<compile_context>
chip_gen: v6e
topology: v6e:2x2x1
jax: 0.10.0
libtpu: 0.0.40
codegen_flags: <defaults>
</compile_context>

<pallas_src>
import functools

import jax
import jax.numpy as jnp
from jax import lax
from jax.experimental import pallas as pl
from jax.experimental.pallas import tpu as pltpu


FC2_PAD = 128  # pad fc2 outputs to a full lane width; slice to action_count outside


def _vmem_spec():
    return pl.BlockSpec(memory_space=pltpu.MemorySpace.VMEM)


# ----------------------------------------------------------------------------
# Pallas kernel: Y = relu(X @ W + b).  X bf16, W bf16, b f32 (1, N).
# Accumulation in f32 (preferred_element_type), bf16 store.
# Whole operands live in VMEM (largest operand here is ~205 KB).
# ----------------------------------------------------------------------------
def _matmul_bias_relu_kernel(x_ref, w_ref, b_ref, o_ref):
    x = x_ref[...].astype(w_ref.dtype)
    acc = jnp.dot(x, w_ref[...], preferred_element_type=jnp.float32)
    acc = jnp.maximum(acc + b_ref[...], 0.0)
    o_ref[...] = acc.astype(o_ref.dtype)


def matmul_bias_relu(x, w, b_2d, *, out_dtype=jnp.bfloat16):
    m, k = x.shape
    k2, n = w.shape
    assert k == k2, (x.shape, w.shape)
    out_bytes = jnp.dtype(out_dtype).itemsize
    bytes_accessed = (m * k * x.dtype.itemsize + k * n * w.dtype.itemsize
                      + n * 4 + m * n * out_bytes)
    return pl.pallas_call(
        _matmul_bias_relu_kernel,
        out_shape=jax.ShapeDtypeStruct((m, n), out_dtype),
        in_specs=[_vmem_spec()] * 3,
        out_specs=_vmem_spec(),
        cost_estimate=pl.CostEstimate(
            flops=2 * m * k * n, transcendentals=0,
            bytes_accessed=bytes_accessed),
    )(x, w, b_2d)


# ----------------------------------------------------------------------------
# Pallas kernel: fused fc1 + ReLU + fc2.  Hidden activation stays in VMEM.
# x (M, 4096) bf16, w1 (4096, 512) bf16, w2 (512, 128) bf16, biases f32.
# ----------------------------------------------------------------------------
def _fc_fused_kernel(x_ref, w1_ref, b1_ref, w2_ref, b2_ref, o_ref):
    x = x_ref[...].astype(w1_ref.dtype)
    h = jnp.dot(x, w1_ref[...], preferred_element_type=jnp.float32)
    h = jnp.maximum(h + b1_ref[...], 0.0)
    o = jnp.dot(h.astype(w2_ref.dtype), w2_ref[...],
                preferred_element_type=jnp.float32)
    o_ref[...] = (o + b2_ref[...]).astype(o_ref.dtype)


def fc_fused(x, w1, b1_2d, w2, b2_2d):
    m, k1 = x.shape
    k1b, hid = w1.shape
    hidb, n = w2.shape
    assert k1 == k1b and hid == hidb, (x.shape, w1.shape, w2.shape)
    flops = 2 * m * k1 * hid + 2 * m * hid * n
    bytes_accessed = (m * k1 * x.dtype.itemsize
                      + k1 * hid * w1.dtype.itemsize + hid * 4
                      + hid * n * w2.dtype.itemsize + n * 4
                      + m * n * 4)
    return pl.pallas_call(
        _fc_fused_kernel,
        out_shape=jax.ShapeDtypeStruct((m, n), jnp.float32),
        in_specs=[_vmem_spec()] * 5,
        out_specs=_vmem_spec(),
        cost_estimate=pl.CostEstimate(
            flops=flops, transcendentals=0, bytes_accessed=bytes_accessed),
    )(x, w1, b1_2d, w2, b2_2d)


# ----------------------------------------------------------------------------
# Conv2d (VALID) + ReLU as one XLA patch-extraction op + Pallas GEMM.
# Patch feature ordering from conv_general_dilated_patches is
# c*(KH*KW) + i*KW + j, matching the PyTorch (Cout, Cin*KH*KW) weight
# flattening used in prepare_params (guarded by the __main__ allclose check).
# ----------------------------------------------------------------------------
def conv2d_relu_pallas(x_nhwc, wmat, b_2d, *, kh, kw, stride):
    n, h, w, cin = x_nhwc.shape
    cout = wmat.shape[1]
    patches = lax.conv_general_dilated_patches(
        x_nhwc, filter_shape=(kh, kw), window_strides=(stride, stride),
        padding="VALID", dimension_numbers=("NHWC", "HWIO", "NHWC"))
    _, oh, ow, k = patches.shape
    assert k == cin * kh * kw == wmat.shape[0], (patches.shape, wmat.shape)
    out = matmul_bias_relu(patches.reshape(n * oh * ow, k), wmat, b_2d)
    return out.reshape(n, oh, ow, cout)


# ----------------------------------------------------------------------------
# One-time parameter packing (outside jit): bf16 GEMM layouts, fc1 rows
# permuted to NHWC flatten order, fc2 zero-padded to 128 lane-dense outputs.
# ----------------------------------------------------------------------------
def prepare_params(params, action_count):
    def conv_mat(w_oihw):  # (Cout, Cin, KH, KW) -> (Cin*KH*KW, Cout) bf16
        cout = w_oihw.shape[0]
        return w_oihw.reshape(cout, -1).T.astype(jnp.bfloat16)

    def row(b):
        return jnp.asarray(b, jnp.float32).reshape(1, -1)

    # conv3 output is (C=64, H=8, W=8) -> 4096, implied by Linear(4096, 512).
    c3, h3, w3 = 64, 8, 8
    hidden = params["wfc1"].shape[0]          # 512

    # (512, 4096 in C,H,W order) -> (H*W*C, 512) rows in NHWC flatten order.
    wfc1 = params["wfc1"].reshape(hidden, c3, h3, w3)
    wfc1 = jnp.transpose(wfc1, (2, 3, 1, 0)).reshape(h3 * w3 * c3, hidden)

    wfc2 = params["wfc2"].T                   # (512, action_count)
    wfc2p = jnp.zeros((hidden, FC2_PAD), jnp.float32).at[:, :action_count].set(wfc2)
    bfc2p = jnp.zeros((FC2_PAD,), jnp.float32).at[:action_count].set(params["bfc2"])

    return {
        "w1m": conv_mat(params["w1"]), "b1": row(params["b1"]),
        "w2m": conv_mat(params["w2"]), "b2": row(params["b2"]),
        "w3m": conv_mat(params["w3"]), "b3": row(params["b3"]),
        "wfc1m": wfc1.astype(jnp.bfloat16), "bfc1": row(params["bfc1"]),
        "wfc2m": wfc2p.astype(jnp.bfloat16), "bfc2": row(bfc2p),
    }


# ----------------------------------------------------------------------------
# Full DQN forward (Pallas path).
# ----------------------------------------------------------------------------
@functools.partial(jax.jit, static_argnames=("action_count",))
def dqn_forward_pallas(state_nchw, prep, *, action_count):
    n, c, h, w = state_nchw.shape
    assert c == 1, "DQN conv stack expects a single input channel"
    # C == 1: NCHW -> NHWC is a pure relabel; reshape avoids a transpose copy.
    x = state_nchw.reshape(n, h, w, 1).astype(jnp.bfloat16)
    x = conv2d_relu_pallas(x, prep["w1m"], prep["b1"], kh=8, kw=8, stride=4)
    x = conv2d_relu_pallas(x, prep["w2m"], prep["b2"], kh=4, kw=4, stride=2)
    x = conv2d_relu_pallas(x, prep["w3m"], prep["b3"], kh=3, kw=3, stride=1)
    x = x.reshape(x.shape[0], -1)    # NHWC flatten; wfc1 rows pre-permuted
    out = fc_fused(x, prep["wfc1m"], prep["bfc1"], prep["wfc2m"], prep["bfc2"])
    return out[:, :action_count]


# ----------------------------------------------------------------------------
# Pure-JAX f32 reference (mirrors the PyTorch module exactly), for validation.
# ----------------------------------------------------------------------------
def dqn_forward_reference(state_nchw, params):
    def conv(x, w, b, stride):
        y = lax.conv_general_dilated(
            x, w, window_strides=(stride, stride), padding="VALID",
            dimension_numbers=("NCHW", "OIHW", "NCHW"))
        return jnp.maximum(y + b[None, :, None, None], 0.0)

    x = conv(state_nchw, params["w1"], params["b1"], 4)
    x = conv(x, params["w2"], params["b2"], 2)
    x = conv(x, params["w3"], params["b3"], 1)
    x = x.reshape(x.shape[0], -1)                                # NCHW flatten
    x = jnp.maximum(x @ params["wfc1"].T + params["bfc1"], 0.0)
    x = x @ params["wfc2"].T + params["bfc2"]
    return x


# ----------------------------------------------------------------------------
# Deterministic parameter init (PyTorch layouts: conv OIHW, linear (out, in)).
# ----------------------------------------------------------------------------
def init_params(key, action_count):
    ks = jax.random.split(key, 10)

    def conv_w(k, cout, cin, kh, kw):
        fan_in = cin * kh * kw
        return jax.random.normal(k, (cout, cin, kh, kw), jnp.float32) * jnp.sqrt(
            2.0 / fan_in)

    def lin_w(k, out_f, in_f):
        return jax.random.normal(k, (out_f, in_f), jnp.float32) * jnp.sqrt(
            2.0 / in_f)

    return {
        "w1": conv_w(ks[0], 32, 1, 8, 8),
        "b1": jax.random.normal(ks[1], (32,), jnp.float32) * 0.01,
        "w2": conv_w(ks[2], 64, 32, 4, 4),
        "b2": jax.random.normal(ks[3], (64,), jnp.float32) * 0.01,
        "w3": conv_w(ks[4], 64, 64, 3, 3),
        "b3": jax.random.normal(ks[5], (64,), jnp.float32) * 0.01,
        "wfc1": lin_w(ks[6], 512, 4096),
        "bfc1": jax.random.normal(ks[7], (512,), jnp.float32) * 0.01,
        "wfc2": lin_w(ks[8], action_count, 512),
        "bfc2": jax.random.normal(ks[9], (action_count,), jnp.float32) * 0.01,
    }


if __name__ == "__main__":
    action_count = 4
    key = jax.random.PRNGKey(0)
    pkey, xkey = jax.random.split(key)

    params = init_params(pkey, action_count)
    prep = jax.tree_util.tree_map(jax.block_until_ready,
                                  prepare_params(params, action_count))

    # Input consistent with Linear(4096, 512): (batch=2, C=1, H=92, W=92).
    state = jax.random.normal(xkey, (2, 1, 92, 92), jnp.float32)

    out = dqn_forward_pallas(state, prep, action_count=action_count)
    out = jax.block_until_ready(out)
    assert out.shape == (2, action_count), out.shape

    # Regression guard: validates both bf16 tolerance and the implicit
    # conv_general_dilated_patches feature ordering assumed by the GEMM packing.
    ref = jax.block_until_ready(dqn_forward_reference(state, params))
    if not jnp.allclose(out, ref, rtol=5e-2, atol=5e-2):
        raise AssertionError(
            f"mismatch: max abs diff = {float(jnp.max(jnp.abs(out - ref)))}")

    print("KERNEL_OK")
</pallas_src>

<mosaic_0001>
module attributes {stable_mosaic.version = 11 : i64} {
  func.func @_matmul_bias_relu_kernel(%arg0: memref<968x64xbf16, #tpu.memory_space<vmem>>, %arg1: memref<64x32xbf16, #tpu.memory_space<vmem>>, %arg2: memref<1x32xf32, #tpu.memory_space<vmem>>, %arg3: memref<968x32xbf16, #tpu.memory_space<vmem>>) attributes {dimension_semantics = [], scalar_prefetch = 0 : i64, scratch_operands = 0 : i64, tpu.core_type = #tpu.core_type<tc>} {
    %c0 = arith.constant 0 : index
    %c0_0 = arith.constant 0 : index
    %0 = vector.load %arg0[%c0, %c0_0] : memref<968x64xbf16, #tpu.memory_space<vmem>>, vector<968x64xbf16>
    %c0_1 = arith.constant 0 : index
    %c0_2 = arith.constant 0 : index
    %1 = vector.load %arg1[%c0_1, %c0_2] : memref<64x32xbf16, #tpu.memory_space<vmem>>, vector<64x32xbf16>
    %cst = arith.constant dense<0.000000e+00> : vector<968x32xf32>
    %2 = tpu.matmul %0, %1, %cst {dimension_numbers = #tpu.dot_dimension_numbers<[1], [0], [0], [1], [0, 0, 1, 1], [], []>} : vector<968x64xbf16>, vector<64x32xbf16>, vector<968x32xf32> -> vector<968x32xf32>
    %c0_3 = arith.constant 0 : index
    %c0_4 = arith.constant 0 : index
    %3 = vector.load %arg2[%c0_3, %c0_4] : memref<1x32xf32, #tpu.memory_space<vmem>>, vector<1x32xf32>
    %4 = vector.broadcast %3 : vector<1x32xf32> to vector<968x32xf32>
    %5 = arith.addf %2, %4 : vector<968x32xf32>
    %cst_5 = arith.constant 0.000000e+00 : f32
    %6 = vector.broadcast %cst_5 : f32 to vector<968x32xf32>
    %7 = arith.maximumf %5, %6 : vector<968x32xf32>
    %8 = arith.truncf %7 : vector<968x32xf32> to vector<968x32xbf16>
    %c0_6 = arith.constant 0 : index
    %c0_7 = arith.constant 0 : index
    %9 = vector.load %arg3[%c0_6, %c0_7] : memref<968x32xbf16, #tpu.memory_space<vmem>>, vector<968x32xbf16>
    tpu.vector_store %arg3[%c0_6, %c0_7], %8 {strides = array<i32>} : memref<968x32xbf16, #tpu.memory_space<vmem>>, vector<968x32xbf16>,
    return
  }
}

module attributes {stable_mosaic.version = 11 : i64} {
  func.func @_matmul_bias_relu_kernel(%arg0: memref<200x512xbf16, #tpu.memory_space<vmem>>, %arg1: memref<512x64xbf16, #tpu.memory_space<vmem>>, %arg2: memref<1x64xf32, #tpu.memory_space<vmem>>, %arg3: memref<200x64xbf16, #tpu.memory_space<vmem>>) attributes {dimension_semantics = [], scalar_prefetch = 0 : i64, scratch_operands = 0 : i64, tpu.core_type = #tpu.core_type<tc>} {
    %c0 = arith.constant 0 : index
    %c0_0 = arith.constant 0 : index
    %0 = vector.load %arg0[%c0, %c0_0] : memref<200x512xbf16, #tpu.memory_space<vmem>>, vector<200x512xbf16>
    %c0_1 = arith.constant 0 : index
    %c0_2 = arith.constant 0 : index
    %1 = vector.load %arg1[%c0_1, %c0_2] : memref<512x64xbf16, #tpu.memory_space<vmem>>, vector<512x64xbf16>
    %cst = arith.constant dense<0.000000e+00> : vector<200x64xf32>
    %2 = tpu.matmul %0, %1, %cst {dimension_numbers = #tpu.dot_dimension_numbers<[1], [0], [0], [1], [0, 0, 1, 1], [], []>} : vector<200x512xbf16>, vector<512x64xbf16>, vector<200x64xf32> -> vector<200x64xf32>
    %c0_3 = arith.constant 0 : index
    %c0_4 = arith.constant 0 : index
    %3 = vector.load %arg2[%c0_3, %c0_4] : memref<1x64xf32, #tpu.memory_space<vmem>>, vector<1x64xf32>
    %4 = vector.broadcast %3 : vector<1x64xf32> to vector<200x64xf32>
    %5 = arith.addf %2, %4 : vector<200x64xf32>
    %cst_5 = arith.constant 0.000000e+00 : f32
    %6 = vector.broadcast %cst_5 : f32 to vector<200x64xf32>
    %7 = arith.maximumf %5, %6 : vector<200x64xf32>
    %8 = arith.truncf %7 : vector<200x64xf32> to vector<200x64xbf16>
    %c0_6 = arith.constant 0 : index
    %c0_7 = arith.constant 0 : index
    %9 = vector.load %arg3[%c0_6, %c0_7] : memref<200x64xbf16, #tpu.memory_space<vmem>>, vector<200x64xbf16>
    tpu.vector_store %arg3[%c0_6, %c0_7], %8 {strides = array<i32>} : memref<200x64xbf16, #tpu.memory_space<vmem>>, vector<200x64xbf16>,
    return
  }
}

module attributes {stable_mosaic.version = 11 : i64} {
  func.func @_matmul_bias_relu_kernel(%arg0: memref<128x576xbf16, #tpu.memory_space<vmem>>, %arg1: memref<576x64xbf16, #tpu.memory_space<vmem>>, %arg2: memref<1x64xf32, #tpu.memory_space<vmem>>, %arg3: memref<128x64xbf16, #tpu.memory_space<vmem>>) attributes {dimension_semantics = [], scalar_prefetch = 0 : i64, scratch_operands = 0 : i64, tpu.core_type = #tpu.core_type<tc>} {
    %c0 = arith.constant 0 : index
    %c0_0 = arith.constant 0 : index
    %0 = vector.load %arg0[%c0, %c0_0] : memref<128x576xbf16, #tpu.memory_space<vmem>>, vector<128x576xbf16>
    %c0_1 = arith.constant 0 : index
    %c0_2 = arith.constant 0 : index
    %1 = vector.load %arg1[%c0_1, %c0_2] : memref<576x64xbf16, #tpu.memory_space<vmem>>, vector<576x64xbf16>
    %cst = arith.constant dense<0.000000e+00> : vector<128x64xf32>
    %2 = tpu.matmul %0, %1, %cst {dimension_numbers = #tpu.dot_dimension_numbers<[1], [0], [0], [1], [0, 0, 1, 1], [], []>} : vector<128x576xbf16>, vector<576x64xbf16>, vector<128x64xf32> -> vector<128x64xf32>
    %c0_3 = arith.constant 0 : index
    %c0_4 = arith.constant 0 : index
    %3 = vector.load %arg2[%c0_3, %c0_4] : memref<1x64xf32, #tpu.memory_space<vmem>>, vector<1x64xf32>
    %4 = vector.broadcast %3 : vector<1x64xf32> to vector<128x64xf32>
    %5 = arith.addf %2, %4 : vector<128x64xf32>
    %cst_5 = arith.constant 0.000000e+00 : f32
    %6 = vector.broadcast %cst_5 : f32 to vector<128x64xf32>
    %7 = arith.maximumf %5, %6 : vector<128x64xf32>
    %8 = arith.truncf %7 : vector<128x64xf32> to vector<128x64xbf16>
    %c0_6 = arith.constant 0 : index
    %c0_7 = arith.constant 0 : index
    %9 = vector.load %arg3[%c0_6, %c0_7] : memref<128x64xbf16, #tpu.memory_space<vmem>>, vector<128x64xbf16>
    tpu.vector_store %arg3[%c0_6, %c0_7], %8 {strides = array<i32>} : memref<128x64xbf16, #tpu.memory_space<vmem>>, vector<128x64xbf16>,
    return
  }
}

module attributes {stable_mosaic.version = 11 : i64} {
  func.func @_fc_fused_kernel(%arg0: memref<2x4096xbf16, #tpu.memory_space<vmem>>, %arg1: memref<4096x512xbf16, #tpu.memory_space<vmem>>, %arg2: memref<1x512xf32, #tpu.memory_space<vmem>>, %arg3: memref<512x128xbf16, #tpu.memory_space<vmem>>, %arg4: memref<1x128xf32, #tpu.memory_space<vmem>>, %arg5: memref<2x128xf32, #tpu.memory_space<vmem>>) attributes {dimension_semantics = [], scalar_prefetch = 0 : i64, scratch_operands = 0 : i64, tpu.core_type = #tpu.core_type<tc>} {
    %c0 = arith.constant 0 : index
    %c0_0 = arith.constant 0 : index
    %0 = vector.load %arg0[%c0, %c0_0] : memref<2x4096xbf16, #tpu.memory_space<vmem>>, vector<2x4096xbf16>
    %c0_1 = arith.constant 0 : index
    %c0_2 = arith.constant 0 : index
    %1 = vector.load %arg1[%c0_1, %c0_2] : memref<4096x512xbf16, #tpu.memory_space<vmem>>, vector<4096x512xbf16>
    %cst = arith.constant dense<0.000000e+00> : vector<2x512xf32>
    %2 = tpu.matmul %0, %1, %cst {dimension_numbers = #tpu.dot_dimension_numbers<[1], [0], [0], [1], [0, 0, 1, 1], [], []>} : vector<2x4096xbf16>, vector<4096x512xbf16>, vector<2x512xf32> -> vector<2x512xf32>
    %c0_3 = arith.constant 0 : index
    %c0_4 = arith.constant 0 : index
    %3 = vector.load %arg2[%c0_3, %c0_4] : memref<1x512xf32, #tpu.memory_space<vmem>>, vector<1x512xf32>
    %4 = vector.broadcast %3 : vector<1x512xf32> to vector<2x512xf32>
    %5 = arith.addf %2, %4 : vector<2x512xf32>
    %cst_5 = arith.constant 0.000000e+00 : f32
    %6 = vector.broadcast %cst_5 : f32 to vector<2x512xf32>
    %7 = arith.maximumf %5, %6 : vector<2x512xf32>
    %8 = arith.truncf %7 : vector<2x512xf32> to vector<2x512xbf16>
    %c0_6 = arith.constant 0 : index
    %c0_7 = arith.constant 0 : index
    %9 = vector.load %arg3[%c0_6, %c0_7] : memref<512x128xbf16, #tpu.memory_space<vmem>>, vector<512x128xbf16>
    %cst_8 = arith.constant dense<0.000000e+00> : vector<2x128xf32>
    %10 = tpu.matmul %8, %9, %cst_8 {dimension_numbers = #tpu.dot_dimension_numbers<[1], [0], [0], [1], [0, 0, 1, 1], [], []>} : vector<2x512xbf16>, vector<512x128xbf16>, vector<2x128xf32> -> vector<2x128xf32>
    %c0_9 = arith.constant 0 : index
    %c0_10 = arith.constant 0 : index
    %11 = vector.load %arg4[%c0_9, %c0_10] : memref<1x128xf32, #tpu.memory_space<vmem>>, vector<1x128xf32>
    %12 = vector.broadcast %11 : vector<1x128xf32> to vector<2x128xf32>
    %13 = arith.addf %10, %12 : vector<2x128xf32>
    %c0_11 = arith.constant 0 : index
    %c0_12 = arith.constant 0 : index
    %14 = vector.load %arg5[%c0_11, %c0_12] : memref<2x128xf32, #tpu.memory_space<vmem>>, vector<2x128xf32>
    tpu.vector_store %arg5[%c0_11, %c0_12], %13 {strides = array<i32>} : memref<2x128xf32, #tpu.memory_space<vmem>>, vector<2x128xf32>,
    return
  }
}

</mosaic_0001>

<bundles_post_ra>
// kernel: dqn_forward_pallas.4
= control target key start
LH: loop header
LB: loop body
LE: loop exit
PB: predicated region body
PF: predicated region fallthrough
CT: control target
= control target key end

     0   :  { %v2676_v0 = vmov 0.0   ;;  %vm2677_vm0 = vmmov 0   ;;  %vm478_vm1 = vcmask 523264   ;;  %vm1788_vm2 = vcmask 257024   ;;  %s3699_s1 = inlined_call_operand.vmem [shape: bf16[64,32], index: 1, kind: input, shape index: {}]   ;;  %s3700_s0 = inlined_call_operand.vmem [shape: bf16[968,64], index: 0, kind: input, shape index: {}]   ;;  %s3701_s2 = inlined_call_operand.vmem [shape: f32[1,32], index: 2, kind: input, shape index: {}]   ;;  %s3702_s3 = inlined_call_operand.vmem [shape: bf16[968,32], index: 3, kind: output, shape index: {}]  }
   0x1   :  { %2348 = vmatprep.subr.bf16.mxu0 %v2676_v0  ;;  %v2610_v1 = vld [vmem:[%s3699_s1 + $0x18] sm:$0xff]   ;;  %2600 = vmatprep.subr.bf16.mxu1 %v2676_v0  ;;  %v2611_v2 = vld [vmem:[%s3699_s1 + $0x10] sm:$0xff]   ;;  %v2612_v3 = vld [vmem:[%s3699_s1 + $0x8] sm:$0xff]  }
   0x2   :  { %2356 = vmatprep.mubr.msk.bf16.mxu0 %vm2677_vm0, %v2676_v0  ;;  %2480 = vmatprep.mubr.msk.bf16.mxu1 %vm2677_vm0, %v2676_v0  ;;  %v2613_v4 = vld [vmem:[%s3699_s1] sm:$0xff]   ;;  %v2615_v6 = vld [vmem:[%s3700_s0 + $0xf8] sm:$0xff]   ;;  %v2616_v7 = vld [vmem:[%s3700_s0 + $0x8] sm:$0xff]  }
   0x3   :  { %2349 = vmatpush3.bf16.msra.mxu0 %v2610_v1  ;;  %2604 = vmatpush3.bf16.msra.mxu1 %v2610_v1  ;;  %v2614_v5 = vld [vmem:[%s3700_s0] sm:$0xff]   ;;  %v2618_v9 = vld [vmem:[%s3700_s0 + $0x10] sm:$0xff]   ;;  %v2619_v10 = vld [vmem:[%s3700_s0 + $0x108] sm:$0xff]  }
   0x4   :  { %2350 = vmatprep.subr.bf16.mxu0 %v2676_v0  ;;  %2601 = vmatprep.subr.bf16.mxu1 %v2676_v0  ;;  %v2617_v8 = vld [vmem:[%s3700_s0 + $0x100] sm:$0xff]   ;;  %v2620_v11 = vld [vmem:[%s3700_s0 + $0x18] sm:$0xff]   ;;  %v2621_v12 = vld [vmem:[%s3700_s0 + $0x110] sm:$0xff]  }
   0x5   :  { %v2622_v13 = vld [vmem:[%s3700_s0 + $0x20] sm:$0xff]   ;;  %v2623_v14 = vld [vmem:[%s3700_s0 + $0x118] sm:$0xff]   ;;  %v2624_v15 = vld [vmem:[%s3700_s0 + $0x28] sm:$0xff]  }
   0x6   :  { %v2625_v16 = vld [vmem:[%s3700_s0 + $0x120] sm:$0xff]   ;;  %v2626_v17 = vld [vmem:[%s3700_s0 + $0x30] sm:$0xff]   ;;  %v2627_v18 = vld [vmem:[%s3700_s0 + $0x128] sm:$0xff]  }
   0x7   :  { %2351 = vmatpush3.bf16.msra.mxu0 %v2611_v2  ;;  %2605 = vmatpush3.bf16.msra.mxu1 %v2611_v2  ;;  %v2628_v19 = vld [vmem:[%s3700_s0 + $0x38] sm:$0xff]   ;;  %v2629_v20 = vld [vmem:[%s3700_s0 + $0x130] sm:$0xff]   ;;  %v2630_v21 = vld [vmem:[%s3700_s0 + $0x40] sm:$0xff]  }
   0x8   :  { %2352 = vmatprep.subr.bf16.mxu0 %v2676_v0  ;;  %2602 = vmatprep.subr.bf16.mxu1 %v2676_v0  ;;  %v2631_v22 = vld [vmem:[%s3700_s0 + $0x138] sm:$0xff]   ;;  %v2632_v23 = vld [vmem:[%s3700_s0 + $0x48] sm:$0xff]   ;;  %v2633_v24 = vld [vmem:[%s3700_s0 + $0x140] sm:$0xff]  }
   0x9   :  { %v2634_v25 = vld [vmem:[%s3700_s0 + $0x50] sm:$0xff]   ;;  %v2635_v26 = vld [vmem:[%s3700_s0 + $0x148] sm:$0xff]   ;;  %v2636_v27 = vld [vmem:[%s3700_s0 + $0x58] sm:$0xff]  }
   0xa   :  { %v2637_v28 = vld [vmem:[%s3700_s0 + $0x150] sm:$0xff]   ;;  %v2638_v29 = vld [vmem:[%s3700_s0 + $0x60] sm:$0xff]   ;;  %v2639_v30 = vld [vmem:[%s3700_s0 + $0x158] sm:$0xff]  }
   0xb   :  { %2353 = vmatpush3.bf16.msra.mxu0 %v2612_v3  ;;  %2606 = vmatpush3.bf16.msra.mxu1 %v2612_v3  ;;  %v2640_v31 = vld [vmem:[%s3700_s0 + $0x68] sm:$0xff]   ;;  %v2641_v32 = vld [vmem:[%s3700_s0 + $0x160] sm:$0xff]   ;;  %v2642_v33 = vld [vmem:[%s3700_s0 + $0x70] sm:$0xff]  }
   0xc   :  { %2354 = vmatprep.subr.bf16.mxu0 %v2676_v0  ;;  %2603 = vmatprep.subr.bf16.mxu1 %v2676_v0  ;;  %v2643_v34 = vld [vmem:[%s3700_s0 + $0x168] sm:$0xff]   ;;  %v2644_v35 = vld [vmem:[%s3700_s0 + $0x78] sm:$0xff]   ;;  %v2645_v36 = vld [vmem:[%s3700_s0 + $0x170] sm:$0xff]  }
   0xd   :  { %v2646_v37 = vld [vmem:[%s3700_s0 + $0x80] sm:$0xff]   ;;  %v2647_v38 = vld [vmem:[%s3700_s0 + $0x178] sm:$0xff]   ;;  %v2648_v39 = vld [vmem:[%s3700_s0 + $0x88] sm:$0xff]  }
   0xe   :  { %v2649_v40 = vld [vmem:[%s3700_s0 + $0x180] sm:$0xff]   ;;  %v2650_v41 = vld [vmem:[%s3700_s0 + $0x90] sm:$0xff]   ;;  %v2651_v42 = vld [vmem:[%s3700_s0 + $0x188] sm:$0xff]  }
   0xf   :  { %2355 = vmatpush3.bf16.msra.mxu0 %v2613_v4  ;;  %2607 = vmatpush3.bf16.msra.mxu1 %v2613_v4  ;;  %v2652_v43 = vld [vmem:[%s3700_s0 + $0x98] sm:$0xff]   ;;  %v2653_v44 = vld [vmem:[%s3700_s0 + $0x190] sm:$0xff]   ;;  %v2654_v45 = vld [vmem:[%s3700_s0 + $0xa0] sm:$0xff]  }
  0x10   :  { %v2655_v46 = vld [vmem:[%s3700_s0 + $0x198] sm:$0xff]   ;;  %v2656_v47 = vld [vmem:[%s3700_s0 + $0xa8] sm:$0xff]   ;;  %v2657_v48 = vld [vmem:[%s3700_s0 + $0x1a0] sm:$0xff]  }
  0x11   :  { %v2658_v49 = vld [vmem:[%s3700_s0 + $0xb0] sm:$0xff]   ;;  %v2659_v50 = vld [vmem:[%s3700_s0 + $0x1a8] sm:$0xff]   ;;  %v2660_v51 = vld [vmem:[%s3700_s0 + $0xb8] sm:$0xff]  }
  0x12   :  { %2357 = vmatmul.mubr.msk.bf16.vlgmr.msra.gmra.mxu0 %vm478_vm1, %v2614_v5  ;;  %2481 = vmatmul.mubr.msk.bf16.vlgmr.msra.gmra.mxu1 %vm478_vm1, %v2615_v6  ;;  %v2661_v52 = vld [vmem:[%s3700_s0 + $0x1b0] sm:$0xff]   ;;  %v2662_v53 = vld [vmem:[%s3700_s0 + $0xc0] sm:$0xff]   ;;  %v2663_v54 = vld [vmem:[%s3700_s0 + $0x1b8] sm:$0xff]  }
  0x13   :  { %2360 = vmatprep.mubr.msk.bf16.mxu0 %vm2677_vm0, %v2676_v0  ;;  %2484 = vmatprep.mubr.msk.bf16.mxu1 %vm2677_vm0, %v2676_v0  ;;  %v3019_v55 = vld [vmem:[%s3701_s2] ss:$0 sm:$0xff]  ;;  %v2664_v2 = vld [vmem:[%s3700_s0 + $0xc8] sm:$0xff]  }
  0x14   :  { %v2665_v4 = vld [vmem:[%s3700_s0 + $0x1c0] sm:$0xff]  }
  0x1a   :  { %2361 = vmatmul.mubr.msk.bf16.gmra.mxu0 %vm478_vm1, %v2616_v7  ;;  %2485 = vmatmul.mubr.msk.bf16.gmra.mxu1 %vm478_vm1, %v2617_v8 }
  0x1b   :  { %2364 = vmatprep.mubr.msk.bf16.mxu0 %vm2677_vm0, %v2676_v0  ;;  %2488 = vmatprep.mubr.msk.bf16.mxu1 %vm2677_vm0, %v2676_v0 }
  0x22   :  { %2365 = vmatmul.mubr.msk.bf16.gmra.mxu0 %vm478_vm1, %v2618_v9  ;;  %2489 = vmatmul.mubr.msk.bf16.gmra.mxu1 %vm478_vm1, %v2619_v10 }
  0x23   :  { %2368 = vmatprep.mubr.msk.bf16.mxu0 %vm2677_vm0, %v2676_v0  ;;  %2492 = vmatprep.mubr.msk.bf16.mxu1 %vm2677_vm0, %v2676_v0 }
  0x2a   :  { %2369 = vmatmul.mubr.msk.bf16.gmra.mxu0 %vm478_vm1, %v2620_v11  ;;  %2493 = vmatmul.mubr.msk.bf16.gmra.mxu1 %vm478_vm1, %v2621_v12 }
  0x2b   :  { %2372 = vmatprep.mubr.msk.bf16.mxu0 %vm2677_vm0, %v2676_v0  ;;  %2496 = vmatprep.mubr.msk.bf16.mxu1 %vm2677_vm0, %v2676_v0 }
  0x32   :  { %2373 = vmatmul.mubr.msk.bf16.gmra.mxu0 %vm478_vm1, %v2622_v13  ;;  %2497 = vmatmul.mubr.msk.bf16.gmra.mxu1 %vm478_vm1, %v2623_v14 }
  0x33   :  { %2376 = vmatprep.mubr.msk.bf16.mxu0 %vm2677_vm0, %v2676_v0  ;;  %2500 = vmatprep.mubr.msk.bf16.mxu1 %vm2677_vm0, %v2676_v0 }
  0x3a   :  { %2377 = vmatmul.mubr.msk.bf16.gmra.mxu0 %vm478_vm1, %v2624_v15  ;;  %2501 = vmatmul.mubr.msk.bf16.gmra.mxu1 %vm478_vm1, %v2625_v16 }
  0x3b   :  { %2380 = vmatprep.mubr.msk.bf16.mxu0 %vm2677_vm0, %v2676_v0  ;;  %2504 = vmatprep.mubr.msk.bf16.mxu1 %vm2677_vm0, %v2676_v0 }
  0x42   :  { %2381 = vmatmul.mubr.msk.bf16.gmra.mxu0 %vm478_vm1, %v2626_v17  ;;  %2505 = vmatmul.mubr.msk.bf16.gmra.mxu1 %vm478_vm1, %v2627_v18 }
  0x43   :  { %2384 = vmatprep.mubr.msk.bf16.mxu0 %vm2677_vm0, %v2676_v0  ;;  %2508 = vmatprep.mubr.msk.bf16.mxu1 %vm2677_vm0, %v2676_v0 }
  0x4a   :  { %2385 = vmatmul.mubr.msk.bf16.gmra.mxu0 %vm478_vm1, %v2628_v19  ;;  %2509 = vmatmul.mubr.msk.bf16.gmra.mxu1 %vm478_vm1, %v2629_v20 }
  0x4b   :  { %2388 = vmatprep.mubr.msk.bf16.mxu0 %vm2677_vm0, %v2676_v0  ;;  %2512 = vmatprep.mubr.msk.bf16.mxu1 %vm2677_vm0, %v2676_v0 }
  0x52   :  { %2389 = vmatmul.mubr.msk.bf16.gmra.mxu0 %vm478_vm1, %v2630_v21  ;;  %2513 = vmatmul.mubr.msk.bf16.gmra.mxu1 %vm478_vm1, %v2631_v22 }
  0x53   :  { %2392 = vmatprep.mubr.msk.bf16.mxu0 %vm2677_vm0, %v2676_v0  ;;  %2516 = vmatprep.mubr.msk.bf16.mxu1 %vm2677_vm0, %v2676_v0 }
  0x5a   :  { %2393 = vmatmul.mubr.msk.bf16.gmra.mxu0 %vm478_vm1, %v2632_v23  ;;  %2517 = vmatmul.mubr.msk.bf16.gmra.mxu1 %vm478_vm1, %v2633_v24  ;;  %v2666_v24 = vld [vmem:[%s3700_s0 + $0xd0] sm:$0xff]  }
  0x5b   :  { %2396 = vmatprep.mubr.msk.bf16.mxu0 %vm2677_vm0, %v2676_v0  ;;  %2520 = vmatprep.mubr.msk.bf16.mxu1 %vm2677_vm0, %v2676_v0 }
  0x62   :  { %2397 = vmatmul.mubr.msk.bf16.gmra.mxu0 %vm478_vm1, %v2634_v25  ;;  %2521 = vmatmul.mubr.msk.bf16.gmra.mxu1 %vm478_vm1, %v2635_v26  ;;  %v2667_v26 = vld [vmem:[%s3700_s0 + $0x1c8] sm:$0xff]  }
  0x63   :  { %2400 = vmatprep.mubr.msk.bf16.mxu0 %vm2677_vm0, %v2676_v0  ;;  %2524 = vmatprep.mubr.msk.bf16.mxu1 %vm2677_vm0, %v2676_v0 }
  0x6a   :  { %2401 = vmatmul.mubr.msk.bf16.gmra.mxu0 %vm478_vm1, %v2636_v27  ;;  %2525 = vmatmul.mubr.msk.bf16.gmra.mxu1 %vm478_vm1, %v2637_v28 }
  0x6b   :  { %2404 = vmatprep.mubr.msk.bf16.mxu0 %vm2677_vm0, %v2676_v0  ;;  %2528 = vmatprep.mubr.msk.bf16.mxu1 %vm2677_vm0, %v2676_v0 }
  0x72   :  { %2405 = vmatmul.mubr.msk.bf16.gmra.mxu0 %vm478_vm1, %v2638_v29  ;;  %2529 = vmatmul.mubr.msk.bf16.gmra.mxu1 %vm478_vm1, %v2639_v30 }
  0x73   :  { %2408 = vmatprep.mubr.msk.bf16.mxu0 %vm2677_vm0, %v2676_v0  ;;  %2532 = vmatprep.mubr.msk.bf16.mxu1 %vm2677_vm0, %v2676_v0 }
  0x7a   :  { %2409 = vmatmul.mubr.msk.bf16.gmra.mxu0 %vm478_vm1, %v2640_v31  ;;  %2533 = vmatmul.mubr.msk.bf16.gmra.mxu1 %vm478_vm1, %v2641_v32 }
  0x7b   :  { %2412 = vmatprep.mubr.msk.bf16.mxu0 %vm2677_vm0, %v2676_v0  ;;  %2536 = vmatprep.mubr.msk.bf16.mxu1 %vm2677_vm0, %v2676_v0 }
  0x82   :  { %2413 = vmatmul.mubr.msk.bf16.gmra.mxu0 %vm478_vm1, %v2642_v33  ;;  %2537 = vmatmul.mubr.msk.bf16.gmra.mxu1 %vm478_vm1, %v2643_v34 }
  0x83   :  { %2416 = vmatprep.mubr.msk.bf16.mxu0 %vm2677_vm0, %v2676_v0  ;;  %2540 = vmatprep.mubr.msk.bf16.mxu1 %vm2677_vm0, %v2676_v0 }
  0x8a   :  { %2417 = vmatmul.mubr.msk.bf16.gmra.mxu0 %vm478_vm1, %v2644_v35  ;;  %2541 = vmatmul.mubr.msk.bf16.gmra.mxu1 %vm478_vm1, %v2645_v36 }
  0x8b   :  { %2420 = vmatprep.mubr.msk.bf16.mxu0 %vm2677_vm0, %v2676_v0  ;;  %2544 = vmatprep.mubr.msk.bf16.mxu1 %vm2677_vm0, %v2676_v0 }
  0x92   :  { %2421 = vmatmul.mubr.msk.bf16.gmra.mxu0 %vm478_vm1, %v2646_v37  ;;  %2545 = vmatmul.mubr.msk.bf16.gmra.mxu1 %vm478_vm1, %v2647_v38 }
  0x93   :  { %2424 = vmatprep.mubr.msk.bf16.mxu0 %vm2677_vm0, %v2676_v0  ;;  %2548 = vmatprep.mubr.msk.bf16.mxu1 %vm2677_vm0, %v2676_v0 }
  0x9a   :  { %2425 = vmatmul.mubr.msk.bf16.gmra.mxu0 %vm478_vm1, %v2648_v39  ;;  %2549 = vmatmul.mubr.msk.bf16.gmra.mxu1 %vm478_vm1, %v2649_v40 }
  0x9b   :  { %2428 = vmatprep.mubr.msk.bf16.mxu0 %vm2677_vm0, %v2676_v0  ;;  %2552 = vmatprep.mubr.msk.bf16.mxu1 %vm2677_vm0, %v2676_v0 }
  0xa2   :  { %2429 = vmatmul.mubr.msk.bf16.gmra.mxu0 %vm478_vm1, %v2650_v41  ;;  %2553 = vmatmul.mubr.msk.bf16.gmra.mxu1 %vm478_vm1, %v2651_v42 }
  0xa3   :  { %2432 = vmatprep.mubr.msk.bf16.mxu0 %vm2677_vm0, %v2676_v0  ;;  %2556 = vmatprep.mubr.msk.bf16.mxu1 %vm2677_vm0, %v2676_v0 }
  0xaa   :  { %2433 = vmatmul.mubr.msk.bf16.gmra.mxu0 %vm478_vm1, %v2652_v43  ;;  %2557 = vmatmul.mubr.msk.bf16.gmra.mxu1 %vm478_vm1, %v2653_v44 }
  0xab   :  { %2436 = vmatprep.mubr.msk.bf16.mxu0 %vm2677_vm0, %v2676_v0  ;;  %2560 = vmatprep.mubr.msk.bf16.mxu1 %vm2677_vm0, %v2676_v0 }
  0xb2   :  { %2437 = vmatmul.mubr.msk.bf16.gmra.mxu0 %vm478_vm1, %v2654_v45  ;;  %2561 = vmatmul.mubr.msk.bf16.gmra.mxu1 %vm478_vm1, %v2655_v46  ;;  %v2668_v46 = vld [vmem:[%s3700_s0 + $0xd8] sm:$0xff]  }
  0xb3   :  { %2440 = vmatprep.mubr.msk.bf16.mxu0 %vm2677_vm0, %v2676_v0  ;;  %2564 = vmatprep.mubr.msk.bf16.mxu1 %vm2677_vm0, %v2676_v0 }
  0xba   :  { %2441 = vmatmul.mubr.msk.bf16.gmra.mxu0 %vm478_vm1, %v2656_v47  ;;  %2565 = vmatmul.mubr.msk.bf16.gmra.mxu1 %vm478_vm1, %v2657_v48  ;;  %v2669_v48 = vld [vmem:[%s3700_s0 + $0x1d0] sm:$0xff]  }
  0xbb   :  { %2444 = vmatprep.mubr.msk.bf16.mxu0 %vm2677_vm0, %v2676_v0  ;;  %2568 = vmatprep.mubr.msk.bf16.mxu1 %vm2677_vm0, %v2676_v0 }
  0xc2   :  { %2445 = vmatmul.mubr.msk.bf16.gmra.mxu0 %vm478_vm1, %v2658_v49  ;;  %2569 = vmatmul.mubr.msk.bf16.gmra.mxu1 %vm478_vm1, %v2659_v50 }
  0xc3   :  { %2448 = vmatprep.mubr.msk.bf16.mxu0 %vm2677_vm0, %v2676_v0  ;;  %2572 = vmatprep.mubr.msk.bf16.mxu1 %vm2677_vm0, %v2676_v0 }
  0xca   :  { %2449 = vmatmul.mubr.msk.bf16.gmra.mxu0 %vm478_vm1, %v2660_v51  ;;  %2573 = vmatmul.mubr.msk.bf16.gmra.mxu1 %vm478_vm1, %v2661_v52 }
  0xcb   :  { %2452 = vmatprep.mubr.msk.bf16.mxu0 %vm2677_vm0, %v2676_v0  ;;  %2576 = vmatprep.mubr.msk.bf16.mxu1 %vm2677_vm0, %v2676_v0 }
  0xd2   :  { %v696_v56 = vpop.f32.mrf.mxu0  ;;  %2453 = vmatmul.mubr.msk.bf16.gmra.mxu0 %vm478_vm1, %v2662_v53  ;;  %v944_v57 = vpop.f32.mrf.mxu1  ;;  %2577 = vmatmul.mubr.msk.bf16.gmra.mxu1 %vm478_vm1, %v2663_v54 }
  0xd3   :  { %v697_v58 = vadd.f32 %v3019_v55, %v696_v56  ;;  %v945_v59 = vadd.f32 %v3019_v55, %v944_v57  ;;  %2456 = vmatprep.mubr.msk.bf16.mxu0 %vm2677_vm0, %v2676_v0  ;;  %2580 = vmatprep.mubr.msk.bf16.mxu1 %vm2677_vm0, %v2676_v0 }
  0xd4   :  { %v2358_v60 = vpop.f32.mrf.mxu0  ;;  %v2482_v61 = vpop.f32.mrf.mxu1 }
  0xd5   :  { %v1182_v62 = vmax.f32 %v697_v58, 0.0  ;;  %v1244_v63 = vmax.f32 %v945_v59, 0.0 }
  0xd6   :  { %v699_v1 = vpop.f32.mrf.mxu0  ;;  %v947_v3 = vpop.f32.mrf.mxu1 }
  0xd7   :  { %v2162_v5 = vpack.c.bf16 %v1182_v62, %v1182_v62  ;;  %v700_v6 = vadd.f32 %v3019_v55, %v699_v1  ;;  %v2224_v7 = vpack.c.bf16 %v1244_v63, %v1244_v63  ;;  %v948_v8 = vadd.f32 %v3019_v55, %v947_v3 }
  0xd8   :  { %v2359_v9 = vpop.f32.mrf.mxu0  ;;  %v2483_v10 = vpop.f32.mrf.mxu1 }
  0xd9   :  { %1789 = vst.msk [vmem:[%s3702_s3] sm:$0xf] %vm1788_vm2, %v2162_v5  ;;  %v1183_v11 = vmax.f32 %v700_v6, 0.0  ;;  %1851 = vst.msk [vmem:[%s3702_s3 + $0xf8] sm:$0xf] %vm1788_vm2, %v2224_v7  ;;  %v1245_v12 = vmax.f32 %v948_v8, 0.0 }
  0xda   :  { %v704_v13 = vpop.f32.mrf.mxu0  ;;  %2457 = vmatmul.mubr.msk.bf16.gmra.mxu0 %vm478_vm1, %v2664_v2  ;;  %v952_v14 = vpop.f32.mrf.mxu1  ;;  %2581 = vmatmul.mubr.msk.bf16.gmra.mxu1 %vm478_vm1, %v2665_v4  ;;  %v2670_v6 = vld [vmem:[%s3700_s0 + $0xe0] sm:$0xff]   ;;  %v2671_v8 = vld [vmem:[%s3700_s0 + $0x1d8] sm:$0xff]  }
  0xdb   :  { %v2163_v15 = vpack.c.bf16 %v1183_v11, %v1183_v11  ;;  %v705_v16 = vadd.f32 %v3019_v55, %v704_v13  ;;  %v2225_v17 = vpack.c.bf16 %v1245_v12, %v1245_v12  ;;  %v953_v18 = vadd.f32 %v3019_v55, %v952_v14  ;;  %2460 = vmatprep.mubr.msk.bf16.mxu0 %vm2677_vm0, %v2676_v0 }
  0xdc   :  { %v2362_v19 = vpop.f32.mrf.mxu0  ;;  %v2486_v20 = vpop.f32.mrf.mxu1  ;;  %2584 = vmatprep.mubr.msk.bf16.mxu1 %vm2677_vm0, %v2676_v0 }
  0xdd   :  { %1790 = vst.msk [vmem:[%s3702_s3 + $0x4] sm:$0xf] %vm1788_vm2, %v2163_v15  ;;  %v1184_v21 = vmax.f32 %v705_v16, 0.0  ;;  %1852 = vst.msk [vmem:[%s3702_s3 + $0xfc] sm:$0xf] %vm1788_vm2, %v2225_v17  ;;  %v1246_v22 = vmax.f32 %v953_v18, 0.0 }
  0xde   :  { %v707_v23 = vpop.f32.mrf.mxu0  ;;  %v955_v25 = vpop.f32.mrf.mxu1 }
  0xdf   :  { %v2164_v27 = vpack.c.bf16 %v1184_v21, %v1184_v21  ;;  %v708_v28 = vadd.f32 %v3019_v55, %v707_v23  ;;  %v2226_v29 = vpack.c.bf16 %v1246_v22, %v1246_v22  ;;  %v956_v30 = vadd.f32 %v3019_v55, %v955_v25 }
  0xe0   :  { %v2363_v31 = vpop.f32.mrf.mxu0  ;;  %v2487_v32 = vpop.f32.mrf.mxu1 }
  0xe1   :  { %1791 = vst.msk [vmem:[%s3702_s3 + $0x8] sm:$0xf] %vm1788_vm2, %v2164_v27  ;;  %v1185_v33 = vmax.f32 %v708_v28, 0.0  ;;  %1853 = vst.msk [vmem:[%s3702_s3 + $0x100] sm:$0xf] %vm1788_vm2, %v2226_v29  ;;  %v1247_v34 = vmax.f32 %v956_v30, 0.0 }
  0xe2   :  { %v712_v35 = vpop.f32.mrf.mxu0  ;;  %2461 = vmatmul.mubr.msk.bf16.gmra.mxu0 %vm478_vm1, %v2666_v24  ;;  %v960_v36 = vpop.f32.mrf.mxu1  ;;  %2585 = vmatmul.mubr.msk.bf16.gmra.mxu1 %vm478_vm1, %v2667_v26  ;;  %v2672_v28 = vld [vmem:[%s3700_s0 + $0xe8] sm:$0xff]   ;;  %v2673_v30 = vld [vmem:[%s3700_s0 + $0x1e0] ss:$0 sps:$4 sm:$0xff]  }
  0xe3   :  { %v2165_v37 = vpack.c.bf16 %v1185_v33, %v1185_v33  ;;  %v713_v38 = vadd.f32 %v3019_v55, %v712_v35  ;;  %v2227_v39 = vpack.c.bf16 %v1247_v34, %v1247_v34  ;;  %v961_v40 = vadd.f32 %v3019_v55, %v960_v36  ;;  %2464 = vmatprep.mubr.msk.bf16.mxu0 %vm2677_vm0, %v2676_v0 }
  0xe4   :  { %v2366_v41 = vpop.f32.mrf.mxu0  ;;  %v2490_v42 = vpop.f32.mrf.mxu1  ;;  %2588 = vmatprep.mubr.msk.bf16.mxu1 %vm2677_vm0, %v2676_v0 }
  0xe5   :  { %1792 = vst.msk [vmem:[%s3702_s3 + $0xc] sm:$0xf] %vm1788_vm2, %v2165_v37  ;;  %v1186_v43 = vmax.f32 %v713_v38, 0.0  ;;  %1854 = vst.msk [vmem:[%s3702_s3 + $0x104] sm:$0xf] %vm1788_vm2, %v2227_v39  ;;  %v1248_v44 = vmax.f32 %v961_v40, 0.0 }
  0xe6   :  { %v715_v45 = vpop.f32.mrf.mxu0  ;;  %v963_v47 = vpop.f32.mrf.mxu1 }
  0xe7   :  { %v2166_v49 = vpack.c.bf16 %v1186_v43, %v1186_v43  ;;  %v716_v50 = vadd.f32 %v3019_v55, %v715_v45  ;;  %v2228_v51 = vpack.c.bf16 %v1248_v44, %v1248_v44  ;;  %v964_v52 = vadd.f32 %v3019_v55, %v963_v47 }
  0xe8   :  { %v2367_v53 = vpop.f32.mrf.mxu0  ;;  %v2491_v54 = vpop.f32.mrf.mxu1 }
  0xe9   :  { %1793 = vst.msk [vmem:[%s3702_s3 + $0x10] sm:$0xf] %vm1788_vm2, %v2166_v49  ;;  %v1187_v56 = vmax.f32 %v716_v50, 0.0  ;;  %1855 = vst.msk [vmem:[%s3702_s3 + $0x108] sm:$0xf] %vm1788_vm2, %v2228_v51  ;;  %v1249_v57 = vmax.f32 %v964_v52, 0.0 }
  0xea   :  { %v720_v58 = vpop.f32.mrf.mxu0  ;;  %2465 = vmatmul.mubr.msk.bf16.gmra.mxu0 %vm478_vm1, %v2668_v46  ;;  %v968_v59 = vpop.f32.mrf.mxu1  ;;  %2589 = vmatmul.mubr.msk.bf16.gmra.mxu1 %vm478_vm1, %v2669_v48  ;;  %v2674_v50 = vld [vmem:[%s3700_s0 + $0xf0] sm:$0xff]  }
  0xeb   :  { %v2167_v60 = vpack.c.bf16 %v1187_v56, %v1187_v56  ;;  %v721_v61 = vadd.f32 %v3019_v55, %v720_v58  ;;  %v2229_v62 = vpack.c.bf16 %v1249_v57, %v1249_v57  ;;  %v969_v63 = vadd.f32 %v3019_v55, %v968_v59  ;;  %2468 = vmatprep.mubr.msk.bf16.mxu0 %vm2677_vm0, %v2676_v0 }
  0xec   :  { %v2370_v1 = vpop.f32.mrf.mxu0  ;;  %v2494_v2 = vpop.f32.mrf.mxu1  ;;  %2592 = vmatprep.mubr.msk.bf16.mxu1 %vm2677_vm0, %v2676_v0 }
  0xed   :  { %1794 = vst.msk [vmem:[%s3702_s3 + $0x14] sm:$0xf] %vm1788_vm2, %v2167_v60  ;;  %v1188_v3 = vmax.f32 %v721_v61, 0.0  ;;  %1856 = vst.msk [vmem:[%s3702_s3 + $0x10c] sm:$0xf] %vm1788_vm2, %v2229_v62  ;;  %v1250_v4 = vmax.f32 %v969_v63, 0.0 }
  0xee   :  { %v723_v5 = vpop.f32.mrf.mxu0  ;;  %v971_v7 = vpop.f32.mrf.mxu1 }
  0xef   :  { %v2168_v9 = vpack.c.bf16 %v1188_v3, %v1188_v3  ;;  %v724_v10 = vadd.f32 %v3019_v55, %v723_v5  ;;  %v2230_v11 = vpack.c.bf16 %v1250_v4, %v1250_v4  ;;  %v972_v12 = vadd.f32 %v3019_v55, %v971_v7 }
  0xf0   :  { %v2371_v13 = vpop.f32.mrf.mxu0  ;;  %v2495_v14 = vpop.f32.mrf.mxu1 }
  0xf1   :  { %1795 = vst.msk [vmem:[%s3702_s3 + $0x18] sm:$0xf] %vm1788_vm2, %v2168_v9  ;;  %v1189_v15 = vmax.f32 %v724_v10, 0.0  ;;  %1857 = vst.msk [vmem:[%s3702_s3 + $0x110] sm:$0xf] %vm1788_vm2, %v2230_v11  ;;  %v1251_v16 = vmax.f32 %v972_v12, 0.0 }
  0xf2   :  { %v728_v17 = vpop.f32.mrf.mxu0  ;;  %2469 = vmatmul.mubr.msk.bf16.gmra.mxu0 %vm478_vm1, %v2670_v6  ;;  %v976_v18 = vpop.f32.mrf.mxu1  ;;  %2593 = vmatmul.mubr.msk.bf16.gmra.mxu1 %vm478_vm1, %v2671_v8 }
  0xf3   :  { %v2169_v19 = vpack.c.bf16 %v1189_v15, %v1189_v15  ;;  %v729_v20 = vadd.f32 %v3019_v55, %v728_v17  ;;  %v2231_v21 = vpack.c.bf16 %v1251_v16, %v1251_v16  ;;  %v977_v22 = vadd.f32 %v3019_v55, %v976_v18  ;;  %2472 = vmatprep.mubr.msk.bf16.mxu0 %vm2677_vm0, %v2676_v0 }
  0xf4   :  { %v2374_v23 = vpop.f32.mrf.mxu0  ;;  %v2498_v24 = vpop.f32.mrf.mxu1  ;;  %2596 = vmatprep.mubr.msk.bf16.mxu1 %vm2677_vm0, %v2676_v0 }
  0xf5   :  { %1796 = vst.msk [vmem:[%s3702_s3 + $0x1c] sm:$0xf] %vm1788_vm2, %v2169_v19  ;;  %v1190_v25 = vmax.f32 %v729_v20, 0.0  ;;  %1858 = vst.msk [vmem:[%s3702_s3 + $0x114] sm:$0xf] %vm1788_vm2, %v2231_v21  ;;  %v1252_v26 = vmax.f32 %v977_v22, 0.0 }
  0xf6   :  { %v731_v27 = vpop.f32.mrf.mxu0  ;;  %v979_v29 = vpop.f32.mrf.mxu1 }
  0xf7   :  { %v2170_v31 = vpack.c.bf16 %v1190_v25, %v1190_v25  ;;  %v732_v32 = vadd.f32 %v3019_v55, %v731_v27  ;;  %v2232_v33 = vpack.c.bf16 %v1252_v26, %v1252_v26  ;;  %v980_v34 = vadd.f32 %v3019_v55, %v979_v29 }
  0xf8   :  { %v2375_v35 = vpop.f32.mrf.mxu0  ;;  %v2499_v36 = vpop.f32.mrf.mxu1 }
  0xf9   :  { %1797 = vst.msk [vmem:[%s3702_s3 + $0x20] sm:$0xf] %vm1788_vm2, %v2170_v31  ;;  %v1191_v37 = vmax.f32 %v732_v32, 0.0  ;;  %1859 = vst.msk [vmem:[%s3702_s3 + $0x118] sm:$0xf] %vm1788_vm2, %v2232_v33  ;;  %v1253_v38 = vmax.f32 %v980_v34, 0.0 }
  0xfa   :  { %v736_v39 = vpop.f32.mrf.mxu0  ;;  %2473 = vmatmul.mubr.msk.bf16.gmra.mxu0 %vm478_vm1, %v2672_v28  ;;  %v984_v40 = vpop.f32.mrf.mxu1  ;;  %2597 = vmatmul.mubr.msk.bf16.gmra.mxu1 %vm478_vm1, %v2673_v30 }
  0xfb   :  { %v2171_v41 = vpack.c.bf16 %v1191_v37, %v1191_v37  ;;  %v737_v42 = vadd.f32 %v3019_v55, %v736_v39  ;;  %v2233_v43 = vpack.c.bf16 %v1253_v38, %v1253_v38  ;;  %v985_v44 = vadd.f32 %v3019_v55, %v984_v40  ;;  %2476 = vmatprep.mubr.msk.bf16.mxu0 %vm2677_vm0, %v2676_v0 }
  0xfc   :  { %v2378_v45 = vpop.f32.mrf.mxu0  ;;  %v2502_v46 = vpop.f32.mrf.mxu1 }
  0xfd   :  { %1798 = vst.msk [vmem:[%s3702_s3 + $0x24] sm:$0xf] %vm1788_vm2, %v2171_v41  ;;  %v1192_v47 = vmax.f32 %v737_v42, 0.0  ;;  %1860 = vst.msk [vmem:[%s3702_s3 + $0x11c] sm:$0xf] %vm1788_vm2, %v2233_v43  ;;  %v1254_v48 = vmax.f32 %v985_v44, 0.0 }
  0xfe   :  { %v739_v49 = vpop.f32.mrf.mxu0  ;;  %v987_v0 = vpop.f32.mrf.mxu1 }
  0xff   :  { %v2172_v51 = vpack.c.bf16 %v1192_v47, %v1192_v47  ;;  %v740_v52 = vadd.f32 %v3019_v55, %v739_v49  ;;  %v2234_v53 = vpack.c.bf16 %v1254_v48, %v1254_v48  ;;  %v988_v54 = vadd.f32 %v3019_v55, %v987_v0 }
 0x100   :  { %v2379_v56 = vpop.f32.mrf.mxu0  ;;  %v2503_v57 = vpop.f32.mrf.mxu1 }
 0x101   :  { %1799 = vst.msk [vmem:[%s3702_s3 + $0x28] sm:$0xf] %vm1788_vm2, %v2172_v51  ;;  %v1193_v58 = vmax.f32 %v740_v52, 0.0  ;;  %1861 = vst.msk [vmem:[%s3702_s3 + $0x120] sm:$0xf] %vm1788_vm2, %v2234_v53  ;;  %v1255_v59 = vmax.f32 %v988_v54, 0.0 }
 0x102   :  { %v744_v60 = vpop.f32.mrf.mxu0  ;;  %2477 = vmatmul.mubr.msk.bf16.gmra.mxu0 %vm478_vm1, %v2674_v50  ;;  %v992_v61 = vpop.f32.mrf.mxu1 }
 0x103   :  { %v2173_v62 = vpack.c.bf16 %v1193_v58, %v1193_v58  ;;  %v745_v63 = vadd.f32 %v3019_v55, %v744_v60  ;;  %v2235_v1 = vpack.c.bf16 %v1255_v59, %v1255_v59  ;;  %v993_v2 = vadd.f32 %v3019_v55, %v992_v61 }
 0x104   :  { %v2382_v3 = vpop.f32.mrf.mxu0  ;;  %v2506_v4 = vpop.f32.mrf.mxu1 }
 0x105   :  { %1800 = vst.msk [vmem:[%s3702_s3 + $0x2c] sm:$0xf] %vm1788_vm2, %v2173_v62  ;;  %v1194_v5 = vmax.f32 %v745_v63, 0.0  ;;  %1862 = vst.msk [vmem:[%s3702_s3 + $0x124] sm:$0xf] %vm1788_vm2, %v2235_v1  ;;  %v1256_v6 = vmax.f32 %v993_v2, 0.0 }
 0x106   :  { %v747_v7 = vpop.f32.mrf.mxu0  ;;  %v995_v8 = vpop.f32.mrf.mxu1 }
 0x107   :  { %v2174_v9 = vpack.c.bf16 %v1194_v5, %v1194_v5  ;;  %v748_v10 = vadd.f32 %v3019_v55, %v747_v7  ;;  %v2236_v11 = vpack.c.bf16 %v1256_v6, %v1256_v6  ;;  %v996_v12 = vadd.f32 %v3019_v55, %v995_v8 }
 0x108   :  { %v2383_v13 = vpop.f32.mrf.mxu0  ;;  %v2507_v14 = vpop.f32.mrf.mxu1 }
 0x109   :  { %1801 = vst.msk [vmem:[%s3702_s3 + $0x30] sm:$0xf] %vm1788_vm2, %v2174_v9  ;;  %v1195_v15 = vmax.f32 %v748_v10, 0.0  ;;  %1863 = vst.msk [vmem:[%s3702_s3 + $0x128] sm:$0xf] %vm1788_vm2, %v2236_v11  ;;  %v1257_v16 = vmax.f32 %v996_v12, 0.0 }
 0x10a   :  { %v752_v17 = vpop.f32.mrf.mxu0  ;;  %v1000_v18 = vpop.f32.mrf.mxu1 }
 0x10b   :  { %v2175_v19 = vpack.c.bf16 %v1195_v15, %v1195_v15  ;;  %v753_v20 = vadd.f32 %v3019_v55, %v752_v17  ;;  %v2237_v21 = vpack.c.bf16 %v1257_v16, %v1257_v16  ;;  %v1001_v22 = vadd.f32 %v3019_v55, %v1000_v18 }
 0x10c   :  { %v2386_v23 = vpop.f32.mrf.mxu0  ;;  %v2510_v24 = vpop.f32.mrf.mxu1 }
 0x10d   :  { %1802 = vst.msk [vmem:[%s3702_s3 + $0x34] sm:$0xf] %vm1788_vm2, %v2175_v19  ;;  %v1196_v25 = vmax.f32 %v753_v20, 0.0  ;;  %1864 = vst.msk [vmem:[%s3702_s3 + $0x12c] sm:$0xf] %vm1788_vm2, %v2237_v21  ;;  %v1258_v26 = vmax.f32 %v1001_v22, 0.0 }
 0x10e   :  { %v755_v27 = vpop.f32.mrf.mxu0  ;;  %v1003_v28 = vpop.f32.mrf.mxu1 }
 0x10f   :  { %v2176_v29 = vpack.c.bf16 %v1196_v25, %v1196_v25  ;;  %v756_v30 = vadd.f32 %v3019_v55, %v755_v27  ;;  %v2238_v31 = vpack.c.bf16 %v1258_v26, %v1258_v26  ;;  %v1004_v32 = vadd.f32 %v3019_v55, %v1003_v28 }
 0x110   :  { %v2387_v33 = vpop.f32.mrf.mxu0  ;;  %v2511_v34 = vpop.f32.mrf.mxu1 }
 0x111   :  { %1803 = vst.msk [vmem:[%s3702_s3 + $0x38] sm:$0xf] %vm1788_vm2, %v2176_v29  ;;  %v1197_v35 = vmax.f32 %v756_v30, 0.0  ;;  %1865 = vst.msk [vmem:[%s3702_s3 + $0x130] sm:$0xf] %vm1788_vm2, %v2238_v31  ;;  %v1259_v36 = vmax.f32 %v1004_v32, 0.0 }
 0x112   :  { %v760_v37 = vpop.f32.mrf.mxu0  ;;  %v1008_v38 = vpop.f32.mrf.mxu1 }
 0x113   :  { %v2177_v39 = vpack.c.bf16 %v1197_v35, %v1197_v35  ;;  %v761_v40 = vadd.f32 %v3019_v55, %v760_v37  ;;  %v2239_v41 = vpack.c.bf16 %v1259_v36, %v1259_v36  ;;  %v1009_v42 = vadd.f32 %v3019_v55, %v1008_v38 }
 0x114   :  { %v2390_v43 = vpop.f32.mrf.mxu0  ;;  %v2514_v44 = vpop.f32.mrf.mxu1 }
 0x115   :  { %1804 = vst.msk [vmem:[%s3702_s3 + $0x3c] sm:$0xf] %vm1788_vm2, %v2177_v39  ;;  %v1198_v45 = vmax.f32 %v761_v40, 0.0  ;;  %1866 = vst.msk [vmem:[%s3702_s3 + $0x134] sm:$0xf] %vm1788_vm2, %v2239_v41  ;;  %v1260_v46 = vmax.f32 %v1009_v42, 0.0 }
 0x116   :  { %v763_v47 = vpop.f32.mrf.mxu0  ;;  %v1011_v48 = vpop.f32.mrf.mxu1 }
 0x117   :  { %v2178_v49 = vpack.c.bf16 %v1198_v45, %v1198_v45  ;;  %v764_v50 = vadd.f32 %v3019_v55, %v763_v47  ;;  %v2240_v0 = vpack.c.bf16 %v1260_v46, %v1260_v46  ;;  %v1012_v51 = vadd.f32 %v3019_v55, %v1011_v48 }
 0x118   :  { %v2391_v52 = vpop.f32.mrf.mxu0  ;;  %v2515_v53 = vpop.f32.mrf.mxu1 }
 0x119   :  { %1805 = vst.msk [vmem:[%s3702_s3 + $0x40] sm:$0xf] %vm1788_vm2, %v2178_v49  ;;  %v1199_v54 = vmax.f32 %v764_v50, 0.0  ;;  %1867 = vst.msk [vmem:[%s3702_s3 + $0x138] sm:$0xf] %vm1788_vm2, %v2240_v0  ;;  %v1261_v56 = vmax.f32 %v1012_v51, 0.0 }
 0x11a   :  { %v768_v57 = vpop.f32.mrf.mxu0  ;;  %v1016_v58 = vpop.f32.mrf.mxu1 }
 0x11b   :  { %v2179_v59 = vpack.c.bf16 %v1199_v54, %v1199_v54  ;;  %v769_v60 = vadd.f32 %v3019_v55, %v768_v57  ;;  %v2241_v61 = vpack.c.bf16 %v1261_v56, %v1261_v56  ;;  %v1017_v62 = vadd.f32 %v3019_v55, %v1016_v58 }
 0x11c   :  { %v2394_v63 = vpop.f32.mrf.mxu0  ;;  %v2518_v1 = vpop.f32.mrf.mxu1 }
 0x11d   :  { %1806 = vst.msk [vmem:[%s3702_s3 + $0x44] sm:$0xf] %vm1788_vm2, %v2179_v59  ;;  %v1200_v2 = vmax.f32 %v769_v60, 0.0  ;;  %1868 = vst.msk [vmem:[%s3702_s3 + $0x13c] sm:$0xf] %vm1788_vm2, %v2241_v61  ;;  %v1262_v3 = vmax.f32 %v1017_v62, 0.0 }
 0x11e   :  { %v771_v4 = vpop.f32.mrf.mxu0  ;;  %v1019_v5 = vpop.f32.mrf.mxu1 }
 0x11f   :  { %v2180_v6 = vpack.c.bf16 %v1200_v2, %v1200_v2  ;;  %v772_v7 = vadd.f32 %v3019_v55, %v771_v4  ;;  %v2242_v8 = vpack.c.bf16 %v1262_v3, %v1262_v3  ;;  %v1020_v9 = vadd.f32 %v3019_v55, %v1019_v5 }
 0x120   :  { %v2395_v10 = vpop.f32.mrf.mxu0  ;;  %v2519_v11 = vpop.f32.mrf.mxu1 }
 0x121   :  { %1807 = vst.msk [vmem:[%s3702_s3 + $0x48] sm:$0xf] %vm1788_vm2, %v2180_v6  ;;  %v1201_v12 = vmax.f32 %v772_v7, 0.0  ;;  %1869 = vst.msk [vmem:[%s3702_s3 + $0x140] sm:$0xf] %vm1788_vm2, %v2242_v8  ;;  %v1263_v13 = vmax.f32 %v1020_v9, 0.0 }
 0x122   :  { %v776_v14 = vpop.f32.mrf.mxu0  ;;  %v1024_v15 = vpop.f32.mrf.mxu1 }
 0x123   :  { %v2181_v16 = vpack.c.bf16 %v1201_v12, %v1201_v12  ;;  %v777_v17 = vadd.f32 %v3019_v55, %v776_v14  ;;  %v2243_v18 = vpack.c.bf16 %v1263_v13, %v1263_v13  ;;  %v1025_v19 = vadd.f32 %v3019_v55, %v1024_v15 }
 0x124   :  { %v2398_v20 = vpop.f32.mrf.mxu0  ;;  %v2522_v21 = vpop.f32.mrf.mxu1 }
 0x125   :  { %1808 = vst.msk [vmem:[%s3702_s3 + $0x4c] sm:$0xf] %vm1788_vm2, %v2181_v16  ;;  %v1202_v22 = vmax.f32 %v777_v17, 0.0  ;;  %1870 = vst.msk [vmem:[%s3702_s3 + $0x144] sm:$0xf] %vm1788_vm2, %v2243_v18  ;;  %v1264_v23 = vmax.f32 %v1025_v19, 0.0 }
 0x126   :  { %v779_v24 = vpop.f32.mrf.mxu0  ;;  %v1027_v25 = vpop.f32.mrf.mxu1 }
 0x127   :  { %v2182_v26 = vpack.c.bf16 %v1202_v22, %v1202_v22  ;;  %v780_v27 = vadd.f32 %v3019_v55, %v779_v24  ;;  %v2244_v28 = vpack.c.bf16 %v1264_v23, %v1264_v23  ;;  %v1028_v29 = vadd.f32 %v3019_v55, %v1027_v25 }
 0x128   :  { %v2399_v30 = vpop.f32.mrf.mxu0  ;;  %v2523_v31 = vpop.f32.mrf.mxu1 }
 0x129   :  { %1809 = vst.msk [vmem:[%s3702_s3 + $0x50] sm:$0xf] %vm1788_vm2, %v2182_v26  ;;  %v1203_v32 = vmax.f32 %v780_v27, 0.0  ;;  %1871 = vst.msk [vmem:[%s3702_s3 + $0x148] sm:$0xf] %vm1788_vm2, %v2244_v28  ;;  %v1265_v33 = vmax.f32 %v1028_v29, 0.0 }
 0x12a   :  { %v784_v34 = vpop.f32.mrf.mxu0  ;;  %v1032_v35 = vpop.f32.mrf.mxu1 }
 0x12b   :  { %v2183_v36 = vpack.c.bf16 %v1203_v32, %v1203_v32  ;;  %v785_v37 = vadd.f32 %v3019_v55, %v784_v34  ;;  %v2245_v38 = vpack.c.bf16 %v1265_v33, %v1265_v33  ;;  %v1033_v39 = vadd.f32 %v3019_v55, %v1032_v35 }
 0x12c   :  { %v2402_v40 = vpop.f32.mrf.mxu0  ;;  %v2526_v41 = vpop.f32.mrf.mxu1 }
 0x12d   :  { %1810 = vst.msk [vmem:[%s3702_s3 + $0x54] sm:$0xf] %vm1788_vm2, %v2183_v36  ;;  %v1204_v42 = vmax.f32 %v785_v37, 0.0  ;;  %1872 = vst.msk [vmem:[%s3702_s3 + $0x14c] sm:$0xf] %vm1788_vm2, %v2245_v38  ;;  %v1266_v43 = vmax.f32 %v1033_v39, 0.0 }
 0x12e   :  { %v787_v44 = vpop.f32.mrf.mxu0  ;;  %v1035_v45 = vpop.f32.mrf.mxu1 }
 0x12f   :  { %v2184_v46 = vpack.c.bf16 %v1204_v42, %v1204_v42  ;;  %v788_v47 = vadd.f32 %v3019_v55, %v787_v44  ;;  %v2246_v48 = vpack.c.bf16 %v1266_v43, %v1266_v43  ;;  %v1036_v49 = vadd.f32 %v3019_v55, %v1035_v45 }
 0x130   :  { %v2403_v50 = vpop.f32.mrf.mxu0  ;;  %v2527_v0 = vpop.f32.mrf.mxu1 }
 0x131   :  { %1811 = vst.msk [vmem:[%s3702_s3 + $0x58] sm:$0xf] %vm1788_vm2, %v2184_v46  ;;  %v1205_v51 = vmax.f32 %v788_v47, 0.0  ;;  %1873 = vst.msk [vmem:[%s3702_s3 + $0x150] sm:$0xf] %vm1788_vm2, %v2246_v48  ;;  %v1267_v52 = vmax.f32 %v1036_v49, 0.0 }
 0x132   :  { %v792_v53 = vpop.f32.mrf.mxu0  ;;  %v1040_v54 = vpop.f32.mrf.mxu1 }
 0x133   :  { %v2185_v56 = vpack.c.bf16 %v1205_v51, %v1205_v51  ;;  %v793_v57 = vadd.f32 %v3019_v55, %v792_v53  ;;  %v2247_v58 = vpack.c.bf16 %v1267_v52, %v1267_v52  ;;  %v1041_v59 = vadd.f32 %v3019_v55, %v1040_v54 }
 0x134   :  { %v2406_v60 = vpop.f32.mrf.mxu0  ;;  %v2530_v61 = vpop.f32.mrf.mxu1 }
 0x135   :  { %1812 = vst.msk [vmem:[%s3702_s3 + $0x5c] sm:$0xf] %vm1788_vm2, %v2185_v56  ;;  %v1206_v62 = vmax.f32 %v793_v57, 0.0  ;;  %1874 = vst.msk [vmem:[%s3702_s3 + $0x154] sm:$0xf] %vm1788_vm2, %v2247_v58  ;;  %v1268_v63 = vmax.f32 %v1041_v59, 0.0 }
 0x136   :  { %v795_v1 = vpop.f32.mrf.mxu0  ;;  %v1043_v2 = vpop.f32.mrf.mxu1 }
 0x137   :  { %v2186_v3 = vpack.c.bf16 %v1206_v62, %v1206_v62  ;;  %v796_v4 = vadd.f32 %v3019_v55, %v795_v1  ;;  %v2248_v5 = vpack.c.bf16 %v1268_v63, %v1268_v63  ;;  %v1044_v6 = vadd.f32 %v3019_v55, %v1043_v2 }
 0x138   :  { %v2407_v7 = vpop.f32.mrf.mxu0  ;;  %v2531_v8 = vpop.f32.mrf.mxu1 }
 0x139   :  { %1813 = vst.msk [vmem:[%s3702_s3 + $0x60] sm:$0xf] %vm1788_vm2, %v2186_v3  ;;  %v1207_v9 = vmax.f32 %v796_v4, 0.0  ;;  %1875 = vst.msk [vmem:[%s3702_s3 + $0x158] sm:$0xf] %vm1788_vm2, %v2248_v5  ;;  %v1269_v10 = vmax.f32 %v1044_v6, 0.0 }
 0x13a   :  { %v800_v11 = vpop.f32.mrf.mxu0  ;;  %v1048_v12 = vpop.f32.mrf.mxu1 }
 0x13b   :  { %v2187_v13 = vpack.c.bf16 %v1207_v9, %v1207_v9  ;;  %v801_v14 = vadd.f32 %v3019_v55, %v800_v11  ;;  %v2249_v15 = vpack.c.bf16 %v1269_v10, %v1269_v10  ;;  %v1049_v16 = vadd.f32 %v3019_v55, %v1048_v12 }
 0x13c   :  { %v2410_v17 = vpop.f32.mrf.mxu0  ;;  %v2534_v18 = vpop.f32.mrf.mxu1 }
 0x13d   :  { %1814 = vst.msk [vmem:[%s3702_s3 + $0x64] sm:$0xf] %vm1788_vm2, %v2187_v13  ;;  %v1208_v19 = vmax.f32 %v801_v14, 0.0  ;;  %1876 = vst.msk [vmem:[%s3702_s3 + $0x15c] sm:$0xf] %vm1788_vm2, %v2249_v15  ;;  %v1270_v20 = vmax.f32 %v1049_v16, 0.0 }
 0x13e   :  { %v803_v21 = vpop.f32.mrf.mxu0  ;;  %v1051_v22 = vpop.f32.mrf.mxu1 }
 0x13f   :  { %v2188_v23 = vpack.c.bf16 %v1208_v19, %v1208_v19  ;;  %v804_v24 = vadd.f32 %v3019_v55, %v803_v21  ;;  %v2250_v25 = vpack.c.bf16 %v1270_v20, %v1270_v20  ;;  %v1052_v26 = vadd.f32 %v3019_v55, %v1051_v22 }
 0x140   :  { %v2411_v27 = vpop.f32.mrf.mxu0  ;;  %v2535_v28 = vpop.f32.mrf.mxu1 }
 0x141   :  { %1815 = vst.msk [vmem:[%s3702_s3 + $0x68] sm:$0xf] %vm1788_vm2, %v2188_v23  ;;  %v1209_v29 = vmax.f32 %v804_v24, 0.0  ;;  %1877 = vst.msk [vmem:[%s3702_s3 + $0x160] sm:$0xf] %vm1788_vm2, %v2250_v25  ;;  %v1271_v30 = vmax.f32 %v1052_v26, 0.0 }
 0x142   :  { %v808_v31 = vpop.f32.mrf.mxu0  ;;  %v1056_v32 = vpop.f32.mrf.mxu1 }
 0x143   :  { %v2189_v33 = vpack.c.bf16 %v1209_v29, %v1209_v29  ;;  %v809_v34 = vadd.f32 %v3019_v55, %v808_v31  ;;  %v2251_v35 = vpack.c.bf16 %v1271_v30, %v1271_v30  ;;  %v1057_v36 = vadd.f32 %v3019_v55, %v1056_v32 }
 0x144   :  { %v2414_v37 = vpop.f32.mrf.mxu0  ;;  %v2538_v38 = vpop.f32.mrf.mxu1 }
 0x145   :  { %1816 = vst.msk [vmem:[%s3702_s3 + $0x6c] sm:$0xf] %vm1788_vm2, %v2189_v33  ;;  %v1210_v39 = vmax.f32 %v809_v34, 0.0  ;;  %1878 = vst.msk [vmem:[%s3702_s3 + $0x164] sm:$0xf] %vm1788_vm2, %v2251_v35  ;;  %v1272_v40 = vmax.f32 %v1057_v36, 0.0 }
 0x146   :  { %v811_v41 = vpop.f32.mrf.mxu0  ;;  %v1059_v42 = vpop.f32.mrf.mxu1 }
 0x147   :  { %v2190_v43 = vpack.c.bf16 %v1210_v39, %v1210_v39  ;;  %v812_v44 = vadd.f32 %v3019_v55, %v811_v41  ;;  %v2252_v45 = vpack.c.bf16 %v1272_v40, %v1272_v40  ;;  %v1060_v46 = vadd.f32 %v3019_v55, %v1059_v42 }
 0x148   :  { %v2415_v47 = vpop.f32.mrf.mxu0  ;;  %v2539_v48 = vpop.f32.mrf.mxu1 }
 0x149   :  { %1817 = vst.msk [vmem:[%s3702_s3 + $0x70] sm:$0xf] %vm1788_vm2, %v2190_v43  ;;  %v1211_v49 = vmax.f32 %v812_v44, 0.0  ;;  %1879 = vst.msk [vmem:[%s3702_s3 + $0x168] sm:$0xf] %vm1788_vm2, %v2252_v45  ;;  %v1273_v50 = vmax.f32 %v1060_v46, 0.0 }
 0x14a   :  { %v816_v0 = vpop.f32.mrf.mxu0  ;;  %v1064_v51 = vpop.f32.mrf.mxu1 }
 0x14b   :  { %v2191_v52 = vpack.c.bf16 %v1211_v49, %v1211_v49  ;;  %v817_v53 = vadd.f32 %v3019_v55, %v816_v0  ;;  %v2253_v54 = vpack.c.bf16 %v1273_v50, %v1273_v50  ;;  %v1065_v56 = vadd.f32 %v3019_v55, %v1064_v51 }
 0x14c   :  { %v2418_v57 = vpop.f32.mrf.mxu0  ;;  %v2542_v58 = vpop.f32.mrf.mxu1 }
 0x14d   :  { %1818 = vst.msk [vmem:[%s3702_s3 + $0x74] sm:$0xf] %vm1788_vm2, %v2191_v52  ;;  %v1212_v59 = vmax.f32 %v817_v53, 0.0  ;;  %1880 = vst.msk [vmem:[%s3702_s3 + $0x16c] sm:$0xf] %vm1788_vm2, %v2253_v54  ;;  %v1274_v60 = vmax.f32 %v1065_v56, 0.0 }
 0x14e   :  { %v819_v61 = vpop.f32.mrf.mxu0  ;;  %v1067_v62 = vpop.f32.mrf.mxu1 }
 0x14f   :  { %v2192_v63 = vpack.c.bf16 %v1212_v59, %v1212_v59  ;;  %v820_v1 = vadd.f32 %v3019_v55, %v819_v61  ;;  %v2254_v2 = vpack.c.bf16 %v1274_v60, %v1274_v60  ;;  %v1068_v3 = vadd.f32 %v3019_v55, %v1067_v62 }
 0x150   :  { %v2419_v4 = vpop.f32.mrf.mxu0  ;;  %v2543_v5 = vpop.f32.mrf.mxu1 }
 0x151   :  { %1819 = vst.msk [vmem:[%s3702_s3 + $0x78] sm:$0xf] %vm1788_vm2, %v2192_v63  ;;  %v1213_v6 = vmax.f32 %v820_v1, 0.0  ;;  %1881 = vst.msk [vmem:[%s3702_s3 + $0x170] sm:$0xf] %vm1788_vm2, %v2254_v2  ;;  %v1275_v7 = vmax.f32 %v1068_v3, 0.0 }
 0x152   :  { %v824_v8 = vpop.f32.mrf.mxu0  ;;  %v1072_v9 = vpop.f32.mrf.mxu1 }
 0x153   :  { %v2193_v10 = vpack.c.bf16 %v1213_v6, %v1213_v6  ;;  %v825_v11 = vadd.f32 %v3019_v55, %v824_v8  ;;  %v2255_v12 = vpack.c.bf16 %v1275_v7, %v1275_v7  ;;  %v1073_v13 = vadd.f32 %v3019_v55, %v1072_v9 }
 0x154   :  { %v2422_v14 = vpop.f32.mrf.mxu0  ;;  %v2546_v15 = vpop.f32.mrf.mxu1 }
 0x155   :  { %1820 = vst.msk [vmem:[%s3702_s3 + $0x7c] sm:$0xf] %vm1788_vm2, %v2193_v10  ;;  %v1214_v16 = vmax.f32 %v825_v11, 0.0  ;;  %1882 = vst.msk [vmem:[%s3702_s3 + $0x174] sm:$0xf] %vm1788_vm2, %v2255_v12  ;;  %v1276_v17 = vmax.f32 %v1073_v13, 0.0 }
 0x156   :  { %v827_v18 = vpop.f32.mrf.mxu0  ;;  %v1075_v19 = vpop.f32.mrf.mxu1 }
 0x157   :  { %v2194_v20 = vpack.c.bf16 %v1214_v16, %v1214_v16  ;;  %v828_v21 = vadd.f32 %v3019_v55, %v827_v18  ;;  %v2256_v22 = vpack.c.bf16 %v1276_v17, %v1276_v17  ;;  %v1076_v23 = vadd.f32 %v3019_v55, %v1075_v19 }
 0x158   :  { %v2423_v24 = vpop.f32.mrf.mxu0  ;;  %v2547_v25 = vpop.f32.mrf.mxu1 }
 0x159   :  { %1821 = vst.msk [vmem:[%s3702_s3 + $0x80] sm:$0xf] %vm1788_vm2, %v2194_v20  ;;  %v1215_v26 = vmax.f32 %v828_v21, 0.0  ;;  %1883 = vst.msk [vmem:[%s3702_s3 + $0x178] sm:$0xf] %vm1788_vm2, %v2256_v22  ;;  %v1277_v27 = vmax.f32 %v1076_v23, 0.0 }
 0x15a   :  { %v832_v28 = vpop.f32.mrf.mxu0  ;;  %v1080_v29 = vpop.f32.mrf.mxu1 }
 0x15b   :  { %v2195_v30 = vpack.c.bf16 %v1215_v26, %v1215_v26  ;;  %v833_v31 = vadd.f32 %v3019_v55, %v832_v28  ;;  %v2257_v32 = vpack.c.bf16 %v1277_v27, %v1277_v27  ;;  %v1081_v33 = vadd.f32 %v3019_v55, %v1080_v29 }
 0x15c   :  { %v2426_v34 = vpop.f32.mrf.mxu0  ;;  %v2550_v35 = vpop.f32.mrf.mxu1 }
 0x15d   :  { %1822 = vst.msk [vmem:[%s3702_s3 + $0x84] sm:$0xf] %vm1788_vm2, %v2195_v30  ;;  %v1216_v36 = vmax.f32 %v833_v31, 0.0  ;;  %1884 = vst.msk [vmem:[%s3702_s3 + $0x17c] sm:$0xf] %vm1788_vm2, %v2257_v32  ;;  %v1278_v37 = vmax.f32 %v1081_v33, 0.0 }
 0x15e   :  { %v835_v38 = vpop.f32.mrf.mxu0  ;;  %v1083_v39 = vpop.f32.mrf.mxu1 }
 0x15f   :  { %v2196_v40 = vpack.c.bf16 %v1216_v36, %v1216_v36  ;;  %v836_v41 = vadd.f32 %v3019_v55, %v835_v38  ;;  %v2258_v42 = vpack.c.bf16 %v1278_v37, %v1278_v37  ;;  %v1084_v43 = vadd.f32 %v3019_v55, %v1083_v39 }
 0x160   :  { %v2427_v44 = vpop.f32.mrf.mxu0  ;;  %v2551_v45 = vpop.f32.mrf.mxu1 }
 0x161   :  { %1823 = vst.msk [vmem:[%s3702_s3 + $0x88] sm:$0xf] %vm1788_vm2, %v2196_v40  ;;  %v1217_v46 = vmax.f32 %v836_v41, 0.0  ;;  %1885 = vst.msk [vmem:[%s3702_s3 + $0x180] sm:$0xf] %vm1788_vm2, %v2258_v42  ;;  %v1279_v47 = vmax.f32 %v1084_v43, 0.0 }
 0x162   :  { %v840_v48 = vpop.f32.mrf.mxu0  ;;  %v1088_v49 = vpop.f32.mrf.mxu1 }
 0x163   :  { %v2197_v50 = vpack.c.bf16 %v1217_v46, %v1217_v46  ;;  %v841_v0 = vadd.f32 %v3019_v55, %v840_v48  ;;  %v2259_v51 = vpack.c.bf16 %v1279_v47, %v1279_v47  ;;  %v1089_v52 = vadd.f32 %v3019_v55, %v1088_v49 }
 0x164   :  { %v2430_v53 = vpop.f32.mrf.mxu0  ;;  %v2554_v54 = vpop.f32.mrf.mxu1 }
 0x165   :  { %1824 = vst.msk [vmem:[%s3702_s3 + $0x8c] sm:$0xf] %vm1788_vm2, %v2197_v50  ;;  %v1218_v56 = vmax.f32 %v841_v0, 0.0  ;;  %1886 = vst.msk [vmem:[%s3702_s3 + $0x184] sm:$0xf] %vm1788_vm2, %v2259_v51  ;;  %v1280_v57 = vmax.f32 %v1089_v52, 0.0 }
 0x166   :  { %v843_v58 = vpop.f32.mrf.mxu0  ;;  %v1091_v59 = vpop.f32.mrf.mxu1 }
 0x167   :  { %v2198_v60 = vpack.c.bf16 %v1218_v56, %v1218_v56  ;;  %v844_v61 = vadd.f32 %v3019_v55, %v843_v58  ;;  %v2260_v62 = vpack.c.bf16 %v1280_v57, %v1280_v57  ;;  %v1092_v63 = vadd.f32 %v3019_v55, %v1091_v59 }
 0x168   :  { %v2431_v1 = vpop.f32.mrf.mxu0  ;;  %v2555_v2 = vpop.f32.mrf.mxu1 }
 0x169   :  { %1825 = vst.msk [vmem:[%s3702_s3 + $0x90] sm:$0xf] %vm1788_vm2, %v2198_v60  ;;  %v1219_v3 = vmax.f32 %v844_v61, 0.0  ;;  %1887 = vst.msk [vmem:[%s3702_s3 + $0x188] sm:$0xf] %vm1788_vm2, %v2260_v62  ;;  %v1281_v4 = vmax.f32 %v1092_v63, 0.0 }
 0x16a   :  { %v848_v5 = vpop.f32.mrf.mxu0  ;;  %v1096_v6 = vpop.f32.mrf.mxu1 }
 0x16b   :  { %v2199_v7 = vpack.c.bf16 %v1219_v3, %v1219_v3  ;;  %v849_v8 = vadd.f32 %v3019_v55, %v848_v5  ;;  %v2261_v9 = vpack.c.bf16 %v1281_v4, %v1281_v4  ;;  %v1097_v10 = vadd.f32 %v3019_v55, %v1096_v6 }
 0x16c   :  { %v2434_v11 = vpop.f32.mrf.mxu0  ;;  %v2558_v12 = vpop.f32.mrf.mxu1 }
 0x16d   :  { %1826 = vst.msk [vmem:[%s3702_s3 + $0x94] sm:$0xf] %vm1788_vm2, %v2199_v7  ;;  %v1220_v13 = vmax.f32 %v849_v8, 0.0  ;;  %1888 = vst.msk [vmem:[%s3702_s3 + $0x18c] sm:$0xf] %vm1788_vm2, %v2261_v9  ;;  %v1282_v14 = vmax.f32 %v1097_v10, 0.0 }
 0x16e   :  { %v851_v15 = vpop.f32.mrf.mxu0  ;;  %v1099_v16 = vpop.f32.mrf.mxu1 }
 0x16f   :  { %v2200_v17 = vpack.c.bf16 %v1220_v13, %v1220_v13  ;;  %v852_v18 = vadd.f32 %v3019_v55, %v851_v15  ;;  %v2262_v19 = vpack.c.bf16 %v1282_v14, %v1282_v14  ;;  %v1100_v20 = vadd.f32 %v3019_v55, %v1099_v16  ;;  %v3484_v55 = vld [vmem:[%s3701_s2] ss:$0 sm:$0xff] }
 0x170   :  { %v2435_v21 = vpop.f32.mrf.mxu0  ;;  %v2559_v22 = vpop.f32.mrf.mxu1 }
 0x171   :  { %1827 = vst.msk [vmem:[%s3702_s3 + $0x98] sm:$0xf] %vm1788_vm2, %v2200_v17  ;;  %v1221_v23 = vmax.f32 %v852_v18, 0.0  ;;  %1889 = vst.msk [vmem:[%s3702_s3 + $0x190] sm:$0xf] %vm1788_vm2, %v2262_v19  ;;  %v1283_v24 = vmax.f32 %v1100_v20, 0.0 }
 0x172   :  { %v856_v25 = vpop.f32.mrf.mxu0  ;;  %v1104_v26 = vpop.f32.mrf.mxu1 }
 0x173   :  { %v2201_v27 = vpack.c.bf16 %v1221_v23, %v1221_v23  ;;  %v857_v28 = vadd.f32 %v3484_v55, %v856_v25  ;;  %v2263_v29 = vpack.c.bf16 %v1283_v24, %v1283_v24  ;;  %v1105_v30 = vadd.f32 %v3484_v55, %v1104_v26 }
 0x174   :  { %v2438_v31 = vpop.f32.mrf.mxu0  ;;  %v2562_v32 = vpop.f32.mrf.mxu1 }
 0x175   :  { %1828 = vst.msk [vmem:[%s3702_s3 + $0x9c] sm:$0xf] %vm1788_vm2, %v2201_v27  ;;  %v1222_v33 = vmax.f32 %v857_v28, 0.0  ;;  %1890 = vst.msk [vmem:[%s3702_s3 + $0x194] sm:$0xf] %vm1788_vm2, %v2263_v29  ;;  %v1284_v34 = vmax.f32 %v1105_v30, 0.0 }
 0x176   :  { %v859_v35 = vpop.f32.mrf.mxu0  ;;  %v1107_v36 = vpop.f32.mrf.mxu1 }
 0x177   :  { %v2202_v37 = vpack.c.bf16 %v1222_v33, %v1222_v33  ;;  %v860_v38 = vadd.f32 %v3484_v55, %v859_v35  ;;  %v2264_v39 = vpack.c.bf16 %v1284_v34, %v1284_v34  ;;  %v1108_v40 = vadd.f32 %v3484_v55, %v1107_v36 }
 0x178   :  { %v2439_v41 = vpop.f32.mrf.mxu0  ;;  %v2563_v42 = vpop.f32.mrf.mxu1 }
 0x179   :  { %1829 = vst.msk [vmem:[%s3702_s3 + $0xa0] sm:$0xf] %vm1788_vm2, %v2202_v37  ;;  %v1223_v43 = vmax.f32 %v860_v38, 0.0  ;;  %1891 = vst.msk [vmem:[%s3702_s3 + $0x198] sm:$0xf] %vm1788_vm2, %v2264_v39  ;;  %v1285_v44 = vmax.f32 %v1108_v40, 0.0 }
 0x17a   :  { %v864_v45 = vpop.f32.mrf.mxu0  ;;  %v1112_v46 = vpop.f32.mrf.mxu1 }
 0x17b   :  { %v2203_v47 = vpack.c.bf16 %v1223_v43, %v1223_v43  ;;  %v865_v48 = vadd.f32 %v3484_v55, %v864_v45  ;;  %v2265_v49 = vpack.c.bf16 %v1285_v44, %v1285_v44  ;;  %v1113_v50 = vadd.f32 %v3484_v55, %v1112_v46 }
 0x17c   :  { %v2442_v0 = vpop.f32.mrf.mxu0  ;;  %v2566_v51 = vpop.f32.mrf.mxu1 }
 0x17d   :  { %1830 = vst.msk [vmem:[%s3702_s3 + $0xa4] sm:$0xf] %vm1788_vm2, %v2203_v47  ;;  %v1224_v52 = vmax.f32 %v865_v48, 0.0  ;;  %1892 = vst.msk [vmem:[%s3702_s3 + $0x19c] sm:$0xf] %vm1788_vm2, %v2265_v49  ;;  %v1286_v53 = vmax.f32 %v1113_v50, 0.0 }
 0x17e   :  { %v867_v54 = vpop.f32.mrf.mxu0  ;;  %v1115_v56 = vpop.f32.mrf.mxu1 }
 0x17f   :  { %v2204_v57 = vpack.c.bf16 %v1224_v52, %v1224_v52  ;;  %v868_v58 = vadd.f32 %v3484_v55, %v867_v54  ;;  %v2266_v59 = vpack.c.bf16 %v1286_v53, %v1286_v53  ;;  %v1116_v60 = vadd.f32 %v3484_v55, %v1115_v56 }
 0x180   :  { %v2443_v61 = vpop.f32.mrf.mxu0  ;;  %v2567_v62 = vpop.f32.mrf.mxu1 }
 0x181   :  { %1831 = vst.msk [vmem:[%s3702_s3 + $0xa8] sm:$0xf] %vm1788_vm2, %v2204_v57  ;;  %v1225_v63 = vmax.f32 %v868_v58, 0.0  ;;  %1893 = vst.msk [vmem:[%s3702_s3 + $0x1a0] sm:$0xf] %vm1788_vm2, %v2266_v59  ;;  %v1287_v1 = vmax.f32 %v1116_v60, 0.0 }
 0x182   :  { %v872_v2 = vpop.f32.mrf.mxu0  ;;  %v1120_v3 = vpop.f32.mrf.mxu1 }
 0x183   :  { %v2205_v4 = vpack.c.bf16 %v1225_v63, %v1225_v63  ;;  %v873_v5 = vadd.f32 %v3484_v55, %v872_v2  ;;  %v2267_v6 = vpack.c.bf16 %v1287_v1, %v1287_v1  ;;  %v1121_v7 = vadd.f32 %v3484_v55, %v1120_v3 }
 0x184   :  { %v2446_v8 = vpop.f32.mrf.mxu0  ;;  %v2570_v9 = vpop.f32.mrf.mxu1 }
 0x185   :  { %1832 = vst.msk [vmem:[%s3702_s3 + $0xac] sm:$0xf] %vm1788_vm2, %v2205_v4  ;;  %v1226_v10 = vmax.f32 %v873_v5, 0.0  ;;  %1894 = vst.msk [vmem:[%s3702_s3 + $0x1a4] sm:$0xf] %vm1788_vm2, %v2267_v6  ;;  %v1288_v11 = vmax.f32 %v1121_v7, 0.0 }
 0x186   :  { %v875_v12 = vpop.f32.mrf.mxu0  ;;  %v1123_v13 = vpop.f32.mrf.mxu1 }
 0x187   :  { %v2206_v14 = vpack.c.bf16 %v1226_v10, %v1226_v10  ;;  %v876_v15 = vadd.f32 %v3484_v55, %v875_v12  ;;  %v2268_v16 = vpack.c.bf16 %v1288_v11, %v1288_v11  ;;  %v1124_v17 = vadd.f32 %v3484_v55, %v1123_v13 }
 0x188   :  { %v2447_v18 = vpop.f32.mrf.mxu0  ;;  %v2571_v19 = vpop.f32.mrf.mxu1 }
 0x189   :  { %1833 = vst.msk [vmem:[%s3702_s3 + $0xb0] sm:$0xf] %vm1788_vm2, %v2206_v14  ;;  %v1227_v20 = vmax.f32 %v876_v15, 0.0  ;;  %1895 = vst.msk [vmem:[%s3702_s3 + $0x1a8] sm:$0xf] %vm1788_vm2, %v2268_v16  ;;  %v1289_v21 = vmax.f32 %v1124_v17, 0.0 }
 0x18a   :  { %v880_v22 = vpop.f32.mrf.mxu0  ;;  %v1128_v23 = vpop.f32.mrf.mxu1 }
 0x18b   :  { %v2207_v24 = vpack.c.bf16 %v1227_v20, %v1227_v20  ;;  %v881_v25 = vadd.f32 %v3484_v55, %v880_v22  ;;  %v2269_v26 = vpack.c.bf16 %v1289_v21, %v1289_v21  ;;  %v1129_v27 = vadd.f32 %v3484_v55, %v1128_v23 }
 0x18c   :  { %v2450_v28 = vpop.f32.mrf.mxu0  ;;  %v2574_v29 = vpop.f32.mrf.mxu1 }
 0x18d   :  { %1834 = vst.msk [vmem:[%s3702_s3 + $0xb4] sm:$0xf] %vm1788_vm2, %v2207_v24  ;;  %v1228_v30 = vmax.f32 %v881_v25, 0.0  ;;  %1896 = vst.msk [vmem:[%s3702_s3 + $0x1ac] sm:$0xf] %vm1788_vm2, %v2269_v26  ;;  %v1290_v31 = vmax.f32 %v1129_v27, 0.0 }
 0x18e   :  { %v883_v32 = vpop.f32.mrf.mxu0  ;;  %v1131_v33 = vpop.f32.mrf.mxu1 }
 0x18f   :  { %v2208_v34 = vpack.c.bf16 %v1228_v30, %v1228_v30  ;;  %v884_v35 = vadd.f32 %v3484_v55, %v883_v32  ;;  %v2270_v36 = vpack.c.bf16 %v1290_v31, %v1290_v31  ;;  %v1132_v37 = vadd.f32 %v3484_v55, %v1131_v33 }
 0x190   :  { %v2451_v38 = vpop.f32.mrf.mxu0  ;;  %v2575_v39 = vpop.f32.mrf.mxu1 }
 0x191   :  { %1835 = vst.msk [vmem:[%s3702_s3 + $0xb8] sm:$0xf] %vm1788_vm2, %v2208_v34  ;;  %v1229_v40 = vmax.f32 %v884_v35, 0.0  ;;  %1897 = vst.msk [vmem:[%s3702_s3 + $0x1b0] sm:$0xf] %vm1788_vm2, %v2270_v36  ;;  %v1291_v41 = vmax.f32 %v1132_v37, 0.0 }
 0x192   :  { %v888_v42 = vpop.f32.mrf.mxu0  ;;  %v1136_v43 = vpop.f32.mrf.mxu1 }
 0x193   :  { %v2209_v44 = vpack.c.bf16 %v1229_v40, %v1229_v40  ;;  %v889_v45 = vadd.f32 %v3484_v55, %v888_v42  ;;  %v2271_v46 = vpack.c.bf16 %v1291_v41, %v1291_v41  ;;  %v1137_v47 = vadd.f32 %v3484_v55, %v1136_v43 }
 0x194   :  { %v2454_v48 = vpop.f32.mrf.mxu0  ;;  %v2578_v49 = vpop.f32.mrf.mxu1 }
 0x195   :  { %1836 = vst.msk [vmem:[%s3702_s3 + $0xbc] sm:$0xf] %vm1788_vm2, %v2209_v44  ;;  %v1230_v50 = vmax.f32 %v889_v45, 0.0  ;;  %1898 = vst.msk [vmem:[%s3702_s3 + $0x1b4] sm:$0xf] %vm1788_vm2, %v2271_v46  ;;  %v1292_v0 = vmax.f32 %v1137_v47, 0.0 }
 0x196   :  { %v891_v51 = vpop.f32.mrf.mxu0  ;;  %v1139_v52 = vpop.f32.mrf.mxu1 }
 0x197   :  { %v2210_v53 = vpack.c.bf16 %v1230_v50, %v1230_v50  ;;  %v892_v54 = vadd.f32 %v3484_v55, %v891_v51  ;;  %v2272_v56 = vpack.c.bf16 %v1292_v0, %v1292_v0  ;;  %v1140_v57 = vadd.f32 %v3484_v55, %v1139_v52 }
 0x198   :  { %v2455_v58 = vpop.f32.mrf.mxu0  ;;  %v2579_v59 = vpop.f32.mrf.mxu1 }
 0x199   :  { %1837 = vst.msk [vmem:[%s3702_s3 + $0xc0] sm:$0xf] %vm1788_vm2, %v2210_v53  ;;  %v1231_v60 = vmax.f32 %v892_v54, 0.0  ;;  %1899 = vst.msk [vmem:[%s3702_s3 + $0x1b8] sm:$0xf] %vm1788_vm2, %v2272_v56  ;;  %v1293_v61 = vmax.f32 %v1140_v57, 0.0 }
 0x19a   :  { %v896_v62 = vpop.f32.mrf.mxu0  ;;  %v1144_v63 = vpop.f32.mrf.mxu1 }
 0x19b   :  { %v2211_v1 = vpack.c.bf16 %v1231_v60, %v1231_v60  ;;  %v897_v2 = vadd.f32 %v3484_v55, %v896_v62  ;;  %v2273_v3 = vpack.c.bf16 %v1293_v61, %v1293_v61  ;;  %v1145_v4 = vadd.f32 %v3484_v55, %v1144_v63 }
 0x19c   :  { %v2458_v5 = vpop.f32.mrf.mxu0  ;;  %v2582_v6 = vpop.f32.mrf.mxu1 }
 0x19d   :  { %1838 = vst.msk [vmem:[%s3702_s3 + $0xc4] sm:$0xf] %vm1788_vm2, %v2211_v1  ;;  %v1232_v7 = vmax.f32 %v897_v2, 0.0  ;;  %1900 = vst.msk [vmem:[%s3702_s3 + $0x1bc] sm:$0xf] %vm1788_vm2, %v2273_v3  ;;  %v1294_v8 = vmax.f32 %v1145_v4, 0.0 }
 0x19e   :  { %v899_v9 = vpop.f32.mrf.mxu0  ;;  %v1147_v10 = vpop.f32.mrf.mxu1 }
 0x19f   :  { %v2212_v11 = vpack.c.bf16 %v1232_v7, %v1232_v7  ;;  %v900_v12 = vadd.f32 %v3484_v55, %v899_v9  ;;  %v2274_v13 = vpack.c.bf16 %v1294_v8, %v1294_v8  ;;  %v1148_v14 = vadd.f32 %v3484_v55, %v1147_v10 }
 0x1a0   :  { %v2459_v15 = vpop.f32.mrf.mxu0  ;;  %v2583_v16 = vpop.f32.mrf.mxu1 }
 0x1a1   :  { %1839 = vst.msk [vmem:[%s3702_s3 + $0xc8] sm:$0xf] %vm1788_vm2, %v2212_v11  ;;  %v1233_v17 = vmax.f32 %v900_v12, 0.0  ;;  %1901 = vst.msk [vmem:[%s3702_s3 + $0x1c0] sm:$0xf] %vm1788_vm2, %v2274_v13  ;;  %v1295_v18 = vmax.f32 %v1148_v14, 0.0 }
 0x1a2   :  { %v904_v19 = vpop.f32.mrf.mxu0  ;;  %v1152_v20 = vpop.f32.mrf.mxu1 }
 0x1a3   :  { %v2213_v21 = vpack.c.bf16 %v1233_v17, %v1233_v17  ;;  %v905_v22 = vadd.f32 %v3484_v55, %v904_v19  ;;  %v2275_v23 = vpack.c.bf16 %v1295_v18, %v1295_v18  ;;  %v1153_v24 = vadd.f32 %v3484_v55, %v1152_v20 }
 0x1a4   :  { %v2462_v25 = vpop.f32.mrf.mxu0  ;;  %v2586_v26 = vpop.f32.mrf.mxu1 }
 0x1a5   :  { %1840 = vst.msk [vmem:[%s3702_s3 + $0xcc] sm:$0xf] %vm1788_vm2, %v2213_v21  ;;  %v1234_v27 = vmax.f32 %v905_v22, 0.0  ;;  %1902 = vst.msk [vmem:[%s3702_s3 + $0x1c4] sm:$0xf] %vm1788_vm2, %v2275_v23  ;;  %v1296_v28 = vmax.f32 %v1153_v24, 0.0 }
 0x1a6   :  { %v907_v29 = vpop.f32.mrf.mxu0  ;;  %v1155_v30 = vpop.f32.mrf.mxu1 }
 0x1a7   :  { %v2214_v31 = vpack.c.bf16 %v1234_v27, %v1234_v27  ;;  %v908_v32 = vadd.f32 %v3484_v55, %v907_v29  ;;  %v2276_v33 = vpack.c.bf16 %v1296_v28, %v1296_v28  ;;  %v1156_v34 = vadd.f32 %v3484_v55, %v1155_v30 }
 0x1a8   :  { %v2463_v35 = vpop.f32.mrf.mxu0  ;;  %v2587_v36 = vpop.f32.mrf.mxu1 }
 0x1a9   :  { %1841 = vst.msk [vmem:[%s3702_s3 + $0xd0] sm:$0xf] %vm1788_vm2, %v2214_v31  ;;  %v1235_v37 = vmax.f32 %v908_v32, 0.0  ;;  %1903 = vst.msk [vmem:[%s3702_s3 + $0x1c8] sm:$0xf] %vm1788_vm2, %v2276_v33  ;;  %v1297_v38 = vmax.f32 %v1156_v34, 0.0 }
 0x1aa   :  { %v912_v39 = vpop.f32.mrf.mxu0  ;;  %v1160_v40 = vpop.f32.mrf.mxu1 }
 0x1ab   :  { %v2215_v41 = vpack.c.bf16 %v1235_v37, %v1235_v37  ;;  %v913_v42 = vadd.f32 %v3484_v55, %v912_v39  ;;  %v2277_v43 = vpack.c.bf16 %v1297_v38, %v1297_v38  ;;  %v1161_v44 = vadd.f32 %v3484_v55, %v1160_v40 }
 0x1ac   :  { %v2466_v45 = vpop.f32.mrf.mxu0  ;;  %v2590_v46 = vpop.f32.mrf.mxu1 }
 0x1ad   :  { %1842 = vst.msk [vmem:[%s3702_s3 + $0xd4] sm:$0xf] %vm1788_vm2, %v2215_v41  ;;  %v1236_v47 = vmax.f32 %v913_v42, 0.0  ;;  %1904 = vst.msk [vmem:[%s3702_s3 + $0x1cc] sm:$0xf] %vm1788_vm2, %v2277_v43  ;;  %v1298_v48 = vmax.f32 %v1161_v44, 0.0 }
 0x1ae   :  { %v915_v49 = vpop.f32.mrf.mxu0  ;;  %v1163_v50 = vpop.f32.mrf.mxu1 }
 0x1af   :  { %v2216_v0 = vpack.c.bf16 %v1236_v47, %v1236_v47  ;;  %v916_v51 = vadd.f32 %v3484_v55, %v915_v49  ;;  %v2278_v52 = vpack.c.bf16 %v1298_v48, %v1298_v48  ;;  %v1164_v53 = vadd.f32 %v3484_v55, %v1163_v50 }
 0x1b0   :  { %v2467_v54 = vpop.f32.mrf.mxu0  ;;  %v2591_v56 = vpop.f32.mrf.mxu1 }
 0x1b1   :  { %1843 = vst.msk [vmem:[%s3702_s3 + $0xd8] sm:$0xf] %vm1788_vm2, %v2216_v0  ;;  %v1237_v57 = vmax.f32 %v916_v51, 0.0  ;;  %1905 = vst.msk [vmem:[%s3702_s3 + $0x1d0] sm:$0xf] %vm1788_vm2, %v2278_v52  ;;  %v1299_v58 = vmax.f32 %v1164_v53, 0.0 }
 0x1b2   :  { %v920_v59 = vpop.f32.mrf.mxu0  ;;  %v1168_v60 = vpop.f32.mrf.mxu1 }
 0x1b3   :  { %v2217_v61 = vpack.c.bf16 %v1237_v57, %v1237_v57  ;;  %v921_v62 = vadd.f32 %v3484_v55, %v920_v59  ;;  %v2279_v63 = vpack.c.bf16 %v1299_v58, %v1299_v58  ;;  %v1169_v1 = vadd.f32 %v3484_v55, %v1168_v60 }
 0x1b4   :  { %v2470_v2 = vpop.f32.mrf.mxu0  ;;  %v2594_v3 = vpop.f32.mrf.mxu1 }
 0x1b5   :  { %1844 = vst.msk [vmem:[%s3702_s3 + $0xdc] sm:$0xf] %vm1788_vm2, %v2217_v61  ;;  %v1238_v4 = vmax.f32 %v921_v62, 0.0  ;;  %1906 = vst.msk [vmem:[%s3702_s3 + $0x1d4] sm:$0xf] %vm1788_vm2, %v2279_v63  ;;  %v1300_v5 = vmax.f32 %v1169_v1, 0.0 }
 0x1b6   :  { %v923_v6 = vpop.f32.mrf.mxu0  ;;  %v1171_v7 = vpop.f32.mrf.mxu1 }
 0x1b7   :  { %v2218_v8 = vpack.c.bf16 %v1238_v4, %v1238_v4  ;;  %v924_v9 = vadd.f32 %v3484_v55, %v923_v6  ;;  %v2280_v10 = vpack.c.bf16 %v1300_v5, %v1300_v5  ;;  %v1172_v11 = vadd.f32 %v3484_v55, %v1171_v7 }
 0x1b8   :  { %v2471_v12 = vpop.f32.mrf.mxu0  ;;  %v2595_v13 = vpop.f32.mrf.mxu1 }
 0x1b9   :  { %1845 = vst.msk [vmem:[%s3702_s3 + $0xe0] sm:$0xf] %vm1788_vm2, %v2218_v8  ;;  %v1239_v14 = vmax.f32 %v924_v9, 0.0  ;;  %1907 = vst.msk [vmem:[%s3702_s3 + $0x1d8] sm:$0xf] %vm1788_vm2, %v2280_v10  ;;  %v1301_v15 = vmax.f32 %v1172_v11, 0.0 }
 0x1ba   :  { %v928_v16 = vpop.f32.mrf.mxu0  ;;  %v1176_v17 = vpop.f32.mrf.mxu1 }
 0x1bb   :  { %v2219_v18 = vpack.c.bf16 %v1239_v14, %v1239_v14  ;;  %v929_v19 = vadd.f32 %v3484_v55, %v928_v16  ;;  %v2281_v20 = vpack.c.bf16 %v1301_v15, %v1301_v15  ;;  %v1177_v21 = vadd.f32 %v3484_v55, %v1176_v17 }
 0x1bc   :  { %v2474_v22 = vpop.f32.mrf.mxu0  ;;  %v2598_v23 = vpop.f32.mrf.mxu1 }
 0x1bd   :  { %1846 = vst.msk [vmem:[%s3702_s3 + $0xe4] sm:$0xf] %vm1788_vm2, %v2219_v18  ;;  %v1240_v24 = vmax.f32 %v929_v19, 0.0  ;;  %1908 = vst.msk [vmem:[%s3702_s3 + $0x1dc] sm:$0xf] %vm1788_vm2, %v2281_v20  ;;  %v1302_v25 = vmax.f32 %v1177_v21, 0.0 }
 0x1be   :  { %v931_v26 = vpop.f32.mrf.mxu0  ;;  %v1179_v27 = vpop.f32.mrf.mxu1 }
 0x1bf   :  { %v2220_v28 = vpack.c.bf16 %v1240_v24, %v1240_v24  ;;  %v932_v29 = vadd.f32 %v3484_v55, %v931_v26  ;;  %v2282_v30 = vpack.c.bf16 %v1302_v25, %v1302_v25 }
 0x1c0   :  { %v2475_v31 = vpop.f32.mrf.mxu0  ;;  %v2599_v32 = vpop.f32.mrf.mxu1 }
 0x1c1   :  { %1847 = vst.msk [vmem:[%s3702_s3 + $0xe8] sm:$0xf] %vm1788_vm2, %v2220_v28  ;;  %v1241_v33 = vmax.f32 %v932_v29, 0.0  ;;  %1909 = vst.msk [vmem:[%s3702_s3 + $0x1e0] sm:$0xf] %vm1788_vm2, %v2282_v30 }
 0x1c2   :  { %v936_v34 = vpop.f32.mrf.mxu0 }
 0x1c3   :  { %v2221_v35 = vpack.c.bf16 %v1241_v33, %v1241_v33  ;;  %v937_v36 = vadd.f32 %v3484_v55, %v936_v34 }
 0x1c4   :  { %v2478_v37 = vpop.f32.mrf.mxu0 }
 0x1c5   :  { %1848 = vst.msk [vmem:[%s3702_s3 + $0xec] sm:$0xf] %vm1788_vm2, %v2221_v35  ;;  %v1242_v38 = vmax.f32 %v937_v36, 0.0 }
 0x1c6   :  { %v939_v39 = vpop.f32.mrf.mxu0 }
 0x1c7   :  { %v2222_v40 = vpack.c.bf16 %v1242_v38, %v1242_v38  ;;  %v940_v41 = vadd.f32 %v3484_v55, %v939_v39 }
 0x1c8   :  { %v2479_v42 = vpop.f32.mrf.mxu0 }
 0x1c9   :  { %1849 = vst.msk [vmem:[%s3702_s3 + $0xf0] sm:$0xf] %vm1788_vm2, %v2222_v40  ;;  %v1243_v43 = vmax.f32 %v940_v41, 0.0 }
 0x1cb   :  { %v2223_v44 = vpack.c.bf16 %v1243_v43, %v1243_v43 }
 0x1cd   :  { %1850 = vst.msk [vmem:[%s3702_s3 + $0xf4] sm:$0xf] %vm1788_vm2, %v2223_v44 }

// kernel: dqn_forward_pallas.5
= control target key start
LH: loop header
LB: loop body
LE: loop exit
PB: predicated region body
PF: predicated region fallthrough
CT: control target
= control target key end

     0   :  { %vm980_vm0 = vcmask 519168   ;;  %s1837_s1 = inlined_call_operand.vmem [shape: bf16[512,64], index: 1, kind: input, shape index: {}]   ;;  %s1838_s0 = inlined_call_operand.vmem [shape: bf16[200,512], index: 0, kind: input, shape index: {}]   ;;  %s1839_s2 = inlined_call_operand.vmem [shape: f32[1,64], index: 2, kind: input, shape index: {}]   ;;  %s1840_s3 = inlined_call_operand.vmem [shape: bf16[200,64], index: 3, kind: output, shape index: {}]  }
   0x1   :  { %v1333_v0 = vld [vmem:[%s1837_s1 + $0x78] sm:$0xff]   ;;  %v1337_v4 = vld [vmem:[%s1837_s1 + $0x70] sm:$0xff]   ;;  %v1341_v8 = vld [vmem:[%s1837_s1 + $0x68] sm:$0xff]  }
   0x2   :  { %v1334_v1 = vld [vmem:[%s1837_s1 + $0xf8] sm:$0xff]   ;;  %1145 = vmatprep.subr.bf16.mxu0 %v1333_v0  ;;  %v1338_v5 = vld [vmem:[%s1837_s1 + $0xf0] sm:$0xff]   ;;  %v1342_v9 = vld [vmem:[%s1837_s1 + $0xe8] sm:$0xff]  }
   0x3   :  { %v1335_v2 = vld [vmem:[%s1837_s1 + $0x38] sm:$0xff]   ;;  %1239 = vmatprep.subr.bf16.mxu1 %v1334_v1  ;;  %v1339_v6 = vld [vmem:[%s1837_s1 + $0x30] sm:$0xff]   ;;  %v1343_v10 = vld [vmem:[%s1837_s1 + $0x28] sm:$0xff]  }
   0x4   :  { %v1336_v3 = vld [vmem:[%s1837_s1 + $0xb8] sm:$0xff]   ;;  %1146 = vmatpush3.bf16.msra.mxu0 %v1335_v2  ;;  %v1340_v7 = vld [vmem:[%s1837_s1 + $0xb0] sm:$0xff]   ;;  %v1344_v11 = vld [vmem:[%s1837_s1 + $0xa8] sm:$0xff]  }
   0x5   :  { %1240 = vmatpush3.bf16.msra.mxu1 %v1336_v3  ;;  %1147 = vmatprep.subr.bf16.mxu0 %v1337_v4  ;;  %v1345_v12 = vld [vmem:[%s1837_s1 + $0x60] sm:$0xff]   ;;  %v1349_v16 = vld [vmem:[%s1837_s1 + $0x58] sm:$0xff]   ;;  %v1353_v20 = vld [vmem:[%s1837_s1 + $0x50] sm:$0xff]  }
   0x6   :  { %1241 = vmatprep.subr.bf16.mxu1 %v1338_v5  ;;  %v1346_v13 = vld [vmem:[%s1837_s1 + $0xe0] sm:$0xff]   ;;  %v1350_v17 = vld [vmem:[%s1837_s1 + $0xd8] sm:$0xff]   ;;  %v1354_v21 = vld [vmem:[%s1837_s1 + $0xd0] sm:$0xff]  }
   0x7   :  { %v1347_v14 = vld [vmem:[%s1837_s1 + $0x20] sm:$0xff]   ;;  %v1351_v18 = vld [vmem:[%s1837_s1 + $0x18] sm:$0xff]   ;;  %v1355_v22 = vld [vmem:[%s1837_s1 + $0x10] sm:$0xff]  }
   0x8   :  { %1148 = vmatpush3.bf16.msra.mxu0 %v1339_v6  ;;  %v1348_v15 = vld [vmem:[%s1837_s1 + $0xa0] sm:$0xff]   ;;  %v1352_v19 = vld [vmem:[%s1837_s1 + $0x98] sm:$0xff]   ;;  %v1356_v23 = vld [vmem:[%s1837_s1 + $0x90] sm:$0xff]  }
   0x9   :  { %1242 = vmatpush3.bf16.msra.mxu1 %v1340_v7  ;;  %1149 = vmatprep.subr.bf16.mxu0 %v1341_v8  ;;  %v1357_v24 = vld [vmem:[%s1837_s1 + $0x48] sm:$0xff]   ;;  %v1361_v28 = vld [vmem:[%s1837_s1 + $0x40] sm:$0xff]  }
   0xa   :  { %1243 = vmatprep.subr.bf16.mxu1 %v1342_v9  ;;  %v1358_v25 = vld [vmem:[%s1837_s1 + $0xc8] sm:$0xff]   ;;  %v1362_v29 = vld [vmem:[%s1837_s1 + $0xc0] sm:$0xff]  }
   0xb   :  { %v1359_v26 = vld [vmem:[%s1837_s1 + $0x8] sm:$0xff]   ;;  %v1363_v30 = vld [vmem:[%s1837_s1] sm:$0xff]  }
   0xc   :  { %1150 = vmatpush3.bf16.msra.mxu0 %v1343_v10  ;;  %v1360_v27 = vld [vmem:[%s1837_s1 + $0x88] sm:$0xff]   ;;  %v1364_v31 = vld [vmem:[%s1837_s1 + $0x80] sm:$0xff]  }
   0xd   :  { %1244 = vmatpush3.bf16.msra.mxu1 %v1344_v11  ;;  %1151 = vmatprep.subr.bf16.mxu0 %v1345_v12  ;;  %v1365_v32 = vld [vmem:[%s1838_s0] ss:$16 sps:$4 sm:$0xff]   ;;  %v1367_v33 = vld [vmem:[%s1838_s0 + $0x4] ss:$16 sps:$4 sm:$0xff]   ;;  %v1368_v34 = vld [vmem:[%s1838_s0 + $0x8] ss:$16 sps:$4 sm:$0xff]  }
   0xe   :  { %1245 = vmatprep.subr.bf16.mxu1 %v1346_v13  ;;  %v1370_v35 = vld [vmem:[%s1838_s0 + $0xc] ss:$16 sps:$4 sm:$0xff]   ;;  %614 = vmatprep.mubr.bf16.mxu0 %v1367_v33  ;;  %v1371_v36 = vld [vmem:[%s1838_s0 + $0x24] ss:$16 sps:$4 sm:$0xff]   ;;  %v1375_v38 = vld [vmem:[%s1838_s0 + $0x20] ss:$16 sps:$4 sm:$0xff]  }
   0xf   :  { %750 = vmatprep.mubr.bf16.mxu1 %v1370_v35  ;;  %v1373_v37 = vld [vmem:[%s1838_s0 + $0x2c] ss:$16 sps:$4 sm:$0xff]   ;;  %v1376_v39 = vld [vmem:[%s1838_s0 + $0x28] ss:$16 sps:$4 sm:$0xff]   ;;  %v1377_v40 = vld [vmem:[%s1838_s0 + $0x44] ss:$16 sps:$4 sm:$0xff]  }
  0x10   :  { %1152 = vmatpush3.bf16.msra.mxu0 %v1347_v14  ;;  %v1379_v41 = vld [vmem:[%s1838_s0 + $0x4c] ss:$16 sps:$4 sm:$0xff]   ;;  %v1381_v42 = vld [vmem:[%s1838_s0 + $0x40] ss:$16 sps:$4 sm:$0xff]   ;;  %v1382_v43 = vld [vmem:[%s1838_s0 + $0x48] ss:$16 sps:$4 sm:$0xff]  }
  0x11   :  { %1246 = vmatpush3.bf16.msra.mxu1 %v1348_v15  ;;  %1153 = vmatprep.subr.bf16.mxu0 %v1349_v16  ;;  %v1383_v44 = vld [vmem:[%s1838_s0 + $0x64] ss:$16 sps:$4 sm:$0xff]   ;;  %v1385_v45 = vld [vmem:[%s1838_s0 + $0x6c] ss:$16 sps:$4 sm:$0xff]   ;;  %v1387_v46 = vld [vmem:[%s1838_s0 + $0x60] ss:$16 sps:$4 sm:$0xff]  }
  0x12   :  { %1247 = vmatprep.subr.bf16.mxu1 %v1350_v17  ;;  %v1388_v47 = vld [vmem:[%s1838_s0 + $0x68] ss:$16 sps:$4 sm:$0xff]   ;;  %v1389_v48 = vld [vmem:[%s1838_s0 + $0x84] ss:$16 sps:$4 sm:$0xff]   ;;  %v1391_v49 = vld [vmem:[%s1838_s0 + $0x8c] ss:$16 sps:$4 sm:$0xff]  }
  0x13   :  { %v1393_v50 = vld [vmem:[%s1838_s0 + $0x80] ss:$16 sps:$4 sm:$0xff]   ;;  %v1394_v51 = vld [vmem:[%s1838_s0 + $0x88] ss:$16 sps:$4 sm:$0xff]   ;;  %v1395_v52 = vld [vmem:[%s1838_s0 + $0xa4] ss:$16 sps:$4 sm:$0xff]  }
  0x14   :  { %1154 = vmatpush3.bf16.msra.mxu0 %v1351_v18  ;;  %v1397_v53 = vld [vmem:[%s1838_s0 + $0xac] ss:$16 sps:$4 sm:$0xff]   ;;  %v1399_v54 = vld [vmem:[%s1838_s0 + $0xa0] ss:$16 sps:$4 sm:$0xff]   ;;  %v1400_v55 = vld [vmem:[%s1838_s0 + $0xa8] ss:$16 sps:$4 sm:$0xff]  }
  0x15   :  { %1248 = vmatpush3.bf16.msra.mxu1 %v1352_v19  ;;  %1155 = vmatprep.subr.bf16.mxu0 %v1353_v20  ;;  %v1401_v56 = vld [vmem:[%s1838_s0 + $0xc4] ss:$16 sps:$4 sm:$0xff]   ;;  %v1403_v57 = vld [vmem:[%s1838_s0 + $0xcc] ss:$16 sps:$4 sm:$0xff]   ;;  %v1405_v58 = vld [vmem:[%s1838_s0 + $0xc0] ss:$16 sps:$4 sm:$0xff]  }
  0x16   :  { %1249 = vmatprep.subr.bf16.mxu1 %v1354_v21  ;;  %v1406_v59 = vld [vmem:[%s1838_s0 + $0xc8] ss:$16 sps:$4 sm:$0xff]   ;;  %v1407_v60 = vld [vmem:[%s1838_s0 + $0xe4] ss:$16 sps:$4 sm:$0xff]   ;;  %v1409_v61 = vld [vmem:[%s1838_s0 + $0xec] ss:$16 sps:$4 sm:$0xff]  }
  0x17   :  { %v1411_v62 = vld [vmem:[%s1838_s0 + $0xe0] ss:$16 sps:$4 sm:$0xff]   ;;  %v1412_v63 = vld [vmem:[%s1838_s0 + $0xe8] ss:$16 sps:$4 sm:$0xff]   ;;  %v1413_v0 = vld [vmem:[%s1838_s0 + $0x104] ss:$16 sps:$4 sm:$0xff]  }
  0x18   :  { %1156 = vmatpush3.bf16.msra.mxu0 %v1355_v22  ;;  %v1415_v1 = vld [vmem:[%s1838_s0 + $0x10c] ss:$16 sps:$4 sm:$0xff]   ;;  %v1417_v2 = vld [vmem:[%s1838_s0 + $0x100] ss:$16 sps:$4 sm:$0xff]   ;;  %v1418_v3 = vld [vmem:[%s1838_s0 + $0x108] ss:$16 sps:$4 sm:$0xff]  }
  0x19   :  { %1250 = vmatpush3.bf16.msra.mxu1 %v1356_v23  ;;  %1157 = vmatprep.subr.bf16.mxu0 %v1357_v24  ;;  %v1419_v4 = vld [vmem:[%s1838_s0 + $0x124] ss:$16 sps:$4 sm:$0xff]   ;;  %v1421_v5 = vld [vmem:[%s1838_s0 + $0x12c] ss:$16 sps:$4 sm:$0xff]   ;;  %v1423_v6 = vld [vmem:[%s1838_s0 + $0x120] ss:$16 sps:$4 sm:$0xff]  }
  0x1a   :  { %1251 = vmatprep.subr.bf16.mxu1 %v1358_v25  ;;  %v1424_v7 = vld [vmem:[%s1838_s0 + $0x128] ss:$16 sps:$4 sm:$0xff]   ;;  %v1425_v8 = vld [vmem:[%s1838_s0 + $0x144] ss:$16 sps:$4 sm:$0xff]   ;;  %v1427_v9 = vld [vmem:[%s1838_s0 + $0x14c] ss:$16 sps:$4 sm:$0xff]  }
  0x1b   :  { %v1429_v10 = vld [vmem:[%s1838_s0 + $0x140] ss:$16 sps:$4 sm:$0xff]   ;;  %v1430_v11 = vld [vmem:[%s1838_s0 + $0x148] ss:$16 sps:$4 sm:$0xff]   ;;  %v1431_v12 = vld [vmem:[%s1838_s0 + $0x164] ss:$16 sps:$4 sm:$0xff]  }
  0x1c   :  { %1158 = vmatpush3.bf16.msra.mxu0 %v1359_v26  ;;  %v1433_v13 = vld [vmem:[%s1838_s0 + $0x16c] ss:$16 sps:$4 sm:$0xff]   ;;  %v63_v14 = vld [vmem:[%s1838_s0 + $0x180] sm:$0xff]  ;;  %v1436_v17 = vld [vmem:[%s1838_s0 + $0x168] ss:$16 sps:$4 sm:$0xff]  }
  0x1d   :  { %1252 = vmatpush3.bf16.msra.mxu1 %v1360_v27  ;;  %1159 = vmatprep.subr.bf16.mxu0 %v1361_v28  ;;  %v64_v15 = vld [vmem:[%s1838_s0 + $0x188] sm:$0xff]  ;;  %v1435_v16 = vld [vmem:[%s1838_s0 + $0x160] ss:$16 sps:$4 sm:$0xff]   ;;  %v1060_v18 = vcombine.high %v63_v14, %v63_v14  ;;  %v1059_v20 = vcombine.low %v63_v14, %v63_v14 }
  0x1e   :  { %1253 = vmatprep.subr.bf16.mxu1 %v1362_v29  ;;  %v1062_v19 = vcombine.high %v64_v15, %v64_v15  ;;  %v1061_v21 = vcombine.low %v64_v15, %v64_v15  ;;  %v1710_v24 = vld [vmem:[%s1839_s2] ss:$0 sm:$0xff] }
  0x20   :  { %1160 = vmatpush3.bf16.msra.mxu0 %v1363_v30 }
  0x21   :  { %1254 = vmatpush3.bf16.msra.mxu1 %v1364_v31 }
  0x23   :  { %615 = vmatmul.mubr.bf16.vlgmr.msra.gmra.mxu0 %v1365_v32 }
  0x24   :  { %751 = vmatmul.mubr.bf16.vlgmr.msra.gmra.mxu1 %v1368_v34  ;;  %622 = vmatprep.mubr.bf16.mxu0 %v1371_v36 }
  0x25   :  { %758 = vmatprep.mubr.bf16.mxu1 %v1373_v37 }
  0x2b   :  { %623 = vmatmul.mubr.bf16.gmra.mxu0 %v1375_v38 }
  0x2c   :  { %759 = vmatmul.mubr.bf16.gmra.mxu1 %v1376_v39  ;;  %630 = vmatprep.mubr.bf16.mxu0 %v1377_v40 }
  0x2d   :  { %766 = vmatprep.mubr.bf16.mxu1 %v1379_v41 }
  0x33   :  { %631 = vmatmul.mubr.bf16.gmra.mxu0 %v1381_v42 }
  0x34   :  { %767 = vmatmul.mubr.bf16.gmra.mxu1 %v1382_v43  ;;  %638 = vmatprep.mubr.bf16.mxu0 %v1383_v44 }
  0x35   :  { %774 = vmatprep.mubr.bf16.mxu1 %v1385_v45 }
  0x3b   :  { %639 = vmatmul.mubr.bf16.gmra.mxu0 %v1387_v46 }
  0x3c   :  { %775 = vmatmul.mubr.bf16.gmra.mxu1 %v1388_v47  ;;  %646 = vmatprep.mubr.bf16.mxu0 %v1389_v48 }
  0x3d   :  { %782 = vmatprep.mubr.bf16.mxu1 %v1391_v49 }
  0x43   :  { %647 = vmatmul.mubr.bf16.gmra.mxu0 %v1393_v50 }
  0x44   :  { %783 = vmatmul.mubr.bf16.gmra.mxu1 %v1394_v51  ;;  %654 = vmatprep.mubr.bf16.mxu0 %v1395_v52 }
  0x45   :  { %790 = vmatprep.mubr.bf16.mxu1 %v1397_v53 }
  0x4b   :  { %655 = vmatmul.mubr.bf16.gmra.mxu0 %v1399_v54 }
  0x4c   :  { %791 = vmatmul.mubr.bf16.gmra.mxu1 %v1400_v55  ;;  %662 = vmatprep.mubr.bf16.mxu0 %v1401_v56 }
  0x4d   :  { %798 = vmatprep.mubr.bf16.mxu1 %v1403_v57 }
  0x53   :  { %663 = vmatmul.mubr.bf16.gmra.mxu0 %v1405_v58 }
  0x54   :  { %799 = vmatmul.mubr.bf16.gmra.mxu1 %v1406_v59  ;;  %670 = vmatprep.mubr.bf16.mxu0 %v1407_v60 }
  0x55   :  { %806 = vmatprep.mubr.bf16.mxu1 %v1409_v61 }
  0x5b   :  { %671 = vmatmul.mubr.bf16.gmra.mxu0 %v1411_v62 }
  0x5c   :  { %807 = vmatmul.mubr.bf16.gmra.mxu1 %v1412_v63  ;;  %678 = vmatprep.mubr.bf16.mxu0 %v1413_v0 }
  0x5d   :  { %814 = vmatprep.mubr.bf16.mxu1 %v1415_v1 }
  0x63   :  { %679 = vmatmul.mubr.bf16.gmra.mxu0 %v1417_v2 }
  0x64   :  { %815 = vmatmul.mubr.bf16.gmra.mxu1 %v1418_v3  ;;  %686 = vmatprep.mubr.bf16.mxu0 %v1419_v4 }
  0x65   :  { %822 = vmatprep.mubr.bf16.mxu1 %v1421_v5 }
  0x6b   :  { %687 = vmatmul.mubr.bf16.gmra.mxu0 %v1423_v6 }
  0x6c   :  { %823 = vmatmul.mubr.bf16.gmra.mxu1 %v1424_v7  ;;  %694 = vmatprep.mubr.bf16.mxu0 %v1425_v8 }
  0x6d   :  { %830 = vmatprep.mubr.bf16.mxu1 %v1427_v9 }
  0x73   :  { %695 = vmatmul.mubr.bf16.gmra.mxu0 %v1429_v10 }
  0x74   :  { %831 = vmatmul.mubr.bf16.gmra.mxu1 %v1430_v11  ;;  %702 = vmatprep.mubr.bf16.mxu0 %v1431_v12 }
  0x75   :  { %838 = vmatprep.mubr.bf16.mxu1 %v1433_v13 }
  0x7b   :  { %703 = vmatmul.mubr.bf16.gmra.mxu0 %v1435_v16 }
  0x7c   :  { %839 = vmatmul.mubr.bf16.gmra.mxu1 %v1436_v17  ;;  %710 = vmatprep.mubr.bf16.mxu0 %v1060_v18 }
  0x7d   :  { %846 = vmatprep.mubr.bf16.mxu1 %v1062_v19 }
  0x83   :  { %711 = vmatmul.mubr.bf16.gmra.mxu0 %v1059_v20 }
  0x84   :  { %847 = vmatmul.mubr.bf16.gmra.mxu1 %v1061_v21 }
  0xe3   :  { %v1161_v22 = vpop.f32.mrf.mxu0 }
  0xe4   :  { %v1255_v23 = vpop.f32.mrf.mxu1 }
  0xe5   :  { %v1162_v25 = vpop.f32.mrf.mxu0 }
  0xe6   :  { %v1163_v26 = vadd.f32 %v1162_v25, %v1161_v22  ;;  %v1256_v27 = vpop.f32.mrf.mxu1 }
  0xe7   :  { %v1164_v28 = vpop.f32.mrf.mxu0  ;;  %v1257_v30 = vadd.f32 %v1256_v27, %v1255_v23 }
  0xe8   :  { %v617_v29 = vadd.f32 %v1163_v26, %v1710_v24  ;;  %v1258_v31 = vpop.f32.mrf.mxu1 }
  0xe9   :  { %v1165_v32 = vpop.f32.mrf.mxu0 }
  0xea   :  { %v753_v33 = vadd.f32 %v1257_v30, %v617_v29  ;;  %v1166_v34 = vadd.f32 %v1165_v32, %v1164_v28  ;;  %v1259_v35 = vpop.f32.mrf.mxu1 }
  0xeb   :  { %v1167_v36 = vpop.f32.mrf.mxu0  ;;  %v1260_v39 = vadd.f32 %v1259_v35, %v1258_v31 }
  0xec   :  { %v854_v37 = vmax.f32 %v753_v33, 0.0  ;;  %v620_v38 = vadd.f32 %v1166_v34, %v1710_v24  ;;  %v1261_v40 = vpop.f32.mrf.mxu1 }
  0xed   :  { %v1168_v41 = vpop.f32.mrf.mxu0 }
  0xee   :  { %v1120_v42 = vpack.c.bf16 %v854_v37, %v854_v37  ;;  %v756_v43 = vadd.f32 %v1260_v39, %v620_v38  ;;  %v1169_v44 = vadd.f32 %v1168_v41, %v1167_v36  ;;  %v1262_v45 = vpop.f32.mrf.mxu1 }
  0xef   :  { %v1170_v46 = vpop.f32.mrf.mxu0  ;;  %v1263_v49 = vadd.f32 %v1262_v45, %v1261_v40 }
  0xf0   :  { %981 = vst.msk [vmem:[%s1840_s3] sm:$0xf] %vm980_vm0, %v1120_v42  ;;  %v855_v47 = vmax.f32 %v756_v43, 0.0  ;;  %v625_v48 = vadd.f32 %v1169_v44, %v1710_v24  ;;  %v1264_v50 = vpop.f32.mrf.mxu1 }
  0xf1   :  { %v1171_v51 = vpop.f32.mrf.mxu0 }
  0xf2   :  { %v1121_v52 = vpack.c.bf16 %v855_v47, %v855_v47  ;;  %v761_v53 = vadd.f32 %v1263_v49, %v625_v48  ;;  %v1172_v54 = vadd.f32 %v1171_v51, %v1170_v46  ;;  %v1265_v55 = vpop.f32.mrf.mxu1 }
  0xf3   :  { %v1173_v56 = vpop.f32.mrf.mxu0  ;;  %v1266_v59 = vadd.f32 %v1265_v55, %v1264_v50 }
  0xf4   :  { %982 = vst.msk [vmem:[%s1840_s3 + $0x4] sm:$0xf] %vm980_vm0, %v1121_v52  ;;  %v856_v57 = vmax.f32 %v761_v53, 0.0  ;;  %v628_v58 = vadd.f32 %v1172_v54, %v1710_v24  ;;  %v1267_v60 = vpop.f32.mrf.mxu1 }
  0xf5   :  { %v1174_v61 = vpop.f32.mrf.mxu0 }
  0xf6   :  { %v1122_v62 = vpack.c.bf16 %v856_v57, %v856_v57  ;;  %v764_v63 = vadd.f32 %v1266_v59, %v628_v58  ;;  %v1175_v0 = vadd.f32 %v1174_v61, %v1173_v56  ;;  %v1268_v1 = vpop.f32.mrf.mxu1 }
  0xf7   :  { %v1176_v2 = vpop.f32.mrf.mxu0  ;;  %v1269_v5 = vadd.f32 %v1268_v1, %v1267_v60 }
  0xf8   :  { %983 = vst.msk [vmem:[%s1840_s3 + $0x8] sm:$0xf] %vm980_vm0, %v1122_v62  ;;  %v857_v3 = vmax.f32 %v764_v63, 0.0  ;;  %v633_v4 = vadd.f32 %v1175_v0, %v1710_v24  ;;  %v1270_v6 = vpop.f32.mrf.mxu1 }
  0xf9   :  { %v1177_v7 = vpop.f32.mrf.mxu0 }
  0xfa   :  { %v1123_v8 = vpack.c.bf16 %v857_v3, %v857_v3  ;;  %v769_v9 = vadd.f32 %v1269_v5, %v633_v4  ;;  %v1178_v10 = vadd.f32 %v1177_v7, %v1176_v2  ;;  %v1271_v11 = vpop.f32.mrf.mxu1 }
  0xfb   :  { %v1179_v12 = vpop.f32.mrf.mxu0  ;;  %v1272_v15 = vadd.f32 %v1271_v11, %v1270_v6 }
  0xfc   :  { %984 = vst.msk [vmem:[%s1840_s3 + $0xc] sm:$0xf] %vm980_vm0, %v1123_v8  ;;  %v858_v13 = vmax.f32 %v769_v9, 0.0  ;;  %v636_v14 = vadd.f32 %v1178_v10, %v1710_v24  ;;  %v1273_v16 = vpop.f32.mrf.mxu1 }
  0xfd   :  { %v1180_v17 = vpop.f32.mrf.mxu0 }
  0xfe   :  { %v1124_v18 = vpack.c.bf16 %v858_v13, %v858_v13  ;;  %v772_v19 = vadd.f32 %v1272_v15, %v636_v14  ;;  %v1181_v20 = vadd.f32 %v1180_v17, %v1179_v12  ;;  %v1274_v21 = vpop.f32.mrf.mxu1 }
  0xff   :  { %v1182_v22 = vpop.f32.mrf.mxu0  ;;  %v1275_v26 = vadd.f32 %v1274_v21, %v1273_v16 }
 0x100   :  { %985 = vst.msk [vmem:[%s1840_s3 + $0x10] sm:$0xf] %vm980_vm0, %v1124_v18  ;;  %v859_v23 = vmax.f32 %v772_v19, 0.0  ;;  %v641_v25 = vadd.f32 %v1181_v20, %v1710_v24  ;;  %v1276_v27 = vpop.f32.mrf.mxu1 }
 0x101   :  { %v1183_v28 = vpop.f32.mrf.mxu0 }
 0x102   :  { %v1125_v29 = vpack.c.bf16 %v859_v23, %v859_v23  ;;  %v777_v30 = vadd.f32 %v1275_v26, %v641_v25  ;;  %v1184_v31 = vadd.f32 %v1183_v28, %v1182_v22  ;;  %v1277_v32 = vpop.f32.mrf.mxu1 }
 0x103   :  { %v1185_v33 = vpop.f32.mrf.mxu0  ;;  %v1278_v36 = vadd.f32 %v1277_v32, %v1276_v27 }
 0x104   :  { %986 = vst.msk [vmem:[%s1840_s3 + $0x14] sm:$0xf] %vm980_vm0, %v1125_v29  ;;  %v860_v34 = vmax.f32 %v777_v30, 0.0  ;;  %v644_v35 = vadd.f32 %v1184_v31, %v1710_v24  ;;  %v1279_v37 = vpop.f32.mrf.mxu1 }
 0x105   :  { %v1186_v38 = vpop.f32.mrf.mxu0 }
 0x106   :  { %v1126_v39 = vpack.c.bf16 %v860_v34, %v860_v34  ;;  %v780_v40 = vadd.f32 %v1278_v36, %v644_v35  ;;  %v1187_v41 = vadd.f32 %v1186_v38, %v1185_v33  ;;  %v1280_v42 = vpop.f32.mrf.mxu1 }
 0x107   :  { %v1188_v43 = vpop.f32.mrf.mxu0  ;;  %v1281_v46 = vadd.f32 %v1280_v42, %v1279_v37 }
 0x108   :  { %987 = vst.msk [vmem:[%s1840_s3 + $0x18] sm:$0xf] %vm980_vm0, %v1126_v39  ;;  %v861_v44 = vmax.f32 %v780_v40, 0.0  ;;  %v649_v45 = vadd.f32 %v1187_v41, %v1710_v24  ;;  %v1282_v47 = vpop.f32.mrf.mxu1 }
 0x109   :  { %v1189_v48 = vpop.f32.mrf.mxu0 }
 0x10a   :  { %v1127_v49 = vpack.c.bf16 %v861_v44, %v861_v44  ;;  %v785_v50 = vadd.f32 %v1281_v46, %v649_v45  ;;  %v1190_v51 = vadd.f32 %v1189_v48, %v1188_v43  ;;  %v1283_v52 = vpop.f32.mrf.mxu1 }
 0x10b   :  { %v1191_v53 = vpop.f32.mrf.mxu0  ;;  %v1284_v56 = vadd.f32 %v1283_v52, %v1282_v47 }
 0x10c   :  { %988 = vst.msk [vmem:[%s1840_s3 + $0x1c] sm:$0xf] %vm980_vm0, %v1127_v49  ;;  %v862_v54 = vmax.f32 %v785_v50, 0.0  ;;  %v652_v55 = vadd.f32 %v1190_v51, %v1710_v24  ;;  %v1285_v57 = vpop.f32.mrf.mxu1 }
 0x10d   :  { %v1192_v58 = vpop.f32.mrf.mxu0 }
 0x10e   :  { %v1128_v59 = vpack.c.bf16 %v862_v54, %v862_v54  ;;  %v788_v60 = vadd.f32 %v1284_v56, %v652_v55  ;;  %v1193_v61 = vadd.f32 %v1192_v58, %v1191_v53  ;;  %v1286_v62 = vpop.f32.mrf.mxu1 }
 0x10f   :  { %v1194_v63 = vpop.f32.mrf.mxu0  ;;  %v1287_v2 = vadd.f32 %v1286_v62, %v1285_v57 }
 0x110   :  { %989 = vst.msk [vmem:[%s1840_s3 + $0x20] sm:$0xf] %vm980_vm0, %v1128_v59  ;;  %v863_v0 = vmax.f32 %v788_v60, 0.0  ;;  %v657_v1 = vadd.f32 %v1193_v61, %v1710_v24  ;;  %v1288_v3 = vpop.f32.mrf.mxu1 }
 0x111   :  { %v1195_v4 = vpop.f32.mrf.mxu0 }
 0x112   :  { %v1129_v5 = vpack.c.bf16 %v863_v0, %v863_v0  ;;  %v793_v6 = vadd.f32 %v1287_v2, %v657_v1  ;;  %v1196_v7 = vadd.f32 %v1195_v4, %v1194_v63  ;;  %v1289_v8 = vpop.f32.mrf.mxu1 }
 0x113   :  { %v1197_v9 = vpop.f32.mrf.mxu0  ;;  %v1290_v12 = vadd.f32 %v1289_v8, %v1288_v3 }
 0x114   :  { %990 = vst.msk [vmem:[%s1840_s3 + $0x24] sm:$0xf] %vm980_vm0, %v1129_v5  ;;  %v864_v10 = vmax.f32 %v793_v6, 0.0  ;;  %v660_v11 = vadd.f32 %v1196_v7, %v1710_v24  ;;  %v1291_v13 = vpop.f32.mrf.mxu1 }
 0x115   :  { %v1198_v14 = vpop.f32.mrf.mxu0 }
 0x116   :  { %v1130_v15 = vpack.c.bf16 %v864_v10, %v864_v10  ;;  %v796_v16 = vadd.f32 %v1290_v12, %v660_v11  ;;  %v1199_v17 = vadd.f32 %v1198_v14, %v1197_v9  ;;  %v1292_v18 = vpop.f32.mrf.mxu1 }
 0x117   :  { %v1200_v19 = vpop.f32.mrf.mxu0  ;;  %v1293_v22 = vadd.f32 %v1292_v18, %v1291_v13 }
 0x118   :  { %991 = vst.msk [vmem:[%s1840_s3 + $0x28] sm:$0xf] %vm980_vm0, %v1130_v15  ;;  %v865_v20 = vmax.f32 %v796_v16, 0.0  ;;  %v665_v21 = vadd.f32 %v1199_v17, %v1710_v24  ;;  %v1294_v23 = vpop.f32.mrf.mxu1 }
 0x119   :  { %v1201_v25 = vpop.f32.mrf.mxu0 }
 0x11a   :  { %v1131_v26 = vpack.c.bf16 %v865_v20, %v865_v20  ;;  %v801_v27 = vadd.f32 %v1293_v22, %v665_v21  ;;  %v1202_v28 = vadd.f32 %v1201_v25, %v1200_v19  ;;  %v1295_v29 = vpop.f32.mrf.mxu1 }
 0x11b   :  { %v1203_v30 = vpop.f32.mrf.mxu0  ;;  %v1296_v33 = vadd.f32 %v1295_v29, %v1294_v23 }
 0x11c   :  { %992 = vst.msk [vmem:[%s1840_s3 + $0x2c] sm:$0xf] %vm980_vm0, %v1131_v26  ;;  %v866_v31 = vmax.f32 %v801_v27, 0.0  ;;  %v668_v32 = vadd.f32 %v1202_v28, %v1710_v24  ;;  %v1297_v34 = vpop.f32.mrf.mxu1 }
 0x11d   :  { %v1204_v35 = vpop.f32.mrf.mxu0 }
 0x11e   :  { %v1132_v36 = vpack.c.bf16 %v866_v31, %v866_v31  ;;  %v804_v37 = vadd.f32 %v1296_v33, %v668_v32  ;;  %v1205_v38 = vadd.f32 %v1204_v35, %v1203_v30  ;;  %v1298_v39 = vpop.f32.mrf.mxu1 }
 0x11f   :  { %v1206_v40 = vpop.f32.mrf.mxu0  ;;  %v1299_v43 = vadd.f32 %v1298_v39, %v1297_v34 }
 0x120   :  { %993 = vst.msk [vmem:[%s1840_s3 + $0x30] sm:$0xf] %vm980_vm0, %v1132_v36  ;;  %v867_v41 = vmax.f32 %v804_v37, 0.0  ;;  %v673_v42 = vadd.f32 %v1205_v38, %v1710_v24  ;;  %v1300_v44 = vpop.f32.mrf.mxu1 }
 0x121   :  { %v1207_v45 = vpop.f32.mrf.mxu0 }
 0x122   :  { %v1133_v46 = vpack.c.bf16 %v867_v41, %v867_v41  ;;  %v809_v47 = vadd.f32 %v1299_v43, %v673_v42  ;;  %v1208_v48 = vadd.f32 %v1207_v45, %v1206_v40  ;;  %v1301_v49 = vpop.f32.mrf.mxu1 }
 0x123   :  { %v1209_v50 = vpop.f32.mrf.mxu0  ;;  %v1302_v53 = vadd.f32 %v1301_v49, %v1300_v44 }
 0x124   :  { %994 = vst.msk [vmem:[%s1840_s3 + $0x34] sm:$0xf] %vm980_vm0, %v1133_v46  ;;  %v868_v51 = vmax.f32 %v809_v47, 0.0  ;;  %v676_v52 = vadd.f32 %v1208_v48, %v1710_v24  ;;  %v1303_v54 = vpop.f32.mrf.mxu1 }
 0x125   :  { %v1210_v55 = vpop.f32.mrf.mxu0 }
 0x126   :  { %v1134_v56 = vpack.c.bf16 %v868_v51, %v868_v51  ;;  %v812_v57 = vadd.f32 %v1302_v53, %v676_v52  ;;  %v1211_v58 = vadd.f32 %v1210_v55, %v1209_v50  ;;  %v1304_v59 = vpop.f32.mrf.mxu1 }
 0x127   :  { %v1212_v60 = vpop.f32.mrf.mxu0  ;;  %v1305_v63 = vadd.f32 %v1304_v59, %v1303_v54 }
 0x128   :  { %995 = vst.msk [vmem:[%s1840_s3 + $0x38] sm:$0xf] %vm980_vm0, %v1134_v56  ;;  %v869_v61 = vmax.f32 %v812_v57, 0.0  ;;  %v681_v62 = vadd.f32 %v1211_v58, %v1710_v24  ;;  %v1306_v0 = vpop.f32.mrf.mxu1 }
 0x129   :  { %v1213_v1 = vpop.f32.mrf.mxu0 }
 0x12a   :  { %v1135_v2 = vpack.c.bf16 %v869_v61, %v869_v61  ;;  %v817_v3 = vadd.f32 %v1305_v63, %v681_v62  ;;  %v1214_v4 = vadd.f32 %v1213_v1, %v1212_v60  ;;  %v1307_v5 = vpop.f32.mrf.mxu1 }
 0x12b   :  { %v1215_v6 = vpop.f32.mrf.mxu0  ;;  %v1308_v9 = vadd.f32 %v1307_v5, %v1306_v0 }
 0x12c   :  { %996 = vst.msk [vmem:[%s1840_s3 + $0x3c] sm:$0xf] %vm980_vm0, %v1135_v2  ;;  %v870_v7 = vmax.f32 %v817_v3, 0.0  ;;  %v684_v8 = vadd.f32 %v1214_v4, %v1710_v24  ;;  %v1309_v10 = vpop.f32.mrf.mxu1 }
 0x12d   :  { %v1216_v11 = vpop.f32.mrf.mxu0 }
 0x12e   :  { %v1136_v12 = vpack.c.bf16 %v870_v7, %v870_v7  ;;  %v820_v13 = vadd.f32 %v1308_v9, %v684_v8  ;;  %v1217_v14 = vadd.f32 %v1216_v11, %v1215_v6  ;;  %v1310_v15 = vpop.f32.mrf.mxu1 }
 0x12f   :  { %v1218_v16 = vpop.f32.mrf.mxu0  ;;  %v1311_v19 = vadd.f32 %v1310_v15, %v1309_v10 }
 0x130   :  { %997 = vst.msk [vmem:[%s1840_s3 + $0x40] sm:$0xf] %vm980_vm0, %v1136_v12  ;;  %v871_v17 = vmax.f32 %v820_v13, 0.0  ;;  %v689_v18 = vadd.f32 %v1217_v14, %v1710_v24  ;;  %v1312_v20 = vpop.f32.mrf.mxu1 }
 0x131   :  { %v1219_v21 = vpop.f32.mrf.mxu0 }
 0x132   :  { %v1137_v22 = vpack.c.bf16 %v871_v17, %v871_v17  ;;  %v825_v23 = vadd.f32 %v1311_v19, %v689_v18  ;;  %v1220_v25 = vadd.f32 %v1219_v21, %v1218_v16  ;;  %v1313_v26 = vpop.f32.mrf.mxu1 }
 0x133   :  { %v1221_v27 = vpop.f32.mrf.mxu0  ;;  %v1314_v30 = vadd.f32 %v1313_v26, %v1312_v20 }
 0x134   :  { %998 = vst.msk [vmem:[%s1840_s3 + $0x44] sm:$0xf] %vm980_vm0, %v1137_v22  ;;  %v872_v28 = vmax.f32 %v825_v23, 0.0  ;;  %v692_v29 = vadd.f32 %v1220_v25, %v1710_v24  ;;  %v1315_v31 = vpop.f32.mrf.mxu1 }
 0x135   :  { %v1222_v32 = vpop.f32.mrf.mxu0 }
 0x136   :  { %v1138_v33 = vpack.c.bf16 %v872_v28, %v872_v28  ;;  %v828_v34 = vadd.f32 %v1314_v30, %v692_v29  ;;  %v1223_v35 = vadd.f32 %v1222_v32, %v1221_v27  ;;  %v1316_v36 = vpop.f32.mrf.mxu1 }
 0x137   :  { %v1224_v37 = vpop.f32.mrf.mxu0  ;;  %v1317_v40 = vadd.f32 %v1316_v36, %v1315_v31 }
 0x138   :  { %999 = vst.msk [vmem:[%s1840_s3 + $0x48] sm:$0xf] %vm980_vm0, %v1138_v33  ;;  %v873_v38 = vmax.f32 %v828_v34, 0.0  ;;  %v697_v39 = vadd.f32 %v1223_v35, %v1710_v24  ;;  %v1318_v41 = vpop.f32.mrf.mxu1 }
 0x139   :  { %v1225_v42 = vpop.f32.mrf.mxu0 }
 0x13a   :  { %v1139_v43 = vpack.c.bf16 %v873_v38, %v873_v38  ;;  %v833_v44 = vadd.f32 %v1317_v40, %v697_v39  ;;  %v1226_v45 = vadd.f32 %v1225_v42, %v1224_v37  ;;  %v1319_v46 = vpop.f32.mrf.mxu1 }
 0x13b   :  { %v1227_v47 = vpop.f32.mrf.mxu0  ;;  %v1320_v50 = vadd.f32 %v1319_v46, %v1318_v41 }
 0x13c   :  { %1000 = vst.msk [vmem:[%s1840_s3 + $0x4c] sm:$0xf] %vm980_vm0, %v1139_v43  ;;  %v874_v48 = vmax.f32 %v833_v44, 0.0  ;;  %v700_v49 = vadd.f32 %v1226_v45, %v1710_v24  ;;  %v1321_v51 = vpop.f32.mrf.mxu1 }
 0x13d   :  { %v1228_v52 = vpop.f32.mrf.mxu0 }
 0x13e   :  { %v1140_v53 = vpack.c.bf16 %v874_v48, %v874_v48  ;;  %v836_v54 = vadd.f32 %v1320_v50, %v700_v49  ;;  %v1229_v55 = vadd.f32 %v1228_v52, %v1227_v47  ;;  %v1322_v56 = vpop.f32.mrf.mxu1 }
 0x13f   :  { %v1230_v57 = vpop.f32.mrf.mxu0  ;;  %v1323_v60 = vadd.f32 %v1322_v56, %v1321_v51 }
 0x140   :  { %1001 = vst.msk [vmem:[%s1840_s3 + $0x50] sm:$0xf] %vm980_vm0, %v1140_v53  ;;  %v875_v58 = vmax.f32 %v836_v54, 0.0  ;;  %v705_v59 = vadd.f32 %v1229_v55, %v1710_v24  ;;  %v1324_v61 = vpop.f32.mrf.mxu1 }
 0x141   :  { %v1231_v62 = vpop.f32.mrf.mxu0 }
 0x142   :  { %v1141_v63 = vpack.c.bf16 %v875_v58, %v875_v58  ;;  %v841_v0 = vadd.f32 %v1323_v60, %v705_v59  ;;  %v1232_v1 = vadd.f32 %v1231_v62, %v1230_v57  ;;  %v1325_v2 = vpop.f32.mrf.mxu1 }
 0x143   :  { %v1233_v3 = vpop.f32.mrf.mxu0  ;;  %v1326_v6 = vadd.f32 %v1325_v2, %v1324_v61 }
 0x144   :  { %1002 = vst.msk [vmem:[%s1840_s3 + $0x54] sm:$0xf] %vm980_vm0, %v1141_v63  ;;  %v876_v4 = vmax.f32 %v841_v0, 0.0  ;;  %v708_v5 = vadd.f32 %v1232_v1, %v1710_v24  ;;  %v1327_v7 = vpop.f32.mrf.mxu1 }
 0x145   :  { %v1234_v8 = vpop.f32.mrf.mxu0 }
 0x146   :  { %v1142_v9 = vpack.c.bf16 %v876_v4, %v876_v4  ;;  %v844_v10 = vadd.f32 %v1326_v6, %v708_v5  ;;  %v1235_v11 = vadd.f32 %v1234_v8, %v1233_v3  ;;  %v1328_v12 = vpop.f32.mrf.mxu1 }
 0x147   :  { %v1236_v13 = vpop.f32.mrf.mxu0  ;;  %v1329_v16 = vadd.f32 %v1328_v12, %v1327_v7 }
 0x148   :  { %1003 = vst.msk [vmem:[%s1840_s3 + $0x58] sm:$0xf] %vm980_vm0, %v1142_v9  ;;  %v877_v14 = vmax.f32 %v844_v10, 0.0  ;;  %v713_v15 = vadd.f32 %v1235_v11, %v1710_v24  ;;  %v1330_v17 = vpop.f32.mrf.mxu1 }
 0x149   :  { %v1237_v18 = vpop.f32.mrf.mxu0 }
 0x14a   :  { %v1143_v19 = vpack.c.bf16 %v877_v14, %v877_v14  ;;  %v849_v20 = vadd.f32 %v1329_v16, %v713_v15  ;;  %v1331_v21 = vpop.f32.mrf.mxu1 }
 0x14c   :  { %1004 = vst.msk [vmem:[%s1840_s3 + $0x5c] sm:$0xf] %vm980_vm0, %v1143_v19  ;;  %v878_v22 = vmax.f32 %v849_v20, 0.0 }
 0x14e   :  { %v1144_v23 = vpack.c.bf16 %v878_v22, %v878_v22 }
 0x150   :  { %1005 = vst.msk [vmem:[%s1840_s3 + $0x60] sm:$0xf] %vm980_vm0, %v1144_v23 }

// kernel: dqn_forward_pallas.6
= control target key start
LH: loop header
LB: loop body
LE: loop exit
PB: predicated region body
PF: predicated region fallthrough
CT: control target
= control target key end

     0   :  { %vm558_vm0 = vcmask 523264   ;;  %vm954_vm1 = vcmask 519168   ;;  %s1775_s1 = inlined_call_operand.vmem [shape: bf16[576,64], index: 1, kind: input, shape index: {}]   ;;  %s1776_s0 = inlined_call_operand.vmem [shape: bf16[128,576], index: 0, kind: input, shape index: {}]   ;;  %s1777_s2 = inlined_call_operand.vmem [shape: f32[1,64], index: 2, kind: input, shape index: {}]   ;;  %s1778_s3 = inlined_call_operand.vmem [shape: bf16[128,64], index: 3, kind: output, shape index: {}]  }
   0x1   :  { %v1264_v0 = vld [vmem:[%s1775_s1 + $0x78] sm:$0xff]   ;;  %v1268_v4 = vld [vmem:[%s1775_s1 + $0x70] sm:$0xff]   ;;  %v1272_v8 = vld [vmem:[%s1775_s1 + $0x68] sm:$0xff]  }
   0x2   :  { %v1265_v1 = vld [vmem:[%s1775_s1 + $0xf8] sm:$0xff]   ;;  %1092 = vmatprep.subr.bf16.mxu0 %v1264_v0  ;;  %v1269_v5 = vld [vmem:[%s1775_s1 + $0xf0] sm:$0xff]   ;;  %v1273_v9 = vld [vmem:[%s1775_s1 + $0xe8] sm:$0xff]  }
   0x3   :  { %v1266_v2 = vld [vmem:[%s1775_s1 + $0x38] sm:$0xff]   ;;  %1156 = vmatprep.subr.bf16.mxu1 %v1265_v1  ;;  %v1270_v6 = vld [vmem:[%s1775_s1 + $0x30] sm:$0xff]   ;;  %v1274_v10 = vld [vmem:[%s1775_s1 + $0x28] sm:$0xff]  }
   0x4   :  { %v1267_v3 = vld [vmem:[%s1775_s1 + $0xb8] sm:$0xff]   ;;  %1093 = vmatpush3.bf16.msra.mxu0 %v1266_v2  ;;  %v1271_v7 = vld [vmem:[%s1775_s1 + $0xb0] sm:$0xff]   ;;  %v1275_v11 = vld [vmem:[%s1775_s1 + $0xa8] sm:$0xff]  }
   0x5   :  { %1157 = vmatpush3.bf16.msra.mxu1 %v1267_v3  ;;  %1094 = vmatprep.subr.bf16.mxu0 %v1268_v4  ;;  %v1276_v12 = vld [vmem:[%s1775_s1 + $0x60] sm:$0xff]   ;;  %v1280_v16 = vld [vmem:[%s1775_s1 + $0x58] sm:$0xff]   ;;  %v1284_v20 = vld [vmem:[%s1775_s1 + $0x50] sm:$0xff]  }
   0x6   :  { %1158 = vmatprep.subr.bf16.mxu1 %v1269_v5  ;;  %v1277_v13 = vld [vmem:[%s1775_s1 + $0xe0] sm:$0xff]   ;;  %v1281_v17 = vld [vmem:[%s1775_s1 + $0xd8] sm:$0xff]   ;;  %v1285_v21 = vld [vmem:[%s1775_s1 + $0xd0] sm:$0xff]  }
   0x7   :  { %v1278_v14 = vld [vmem:[%s1775_s1 + $0x20] sm:$0xff]   ;;  %v1282_v18 = vld [vmem:[%s1775_s1 + $0x18] sm:$0xff]   ;;  %v1286_v22 = vld [vmem:[%s1775_s1 + $0x10] sm:$0xff]  }
   0x8   :  { %1095 = vmatpush3.bf16.msra.mxu0 %v1270_v6  ;;  %v1279_v15 = vld [vmem:[%s1775_s1 + $0xa0] sm:$0xff]   ;;  %v1283_v19 = vld [vmem:[%s1775_s1 + $0x98] sm:$0xff]   ;;  %v1287_v23 = vld [vmem:[%s1775_s1 + $0x90] sm:$0xff]  }
   0x9   :  { %1159 = vmatpush3.bf16.msra.mxu1 %v1271_v7  ;;  %1096 = vmatprep.subr.bf16.mxu0 %v1272_v8  ;;  %v1288_v24 = vld [vmem:[%s1775_s1 + $0x48] sm:$0xff]   ;;  %v1292_v28 = vld [vmem:[%s1775_s1 + $0x40] sm:$0xff]   ;;  %v1302_v36 = vld [vmem:[%s1775_s1 + $0x118] sm:$0xff]  }
   0xa   :  { %1160 = vmatprep.subr.bf16.mxu1 %v1273_v9  ;;  %v1289_v25 = vld [vmem:[%s1775_s1 + $0xc8] sm:$0xff]   ;;  %v1293_v29 = vld [vmem:[%s1775_s1 + $0xc0] sm:$0xff]   ;;  %v1315_v42 = vld [vmem:[%s1775_s1 + $0x110] sm:$0xff]  }
   0xb   :  { %v1290_v26 = vld [vmem:[%s1775_s1 + $0x8] sm:$0xff]   ;;  %v1294_v30 = vld [vmem:[%s1775_s1] sm:$0xff]   ;;  %v1311_v43 = vld [vmem:[%s1776_s0 + $0x5c] ss:$20 sps:$4 sm:$0xff]  }
   0xc   :  { %1097 = vmatpush3.bf16.msra.mxu0 %v1274_v10  ;;  %v1291_v27 = vld [vmem:[%s1775_s1 + $0x88] sm:$0xff]   ;;  %v1295_v31 = vld [vmem:[%s1775_s1 + $0x80] sm:$0xff]   ;;  %v1316_v47 = vld [vmem:[%s1776_s0 + $0x7c] ss:$20 sps:$4 sm:$0xff]  }
   0xd   :  { %1161 = vmatpush3.bf16.msra.mxu1 %v1275_v11  ;;  %1098 = vmatprep.subr.bf16.mxu0 %v1276_v12  ;;  %v1296_v32 = vld [vmem:[%s1776_s0] ss:$20 sps:$4 sm:$0xff]   ;;  %v1298_v33 = vld [vmem:[%s1776_s0 + $0x4] ss:$20 sps:$4 sm:$0xff]   ;;  %v1299_v34 = vld [vmem:[%s1776_s0 + $0x8] ss:$20 sps:$4 sm:$0xff]  }
   0xe   :  { %1162 = vmatprep.subr.bf16.mxu1 %v1277_v13  ;;  %v1301_v35 = vld [vmem:[%s1776_s0 + $0xc] ss:$20 sps:$4 sm:$0xff]   ;;  %615 = vmatprep.mubr.bf16.mxu0 %v1298_v33  ;;  %v1305_v38 = vld [vmem:[%s1776_s0 + $0x34] ss:$20 sps:$4 sm:$0xff]   ;;  %v1308_v40 = vld [vmem:[%s1776_s0 + $0x30] ss:$20 sps:$4 sm:$0xff]  }
   0xf   :  { %712 = vmatprep.mubr.bf16.mxu1 %v1301_v35  ;;  %v1303_v37 = vld [vmem:[%s1776_s0 + $0x2c] ss:$20 sps:$4 sm:$0xff]   ;;  %v1307_v39 = vld [vmem:[%s1776_s0 + $0x28] ss:$20 sps:$4 sm:$0xff]   ;;  %v1313_v44 = vld [vmem:[%s1776_s0 + $0x50] ss:$20 sps:$4 sm:$0xff]  }
  0x10   :  { %1099 = vmatpush3.bf16.msra.mxu0 %v1278_v14  ;;  %v1309_v41 = vld [vmem:[%s1776_s0 + $0x54] ss:$20 sps:$4 sm:$0xff]   ;;  %v1314_v45 = vld [vmem:[%s1776_s0 + $0x58] ss:$20 sps:$4 sm:$0xff]   ;;  %v1341_v49 = vld [vmem:[%s1775_s1 + $0x100] sm:$0xff]  }
  0x11   :  { %1163 = vmatpush3.bf16.msra.mxu1 %v1279_v15  ;;  %1100 = vmatprep.subr.bf16.mxu0 %v1280_v16  ;;  %v1328_v46 = vld [vmem:[%s1775_s1 + $0x108] sm:$0xff]   ;;  %v1318_v48 = vld [vmem:[%s1776_s0 + $0x84] ss:$20 sps:$4 sm:$0xff]   ;;  %v1321_v51 = vld [vmem:[%s1776_s0 + $0x80] ss:$20 sps:$4 sm:$0xff]  }
  0x12   :  { %1164 = vmatprep.subr.bf16.mxu1 %v1281_v17  ;;  %v1320_v50 = vld [vmem:[%s1776_s0 + $0x78] ss:$20 sps:$4 sm:$0xff]   ;;  %v1326_v54 = vld [vmem:[%s1776_s0 + $0xa0] ss:$20 sps:$4 sm:$0xff]   ;;  %v1327_v55 = vld [vmem:[%s1776_s0 + $0xa8] ss:$20 sps:$4 sm:$0xff]  }
  0x13   :  { %v1322_v52 = vld [vmem:[%s1776_s0 + $0xa4] ss:$20 sps:$4 sm:$0xff]   ;;  %v1324_v53 = vld [vmem:[%s1776_s0 + $0xac] ss:$20 sps:$4 sm:$0xff]   ;;  %v1331_v57 = vld [vmem:[%s1776_s0 + $0xd4] ss:$20 sps:$4 sm:$0xff]  }
  0x14   :  { %1101 = vmatpush3.bf16.msra.mxu0 %v1282_v18  ;;  %v1329_v56 = vld [vmem:[%s1776_s0 + $0xcc] ss:$20 sps:$4 sm:$0xff]   ;;  %v1333_v58 = vld [vmem:[%s1776_s0 + $0xc8] ss:$20 sps:$4 sm:$0xff]   ;;  %v1334_v59 = vld [vmem:[%s1776_s0 + $0xd0] ss:$20 sps:$4 sm:$0xff]  }
  0x15   :  { %1165 = vmatpush3.bf16.msra.mxu1 %v1283_v19  ;;  %1102 = vmatprep.subr.bf16.mxu0 %v1284_v20  ;;  %v1335_v60 = vld [vmem:[%s1776_s0 + $0xf4] ss:$20 sps:$4 sm:$0xff]   ;;  %v1337_v61 = vld [vmem:[%s1776_s0 + $0xfc] ss:$20 sps:$4 sm:$0xff]   ;;  %v1340_v63 = vld [vmem:[%s1776_s0 + $0xf8] ss:$20 sps:$4 sm:$0xff]  }
  0x16   :  { %1166 = vmatprep.subr.bf16.mxu1 %v1285_v21  ;;  %v1339_v62 = vld [vmem:[%s1776_s0 + $0xf0] ss:$20 sps:$4 sm:$0xff]   ;;  %v1346_v2 = vld [vmem:[%s1776_s0 + $0x118] ss:$20 sps:$4 sm:$0xff]   ;;  %v1347_v3 = vld [vmem:[%s1776_s0 + $0x120] ss:$20 sps:$4 sm:$0xff]  }
  0x17   :  { %v1342_v0 = vld [vmem:[%s1776_s0 + $0x11c] ss:$20 sps:$4 sm:$0xff]   ;;  %v1344_v1 = vld [vmem:[%s1776_s0 + $0x124] ss:$20 sps:$4 sm:$0xff]   ;;  %v1352_v8 = vld [vmem:[%s1776_s0 + $0x60] ss:$20 sps:$4 sm:$0xff]  }
  0x18   :  { %1103 = vmatpush3.bf16.msra.mxu0 %v1286_v22  ;;  %v1348_v4 = vld [vmem:[%s1776_s0 + $0x10] ss:$20 sps:$4 sm:$0xff]   ;;  %v1350_v6 = vld [vmem:[%s1776_s0 + $0x38] ss:$20 sps:$4 sm:$0xff]   ;;  %v1353_v9 = vld [vmem:[%s1776_s0 + $0x100] ss:$20 sps:$4 sm:$0xff]  }
  0x19   :  { %1167 = vmatpush3.bf16.msra.mxu1 %v1287_v23  ;;  %1104 = vmatprep.subr.bf16.mxu0 %v1288_v24  ;;  %v1349_v5 = vld [vmem:[%s1776_s0 + $0xb0] ss:$20 sps:$4 sm:$0xff]   ;;  %v1351_v7 = vld [vmem:[%s1776_s0 + $0xd8] ss:$20 sps:$4 sm:$0xff]   ;;  %v1354_v10 = vld [vmem:[%s1776_s0 + $0x88] ss:$20 sps:$4 sm:$0xff]  }
  0x1a   :  { %1168 = vmatprep.subr.bf16.mxu1 %v1289_v25  ;;  %v1355_v11 = vld [vmem:[%s1776_s0 + $0x128] ss:$20 sps:$4 sm:$0xff]  }
  0x1c   :  { %1105 = vmatpush3.bf16.msra.mxu0 %v1290_v26 }
  0x1d   :  { %1169 = vmatpush3.bf16.msra.mxu1 %v1291_v27  ;;  %1106 = vmatprep.subr.bf16.mxu0 %v1292_v28 }
  0x1e   :  { %1170 = vmatprep.subr.bf16.mxu1 %v1293_v29 }
  0x20   :  { %1107 = vmatpush3.bf16.msra.mxu0 %v1294_v30 }
  0x21   :  { %1171 = vmatpush3.bf16.msra.mxu1 %v1295_v31  ;;  %1232 = vmatprep.subr.bf16.mxu0 %v1302_v36 }
  0x22   :  { %1256 = vmatprep.subr.bf16.mxu1 %v1302_v36 }
  0x23   :  { %616 = vmatmul.mubr.bf16.vlgmr.msra.gmra.mxu0 %v1296_v32 }
  0x24   :  { %713 = vmatmul.mubr.bf16.vlgmr.msra.gmra.mxu1 %v1299_v34  ;;  %1233 = vmatpush3.bf16.msra.mxu0 %v1302_v36 }
  0x25   :  { %1260 = vmatpush3.bf16.msra.mxu1 %v1302_v36  ;;  %623 = vmatprep.mubr.bf16.mxu0 %v1303_v37 }
  0x26   :  { %720 = vmatprep.mubr.bf16.mxu1 %v1305_v38  ;;  %1234 = vmatprep.subr.bf16.mxu0 %v1315_v42 }
  0x27   :  { %1257 = vmatprep.subr.bf16.mxu1 %v1315_v42 }
  0x28   :  { %1235 = vmatpush3.bf16.msra.mxu0 %v1315_v42 }
  0x29   :  { %1261 = vmatpush3.bf16.msra.mxu1 %v1315_v42  ;;  %1236 = vmatprep.subr.bf16.mxu0 %v1328_v46 }
  0x2a   :  { %1258 = vmatprep.subr.bf16.mxu1 %v1328_v46 }
  0x2b   :  { %624 = vmatmul.mubr.bf16.gmra.mxu0 %v1307_v39 }
  0x2c   :  { %721 = vmatmul.mubr.bf16.gmra.mxu1 %v1308_v40  ;;  %631 = vmatprep.mubr.bf16.mxu0 %v1309_v41 }
  0x2d   :  { %728 = vmatprep.mubr.bf16.mxu1 %v1311_v43  ;;  %1237 = vmatpush3.bf16.msra.mxu0 %v1328_v46 }
  0x2e   :  { %1262 = vmatpush3.bf16.msra.mxu1 %v1328_v46  ;;  %1238 = vmatprep.subr.bf16.mxu0 %v1341_v49 }
  0x2f   :  { %1259 = vmatprep.subr.bf16.mxu1 %v1341_v49 }
  0x31   :  { %1239 = vmatpush3.bf16.msra.mxu0 %v1341_v49 }
  0x32   :  { %1263 = vmatpush3.bf16.msra.mxu1 %v1341_v49 }
  0x33   :  { %632 = vmatmul.mubr.bf16.gmra.mxu0 %v1313_v44 }
  0x34   :  { %729 = vmatmul.mubr.bf16.gmra.mxu1 %v1314_v45  ;;  %639 = vmatprep.mubr.bf16.mxu0 %v1316_v47 }
  0x35   :  { %736 = vmatprep.mubr.bf16.mxu1 %v1318_v48 }
  0x3b   :  { %640 = vmatmul.mubr.bf16.gmra.mxu0 %v1320_v50 }
  0x3c   :  { %737 = vmatmul.mubr.bf16.gmra.mxu1 %v1321_v51  ;;  %647 = vmatprep.mubr.bf16.mxu0 %v1322_v52 }
  0x3d   :  { %744 = vmatprep.mubr.bf16.mxu1 %v1324_v53 }
  0x43   :  { %648 = vmatmul.mubr.bf16.gmra.mxu0 %v1326_v54 }
  0x44   :  { %745 = vmatmul.mubr.bf16.gmra.mxu1 %v1327_v55  ;;  %655 = vmatprep.mubr.bf16.mxu0 %v1329_v56 }
  0x45   :  { %752 = vmatprep.mubr.bf16.mxu1 %v1331_v57 }
  0x4b   :  { %656 = vmatmul.mubr.bf16.gmra.mxu0 %v1333_v58 }
  0x4c   :  { %753 = vmatmul.mubr.bf16.gmra.mxu1 %v1334_v59  ;;  %663 = vmatprep.mubr.bf16.mxu0 %v1335_v60 }
  0x4d   :  { %760 = vmatprep.mubr.bf16.mxu1 %v1337_v61 }
  0x53   :  { %664 = vmatmul.mubr.bf16.gmra.mxu0 %v1339_v62 }
  0x54   :  { %761 = vmatmul.mubr.bf16.gmra.mxu1 %v1340_v63  ;;  %671 = vmatprep.mubr.bf16.mxu0 %v1342_v0 }
  0x55   :  { %768 = vmatprep.mubr.bf16.mxu1 %v1344_v1 }
  0x5b   :  { %672 = vmatmul.mubr.bf16.gmra.mxu0 %v1346_v2 }
  0x5c   :  { %769 = vmatmul.mubr.bf16.gmra.mxu1 %v1347_v3  ;;  %1240 = vmatprep.mubr.msk.bf16.mxu0 %vm558_vm0, %v1348_v4  ;;  %v1649_v3 = vld [vmem:[%s1777_s2] ss:$0 sm:$0xff] }
  0x5d   :  { %1248 = vmatprep.mubr.msk.bf16.mxu1 %vm558_vm0, %v1349_v5 }
  0x63   :  { %1241 = vmatmul.mubr.msk.bf16.vlgmr.msra.gmra.mxu0 %vm558_vm0, %v1350_v6 }
  0x64   :  { %1249 = vmatmul.mubr.msk.bf16.vlgmr.msra.gmra.mxu1 %vm558_vm0, %v1351_v7  ;;  %1244 = vmatprep.mubr.msk.bf16.mxu0 %vm558_vm0, %v1352_v8 }
  0x65   :  { %1252 = vmatprep.mubr.msk.bf16.mxu1 %vm558_vm0, %v1353_v9 }
  0x6b   :  { %1245 = vmatmul.mubr.msk.bf16.gmra.mxu0 %vm558_vm0, %v1354_v10 }
  0x6c   :  { %1253 = vmatmul.mubr.msk.bf16.gmra.mxu1 %vm558_vm0, %v1355_v11 }
  0xe3   :  { %v1108_v12 = vpop.f32.mrf.mxu0 }
  0xe4   :  { %v1172_v13 = vpop.f32.mrf.mxu1 }
  0xe5   :  { %v1109_v14 = vpop.f32.mrf.mxu0 }
  0xe6   :  { %v1173_v15 = vpop.f32.mrf.mxu1  ;;  %v1110_v63 = vadd.f32 %v1109_v14, %v1108_v12 }
  0xe7   :  { %v1111_v16 = vpop.f32.mrf.mxu0  ;;  %v1174_v10 = vadd.f32 %v1173_v15, %v1172_v13 }
  0xe8   :  { %v1175_v17 = vpop.f32.mrf.mxu1  ;;  %v618_v9 = vadd.f32 %v1110_v63, %v1649_v3 }
  0xe9   :  { %v1112_v18 = vpop.f32.mrf.mxu0 }
  0xea   :  { %v1176_v19 = vpop.f32.mrf.mxu1  ;;  %v1113_v0 = vadd.f32 %v1112_v18, %v1111_v16 }
  0xeb   :  { %v1114_v20 = vpop.f32.mrf.mxu0  ;;  %v1177_v16 = vadd.f32 %v1176_v19, %v1175_v17  ;;  %v715_v19 = vadd.f32 %v1174_v10, %v618_v9 }
  0xec   :  { %v1612_v21 = vpop.f32.mrf.mxu1  ;;  %v621_v11 = vadd.f32 %v1113_v0, %v1649_v3 }
  0xed   :  { %v1115_v22 = vpop.f32.mrf.mxu0 }
  0xee   :  { %v1179_v23 = vpop.f32.mrf.mxu1  ;;  %v1116_v1 = vadd.f32 %v1115_v22, %v1114_v20 }
  0xef   :  { %v1117_v24 = vpop.f32.mrf.mxu0 }
  0xf0   :  { %v1614_v25 = vpop.f32.mrf.mxu1  ;;  %v626_v12 = vadd.f32 %v1116_v1, %v1649_v3 }
  0xf1   :  { %v1118_v26 = vpop.f32.mrf.mxu0 }
  0xf2   :  { %v1182_v27 = vpop.f32.mrf.mxu1  ;;  %v1119_v4 = vadd.f32 %v1118_v26, %v1117_v24  ;;  %v1180_v26 = vadd.f32 %v1179_v23, %v1612_v21 }
  0xf3   :  { %v1120_v28 = vpop.f32.mrf.mxu0  ;;  %v1183_v13 = vadd.f32 %v1182_v27, %v1614_v25 }
  0xf4   :  { %v1184_v29 = vpop.f32.mrf.mxu1  ;;  %v629_v18 = vadd.f32 %v1119_v4, %v1649_v3  ;;  %v723_v17 = vadd.f32 %v1180_v26, %v626_v12  ;;  %v718_v4 = vadd.f32 %v1177_v16, %v621_v11 }
  0xf5   :  { %v1121_v30 = vpop.f32.mrf.mxu0 }
  0xf6   :  { %v1185_v31 = vpop.f32.mrf.mxu1  ;;  %v1122_v5 = vadd.f32 %v1121_v30, %v1120_v28  ;;  %v726_v23 = vadd.f32 %v1183_v13, %v629_v18 }
  0xf7   :  { %v1616_v32 = vpop.f32.mrf.mxu0  ;;  %v1186_v15 = vadd.f32 %v1185_v31, %v1184_v29 }
  0xf8   :  { %v1618_v33 = vpop.f32.mrf.mxu1  ;;  %v634_v20 = vadd.f32 %v1122_v5, %v1649_v3 }
  0xf9   :  { %v1620_v34 = vpop.f32.mrf.mxu0 }
  0xfa   :  { %v1622_v35 = vpop.f32.mrf.mxu1 }
  0xfb   :  { %v1126_v36 = vpop.f32.mrf.mxu0  ;;  %v1673_v25 = vadd.f32 %v1622_v35, %v1618_v33 }
  0xfc   :  { %v1624_v37 = vpop.f32.mrf.mxu1 }
  0xfd   :  { %v1127_v38 = vpop.f32.mrf.mxu0 }
  0xfe   :  { %v1626_v39 = vpop.f32.mrf.mxu1  ;;  %v1128_v28 = vadd.f32 %v1127_v38, %v1126_v36  ;;  %v1669_v36 = vadd.f32 %v1186_v15, %v634_v20 }
  0xff   :  { %v1129_v40 = vpop.f32.mrf.mxu0 }
 0x100   :  { %v1628_v41 = vpop.f32.mrf.mxu1  ;;  %v642_v27 = vadd.f32 %v1128_v28, %v1649_v3 }
 0x101   :  { %v1130_v42 = vpop.f32.mrf.mxu0 }
 0x102   :  { %v1630_v43 = vpop.f32.mrf.mxu1  ;;  %v1131_v30 = vadd.f32 %v1130_v42, %v1129_v40 }
 0x103   :  { %v1132_v44 = vpop.f32.mrf.mxu0  ;;  %v1195_v33 = vadd.f32 %v1630_v43, %v1628_v41 }
 0x104   :  { %v1632_v45 = vpop.f32.mrf.mxu1  ;;  %v645_v29 = vadd.f32 %v1131_v30, %v1649_v3 }
 0x105   :  { %v1133_v46 = vpop.f32.mrf.mxu0 }
 0x106   :  { %v1634_v47 = vpop.f32.mrf.mxu1  ;;  %v1694_v41 = vadd.f32 %v1195_v33, %v645_v29 }
 0x107   :  { %v1135_v48 = vpop.f32.mrf.mxu0  ;;  %v1198_v35 = vadd.f32 %v1634_v47, %v1632_v45 }
 0x108   :  { %v1636_v49 = vpop.f32.mrf.mxu1 }
 0x109   :  { %v1136_v50 = vpop.f32.mrf.mxu0 }
 0x10a   :  { %v1638_v51 = vpop.f32.mrf.mxu1  ;;  %v1137_v0 = vadd.f32 %v1136_v50, %v1135_v48 }
 0x10b   :  { %v1138_v52 = vpop.f32.mrf.mxu0 }
 0x10c   :  { %v1202_v53 = vpop.f32.mrf.mxu1 }
 0x10d   :  { %v1139_v54 = vpop.f32.mrf.mxu0 }
 0x10e   :  { %v1203_v55 = vpop.f32.mrf.mxu1  ;;  %v1140_v22 = vadd.f32 %v1139_v54, %v1138_v52  ;;  %v1125_v52 = vadd.f32 %v1620_v34, %v1616_v32  ;;  %v653_v32 = vadd.f32 %v1137_v0, %v1649_v3 }
 0x10f   :  { %v1141_v56 = vpop.f32.mrf.mxu0  ;;  %v1204_v34 = vadd.f32 %v1203_v55, %v1202_v53  ;;  %v1201_v53 = vadd.f32 %v1638_v51, %v1636_v49 }
 0x110   :  { %v1640_v57 = vpop.f32.mrf.mxu1  ;;  %v658_v54 = vadd.f32 %v1140_v22, %v1649_v3 }
 0x111   :  { %v1142_v58 = vpop.f32.mrf.mxu0 }
 0x112   :  { %v1206_v59 = vpop.f32.mrf.mxu1  ;;  %v1143_v1 = vadd.f32 %v1142_v58, %v1141_v56  ;;  %v1689_v56 = vadd.f32 %v1125_v52, %v1649_v3 }
 0x113   :  { %v1144_v60 = vpop.f32.mrf.mxu0  ;;  %v1207_v55 = vadd.f32 %v1206_v59, %v1640_v57 }
 0x114   :  { %v1642_v61 = vpop.f32.mrf.mxu1  ;;  %v661_v40 = vadd.f32 %v1143_v1, %v1649_v3 }
 0x115   :  { %v1145_v62 = vpop.f32.mrf.mxu0 }
 0x116   :  { %v1644_v2 = vpop.f32.mrf.mxu1  ;;  %v1146_v42 = vadd.f32 %v1145_v62, %v1144_v60  ;;  %v755_v60 = vadd.f32 %v1204_v34, %v658_v54 }
 0x117   :  { %v1651_v6 = vpop.f32.mrf.mxu0  ;;  %v1210_v9 = vadd.f32 %v1644_v2, %v1642_v61 }
 0x118   :  { %v1653_v7 = vpop.f32.mrf.mxu1  ;;  %v666_v43 = vadd.f32 %v1146_v42, %v1649_v3 }
 0x119   :  { %1779 = vst [vmem:[#allocation2_spill] sm:$0xff] %v1653_v7  ;;  %v1655_v8 = vpop.f32.mrf.mxu0  ;;  %v1134_v7 = vadd.f32 %v1133_v46, %v1132_v44  ;;  %v1192_v46 = vadd.f32 %v1626_v39, %v1624_v37 }
 0x11a   :  { %1780 = vst [vmem:[#allocation3_spill] sm:$0xff] %v1655_v8  ;;  %v1660_v14 = vpop.f32.mrf.mxu1  ;;  %v763_v0 = vadd.f32 %v1210_v9, %v666_v43 }
 0x11b   :  { %1781 = vst [vmem:[#allocation4_spill] sm:$0xff] %v1660_v14  ;;  %v1150_v24 = vpop.f32.mrf.mxu0  ;;  %v650_v31 = vadd.f32 %v1134_v7, %v1649_v3  ;;  %v739_v5 = vadd.f32 %v1192_v46, %v642_v27  ;;  %v758_v7 = vadd.f32 %v1207_v55, %v661_v40 }
 0x11c   :  { %v1214_v63 = vpop.f32.mrf.mxu1 }
 0x11d   :  { %v1151_v8 = vpop.f32.mrf.mxu0  ;;  %v747_v39 = vadd.f32 %v1198_v35, %v650_v31 }
 0x11e   :  { %v1215_v14 = vpop.f32.mrf.mxu1  ;;  %v1152_v48 = vadd.f32 %v1151_v8, %v1150_v24  ;;  %v750_v8 = vadd.f32 %v1201_v53, %v653_v32 }
 0x11f   :  { %v1153_v21 = vpop.f32.mrf.mxu0  ;;  %v1216_v22 = vadd.f32 %v1215_v14, %v1214_v63 }
 0x120   :  { %v1678_v38 = vpop.f32.mrf.mxu1  ;;  %v674_v49 = vadd.f32 %v1152_v48, %v1649_v3  ;;  %v1783_v46 = vld [vmem:[#allocation2_spill] sm:$0xff] }
 0x121   :  { %v1154_v44 = vpop.f32.mrf.mxu0  ;;  %v1782_v10 = vld [vmem:[#allocation3_spill] sm:$0xff] }
 0x122   :  { %v1218_v50 = vpop.f32.mrf.mxu1  ;;  %v1149_v11 = vadd.f32 %v1782_v10, %v1651_v6  ;;  %v1155_v12 = vadd.f32 %v1154_v44, %v1153_v21  ;;  %v771_v52 = vadd.f32 %v1216_v22, %v674_v49  ;;  %v1784_v33 = vld [vmem:[#allocation4_spill] sm:$0xff] }
 0x123   :  { %v1242_v58 = vpop.f32.mrf.mxu0  ;;  %v1219_v34 = vadd.f32 %v1218_v50, %v1678_v38  ;;  %v1213_v35 = vadd.f32 %v1784_v33, %v1783_v46 }
 0x124   :  { %v820_v62 = vadd.f32 %v1242_v58, %v723_v17  ;;  %v1250_v37 = vpop.f32.mrf.mxu1  ;;  %v677_v14 = vadd.f32 %v1155_v12, %v1649_v3  ;;  %v669_v27 = vadd.f32 %v1149_v11, %v1649_v3 }
 0x125   :  { %v852_v45 = vadd.f32 %v1250_v37, %v755_v60  ;;  %v811_v47 = vpop.f32.mrf.mxu0 }
 0x126   :  { %v876_v51 = vmax.f32 %v820_v62, 0.0  ;;  %v812_v57 = vadd.f32 %v811_v47, %v715_v19  ;;  %v843_v59 = vpop.f32.mrf.mxu1  ;;  %v774_v37 = vadd.f32 %v1219_v34, %v677_v14  ;;  %v766_v49 = vadd.f32 %v1213_v35, %v669_v27 }
 0x127   :  { %v884_v16 = vmax.f32 %v852_v45, 0.0  ;;  %v844_v18 = vadd.f32 %v843_v59, %v747_v39  ;;  %v1243_v20 = vpop.f32.mrf.mxu0  ;;  %v734_v45 = vadd.f32 %v1673_v25, %v1689_v56 }
 0x128   :  { %v1078_v24 = vpack.c.bf16 %v876_v51, %v876_v51  ;;  %v874_v26 = vmax.f32 %v812_v57, 0.0  ;;  %v823_v28 = vadd.f32 %v1243_v20, %v726_v23  ;;  %v1251_v30 = vpop.f32.mrf.mxu1 }
 0x129   :  { %v1086_v13 = vpack.c.bf16 %v884_v16, %v884_v16  ;;  %v882_v15 = vmax.f32 %v844_v18, 0.0  ;;  %v855_v61 = vadd.f32 %v1251_v30, %v758_v7  ;;  %v814_v2 = vpop.f32.mrf.mxu0 }
 0x12a   :  { %957 = vst.msk [vmem:[%s1778_s3 + $0x8] sm:$0xf] %vm954_vm1, %v1078_v24  ;;  %v1076_v6 = vpack.c.bf16 %v874_v26, %v874_v26  ;;  %v877_v1 = vmax.f32 %v823_v28, 0.0  ;;  %v815_v17 = vadd.f32 %v814_v2, %v718_v4  ;;  %v846_v19 = vpop.f32.mrf.mxu1 }
 0x12b   :  { %965 = vst.msk [vmem:[%s1778_s3 + $0x28] sm:$0xf] %vm954_vm1, %v1086_v13  ;;  %v1084_v63 = vpack.c.bf16 %v882_v15, %v882_v15  ;;  %v885_v54 = vmax.f32 %v855_v61, 0.0  ;;  %v847_v21 = vadd.f32 %v846_v19, %v750_v8  ;;  %v1246_v23 = vpop.f32.mrf.mxu0 }
 0x12c   :  { %955 = vst.msk [vmem:[%s1778_s3] sm:$0xf] %vm954_vm1, %v1076_v6  ;;  %v1079_v4 = vpack.c.bf16 %v877_v1, %v877_v1  ;;  %v875_v29 = vmax.f32 %v815_v17, 0.0  ;;  %v836_v31 = vadd.f32 %v1246_v23, %v739_v5  ;;  %v1254_v32 = vpop.f32.mrf.mxu1 }
 0x12d   :  { %963 = vst.msk [vmem:[%s1778_s3 + $0x20] sm:$0xf] %vm954_vm1, %v1084_v63  ;;  %v1087_v40 = vpack.c.bf16 %v885_v54, %v885_v54  ;;  %v883_v42 = vmax.f32 %v847_v21, 0.0  ;;  %v868_v44 = vadd.f32 %v1254_v32, %v771_v52  ;;  %v827_v3 = vpop.f32.mrf.mxu0 }
 0x12e   :  { %958 = vst.msk [vmem:[%s1778_s3 + $0xc] sm:$0xf] %vm954_vm1, %v1079_v4  ;;  %v1077_v48 = vpack.c.bf16 %v875_v29, %v875_v29  ;;  %v880_v53 = vmax.f32 %v836_v31, 0.0  ;;  %v828_v38 = vadd.f32 %v827_v3, %v1669_v36  ;;  %v859_v50 = vpop.f32.mrf.mxu1 }
 0x12f   :  { %966 = vst.msk [vmem:[%s1778_s3 + $0x2c] sm:$0xf] %vm954_vm1, %v1087_v40  ;;  %v1085_v55 = vpack.c.bf16 %v883_v42, %v883_v42  ;;  %v888_v58 = vmax.f32 %v868_v44, 0.0  ;;  %v860_v60 = vadd.f32 %v859_v50, %v763_v0  ;;  %v1247_v62 = vpop.f32.mrf.mxu0 }
 0x130   :  { %956 = vst.msk [vmem:[%s1778_s3 + $0x4] sm:$0xf] %vm954_vm1, %v1077_v48  ;;  %v1082_v39 = vpack.c.bf16 %v880_v53, %v880_v53  ;;  %v878_v5 = vmax.f32 %v828_v38, 0.0  ;;  %v839_v36 = vadd.f32 %v1247_v62, %v1694_v41  ;;  %v1255_v43 = vpop.f32.mrf.mxu1 }
 0x131   :  { %964 = vst.msk [vmem:[%s1778_s3 + $0x24] sm:$0xf] %vm954_vm1, %v1085_v55  ;;  %v1090_v47 = vpack.c.bf16 %v888_v58, %v888_v58  ;;  %v886_v7 = vmax.f32 %v860_v60, 0.0  ;;  %v871_v8 = vadd.f32 %v1255_v43, %v774_v37  ;;  %v830_v9 = vpop.f32.mrf.mxu0 }
 0x132   :  { %961 = vst.msk [vmem:[%s1778_s3 + $0x18] sm:$0xf] %vm954_vm1, %v1082_v39  ;;  %v1080_v41 = vpack.c.bf16 %v878_v5, %v878_v5  ;;  %v881_v51 = vmax.f32 %v839_v36, 0.0  ;;  %v831_v57 = vadd.f32 %v830_v9, %v734_v45  ;;  %v862_v59 = vpop.f32.mrf.mxu1 }
 0x133   :  { %969 = vst.msk [vmem:[%s1778_s3 + $0x38] sm:$0xf] %vm954_vm1, %v1090_v47  ;;  %v1088_v25 = vpack.c.bf16 %v886_v7, %v886_v7  ;;  %v889_v56 = vmax.f32 %v871_v8, 0.0  ;;  %v863_v10 = vadd.f32 %v862_v59, %v766_v49 }
 0x134   :  { %959 = vst.msk [vmem:[%s1778_s3 + $0x10] sm:$0xf] %vm954_vm1, %v1080_v41  ;;  %v1083_v11 = vpack.c.bf16 %v881_v51, %v881_v51  ;;  %v879_v12 = vmax.f32 %v831_v57, 0.0 }
 0x135   :  { %967 = vst.msk [vmem:[%s1778_s3 + $0x30] sm:$0xf] %vm954_vm1, %v1088_v25  ;;  %v1091_v16 = vpack.c.bf16 %v889_v56, %v889_v56  ;;  %v887_v18 = vmax.f32 %v863_v10, 0.0 }
 0x136   :  { %962 = vst.msk [vmem:[%s1778_s3 + $0x1c] sm:$0xf] %vm954_vm1, %v1083_v11  ;;  %v1081_v20 = vpack.c.bf16 %v879_v12, %v879_v12 }
 0x137   :  { %970 = vst.msk [vmem:[%s1778_s3 + $0x3c] sm:$0xf] %vm954_vm1, %v1091_v16  ;;  %v1089_v22 = vpack.c.bf16 %v887_v18, %v887_v18 }
 0x138   :  { %960 = vst.msk [vmem:[%s1778_s3 + $0x14] sm:$0xf] %vm954_vm1, %v1081_v20 }
 0x139   :  { %968 = vst.msk [vmem:[%s1778_s3 + $0x34] sm:$0xf] %vm954_vm1, %v1089_v22 }

// kernel: dqn_forward_pallas.7
= control target key start
LH: loop header
LB: loop body
LE: loop exit
PB: predicated region body
PF: predicated region fallthrough
CT: control target
= control target key end

     0   :  { %v1052_v36 = vlaneseq  ;;  %v10800_v37 = vmov 1966171168   ;;  %s14339_s0 = inlined_call_operand.vmem [shape: bf16[2,4096], index: 0, kind: input, shape index: {}]   ;;  %s14340_s1 = inlined_call_operand.vmem [shape: bf16[4096,512], index: 1, kind: input, shape index: {}]   ;;  %s14341_s2 = inlined_call_operand.vmem [shape: f32[1,512], index: 2, kind: input, shape index: {}]   ;;  %s14342_s3 = inlined_call_operand.vmem [shape: bf16[512,128], index: 3, kind: input, shape index: {}]   ;;  %s14343_s4 = inlined_call_operand.vmem [shape: f32[1,128], index: 4, kind: input, shape index: {}]   ;;  %s14344_s5 = inlined_call_operand.hbm [shape: f32[2,128], index: 5, kind: output, shape index: {}]  }
   0x1   :  { %v9205_v0 = vld [vmem:[%s14340_s1 + $0xe4] ss:$16 sps:$4 sm:$0xff]   ;;  %v9209_v2 = vld [vmem:[%s14340_s1 + $0xe0] ss:$16 sps:$4 sm:$0xff]   ;;  %v1078_v38 = vunpack.c.l.s4 %v10800_v37 }
   0x2   :  { %v9207_v1 = vld [vmem:[%s14340_s1 + $0x2e4] ss:$16 sps:$4 sm:$0xff]   ;;  %6424 = vmatprep.subr.bf16.mxu0 %v9205_v0  ;;  %v9210_v3 = vld [vmem:[%s14340_s1 + $0x2e0] ss:$16 sps:$4 sm:$0xff]   ;;  %v10949_v42 = vshrl.u32 %v1052_v36, 7 }
   0x3   :  { %6465 = vmatprep.subr.bf16.mxu1 %v9207_v1  ;;  %v9211_v4 = vld [vmem:[%s14340_s1 + $0xc4] ss:$16 sps:$4 sm:$0xff]   ;;  %6425 = vmatpush1.bf16.msra.mxu0 %v9209_v2  ;;  %v9215_v6 = vld [vmem:[%s14340_s1 + $0xc0] ss:$16 sps:$4 sm:$0xff]   ;;  %v1079_v43 = vunpack.c.0.s8 %v1078_v38 }
   0x4   :  { %6466 = vmatpush1.bf16.msra.mxu1 %v9210_v3  ;;  %v9213_v5 = vld [vmem:[%s14340_s1 + $0x2c4] ss:$16 sps:$4 sm:$0xff]   ;;  %6426 = vmatprep.subr.bf16.mxu0 %v9211_v4  ;;  %v9216_v7 = vld [vmem:[%s14340_s1 + $0x2c0] ss:$16 sps:$4 sm:$0xff]  }
   0x5   :  { %6467 = vmatprep.subr.bf16.mxu1 %v9213_v5  ;;  %v9217_v8 = vld [vmem:[%s14340_s1 + $0xa4] ss:$16 sps:$4 sm:$0xff]   ;;  %v9221_v10 = vld [vmem:[%s14340_s1 + $0xa0] ss:$16 sps:$4 sm:$0xff]   ;;  %v10967_v49 = vsub.s32 %v1079_v43, %v10949_v42 }
   0x6   :  { %v9219_v9 = vld [vmem:[%s14340_s1 + $0x2a4] ss:$16 sps:$4 sm:$0xff]   ;;  %v9222_v11 = vld [vmem:[%s14340_s1 + $0x2a0] ss:$16 sps:$4 sm:$0xff]  }
   0x7   :  { %6427 = vmatpush1.bf16.msra.mxu0 %v9215_v6  ;;  %v9223_v12 = vld [vmem:[%s14340_s1 + $0x84] ss:$16 sps:$4 sm:$0xff]   ;;  %v9227_v14 = vld [vmem:[%s14340_s1 + $0x80] ss:$16 sps:$4 sm:$0xff]  }
   0x8   :  { %6468 = vmatpush1.bf16.msra.mxu1 %v9216_v7  ;;  %6428 = vmatprep.subr.bf16.mxu0 %v9217_v8  ;;  %v9225_v13 = vld [vmem:[%s14340_s1 + $0x284] ss:$16 sps:$4 sm:$0xff]   ;;  %v9228_v15 = vld [vmem:[%s14340_s1 + $0x280] ss:$16 sps:$4 sm:$0xff]  }
   0x9   :  { %6469 = vmatprep.subr.bf16.mxu1 %v9219_v9  ;;  %v9229_v16 = vld [vmem:[%s14340_s1 + $0x64] ss:$16 sps:$4 sm:$0xff]   ;;  %v9233_v18 = vld [vmem:[%s14340_s1 + $0x60] ss:$16 sps:$4 sm:$0xff]  }
   0xa   :  { %v9231_v17 = vld [vmem:[%s14340_s1 + $0x264] ss:$16 sps:$4 sm:$0xff]   ;;  %v9234_v19 = vld [vmem:[%s14340_s1 + $0x260] ss:$16 sps:$4 sm:$0xff]  }
   0xb   :  { %6429 = vmatpush1.bf16.msra.mxu0 %v9221_v10  ;;  %v9235_v20 = vld [vmem:[%s14340_s1 + $0x44] ss:$16 sps:$4 sm:$0xff]   ;;  %v9239_v22 = vld [vmem:[%s14340_s1 + $0x40] ss:$16 sps:$4 sm:$0xff]  }
   0xc   :  { %6470 = vmatpush1.bf16.msra.mxu1 %v9222_v11  ;;  %6430 = vmatprep.subr.bf16.mxu0 %v9223_v12  ;;  %v9237_v21 = vld [vmem:[%s14340_s1 + $0x244] ss:$16 sps:$4 sm:$0xff]   ;;  %v9240_v23 = vld [vmem:[%s14340_s1 + $0x240] ss:$16 sps:$4 sm:$0xff]  }
   0xd   :  { %6471 = vmatprep.subr.bf16.mxu1 %v9225_v13  ;;  %v9241_v24 = vld [vmem:[%s14340_s1 + $0x24] ss:$16 sps:$4 sm:$0xff]   ;;  %v9245_v26 = vld [vmem:[%s14340_s1 + $0x20] ss:$16 sps:$4 sm:$0xff]  }
   0xe   :  { %v9243_v25 = vld [vmem:[%s14340_s1 + $0x224] ss:$16 sps:$4 sm:$0xff]   ;;  %v9246_v27 = vld [vmem:[%s14340_s1 + $0x220] ss:$16 sps:$4 sm:$0xff]  }
   0xf   :  { %6431 = vmatpush1.bf16.msra.mxu0 %v9227_v14  ;;  %v9247_v28 = vld [vmem:[%s14340_s1 + $0x4] ss:$16 sps:$4 sm:$0xff]   ;;  %v9251_v30 = vld [vmem:[%s14340_s1] ss:$16 sps:$4 sm:$0xff]  }
  0x10   :  { %6472 = vmatpush1.bf16.msra.mxu1 %v9228_v15  ;;  %6432 = vmatprep.subr.bf16.mxu0 %v9229_v16  ;;  %v9249_v29 = vld [vmem:[%s14340_s1 + $0x204] ss:$16 sps:$4 sm:$0xff]   ;;  %v9252_v31 = vld [vmem:[%s14340_s1 + $0x200] ss:$16 sps:$4 sm:$0xff]  }
  0x11   :  { %6473 = vmatprep.subr.bf16.mxu1 %v9231_v17  ;;  %v9253_v32 = vld [vmem:[%s14340_s1 + $0x1e4] ss:$16 sps:$4 sm:$0xff]   ;;  %v9257_v34 = vld [vmem:[%s14340_s1 + $0x1e0] ss:$16 sps:$4 sm:$0xff]  }
  0x12   :  { %v9255_v33 = vld [vmem:[%s14340_s1 + $0x3e4] ss:$16 sps:$4 sm:$0xff]   ;;  %v9258_v35 = vld [vmem:[%s14340_s1 + $0x3e0] ss:$16 sps:$4 sm:$0xff]  }
  0x13   :  { %6433 = vmatpush1.bf16.msra.mxu0 %v9233_v18  ;;  %v9259_v39 = vld [vmem:[%s14340_s1 + $0x1c4] ss:$16 sps:$4 sm:$0xff]   ;;  %v9263_v41 = vld [vmem:[%s14340_s1 + $0x1c0] ss:$16 sps:$4 sm:$0xff]  }
  0x14   :  { %6474 = vmatpush1.bf16.msra.mxu1 %v9234_v19  ;;  %6434 = vmatprep.subr.bf16.mxu0 %v9235_v20  ;;  %v9261_v40 = vld [vmem:[%s14340_s1 + $0x3c4] ss:$16 sps:$4 sm:$0xff]   ;;  %v9264_v44 = vld [vmem:[%s14340_s1 + $0x3c0] ss:$16 sps:$4 sm:$0xff]  }
  0x15   :  { %6475 = vmatprep.subr.bf16.mxu1 %v9237_v21  ;;  %v9265_v45 = vld [vmem:[%s14340_s1 + $0x1a4] ss:$16 sps:$4 sm:$0xff]   ;;  %v9269_v47 = vld [vmem:[%s14340_s1 + $0x1a0] ss:$16 sps:$4 sm:$0xff]  }
  0x16   :  { %v9267_v46 = vld [vmem:[%s14340_s1 + $0x3a4] ss:$16 sps:$4 sm:$0xff]   ;;  %v9270_v48 = vld [vmem:[%s14340_s1 + $0x3a0] ss:$16 sps:$4 sm:$0xff]  }
  0x17   :  { %6435 = vmatpush1.bf16.msra.mxu0 %v9239_v22  ;;  %v9271_v50 = vld [vmem:[%s14340_s1 + $0x184] ss:$16 sps:$4 sm:$0xff]   ;;  %v9275_v53 = vld [vmem:[%s14340_s1 + $0x180] ss:$16 sps:$4 sm:$0xff]  }
  0x18   :  { %6476 = vmatpush1.bf16.msra.mxu1 %v9240_v23  ;;  %6436 = vmatprep.subr.bf16.mxu0 %v9241_v24  ;;  %v9273_v51 = vld [vmem:[%s14340_s1 + $0x384] ss:$16 sps:$4 sm:$0xff]   ;;  %v9276_v55 = vld [vmem:[%s14340_s1 + $0x380] ss:$16 sps:$4 sm:$0xff]  }
  0x19   :  { %6477 = vmatprep.subr.bf16.mxu1 %v9243_v25  ;;  %v22_v52 = vld [vmem:[%s14339_s0] sm:$0xff] }
  0x1a   :  { %v1083_v54 = vrot.slane %v22_v52, %v10967_v49  ;;  %v9277_v56 = vld [vmem:[%s14340_s1 + $0x164] ss:$16 sps:$4 sm:$0xff]   ;;  %v9281_v59 = vld [vmem:[%s14340_s1 + $0x160] ss:$16 sps:$4 sm:$0xff]   ;;  %v1076_v1 = vcombine.high %v22_v52, %v22_v52 }
  0x1b   :  { %6437 = vmatpush1.bf16.msra.mxu0 %v9245_v26  ;;  %v9279_v57 = vld [vmem:[%s14340_s1 + $0x364] ss:$16 sps:$4 sm:$0xff]   ;;  %v9282_v61 = vld [vmem:[%s14340_s1 + $0x360] ss:$16 sps:$4 sm:$0xff]  }
  0x1c   :  { %6478 = vmatpush1.bf16.msra.mxu1 %v9246_v27  ;;  %6438 = vmatprep.subr.bf16.mxu0 %v9247_v28  ;;  %v1091_v58 = vcombine.high %v1083_v54, %v1083_v54  ;;  %v9283_v62 = vld [vmem:[%s14340_s1 + $0x144] ss:$16 sps:$4 sm:$0xff]   ;;  %v9287_v2 = vld [vmem:[%s14340_s1 + $0x140] ss:$16 sps:$4 sm:$0xff]   ;;  %v11025_v6 = vrot.slane %v1076_v1, %v10967_v49  ;;  %v11045_v13 = vrot.slane %v1083_v54, %v10967_v49 }
  0x1d   :  { %6479 = vmatprep.subr.bf16.mxu1 %v9249_v29  ;;  %v9285_v63 = vld [vmem:[%s14340_s1 + $0x344] ss:$16 sps:$4 sm:$0xff]   ;;  %v9288_v3 = vld [vmem:[%s14340_s1 + $0x340] ss:$16 sps:$4 sm:$0xff]  }
  0x1e   :  { %v10995_v60 = vrot.slane %v1091_v58, %v10967_v49  ;;  %v9289_v4 = vld [vmem:[%s14340_s1 + $0x124] ss:$16 sps:$4 sm:$0xff]   ;;  %v9293_v7 = vld [vmem:[%s14340_s1 + $0x120] ss:$16 sps:$4 sm:$0xff]   ;;  %v1092_v11 = vcombine.high %v11025_v6, %v11025_v6  ;;  %v11061_v18 = vcombine.high %v11045_v13, %v11045_v13 }
  0x1f   :  { %6439 = vmatpush1.bf16.msra.mxu0 %v9251_v30  ;;  %v9291_v5 = vld [vmem:[%s14340_s1 + $0x324] ss:$16 sps:$4 sm:$0xff]   ;;  %v9294_v8 = vld [vmem:[%s14340_s1 + $0x320] ss:$16 sps:$4 sm:$0xff]  }
  0x20   :  { %6480 = vmatpush1.bf16.msra.mxu1 %v9252_v31  ;;  %6440 = vmatprep.subr.bf16.mxu0 %v9253_v32  ;;  %v11008_v0 = vcombine.high %v10995_v60, %v10995_v60  ;;  %v9295_v9 = vld [vmem:[%s14340_s1 + $0x104] ss:$16 sps:$4 sm:$0xff]   ;;  %v9299_v12 = vld [vmem:[%s14340_s1 + $0x100] ss:$16 sps:$4 sm:$0xff]   ;;  %v11057_v17 = vrot.slane %v1092_v11, %v10967_v49 }
  0x21   :  { %6481 = vmatprep.subr.bf16.mxu1 %v9255_v33  ;;  %6456 = vmatprep.mubr.bf16.mxu0 %v10995_v60  ;;  %v9297_v10 = vld [vmem:[%s14340_s1 + $0x304] ss:$16 sps:$4 sm:$0xff]   ;;  %v9300_v14 = vld [vmem:[%s14340_s1 + $0x300] ss:$16 sps:$4 sm:$0xff]  }
  0x22   :  { %6497 = vmatprep.mubr.bf16.mxu1 %v11008_v0  ;;  %v9303_v15 = vld [vmem:[%s14340_s1 + $0x4e4] ss:$16 sps:$4 sm:$0xff]   ;;  %v9301_v19 = vld [vmem:[%s14340_s1 + $0x4e0] ss:$16 sps:$4 sm:$0xff]   ;;  %v11077_v23 = vcombine.high %v11057_v17, %v11057_v17 }
  0x23   :  { %6441 = vmatpush2.bf16.msra.mxu0 %v9257_v34  ;;  %v9306_v16 = vld [vmem:[%s14340_s1 + $0x6e4] ss:$16 sps:$4 sm:$0xff]   ;;  %v9304_v20 = vld [vmem:[%s14340_s1 + $0x6e0] ss:$16 sps:$4 sm:$0xff]  }
  0x24   :  { %6482 = vmatpush2.bf16.msra.mxu1 %v9258_v35  ;;  %6442 = vmatprep.subr.bf16.mxu0 %v9259_v39  ;;  %v9309_v21 = vld [vmem:[%s14340_s1 + $0x4c4] ss:$16 sps:$4 sm:$0xff]   ;;  %v9307_v24 = vld [vmem:[%s14340_s1 + $0x4c0] ss:$16 sps:$4 sm:$0xff]  }
  0x25   :  { %6483 = vmatprep.subr.bf16.mxu1 %v9261_v40  ;;  %v9312_v22 = vld [vmem:[%s14340_s1 + $0x6c4] ss:$16 sps:$4 sm:$0xff]   ;;  %v9310_v25 = vld [vmem:[%s14340_s1 + $0x6c0] ss:$16 sps:$4 sm:$0xff]  }
  0x26   :  { %v9315_v26 = vld [vmem:[%s14340_s1 + $0x4a4] ss:$16 sps:$4 sm:$0xff]   ;;  %v9313_v28 = vld [vmem:[%s14340_s1 + $0x4a0] ss:$16 sps:$4 sm:$0xff]  }
  0x27   :  { %6443 = vmatpush2.bf16.msra.mxu0 %v9263_v41  ;;  %v9318_v27 = vld [vmem:[%s14340_s1 + $0x6a4] ss:$16 sps:$4 sm:$0xff]   ;;  %v9316_v29 = vld [vmem:[%s14340_s1 + $0x6a0] ss:$16 sps:$4 sm:$0xff]  }
  0x28   :  { %6484 = vmatpush2.bf16.msra.mxu1 %v9264_v44  ;;  %6444 = vmatprep.subr.bf16.mxu0 %v9265_v45  ;;  %v9321_v30 = vld [vmem:[%s14340_s1 + $0x484] ss:$16 sps:$4 sm:$0xff]   ;;  %v9319_v32 = vld [vmem:[%s14340_s1 + $0x480] ss:$16 sps:$4 sm:$0xff]  }
  0x29   :  { %6485 = vmatprep.subr.bf16.mxu1 %v9267_v46  ;;  %v9324_v31 = vld [vmem:[%s14340_s1 + $0x684] ss:$16 sps:$4 sm:$0xff]   ;;  %v9322_v33 = vld [vmem:[%s14340_s1 + $0x680] ss:$16 sps:$4 sm:$0xff]  }
  0x2a   :  { %v9327_v34 = vld [vmem:[%s14340_s1 + $0x464] ss:$16 sps:$4 sm:$0xff]   ;;  %v9325_v36 = vld [vmem:[%s14340_s1 + $0x460] ss:$16 sps:$4 sm:$0xff]  }
  0x2b   :  { %6445 = vmatpush2.bf16.msra.mxu0 %v9269_v47  ;;  %v9330_v35 = vld [vmem:[%s14340_s1 + $0x664] ss:$16 sps:$4 sm:$0xff]   ;;  %v9328_v37 = vld [vmem:[%s14340_s1 + $0x660] ss:$16 sps:$4 sm:$0xff]  }
  0x2c   :  { %6486 = vmatpush2.bf16.msra.mxu1 %v9270_v48  ;;  %6446 = vmatprep.subr.bf16.mxu0 %v9271_v50  ;;  %v9333_v38 = vld [vmem:[%s14340_s1 + $0x444] ss:$16 sps:$4 sm:$0xff]   ;;  %v9331_v40 = vld [vmem:[%s14340_s1 + $0x440] ss:$16 sps:$4 sm:$0xff]  }
  0x2d   :  { %6487 = vmatprep.subr.bf16.mxu1 %v9273_v51  ;;  %v9336_v39 = vld [vmem:[%s14340_s1 + $0x644] ss:$16 sps:$4 sm:$0xff]   ;;  %v9334_v41 = vld [vmem:[%s14340_s1 + $0x640] ss:$16 sps:$4 sm:$0xff]  }
  0x2e   :  { %v9339_v43 = vld [vmem:[%s14340_s1 + $0x424] ss:$16 sps:$4 sm:$0xff]   ;;  %v9337_v45 = vld [vmem:[%s14340_s1 + $0x420] ss:$16 sps:$4 sm:$0xff]  }
  0x2f   :  { %6447 = vmatpush2.bf16.msra.mxu0 %v9275_v53  ;;  %v9342_v44 = vld [vmem:[%s14340_s1 + $0x624] ss:$16 sps:$4 sm:$0xff]   ;;  %v9340_v46 = vld [vmem:[%s14340_s1 + $0x620] ss:$16 sps:$4 sm:$0xff]  }
  0x30   :  { %6488 = vmatpush2.bf16.msra.mxu1 %v9276_v55  ;;  %6448 = vmatprep.subr.bf16.mxu0 %v9277_v56  ;;  %v9345_v47 = vld [vmem:[%s14340_s1 + $0x404] ss:$16 sps:$4 sm:$0xff]   ;;  %v9343_v50 = vld [vmem:[%s14340_s1 + $0x400] ss:$16 sps:$4 sm:$0xff]  }
  0x31   :  { %6489 = vmatprep.subr.bf16.mxu1 %v9279_v57  ;;  %v9348_v48 = vld [vmem:[%s14340_s1 + $0x604] ss:$16 sps:$4 sm:$0xff]   ;;  %v9346_v51 = vld [vmem:[%s14340_s1 + $0x600] ss:$16 sps:$4 sm:$0xff]  }
  0x32   :  { %v9351_v52 = vld [vmem:[%s14340_s1 + $0x5e4] ss:$16 sps:$4 sm:$0xff]   ;;  %v9349_v54 = vld [vmem:[%s14340_s1 + $0x5e0] ss:$16 sps:$4 sm:$0xff]  }
  0x33   :  { %6449 = vmatpush2.bf16.msra.mxu0 %v9281_v59  ;;  %v9354_v53 = vld [vmem:[%s14340_s1 + $0x7e4] ss:$16 sps:$4 sm:$0xff]   ;;  %v9352_v55 = vld [vmem:[%s14340_s1 + $0x7e0] ss:$16 sps:$4 sm:$0xff]  }
  0x34   :  { %6490 = vmatpush2.bf16.msra.mxu1 %v9282_v61  ;;  %6450 = vmatprep.subr.bf16.mxu0 %v9283_v62  ;;  %v9357_v56 = vld [vmem:[%s14340_s1 + $0x5c4] ss:$16 sps:$4 sm:$0xff]   ;;  %v9355_v58 = vld [vmem:[%s14340_s1 + $0x5c0] ss:$16 sps:$4 sm:$0xff]  }
  0x35   :  { %6491 = vmatprep.subr.bf16.mxu1 %v9285_v63  ;;  %v9360_v57 = vld [vmem:[%s14340_s1 + $0x7c4] ss:$16 sps:$4 sm:$0xff]   ;;  %v9358_v59 = vld [vmem:[%s14340_s1 + $0x7c0] ss:$16 sps:$4 sm:$0xff]  }
  0x36   :  { %v9363_v61 = vld [vmem:[%s14340_s1 + $0x5a4] ss:$16 sps:$4 sm:$0xff]   ;;  %v9361_v63 = vld [vmem:[%s14340_s1 + $0x5a0] ss:$16 sps:$4 sm:$0xff]  }
  0x37   :  { %6451 = vmatpush2.bf16.msra.mxu0 %v9287_v2  ;;  %v9366_v62 = vld [vmem:[%s14340_s1 + $0x7a4] ss:$16 sps:$4 sm:$0xff]   ;;  %v9364_v1 = vld [vmem:[%s14340_s1 + $0x7a0] ss:$16 sps:$4 sm:$0xff]  }
  0x38   :  { %6492 = vmatpush2.bf16.msra.mxu1 %v9288_v3  ;;  %6452 = vmatprep.subr.bf16.mxu0 %v9289_v4  ;;  %v9369_v2 = vld [vmem:[%s14340_s1 + $0x584] ss:$16 sps:$4 sm:$0xff]   ;;  %v9367_v4 = vld [vmem:[%s14340_s1 + $0x580] ss:$16 sps:$4 sm:$0xff]  }
  0x39   :  { %6493 = vmatprep.subr.bf16.mxu1 %v9291_v5  ;;  %v9372_v3 = vld [vmem:[%s14340_s1 + $0x784] ss:$16 sps:$4 sm:$0xff]   ;;  %v9370_v5 = vld [vmem:[%s14340_s1 + $0x780] ss:$16 sps:$4 sm:$0xff]  }
  0x3a   :  { %v9381_v11 = vld [vmem:[%s14340_s1 + $0x544] ss:$16 sps:$4 sm:$0xff]  }
  0x3b   :  { %6453 = vmatpush2.bf16.msra.mxu0 %v9293_v7  ;;  %v9375_v7 = vld [vmem:[%s14340_s1 + $0x564] ss:$16 sps:$4 sm:$0xff]  }
  0x3c   :  { %6494 = vmatpush2.bf16.msra.mxu1 %v9294_v8  ;;  %6454 = vmatprep.subr.bf16.mxu0 %v9295_v9  ;;  %v9378_v8 = vld [vmem:[%s14340_s1 + $0x764] ss:$16 sps:$4 sm:$0xff]   ;;  %v9373_v9 = vld [vmem:[%s14340_s1 + $0x560] ss:$16 sps:$4 sm:$0xff]  }
  0x3d   :  { %6495 = vmatprep.subr.bf16.mxu1 %v9297_v10  ;;  %v9376_v10 = vld [vmem:[%s14340_s1 + $0x760] ss:$16 sps:$4 sm:$0xff]  }
  0x3f   :  { %6455 = vmatpush2.bf16.msra.mxu0 %v9299_v12  ;;  %v9384_v12 = vld [vmem:[%s14340_s1 + $0x744] ss:$16 sps:$4 sm:$0xff]  }
  0x40   :  { %6496 = vmatpush2.bf16.msra.mxu1 %v9300_v14  ;;  %6506 = vmatprep.subr.bf16.mxu0 %v9303_v15  ;;  %v9379_v14 = vld [vmem:[%s14340_s1 + $0x540] ss:$16 sps:$4 sm:$0xff]  }
  0x41   :  { %6547 = vmatprep.subr.bf16.mxu1 %v9306_v16  ;;  %v9382_v15 = vld [vmem:[%s14340_s1 + $0x740] ss:$16 sps:$4 sm:$0xff]   ;;  %v9387_v16 = vld [vmem:[%s14340_s1 + $0x524] ss:$16 sps:$4 sm:$0xff]  }
  0x42   :  { %6457 = vmatmul.mubr.bf16.vlgmr.msra.gmra.mxu0 %v11045_v13 }
  0x43   :  { %6498 = vmatmul.mubr.bf16.vlgmr.msra.gmra.mxu1 %v11061_v18  ;;  %6507 = vmatpush1.bf16.msra.mxu0 %v9301_v19  ;;  %v9390_v19 = vld [vmem:[%s14340_s1 + $0x724] ss:$16 sps:$4 sm:$0xff]  }
  0x44   :  { %6548 = vmatpush1.bf16.msra.mxu1 %v9304_v20  ;;  %6508 = vmatprep.subr.bf16.mxu0 %v9309_v21  ;;  %v9385_v20 = vld [vmem:[%s14340_s1 + $0x520] ss:$16 sps:$4 sm:$0xff]  }
  0x45   :  { %6549 = vmatprep.subr.bf16.mxu1 %v9312_v22  ;;  %6538 = vmatprep.mubr.bf16.mxu0 %v11057_v17  ;;  %v9388_v21 = vld [vmem:[%s14340_s1 + $0x720] ss:$16 sps:$4 sm:$0xff]   ;;  %v9393_v22 = vld [vmem:[%s14340_s1 + $0x504] ss:$16 sps:$4 sm:$0xff]  }
  0x46   :  { %6579 = vmatprep.mubr.bf16.mxu1 %v11077_v23 }
  0x47   :  { %6509 = vmatpush1.bf16.msra.mxu0 %v9307_v24  ;;  %v9396_v24 = vld [vmem:[%s14340_s1 + $0x704] ss:$16 sps:$4 sm:$0xff]  }
  0x48   :  { %6550 = vmatpush1.bf16.msra.mxu1 %v9310_v25  ;;  %6510 = vmatprep.subr.bf16.mxu0 %v9315_v26  ;;  %v9391_v25 = vld [vmem:[%s14340_s1 + $0x500] ss:$16 sps:$4 sm:$0xff]   ;;  %v11256_v26 = vrot.slane %v11025_v6, %v10967_v49 }
  0x49   :  { %6551 = vmatprep.subr.bf16.mxu1 %v9318_v27  ;;  %v9394_v27 = vld [vmem:[%s14340_s1 + $0x700] ss:$16 sps:$4 sm:$0xff]  }
  0x4a   :  { %v11269_v6 = vcombine.high %v11256_v26, %v11256_v26 }
  0x4b   :  { %6511 = vmatpush1.bf16.msra.mxu0 %v9313_v28  ;;  %v9400_v28 = vld [vmem:[%s14340_s1 + $0x8e4] ss:$16 sps:$4 sm:$0xff]  }
  0x4c   :  { %6552 = vmatpush1.bf16.msra.mxu1 %v9316_v29  ;;  %6512 = vmatprep.subr.bf16.mxu0 %v9321_v30  ;;  %v9403_v29 = vld [vmem:[%s14340_s1 + $0xae4] ss:$16 sps:$4 sm:$0xff]   ;;  %v9398_v30 = vld [vmem:[%s14340_s1 + $0x8e0] ss:$16 sps:$4 sm:$0xff]  }
  0x4d   :  { %6553 = vmatprep.subr.bf16.mxu1 %v9324_v31  ;;  %v9401_v31 = vld [vmem:[%s14340_s1 + $0xae0] ss:$16 sps:$4 sm:$0xff]  }
  0x4f   :  { %6513 = vmatpush1.bf16.msra.mxu0 %v9319_v32  ;;  %v11280_v32 = vld [vmem:[%s14339_s0 + $0x8] sm:$0xff] }
  0x50   :  { %6554 = vmatpush1.bf16.msra.mxu1 %v9322_v33  ;;  %6514 = vmatprep.subr.bf16.mxu0 %v9327_v34  ;;  %v9406_v33 = vld [vmem:[%s14340_s1 + $0x8c4] ss:$16 sps:$4 sm:$0xff]  }
  0x51   :  { %6555 = vmatprep.subr.bf16.mxu1 %v9330_v35  ;;  %v9409_v34 = vld [vmem:[%s14340_s1 + $0xac4] ss:$16 sps:$4 sm:$0xff]   ;;  %v11290_v35 = vrot.slane %v11280_v32, %v10967_v49 }
  0x53   :  { %6515 = vmatpush1.bf16.msra.mxu0 %v9325_v36  ;;  %v1140_v36 = vcombine.high %v11290_v35, %v11290_v35 }
  0x54   :  { %6556 = vmatpush1.bf16.msra.mxu1 %v9328_v37  ;;  %6516 = vmatprep.subr.bf16.mxu0 %v9333_v38  ;;  %v9404_v37 = vld [vmem:[%s14340_s1 + $0x8c0] ss:$16 sps:$4 sm:$0xff]  }
  0x55   :  { %6557 = vmatprep.subr.bf16.mxu1 %v9336_v39  ;;  %v9407_v38 = vld [vmem:[%s14340_s1 + $0xac0] ss:$16 sps:$4 sm:$0xff]   ;;  %v9412_v39 = vld [vmem:[%s14340_s1 + $0x8a4] ss:$16 sps:$4 sm:$0xff]  }
  0x57   :  { %6517 = vmatpush1.bf16.msra.mxu0 %v9331_v40  ;;  %v9415_v40 = vld [vmem:[%s14340_s1 + $0xaa4] ss:$16 sps:$4 sm:$0xff]  }
  0x58   :  { %6558 = vmatpush1.bf16.msra.mxu1 %v9334_v41  ;;  %6518 = vmatprep.subr.bf16.mxu0 %v9339_v43  ;;  %v11309_v41 = vrot.slane %v1140_v36, %v10967_v49  ;;  %v9476_v36 = vld [vmem:[%s14340_s1 + $0x940] ss:$16 sps:$4 sm:$0xff]  }
  0x59   :  { %6559 = vmatprep.subr.bf16.mxu1 %v9342_v44  ;;  %v9410_v44 = vld [vmem:[%s14340_s1 + $0x8a0] ss:$16 sps:$4 sm:$0xff]  }
  0x5a   :  { %v11314_v43 = vcombine.high %v11309_v41, %v11309_v41 }
  0x5b   :  { %6519 = vmatpush1.bf16.msra.mxu0 %v9337_v45  ;;  %v9413_v45 = vld [vmem:[%s14340_s1 + $0xaa0] ss:$16 sps:$4 sm:$0xff]  }
  0x5c   :  { %6560 = vmatpush1.bf16.msra.mxu1 %v9340_v46  ;;  %6520 = vmatprep.subr.bf16.mxu0 %v9345_v47  ;;  %v9418_v46 = vld [vmem:[%s14340_s1 + $0x884] ss:$16 sps:$4 sm:$0xff]  }
  0x5d   :  { %6561 = vmatprep.subr.bf16.mxu1 %v9348_v48  ;;  %v9421_v47 = vld [vmem:[%s14340_s1 + $0xa84] ss:$16 sps:$4 sm:$0xff]   ;;  %v9416_v48 = vld [vmem:[%s14340_s1 + $0x880] ss:$16 sps:$4 sm:$0xff]  }
  0x5f   :  { %6521 = vmatpush1.bf16.msra.mxu0 %v9343_v50  ;;  %v9419_v50 = vld [vmem:[%s14340_s1 + $0xa80] ss:$16 sps:$4 sm:$0xff]  }
  0x60   :  { %6562 = vmatpush1.bf16.msra.mxu1 %v9346_v51  ;;  %6522 = vmatprep.subr.bf16.mxu0 %v9351_v52  ;;  %v9424_v51 = vld [vmem:[%s14340_s1 + $0x864] ss:$16 sps:$4 sm:$0xff]  }
  0x61   :  { %6563 = vmatprep.subr.bf16.mxu1 %v9354_v53  ;;  %v9427_v52 = vld [vmem:[%s14340_s1 + $0xa64] ss:$16 sps:$4 sm:$0xff]   ;;  %v9422_v53 = vld [vmem:[%s14340_s1 + $0x860] ss:$16 sps:$4 sm:$0xff]  }
  0x63   :  { %6523 = vmatpush2.bf16.msra.mxu0 %v9349_v54  ;;  %v9425_v54 = vld [vmem:[%s14340_s1 + $0xa60] ss:$16 sps:$4 sm:$0xff]  }
  0x64   :  { %6564 = vmatpush2.bf16.msra.mxu1 %v9352_v55  ;;  %6524 = vmatprep.subr.bf16.mxu0 %v9357_v56  ;;  %v9430_v55 = vld [vmem:[%s14340_s1 + $0x844] ss:$16 sps:$4 sm:$0xff]  }
  0x65   :  { %6565 = vmatprep.subr.bf16.mxu1 %v9360_v57  ;;  %v9433_v56 = vld [vmem:[%s14340_s1 + $0xa44] ss:$16 sps:$4 sm:$0xff]   ;;  %v9428_v57 = vld [vmem:[%s14340_s1 + $0x840] ss:$16 sps:$4 sm:$0xff]  }
  0x67   :  { %6525 = vmatpush2.bf16.msra.mxu0 %v9355_v58  ;;  %v9431_v58 = vld [vmem:[%s14340_s1 + $0xa40] ss:$16 sps:$4 sm:$0xff]  }
  0x68   :  { %6566 = vmatpush2.bf16.msra.mxu1 %v9358_v59  ;;  %6526 = vmatprep.subr.bf16.mxu0 %v9363_v61  ;;  %v9436_v59 = vld [vmem:[%s14340_s1 + $0x824] ss:$16 sps:$4 sm:$0xff]  }
  0x69   :  { %6567 = vmatprep.subr.bf16.mxu1 %v9366_v62  ;;  %v9439_v61 = vld [vmem:[%s14340_s1 + $0xa24] ss:$16 sps:$4 sm:$0xff]   ;;  %v9434_v62 = vld [vmem:[%s14340_s1 + $0x820] ss:$16 sps:$4 sm:$0xff]  }
  0x6b   :  { %6527 = vmatpush2.bf16.msra.mxu0 %v9361_v63  ;;  %v9437_v63 = vld [vmem:[%s14340_s1 + $0xa20] ss:$16 sps:$4 sm:$0xff]  }
  0x6c   :  { %6568 = vmatpush2.bf16.msra.mxu1 %v9364_v1  ;;  %6528 = vmatprep.subr.bf16.mxu0 %v9369_v2  ;;  %v9442_v1 = vld [vmem:[%s14340_s1 + $0x804] ss:$16 sps:$4 sm:$0xff]  }
  0x6d   :  { %6569 = vmatprep.subr.bf16.mxu1 %v9372_v3  ;;  %v9445_v2 = vld [vmem:[%s14340_s1 + $0xa04] ss:$16 sps:$4 sm:$0xff]   ;;  %v9440_v3 = vld [vmem:[%s14340_s1 + $0x800] ss:$16 sps:$4 sm:$0xff]  }
  0x6f   :  { %6529 = vmatpush2.bf16.msra.mxu0 %v9367_v4  ;;  %v9443_v4 = vld [vmem:[%s14340_s1 + $0xa00] ss:$16 sps:$4 sm:$0xff]  }
  0x70   :  { %6570 = vmatpush2.bf16.msra.mxu1 %v9370_v5  ;;  %6530 = vmatprep.subr.bf16.mxu0 %v9375_v7  ;;  %v9448_v5 = vld [vmem:[%s14340_s1 + $0x9e4] ss:$16 sps:$4 sm:$0xff]  }
  0x71   :  { %6571 = vmatprep.subr.bf16.mxu1 %v9378_v8  ;;  %v9451_v7 = vld [vmem:[%s14340_s1 + $0xbe4] ss:$16 sps:$4 sm:$0xff]   ;;  %v9446_v8 = vld [vmem:[%s14340_s1 + $0x9e0] ss:$16 sps:$4 sm:$0xff]  }
  0x73   :  { %6531 = vmatpush2.bf16.msra.mxu0 %v9373_v9  ;;  %v9449_v9 = vld [vmem:[%s14340_s1 + $0xbe0] ss:$16 sps:$4 sm:$0xff]  }
  0x74   :  { %6572 = vmatpush2.bf16.msra.mxu1 %v9376_v10  ;;  %6532 = vmatprep.subr.bf16.mxu0 %v9381_v11  ;;  %v9454_v10 = vld [vmem:[%s14340_s1 + $0x9c4] ss:$16 sps:$4 sm:$0xff]  }
  0x75   :  { %6573 = vmatprep.subr.bf16.mxu1 %v9384_v12  ;;  %v9457_v11 = vld [vmem:[%s14340_s1 + $0xbc4] ss:$16 sps:$4 sm:$0xff]   ;;  %v9452_v12 = vld [vmem:[%s14340_s1 + $0x9c0] ss:$16 sps:$4 sm:$0xff]  }
  0x77   :  { %6533 = vmatpush2.bf16.msra.mxu0 %v9379_v14  ;;  %v9455_v14 = vld [vmem:[%s14340_s1 + $0xbc0] ss:$16 sps:$4 sm:$0xff]  }
  0x78   :  { %6574 = vmatpush2.bf16.msra.mxu1 %v9382_v15  ;;  %6534 = vmatprep.subr.bf16.mxu0 %v9387_v16  ;;  %v9460_v15 = vld [vmem:[%s14340_s1 + $0x9a4] ss:$16 sps:$4 sm:$0xff]  }
  0x79   :  { %6575 = vmatprep.subr.bf16.mxu1 %v9390_v19  ;;  %v9463_v16 = vld [vmem:[%s14340_s1 + $0xba4] ss:$16 sps:$4 sm:$0xff]   ;;  %v9458_v19 = vld [vmem:[%s14340_s1 + $0x9a0] ss:$16 sps:$4 sm:$0xff]  }
  0x7b   :  { %6535 = vmatpush2.bf16.msra.mxu0 %v9385_v20  ;;  %v9461_v20 = vld [vmem:[%s14340_s1 + $0xba0] ss:$16 sps:$4 sm:$0xff]  }
  0x7c   :  { %6576 = vmatpush2.bf16.msra.mxu1 %v9388_v21  ;;  %6536 = vmatprep.subr.bf16.mxu0 %v9393_v22  ;;  %v9466_v21 = vld [vmem:[%s14340_s1 + $0x984] ss:$16 sps:$4 sm:$0xff]  }
  0x7d   :  { %6577 = vmatprep.subr.bf16.mxu1 %v9396_v24  ;;  %v9469_v22 = vld [vmem:[%s14340_s1 + $0xb84] ss:$16 sps:$4 sm:$0xff]   ;;  %v9464_v24 = vld [vmem:[%s14340_s1 + $0x980] ss:$16 sps:$4 sm:$0xff]  }
  0x7f   :  { %6537 = vmatpush2.bf16.msra.mxu0 %v9391_v25  ;;  %v9467_v25 = vld [vmem:[%s14340_s1 + $0xb80] ss:$16 sps:$4 sm:$0xff]  }
  0x80   :  { %6578 = vmatpush2.bf16.msra.mxu1 %v9394_v27  ;;  %6588 = vmatprep.subr.bf16.mxu0 %v9400_v28  ;;  %v9472_v27 = vld [vmem:[%s14340_s1 + $0x964] ss:$16 sps:$4 sm:$0xff]  }
  0x81   :  { %6629 = vmatprep.subr.bf16.mxu1 %v9403_v29  ;;  %v9475_v28 = vld [vmem:[%s14340_s1 + $0xb64] ss:$16 sps:$4 sm:$0xff]   ;;  %v9470_v29 = vld [vmem:[%s14340_s1 + $0x960] ss:$16 sps:$4 sm:$0xff]  }
  0x82   :  { %6539 = vmatmul.mubr.bf16.vlgmr.msra.gmra.mxu0 %v11256_v26 }
  0x83   :  { %6580 = vmatmul.mubr.bf16.vlgmr.msra.gmra.mxu1 %v11269_v6  ;;  %6589 = vmatpush1.bf16.msra.mxu0 %v9398_v30  ;;  %v9473_v30 = vld [vmem:[%s14340_s1 + $0xb60] ss:$16 sps:$4 sm:$0xff]  }
  0x84   :  { %6630 = vmatpush1.bf16.msra.mxu1 %v9401_v31  ;;  %6590 = vmatprep.subr.bf16.mxu0 %v9406_v33  ;;  %v9478_v31 = vld [vmem:[%s14340_s1 + $0x944] ss:$16 sps:$4 sm:$0xff]  }
  0x85   :  { %6631 = vmatprep.subr.bf16.mxu1 %v9409_v34  ;;  %6620 = vmatprep.mubr.bf16.mxu0 %v11309_v41  ;;  %v9481_v33 = vld [vmem:[%s14340_s1 + $0xb44] ss:$16 sps:$4 sm:$0xff]   ;;  %v1125_v34 = vcombine.high %v11280_v32, %v11280_v32 }
  0x86   :  { %6661 = vmatprep.mubr.bf16.mxu1 %v11314_v43  ;;  %v9487_v32 = vld [vmem:[%s14340_s1 + $0xb24] ss:$16 sps:$4 sm:$0xff]  }
  0x87   :  { %6591 = vmatpush1.bf16.msra.mxu0 %v9404_v37  ;;  %v9479_v37 = vld [vmem:[%s14340_s1 + $0xb40] ss:$16 sps:$4 sm:$0xff]  }
  0x88   :  { %6632 = vmatpush1.bf16.msra.mxu1 %v9407_v38  ;;  %6592 = vmatprep.subr.bf16.mxu0 %v9412_v39  ;;  %v9484_v38 = vld [vmem:[%s14340_s1 + $0x924] ss:$16 sps:$4 sm:$0xff]   ;;  %v11464_v39 = vrot.slane %v1125_v34, %v10967_v49  ;;  %v9545_v34 = vld [vmem:[%s14340_s1 + $0xfe0] ss:$16 sps:$4 sm:$0xff]  }
  0x89   :  { %6633 = vmatprep.subr.bf16.mxu1 %v9415_v40  ;;  %v9482_v40 = vld [vmem:[%s14340_s1 + $0x920] ss:$16 sps:$4 sm:$0xff]  }
  0x8b   :  { %6593 = vmatpush1.bf16.msra.mxu0 %v9410_v44  ;;  %v9485_v44 = vld [vmem:[%s14340_s1 + $0xb20] ss:$16 sps:$4 sm:$0xff]  }
  0x8c   :  { %6634 = vmatpush1.bf16.msra.mxu1 %v9413_v45  ;;  %6594 = vmatprep.subr.bf16.mxu0 %v9418_v46  ;;  %v9490_v45 = vld [vmem:[%s14340_s1 + $0x904] ss:$16 sps:$4 sm:$0xff]  }
  0x8d   :  { %6635 = vmatprep.subr.bf16.mxu1 %v9421_v47  ;;  %v9493_v46 = vld [vmem:[%s14340_s1 + $0xb04] ss:$16 sps:$4 sm:$0xff]   ;;  %v1141_v47 = vcombine.high %v11464_v39, %v11464_v39 }
  0x8f   :  { %6595 = vmatpush1.bf16.msra.mxu0 %v9416_v48  ;;  %v9488_v48 = vld [vmem:[%s14340_s1 + $0x900] ss:$16 sps:$4 sm:$0xff]  }
  0x90   :  { %6636 = vmatpush1.bf16.msra.mxu1 %v9419_v50  ;;  %6596 = vmatprep.subr.bf16.mxu0 %v9424_v51  ;;  %v11485_v50 = vrot.slane %v11290_v35, %v10967_v49  ;;  %v9491_v51 = vld [vmem:[%s14340_s1 + $0xb00] ss:$16 sps:$4 sm:$0xff]  }
  0x91   :  { %6637 = vmatprep.subr.bf16.mxu1 %v9427_v52  ;;  %v9496_v52 = vld [vmem:[%s14340_s1 + $0xce4] ss:$16 sps:$4 sm:$0xff]  }
  0x92   :  { %v11501_v35 = vcombine.high %v11485_v50, %v11485_v50 }
  0x93   :  { %6597 = vmatpush1.bf16.msra.mxu0 %v9422_v53  ;;  %v9499_v53 = vld [vmem:[%s14340_s1 + $0xee4] ss:$16 sps:$4 sm:$0xff]  }
  0x94   :  { %6638 = vmatpush1.bf16.msra.mxu1 %v9425_v54  ;;  %6598 = vmatprep.subr.bf16.mxu0 %v9430_v55  ;;  %v11497_v54 = vrot.slane %v1141_v47, %v10967_v49  ;;  %v9494_v55 = vld [vmem:[%s14340_s1 + $0xce0] ss:$16 sps:$4 sm:$0xff]   ;;  %v9562_v47 = vld [vmem:[%s14340_s1 + $0xd84] ss:$16 sps:$4 sm:$0xff]  }
  0x95   :  { %6639 = vmatprep.subr.bf16.mxu1 %v9433_v56  ;;  %v9497_v56 = vld [vmem:[%s14340_s1 + $0xee0] ss:$16 sps:$4 sm:$0xff]  }
  0x97   :  { %6599 = vmatpush1.bf16.msra.mxu0 %v9428_v57  ;;  %v9502_v57 = vld [vmem:[%s14340_s1 + $0xcc4] ss:$16 sps:$4 sm:$0xff]  }
  0x98   :  { %6640 = vmatpush1.bf16.msra.mxu1 %v9431_v58  ;;  %6600 = vmatprep.subr.bf16.mxu0 %v9436_v59  ;;  %v9505_v58 = vld [vmem:[%s14340_s1 + $0xec4] ss:$16 sps:$4 sm:$0xff]   ;;  %v11517_v59 = vcombine.high %v11497_v54, %v11497_v54 }
  0x99   :  { %6641 = vmatprep.subr.bf16.mxu1 %v9439_v61  ;;  %v9500_v61 = vld [vmem:[%s14340_s1 + $0xcc0] ss:$16 sps:$4 sm:$0xff]  }
  0x9b   :  { %6601 = vmatpush1.bf16.msra.mxu0 %v9434_v62  ;;  %v9503_v62 = vld [vmem:[%s14340_s1 + $0xec0] ss:$16 sps:$4 sm:$0xff]  }
  0x9c   :  { %6642 = vmatpush1.bf16.msra.mxu1 %v9437_v63  ;;  %6602 = vmatprep.subr.bf16.mxu0 %v9442_v1  ;;  %v9508_v63 = vld [vmem:[%s14340_s1 + $0xca4] ss:$16 sps:$4 sm:$0xff]  }
  0x9d   :  { %6643 = vmatprep.subr.bf16.mxu1 %v9445_v2  ;;  %v9511_v1 = vld [vmem:[%s14340_s1 + $0xea4] ss:$16 sps:$4 sm:$0xff]   ;;  %v9506_v2 = vld [vmem:[%s14340_s1 + $0xca0] ss:$16 sps:$4 sm:$0xff]  }
  0x9f   :  { %6603 = vmatpush1.bf16.msra.mxu0 %v9440_v3  ;;  %v9509_v3 = vld [vmem:[%s14340_s1 + $0xea0] ss:$16 sps:$4 sm:$0xff]  }
  0xa0   :  { %6644 = vmatpush1.bf16.msra.mxu1 %v9443_v4  ;;  %6604 = vmatprep.subr.bf16.mxu0 %v9448_v5  ;;  %v9514_v4 = vld [vmem:[%s14340_s1 + $0xc84] ss:$16 sps:$4 sm:$0xff]  }
  0xa1   :  { %6645 = vmatprep.subr.bf16.mxu1 %v9451_v7  ;;  %v9517_v5 = vld [vmem:[%s14340_s1 + $0xe84] ss:$16 sps:$4 sm:$0xff]   ;;  %v9512_v7 = vld [vmem:[%s14340_s1 + $0xc80] ss:$16 sps:$4 sm:$0xff]  }
  0xa3   :  { %6605 = vmatpush2.bf16.msra.mxu0 %v9446_v8  ;;  %v9515_v8 = vld [vmem:[%s14340_s1 + $0xe80] ss:$16 sps:$4 sm:$0xff]  }
  0xa4   :  { %6646 = vmatpush2.bf16.msra.mxu1 %v9449_v9  ;;  %6606 = vmatprep.subr.bf16.mxu0 %v9454_v10  ;;  %v9520_v9 = vld [vmem:[%s14340_s1 + $0xc64] ss:$16 sps:$4 sm:$0xff]  }
  0xa5   :  { %6647 = vmatprep.subr.bf16.mxu1 %v9457_v11  ;;  %v9523_v10 = vld [vmem:[%s14340_s1 + $0xe64] ss:$16 sps:$4 sm:$0xff]   ;;  %v9518_v11 = vld [vmem:[%s14340_s1 + $0xc60] ss:$16 sps:$4 sm:$0xff]  }
  0xa7   :  { %6607 = vmatpush2.bf16.msra.mxu0 %v9452_v12  ;;  %v9521_v12 = vld [vmem:[%s14340_s1 + $0xe60] ss:$16 sps:$4 sm:$0xff]  }
  0xa8   :  { %6648 = vmatpush2.bf16.msra.mxu1 %v9455_v14  ;;  %6608 = vmatprep.subr.bf16.mxu0 %v9460_v15  ;;  %v9526_v14 = vld [vmem:[%s14340_s1 + $0xc44] ss:$16 sps:$4 sm:$0xff]  }
  0xa9   :  { %6649 = vmatprep.subr.bf16.mxu1 %v9463_v16  ;;  %v9529_v15 = vld [vmem:[%s14340_s1 + $0xe44] ss:$16 sps:$4 sm:$0xff]   ;;  %v9524_v16 = vld [vmem:[%s14340_s1 + $0xc40] ss:$16 sps:$4 sm:$0xff]  }
  0xab   :  { %6609 = vmatpush2.bf16.msra.mxu0 %v9458_v19  ;;  %v9527_v19 = vld [vmem:[%s14340_s1 + $0xe40] ss:$16 sps:$4 sm:$0xff]  }
  0xac   :  { %6650 = vmatpush2.bf16.msra.mxu1 %v9461_v20  ;;  %6610 = vmatprep.subr.bf16.mxu0 %v9466_v21  ;;  %v9532_v20 = vld [vmem:[%s14340_s1 + $0xc24] ss:$16 sps:$4 sm:$0xff]  }
  0xad   :  { %6651 = vmatprep.subr.bf16.mxu1 %v9469_v22  ;;  %v9535_v21 = vld [vmem:[%s14340_s1 + $0xe24] ss:$16 sps:$4 sm:$0xff]   ;;  %v9530_v22 = vld [vmem:[%s14340_s1 + $0xc20] ss:$16 sps:$4 sm:$0xff]  }
  0xaf   :  { %6611 = vmatpush2.bf16.msra.mxu0 %v9464_v24  ;;  %v9533_v24 = vld [vmem:[%s14340_s1 + $0xe20] ss:$16 sps:$4 sm:$0xff]  }
  0xb0   :  { %6652 = vmatpush2.bf16.msra.mxu1 %v9467_v25  ;;  %6612 = vmatprep.subr.bf16.mxu0 %v9472_v27  ;;  %v9538_v25 = vld [vmem:[%s14340_s1 + $0xc04] ss:$16 sps:$4 sm:$0xff]  }
  0xb1   :  { %6653 = vmatprep.subr.bf16.mxu1 %v9475_v28  ;;  %v9541_v27 = vld [vmem:[%s14340_s1 + $0xe04] ss:$16 sps:$4 sm:$0xff]   ;;  %v9536_v28 = vld [vmem:[%s14340_s1 + $0xc00] ss:$16 sps:$4 sm:$0xff]  }
  0xb3   :  { %6613 = vmatpush2.bf16.msra.mxu0 %v9470_v29  ;;  %v9539_v29 = vld [vmem:[%s14340_s1 + $0xe00] ss:$16 sps:$4 sm:$0xff]  }
  0xb4   :  { %6654 = vmatpush2.bf16.msra.mxu1 %v9473_v30  ;;  %6614 = vmatprep.subr.bf16.mxu0 %v9478_v31  ;;  %v9544_v30 = vld [vmem:[%s14340_s1 + $0xde4] ss:$16 sps:$4 sm:$0xff]  }
  0xb5   :  { %6655 = vmatprep.subr.bf16.mxu1 %v9481_v33  ;;  %v9547_v31 = vld [vmem:[%s14340_s1 + $0xfe4] ss:$16 sps:$4 sm:$0xff]   ;;  %v9542_v33 = vld [vmem:[%s14340_s1 + $0xde0] ss:$16 sps:$4 sm:$0xff]  }
  0xb7   :  { %6615 = vmatpush2.bf16.msra.mxu0 %v9476_v36  ;;  %v9550_v36 = vld [vmem:[%s14340_s1 + $0xdc4] ss:$16 sps:$4 sm:$0xff]  }
  0xb8   :  { %6656 = vmatpush2.bf16.msra.mxu1 %v9479_v37  ;;  %6616 = vmatprep.subr.bf16.mxu0 %v9484_v38  ;;  %v9553_v37 = vld [vmem:[%s14340_s1 + $0xfc4] ss:$16 sps:$4 sm:$0xff]   ;;  %v9548_v38 = vld [vmem:[%s14340_s1 + $0xdc0] ss:$16 sps:$4 sm:$0xff]  }
  0xb9   :  { %6657 = vmatprep.subr.bf16.mxu1 %v9487_v32  ;;  %v9551_v32 = vld [vmem:[%s14340_s1 + $0xfc0] ss:$16 sps:$4 sm:$0xff]  }
  0xbb   :  { %6617 = vmatpush2.bf16.msra.mxu0 %v9482_v40  ;;  %v9556_v40 = vld [vmem:[%s14340_s1 + $0xda4] ss:$16 sps:$4 sm:$0xff]  }
  0xbc   :  { %6658 = vmatpush2.bf16.msra.mxu1 %v9485_v44  ;;  %6618 = vmatprep.subr.bf16.mxu0 %v9490_v45  ;;  %v9559_v44 = vld [vmem:[%s14340_s1 + $0xfa4] ss:$16 sps:$4 sm:$0xff]   ;;  %v9554_v45 = vld [vmem:[%s14340_s1 + $0xda0] ss:$16 sps:$4 sm:$0xff]  }
  0xbd   :  { %6659 = vmatprep.subr.bf16.mxu1 %v9493_v46  ;;  %v9557_v46 = vld [vmem:[%s14340_s1 + $0xfa0] ss:$16 sps:$4 sm:$0xff]  }
  0xbf   :  { %6619 = vmatpush2.bf16.msra.mxu0 %v9488_v48  ;;  %v9565_v48 = vld [vmem:[%s14340_s1 + $0xf84] ss:$16 sps:$4 sm:$0xff]  }
  0xc0   :  { %6660 = vmatpush2.bf16.msra.mxu1 %v9491_v51  ;;  %6670 = vmatprep.subr.bf16.mxu0 %v9496_v52  ;;  %v9560_v51 = vld [vmem:[%s14340_s1 + $0xd80] ss:$16 sps:$4 sm:$0xff]  }
  0xc1   :  { %6711 = vmatprep.subr.bf16.mxu1 %v9499_v53  ;;  %v9563_v52 = vld [vmem:[%s14340_s1 + $0xf80] ss:$16 sps:$4 sm:$0xff]   ;;  %v9568_v53 = vld [vmem:[%s14340_s1 + $0xd64] ss:$16 sps:$4 sm:$0xff]  }
  0xc2   :  { %6621 = vmatmul.mubr.bf16.vlgmr.msra.gmra.mxu0 %v11485_v50 }
  0xc3   :  { %6662 = vmatmul.mubr.bf16.vlgmr.msra.gmra.mxu1 %v11501_v35  ;;  %6671 = vmatpush1.bf16.msra.mxu0 %v9494_v55  ;;  %v9571_v55 = vld [vmem:[%s14340_s1 + $0xf64] ss:$16 sps:$4 sm:$0xff]  }
  0xc4   :  { %6712 = vmatpush1.bf16.msra.mxu1 %v9497_v56  ;;  %6672 = vmatprep.subr.bf16.mxu0 %v9502_v57  ;;  %v9566_v56 = vld [vmem:[%s14340_s1 + $0xd60] ss:$16 sps:$4 sm:$0xff]  }
  0xc5   :  { %6713 = vmatprep.subr.bf16.mxu1 %v9505_v58  ;;  %6702 = vmatprep.mubr.bf16.mxu0 %v11497_v54  ;;  %v9569_v57 = vld [vmem:[%s14340_s1 + $0xf60] ss:$16 sps:$4 sm:$0xff]   ;;  %v9574_v58 = vld [vmem:[%s14340_s1 + $0xd44] ss:$16 sps:$4 sm:$0xff]  }
  0xc6   :  { %6743 = vmatprep.mubr.bf16.mxu1 %v11517_v59 }
  0xc7   :  { %6673 = vmatpush1.bf16.msra.mxu0 %v9500_v61  ;;  %v9577_v61 = vld [vmem:[%s14340_s1 + $0xf44] ss:$16 sps:$4 sm:$0xff]  }
  0xc8   :  { %6714 = vmatpush1.bf16.msra.mxu1 %v9503_v62  ;;  %6674 = vmatprep.subr.bf16.mxu0 %v9508_v63  ;;  %v9572_v62 = vld [vmem:[%s14340_s1 + $0xd40] ss:$16 sps:$4 sm:$0xff]  }
  0xc9   :  { %6715 = vmatprep.subr.bf16.mxu1 %v9511_v1  ;;  %v9575_v63 = vld [vmem:[%s14340_s1 + $0xf40] ss:$16 sps:$4 sm:$0xff]  }
  0xca   :  { %v11676_v1 = vld [vmem:[%s14339_s0 + $0x10] sm:$0xff] }
  0xcb   :  { %6675 = vmatpush1.bf16.msra.mxu0 %v9506_v2  ;;  %v9580_v2 = vld [vmem:[%s14340_s1 + $0xd24] ss:$16 sps:$4 sm:$0xff]  }
  0xcc   :  { %6716 = vmatpush1.bf16.msra.mxu1 %v9509_v3  ;;  %6676 = vmatprep.subr.bf16.mxu0 %v9514_v4  ;;  %v9583_v3 = vld [vmem:[%s14340_s1 + $0xf24] ss:$16 sps:$4 sm:$0xff]   ;;  %v11686_v4 = vrot.slane %v11676_v1, %v10967_v49 }
  0xcd   :  { %6717 = vmatprep.subr.bf16.mxu1 %v9517_v5  ;;  %v9578_v5 = vld [vmem:[%s14340_s1 + $0xd20] ss:$16 sps:$4 sm:$0xff]  }
  0xcf   :  { %6677 = vmatpush1.bf16.msra.mxu0 %v9512_v7  ;;  %v9581_v7 = vld [vmem:[%s14340_s1 + $0xf20] ss:$16 sps:$4 sm:$0xff]  }
  0xd0   :  { %6718 = vmatpush1.bf16.msra.mxu1 %v9515_v8  ;;  %6678 = vmatprep.subr.bf16.mxu0 %v9520_v9  ;;  %v9586_v8 = vld [vmem:[%s14340_s1 + $0xd04] ss:$16 sps:$4 sm:$0xff]  }
  0xd1   :  { %6719 = vmatprep.subr.bf16.mxu1 %v9523_v10  ;;  %v9589_v9 = vld [vmem:[%s14340_s1 + $0xf04] ss:$16 sps:$4 sm:$0xff]   ;;  %v9584_v10 = vld [vmem:[%s14340_s1 + $0xd00] ss:$16 sps:$4 sm:$0xff]  }
  0xd3   :  { %6679 = vmatpush1.bf16.msra.mxu0 %v9518_v11  ;;  %v1189_v11 = vcombine.high %v11686_v4, %v11686_v4 }
  0xd4   :  { %6720 = vmatpush1.bf16.msra.mxu1 %v9521_v12  ;;  %6680 = vmatprep.subr.bf16.mxu0 %v9526_v14  ;;  %v9587_v12 = vld [vmem:[%s14340_s1 + $0xf00] ss:$16 sps:$4 sm:$0xff]  }
  0xd5   :  { %6721 = vmatprep.subr.bf16.mxu1 %v9529_v15  ;;  %v1050_v14 = vld [vmem:[%s14341_s2] sm:$0xf]  ;;  %v11713_v15 = vrot.slane %v11464_v39, %v10967_v49 }
  0xd7   :  { %6681 = vmatpush1.bf16.msra.mxu0 %v9524_v16  ;;  %v1054_v16 = vsub.s32 0, %v10949_v42  ;;  %v11728_v39 = vcombine.high %v11713_v15, %v11713_v15 }
  0xd8   :  { %6722 = vmatpush1.bf16.msra.mxu1 %v9527_v19  ;;  %6682 = vmatprep.subr.bf16.mxu0 %v9532_v20  ;;  %v9593_v19 = vld [vmem:[%s14340_s1 + $0x10e4] ss:$16 sps:$4 sm:$0xff]  }
  0xd9   :  { %6723 = vmatprep.subr.bf16.mxu1 %v9535_v21  ;;  %v9596_v20 = vld [vmem:[%s14340_s1 + $0x12e4] ss:$16 sps:$4 sm:$0xff]   ;;  %v1058_v21 = vsub.s32 1, %v10949_v42 }
  0xdb   :  { %6683 = vmatpush1.bf16.msra.mxu0 %v9530_v22  ;;  %v11724_v22 = vrot.slane %v1189_v11, %v10967_v49  ;;  %v9624_v11 = vld [vmem:[%s14340_s1 + $0x1240] ss:$16 sps:$4 sm:$0xff]  }
  0xdc   :  { %6724 = vmatpush1.bf16.msra.mxu1 %v9533_v24  ;;  %6684 = vmatprep.subr.bf16.mxu0 %v9538_v25  ;;  %v9591_v24 = vld [vmem:[%s14340_s1 + $0x10e0] ss:$16 sps:$4 sm:$0xff]  }
  0xdd   :  { %6725 = vmatprep.subr.bf16.mxu1 %v9541_v27  ;;  %v9594_v25 = vld [vmem:[%s14340_s1 + $0x12e0] ss:$16 sps:$4 sm:$0xff]   ;;  %v1055_v27 = vrot.slane %v1050_v14, %v1054_v16 }
  0xde   :  { %v9627_v16 = vld [vmem:[%s14340_s1 + $0x1020] ss:$16 sps:$4 sm:$0xff]  }
  0xdf   :  { %6685 = vmatpush1.bf16.msra.mxu0 %v9536_v28  ;;  %v9599_v28 = vld [vmem:[%s14340_s1 + $0x10c4] ss:$16 sps:$4 sm:$0xff]  }
  0xe0   :  { %6726 = vmatpush1.bf16.msra.mxu1 %v9539_v29  ;;  %6686 = vmatprep.subr.bf16.mxu0 %v9544_v30  ;;  %v9602_v29 = vld [vmem:[%s14340_s1 + $0x12c4] ss:$16 sps:$4 sm:$0xff]   ;;  %v1059_v30 = vrot.slane %v1050_v14, %v1058_v21 }
  0xe1   :  { %6727 = vmatprep.subr.bf16.mxu1 %v9547_v31  ;;  %v11744_v31 = vcombine.high %v11724_v22, %v11724_v22  ;;  %v9632_v14 = vld [vmem:[%s14340_s1 + $0x1224] ss:$16 sps:$4 sm:$0xff]  }
  0xe2   :  { %v9638_v21 = vld [vmem:[%s14340_s1 + $0x1204] ss:$16 sps:$4 sm:$0xff]  }
  0xe3   :  { %6687 = vmatpush2.bf16.msra.mxu0 %v9542_v33 }
  0xe4   :  { %6728 = vmatpush2.bf16.msra.mxu1 %v9545_v34  ;;  %6688 = vmatprep.subr.bf16.mxu0 %v9550_v36  ;;  %v9597_v36 = vld [vmem:[%s14340_s1 + $0x10c0] ss:$16 sps:$4 sm:$0xff]  }
  0xe5   :  { %6729 = vmatprep.subr.bf16.mxu1 %v9553_v37  ;;  %v9600_v37 = vld [vmem:[%s14340_s1 + $0x12c0] ss:$16 sps:$4 sm:$0xff]  }
  0xe7   :  { %6689 = vmatpush2.bf16.msra.mxu0 %v9548_v38 }
  0xe8   :  { %6730 = vmatpush2.bf16.msra.mxu1 %v9551_v32  ;;  %6690 = vmatprep.subr.bf16.mxu0 %v9556_v40 }
  0xe9   :  { %6731 = vmatprep.subr.bf16.mxu1 %v9559_v44  ;;  %v9605_v44 = vld [vmem:[%s14340_s1 + $0x10a4] ss:$16 sps:$4 sm:$0xff]  }
  0xeb   :  { %6691 = vmatpush2.bf16.msra.mxu0 %v9554_v45  ;;  %v9608_v45 = vld [vmem:[%s14340_s1 + $0x12a4] ss:$16 sps:$4 sm:$0xff]  }
  0xec   :  { %6732 = vmatpush2.bf16.msra.mxu1 %v9557_v46  ;;  %6692 = vmatprep.subr.bf16.mxu0 %v9562_v47 }
  0xed   :  { %6733 = vmatprep.subr.bf16.mxu1 %v9565_v48  ;;  %v9603_v48 = vld [vmem:[%s14340_s1 + $0x10a0] ss:$16 sps:$4 sm:$0xff]  }
  0xef   :  { %6693 = vmatpush2.bf16.msra.mxu0 %v9560_v51  ;;  %v9606_v51 = vld [vmem:[%s14340_s1 + $0x12a0] ss:$16 sps:$4 sm:$0xff]  }
  0xf0   :  { %6734 = vmatpush2.bf16.msra.mxu1 %v9563_v52  ;;  %6694 = vmatprep.subr.bf16.mxu0 %v9568_v53 }
  0xf1   :  { %6735 = vmatprep.subr.bf16.mxu1 %v9571_v55 }
  0xf3   :  { %6695 = vmatpush2.bf16.msra.mxu0 %v9566_v56 }
  0xf4   :  { %6736 = vmatpush2.bf16.msra.mxu1 %v9569_v57  ;;  %6696 = vmatprep.subr.bf16.mxu0 %v9574_v58  ;;  %v9611_v58 = vld [vmem:[%s14340_s1 + $0x1084] ss:$16 sps:$4 sm:$0xff]  }
  0xf5   :  { %6737 = vmatprep.subr.bf16.mxu1 %v9577_v61  ;;  %v9614_v61 = vld [vmem:[%s14340_s1 + $0x1284] ss:$16 sps:$4 sm:$0xff]  }
  0xf7   :  { %6697 = vmatpush2.bf16.msra.mxu0 %v9572_v62  ;;  %v9609_v62 = vld [vmem:[%s14340_s1 + $0x1080] ss:$16 sps:$4 sm:$0xff]  }
  0xf8   :  { %6738 = vmatpush2.bf16.msra.mxu1 %v9575_v63  ;;  %6698 = vmatprep.subr.bf16.mxu0 %v9580_v2  ;;  %v9612_v63 = vld [vmem:[%s14340_s1 + $0x1280] ss:$16 sps:$4 sm:$0xff]   ;;  %v9617_v2 = vld [vmem:[%s14340_s1 + $0x1064] ss:$16 sps:$4 sm:$0xff]  }
  0xf9   :  { %6739 = vmatprep.subr.bf16.mxu1 %v9583_v3  ;;  %v9620_v3 = vld [vmem:[%s14340_s1 + $0x1264] ss:$16 sps:$4 sm:$0xff]  }
  0xfb   :  { %6699 = vmatpush2.bf16.msra.mxu0 %v9578_v5  ;;  %v9615_v5 = vld [vmem:[%s14340_s1 + $0x1060] ss:$16 sps:$4 sm:$0xff]  }
  0xfc   :  { %6740 = vmatpush2.bf16.msra.mxu1 %v9581_v7  ;;  %6700 = vmatprep.subr.bf16.mxu0 %v9586_v8  ;;  %v9618_v7 = vld [vmem:[%s14340_s1 + $0x1260] ss:$16 sps:$4 sm:$0xff]   ;;  %v9623_v8 = vld [vmem:[%s14340_s1 + $0x1044] ss:$16 sps:$4 sm:$0xff]  }
  0xfd   :  { %6741 = vmatprep.subr.bf16.mxu1 %v9589_v9  ;;  %v9626_v9 = vld [vmem:[%s14340_s1 + $0x1244] ss:$16 sps:$4 sm:$0xff]  }
  0xff   :  { %6701 = vmatpush2.bf16.msra.mxu0 %v9584_v10  ;;  %v9621_v10 = vld [vmem:[%s14340_s1 + $0x1040] ss:$16 sps:$4 sm:$0xff]  }
 0x100   :  { %6742 = vmatpush2.bf16.msra.mxu1 %v9587_v12  ;;  %6752 = vmatprep.subr.bf16.mxu0 %v9593_v19  ;;  %v9629_v12 = vld [vmem:[%s14340_s1 + $0x1024] ss:$16 sps:$4 sm:$0xff]   ;;  %v9630_v19 = vld [vmem:[%s14340_s1 + $0x1220] ss:$16 sps:$4 sm:$0xff]  }
 0x101   :  { %6793 = vmatprep.subr.bf16.mxu1 %v9596_v20  ;;  %v9635_v20 = vld [vmem:[%s14340_s1 + $0x1004] ss:$16 sps:$4 sm:$0xff]  }
 0x102   :  { %v6458_v33 = vpop.f32.mrf.mxu0  ;;  %6703 = vmatmul.mubr.bf16.vlgmr.msra.gmra.mxu0 %v11713_v15 }
 0x103   :  { %v6499_v34 = vpop.f32.mrf.mxu1  ;;  %6744 = vmatmul.mubr.bf16.vlgmr.msra.gmra.mxu1 %v11728_v39  ;;  %v6459_v38 = vadd.f32 %v6458_v33, %v1055_v27  ;;  %6753 = vmatpush1.bf16.msra.mxu0 %v9591_v24  ;;  %v9633_v24 = vld [vmem:[%s14340_s1 + $0x1000] ss:$16 sps:$4 sm:$0xff]   ;;  %v9641_v27 = vld [vmem:[%s14340_s1 + $0x11e4] ss:$16 sps:$4 sm:$0xff]  }
 0x104   :  { %6794 = vmatpush1.bf16.msra.mxu1 %v9594_v25  ;;  %v6460_v32 = vpop.f32.mrf.mxu0  ;;  %6754 = vmatprep.subr.bf16.mxu0 %v9599_v28  ;;  %v9636_v25 = vld [vmem:[%s14340_s1 + $0x1200] ss:$16 sps:$4 sm:$0xff]   ;;  %v9644_v28 = vld [vmem:[%s14340_s1 + $0x13e4] ss:$16 sps:$4 sm:$0xff]  }
 0x105   :  { %v6501_v40 = vpop.f32.mrf.mxu1  ;;  %6795 = vmatprep.subr.bf16.mxu1 %v9602_v29  ;;  %v11760_v46 = vadd.f32 %v6499_v34, %v6459_v38  ;;  %v6461_v47 = vadd.f32 %v6460_v32, %v1059_v30  ;;  %6784 = vmatprep.mubr.bf16.mxu0 %v11724_v22  ;;  %v9639_v29 = vld [vmem:[%s14340_s1 + $0x11e0] ss:$16 sps:$4 sm:$0xff]   ;;  %v9647_v33 = vld [vmem:[%s14340_s1 + $0x11c4] ss:$16 sps:$4 sm:$0xff]  }
 0x106   :  { %6825 = vmatprep.mubr.bf16.mxu1 %v11744_v31  ;;  %v6462_v52 = vpop.f32.mrf.mxu0  ;;  %v9642_v30 = vld [vmem:[%s14340_s1 + $0x13e0] ss:$16 sps:$4 sm:$0xff]   ;;  %v9650_v34 = vld [vmem:[%s14340_s1 + $0x13c4] ss:$16 sps:$4 sm:$0xff]  }
 0x107   :  { %v6503_v53 = vpop.f32.mrf.mxu1  ;;  %v11770_v55 = vadd.f32 %v6501_v40, %v6461_v47  ;;  %6755 = vmatpush1.bf16.msra.mxu0 %v9597_v36  ;;  %v9645_v36 = vld [vmem:[%s14340_s1 + $0x11c0] ss:$16 sps:$4 sm:$0xff]   ;;  %v9653_v38 = vld [vmem:[%s14340_s1 + $0x11a4] ss:$16 sps:$4 sm:$0xff]  }
 0x108   :  { %6796 = vmatpush1.bf16.msra.mxu1 %v9600_v37  ;;  %v6463_v56 = vpop.f32.mrf.mxu0  ;;  %6756 = vmatprep.subr.bf16.mxu0 %v9605_v44  ;;  %v9648_v37 = vld [vmem:[%s14340_s1 + $0x13c0] ss:$16 sps:$4 sm:$0xff]   ;;  %v9656_v32 = vld [vmem:[%s14340_s1 + $0x13a4] ss:$16 sps:$4 sm:$0xff]  }
 0x109   :  { %v6504_v57 = vpop.f32.mrf.mxu1  ;;  %6797 = vmatprep.subr.bf16.mxu1 %v9608_v45  ;;  %v9651_v40 = vld [vmem:[%s14340_s1 + $0x11a0] ss:$16 sps:$4 sm:$0xff]   ;;  %v9659_v45 = vld [vmem:[%s14340_s1 + $0x1184] ss:$16 sps:$4 sm:$0xff]  }
 0x10a   :  { %v9654_v44 = vld [vmem:[%s14340_s1 + $0x13a0] ss:$16 sps:$4 sm:$0xff]   ;;  %v9662_v47 = vld [vmem:[%s14340_s1 + $0x1384] ss:$16 sps:$4 sm:$0xff]  }
 0x10b   :  { %6757 = vmatpush1.bf16.msra.mxu0 %v9603_v48  ;;  %v9657_v48 = vld [vmem:[%s14340_s1 + $0x1180] ss:$16 sps:$4 sm:$0xff]   ;;  %v9665_v52 = vld [vmem:[%s14340_s1 + $0x1164] ss:$16 sps:$4 sm:$0xff]  }
 0x10c   :  { %6798 = vmatpush1.bf16.msra.mxu1 %v9606_v51  ;;  %6758 = vmatprep.subr.bf16.mxu0 %v9611_v58  ;;  %v9660_v51 = vld [vmem:[%s14340_s1 + $0x1380] ss:$16 sps:$4 sm:$0xff]   ;;  %v9668_v53 = vld [vmem:[%s14340_s1 + $0x1364] ss:$16 sps:$4 sm:$0xff]  }
 0x10d   :  { %6799 = vmatprep.subr.bf16.mxu1 %v9614_v61  ;;  %v9663_v56 = vld [vmem:[%s14340_s1 + $0x1160] ss:$16 sps:$4 sm:$0xff]   ;;  %v9671_v58 = vld [vmem:[%s14340_s1 + $0x1144] ss:$16 sps:$4 sm:$0xff]  }
 0x10e   :  { %v9666_v57 = vld [vmem:[%s14340_s1 + $0x1360] ss:$16 sps:$4 sm:$0xff]   ;;  %v9674_v61 = vld [vmem:[%s14340_s1 + $0x1344] ss:$16 sps:$4 sm:$0xff]  }
 0x10f   :  { %6759 = vmatpush1.bf16.msra.mxu0 %v9609_v62  ;;  %v1174_v62 = vcombine.high %v11676_v1, %v11676_v1  ;;  %v9680_v1 = vld [vmem:[%s14340_s1 + $0x1324] ss:$16 sps:$4 sm:$0xff]  }
 0x110   :  { %6800 = vmatpush1.bf16.msra.mxu1 %v9612_v63  ;;  %6760 = vmatprep.subr.bf16.mxu0 %v9617_v2  ;;  %v9669_v63 = vld [vmem:[%s14340_s1 + $0x1140] ss:$16 sps:$4 sm:$0xff]  }
 0x111   :  { %6801 = vmatprep.subr.bf16.mxu1 %v9620_v3  ;;  %v9672_v2 = vld [vmem:[%s14340_s1 + $0x1340] ss:$16 sps:$4 sm:$0xff]   ;;  %v9677_v3 = vld [vmem:[%s14340_s1 + $0x1124] ss:$16 sps:$4 sm:$0xff]  }
 0x113   :  { %6761 = vmatpush1.bf16.msra.mxu0 %v9615_v5  ;;  %v11913_v5 = vrot.slane %v1174_v62, %v10967_v49  ;;  %v9708_v62 = vld [vmem:[%s14340_s1 + $0x1680] ss:$16 sps:$4 sm:$0xff]  }
 0x114   :  { %6802 = vmatpush1.bf16.msra.mxu1 %v9618_v7  ;;  %6762 = vmatprep.subr.bf16.mxu0 %v9623_v8  ;;  %v9675_v7 = vld [vmem:[%s14340_s1 + $0x1120] ss:$16 sps:$4 sm:$0xff]  }
 0x115   :  { %6803 = vmatprep.subr.bf16.mxu1 %v9626_v9  ;;  %v9678_v8 = vld [vmem:[%s14340_s1 + $0x1320] ss:$16 sps:$4 sm:$0xff]   ;;  %v9683_v9 = vld [vmem:[%s14340_s1 + $0x1104] ss:$16 sps:$4 sm:$0xff]  }
 0x117   :  { %6763 = vmatpush1.bf16.msra.mxu0 %v9621_v10  ;;  %v9686_v10 = vld [vmem:[%s14340_s1 + $0x1304] ss:$16 sps:$4 sm:$0xff]  }
 0x118   :  { %6804 = vmatpush1.bf16.msra.mxu1 %v9624_v11  ;;  %6764 = vmatprep.subr.bf16.mxu0 %v9629_v12  ;;  %v1190_v11 = vcombine.high %v11913_v5, %v11913_v5  ;;  %v11931_v12 = vrot.slane %v11686_v4, %v10967_v49  ;;  %v9692_v4 = vld [vmem:[%s14340_s1 + $0x16e4] ss:$16 sps:$4 sm:$0xff]  }
 0x119   :  { %6805 = vmatprep.subr.bf16.mxu1 %v9632_v14  ;;  %v9681_v14 = vld [vmem:[%s14340_s1 + $0x1100] ss:$16 sps:$4 sm:$0xff]  }
 0x11b   :  { %6765 = vmatpush1.bf16.msra.mxu0 %v9627_v16  ;;  %v9684_v16 = vld [vmem:[%s14340_s1 + $0x1300] ss:$16 sps:$4 sm:$0xff]  }
 0x11c   :  { %6806 = vmatpush1.bf16.msra.mxu1 %v9630_v19  ;;  %6766 = vmatprep.subr.bf16.mxu0 %v9635_v20  ;;  %v9689_v19 = vld [vmem:[%s14340_s1 + $0x14e4] ss:$16 sps:$4 sm:$0xff]   ;;  %v9687_v20 = vld [vmem:[%s14340_s1 + $0x14e0] ss:$16 sps:$4 sm:$0xff]  }
 0x11d   :  { %6807 = vmatprep.subr.bf16.mxu1 %v9638_v21  ;;  %v9690_v21 = vld [vmem:[%s14340_s1 + $0x16e0] ss:$16 sps:$4 sm:$0xff]  }
 0x11f   :  { %6767 = vmatpush1.bf16.msra.mxu0 %v9633_v24  ;;  %v11952_v24 = vrot.slane %v1190_v11, %v10967_v49  ;;  %v9725_v11 = vld [vmem:[%s14340_s1 + $0x1424] ss:$16 sps:$4 sm:$0xff]  }
 0x120   :  { %6808 = vmatpush1.bf16.msra.mxu1 %v9636_v25  ;;  %6768 = vmatprep.subr.bf16.mxu0 %v9641_v27  ;;  %v11956_v25 = vcombine.high %v11931_v12, %v11931_v12  ;;  %v9695_v27 = vld [vmem:[%s14340_s1 + $0x14c4] ss:$16 sps:$4 sm:$0xff]  }
 0x121   :  { %6809 = vmatprep.subr.bf16.mxu1 %v9644_v28  ;;  %v9698_v28 = vld [vmem:[%s14340_s1 + $0x16c4] ss:$16 sps:$4 sm:$0xff]  }
 0x123   :  { %6769 = vmatpush2.bf16.msra.mxu0 %v9639_v29  ;;  %v9693_v29 = vld [vmem:[%s14340_s1 + $0x14c0] ss:$16 sps:$4 sm:$0xff]  }
 0x124   :  { %6810 = vmatpush2.bf16.msra.mxu1 %v9642_v30  ;;  %6770 = vmatprep.subr.bf16.mxu0 %v9647_v33  ;;  %v9696_v30 = vld [vmem:[%s14340_s1 + $0x16c0] ss:$16 sps:$4 sm:$0xff]   ;;  %v11972_v33 = vcombine.high %v11952_v24, %v11952_v24 }
 0x125   :  { %6811 = vmatprep.subr.bf16.mxu1 %v9650_v34 }
 0x127   :  { %6771 = vmatpush2.bf16.msra.mxu0 %v9645_v36 }
 0x128   :  { %6812 = vmatpush2.bf16.msra.mxu1 %v9648_v37  ;;  %6772 = vmatprep.subr.bf16.mxu0 %v9653_v38 }
 0x129   :  { %6813 = vmatprep.subr.bf16.mxu1 %v9656_v32 }
 0x12b   :  { %6773 = vmatpush2.bf16.msra.mxu0 %v9651_v40  ;;  %v9701_v40 = vld [vmem:[%s14340_s1 + $0x14a4] ss:$16 sps:$4 sm:$0xff]  }
 0x12c   :  { %6814 = vmatpush2.bf16.msra.mxu1 %v9654_v44  ;;  %6774 = vmatprep.subr.bf16.mxu0 %v9659_v45  ;;  %v9704_v44 = vld [vmem:[%s14340_s1 + $0x16a4] ss:$16 sps:$4 sm:$0xff]  }
 0x12d   :  { %6815 = vmatprep.subr.bf16.mxu1 %v9662_v47 }
 0x12f   :  { %6775 = vmatpush2.bf16.msra.mxu0 %v9657_v48  ;;  %v9702_v48 = vld [vmem:[%s14340_s1 + $0x16a0] ss:$16 sps:$4 sm:$0xff]  }
 0x130   :  { %6816 = vmatpush2.bf16.msra.mxu1 %v9660_v51  ;;  %6776 = vmatprep.subr.bf16.mxu0 %v9665_v52 }
 0x131   :  { %6817 = vmatprep.subr.bf16.mxu1 %v9668_v53 }
 0x133   :  { %6777 = vmatpush2.bf16.msra.mxu0 %v9663_v56 }
 0x134   :  { %6818 = vmatpush2.bf16.msra.mxu1 %v9666_v57  ;;  %6778 = vmatprep.subr.bf16.mxu0 %v9671_v58  ;;  %v9707_v57 = vld [vmem:[%s14340_s1 + $0x1484] ss:$16 sps:$4 sm:$0xff]  }
 0x135   :  { %6819 = vmatprep.subr.bf16.mxu1 %v9674_v61  ;;  %v9710_v58 = vld [vmem:[%s14340_s1 + $0x1684] ss:$16 sps:$4 sm:$0xff]   ;;  %v9705_v61 = vld [vmem:[%s14340_s1 + $0x1480] ss:$16 sps:$4 sm:$0xff]  }
 0x137   :  { %6779 = vmatpush2.bf16.msra.mxu0 %v9669_v63  ;;  %v9713_v63 = vld [vmem:[%s14340_s1 + $0x1464] ss:$16 sps:$4 sm:$0xff]  }
 0x138   :  { %6820 = vmatpush2.bf16.msra.mxu1 %v9672_v2  ;;  %6780 = vmatprep.subr.bf16.mxu0 %v9677_v3  ;;  %v9716_v2 = vld [vmem:[%s14340_s1 + $0x1664] ss:$16 sps:$4 sm:$0xff]   ;;  %v9711_v3 = vld [vmem:[%s14340_s1 + $0x1460] ss:$16 sps:$4 sm:$0xff]  }
 0x139   :  { %6821 = vmatprep.subr.bf16.mxu1 %v9680_v1  ;;  %v9714_v1 = vld [vmem:[%s14340_s1 + $0x1660] ss:$16 sps:$4 sm:$0xff]  }
 0x13b   :  { %6781 = vmatpush2.bf16.msra.mxu0 %v9675_v7  ;;  %v9719_v7 = vld [vmem:[%s14340_s1 + $0x1444] ss:$16 sps:$4 sm:$0xff]  }
 0x13c   :  { %6822 = vmatpush2.bf16.msra.mxu1 %v9678_v8  ;;  %6782 = vmatprep.subr.bf16.mxu0 %v9683_v9  ;;  %v9722_v8 = vld [vmem:[%s14340_s1 + $0x1644] ss:$16 sps:$4 sm:$0xff]   ;;  %v9717_v9 = vld [vmem:[%s14340_s1 + $0x1440] ss:$16 sps:$4 sm:$0xff]  }
 0x13d   :  { %6823 = vmatprep.subr.bf16.mxu1 %v9686_v10  ;;  %v9720_v10 = vld [vmem:[%s14340_s1 + $0x1640] ss:$16 sps:$4 sm:$0xff]  }
 0x13f   :  { %6783 = vmatpush2.bf16.msra.mxu0 %v9681_v14  ;;  %v9728_v14 = vld [vmem:[%s14340_s1 + $0x1624] ss:$16 sps:$4 sm:$0xff]  }
 0x140   :  { %6824 = vmatpush2.bf16.msra.mxu1 %v9684_v16  ;;  %6834 = vmatprep.subr.bf16.mxu0 %v9689_v19  ;;  %v9723_v16 = vld [vmem:[%s14340_s1 + $0x1420] ss:$16 sps:$4 sm:$0xff]  }
 0x141   :  { %6875 = vmatprep.subr.bf16.mxu1 %v9692_v4  ;;  %v9726_v19 = vld [vmem:[%s14340_s1 + $0x1620] ss:$16 sps:$4 sm:$0xff]   ;;  %v9731_v4 = vld [vmem:[%s14340_s1 + $0x1404] ss:$16 sps:$4 sm:$0xff]  }
 0x142   :  { %v6540_v34 = vpop.f32.mrf.mxu0  ;;  %6785 = vmatmul.mubr.bf16.vlgmr.msra.gmra.mxu0 %v11931_v12 }
 0x143   :  { %v6581_v36 = vpop.f32.mrf.mxu1  ;;  %6826 = vmatmul.mubr.bf16.vlgmr.msra.gmra.mxu1 %v11956_v25  ;;  %v6541_v37 = vadd.f32 %v6540_v34, %v11760_v46  ;;  %6835 = vmatpush1.bf16.msra.mxu0 %v9687_v20  ;;  %v9699_v46 = vld [vmem:[%s14340_s1 + $0x14a0] ss:$16 sps:$4 sm:$0xff]   ;;  %v9734_v20 = vld [vmem:[%s14340_s1 + $0x1604] ss:$16 sps:$4 sm:$0xff]  }
 0x144   :  { %6876 = vmatpush1.bf16.msra.mxu1 %v9690_v21  ;;  %v6542_v38 = vpop.f32.mrf.mxu0  ;;  %6836 = vmatprep.subr.bf16.mxu0 %v9695_v27  ;;  %v9729_v21 = vld [vmem:[%s14340_s1 + $0x1400] ss:$16 sps:$4 sm:$0xff]  }
 0x145   :  { %v6583_v32 = vpop.f32.mrf.mxu1  ;;  %6877 = vmatprep.subr.bf16.mxu1 %v9698_v28  ;;  %v11983_v45 = vadd.f32 %v6581_v36, %v6541_v37  ;;  %v6543_v47 = vadd.f32 %v6542_v38, %v11770_v55  ;;  %6866 = vmatprep.mubr.bf16.mxu0 %v11952_v24  ;;  %v9732_v27 = vld [vmem:[%s14340_s1 + $0x1600] ss:$16 sps:$4 sm:$0xff]   ;;  %v9737_v28 = vld [vmem:[%s14340_s1 + $0x15e4] ss:$16 sps:$4 sm:$0xff]  }
 0x146   :  { %6907 = vmatprep.mubr.bf16.mxu1 %v11972_v33  ;;  %v6544_v51 = vpop.f32.mrf.mxu0  ;;  %v9738_v34 = vld [vmem:[%s14340_s1 + $0x17e0] ss:$16 sps:$4 sm:$0xff]   ;;  %v9743_v36 = vld [vmem:[%s14340_s1 + $0x15c4] ss:$16 sps:$4 sm:$0xff]  }
 0x147   :  { %v6585_v52 = vpop.f32.mrf.mxu1  ;;  %v11994_v53 = vadd.f32 %v6583_v32, %v6543_v47  ;;  %6837 = vmatpush1.bf16.msra.mxu0 %v9693_v29  ;;  %v9740_v29 = vld [vmem:[%s14340_s1 + $0x17e4] ss:$16 sps:$4 sm:$0xff]   ;;  %v9741_v38 = vld [vmem:[%s14340_s1 + $0x15c0] ss:$16 sps:$4 sm:$0xff]  }
 0x148   :  { %6878 = vmatpush1.bf16.msra.mxu1 %v9696_v30  ;;  %v6545_v56 = vpop.f32.mrf.mxu0  ;;  %6838 = vmatprep.subr.bf16.mxu0 %v9701_v40  ;;  %v9735_v30 = vld [vmem:[%s14340_s1 + $0x15e0] ss:$16 sps:$4 sm:$0xff]   ;;  %v9746_v37 = vld [vmem:[%s14340_s1 + $0x17c4] ss:$16 sps:$4 sm:$0xff]  }
 0x149   :  { %v6586_v55 = vpop.f32.mrf.mxu1  ;;  %6879 = vmatprep.subr.bf16.mxu1 %v9704_v44  ;;  %v9744_v32 = vld [vmem:[%s14340_s1 + $0x17c0] ss:$16 sps:$4 sm:$0xff]   ;;  %v9749_v40 = vld [vmem:[%s14340_s1 + $0x15a4] ss:$16 sps:$4 sm:$0xff]  }
 0x14a   :  { %v9752_v44 = vld [vmem:[%s14340_s1 + $0x17a4] ss:$16 sps:$4 sm:$0xff]   ;;  %v9747_v47 = vld [vmem:[%s14340_s1 + $0x15a0] ss:$16 sps:$4 sm:$0xff]  }
 0x14b   :  { %6839 = vmatpush1.bf16.msra.mxu0 %v9699_v46  ;;  %v9750_v46 = vld [vmem:[%s14340_s1 + $0x17a0] ss:$16 sps:$4 sm:$0xff]   ;;  %v9758_v51 = vld [vmem:[%s14340_s1 + $0x1784] ss:$16 sps:$4 sm:$0xff]  }
 0x14c   :  { %6880 = vmatpush1.bf16.msra.mxu1 %v9702_v48  ;;  %6840 = vmatprep.subr.bf16.mxu0 %v9707_v57  ;;  %v9755_v48 = vld [vmem:[%s14340_s1 + $0x1584] ss:$16 sps:$4 sm:$0xff]   ;;  %v9753_v52 = vld [vmem:[%s14340_s1 + $0x1580] ss:$16 sps:$4 sm:$0xff]  }
 0x14d   :  { %6881 = vmatprep.subr.bf16.mxu1 %v9710_v58  ;;  %v9756_v56 = vld [vmem:[%s14340_s1 + $0x1780] ss:$16 sps:$4 sm:$0xff]   ;;  %v9761_v55 = vld [vmem:[%s14340_s1 + $0x1564] ss:$16 sps:$4 sm:$0xff]  }
 0x14e   :  { %v9764_v57 = vld [vmem:[%s14340_s1 + $0x1764] ss:$16 sps:$4 sm:$0xff]   ;;  %v9759_v58 = vld [vmem:[%s14340_s1 + $0x1560] ss:$16 sps:$4 sm:$0xff]  }
 0x14f   :  { %6841 = vmatpush1.bf16.msra.mxu0 %v9705_v61  ;;  %v9762_v61 = vld [vmem:[%s14340_s1 + $0x1760] ss:$16 sps:$4 sm:$0xff]  }
 0x150   :  { %6882 = vmatpush1.bf16.msra.mxu1 %v9708_v62  ;;  %6842 = vmatprep.subr.bf16.mxu0 %v9713_v63  ;;  %v9767_v62 = vld [vmem:[%s14340_s1 + $0x1544] ss:$16 sps:$4 sm:$0xff]  }
 0x151   :  { %6883 = vmatprep.subr.bf16.mxu1 %v9716_v2  ;;  %v9770_v63 = vld [vmem:[%s14340_s1 + $0x1744] ss:$16 sps:$4 sm:$0xff]   ;;  %v12125_v2 = vld [vmem:[%s14339_s0 + $0x18] sm:$0xff] }
 0x153   :  { %6843 = vmatpush1.bf16.msra.mxu0 %v9711_v3  ;;  %v9765_v3 = vld [vmem:[%s14340_s1 + $0x1540] ss:$16 sps:$4 sm:$0xff]  }
 0x154   :  { %6884 = vmatpush1.bf16.msra.mxu1 %v9714_v1  ;;  %6844 = vmatprep.subr.bf16.mxu0 %v9719_v7  ;;  %v9768_v1 = vld [vmem:[%s14340_s1 + $0x1740] ss:$16 sps:$4 sm:$0xff]   ;;  %v9773_v7 = vld [vmem:[%s14340_s1 + $0x1524] ss:$16 sps:$4 sm:$0xff]  }
 0x155   :  { %6885 = vmatprep.subr.bf16.mxu1 %v9722_v8  ;;  %v9776_v8 = vld [vmem:[%s14340_s1 + $0x1724] ss:$16 sps:$4 sm:$0xff]  }
 0x157   :  { %6845 = vmatpush1.bf16.msra.mxu0 %v9717_v9  ;;  %v12141_v9 = vrot.slane %v12125_v2, %v10967_v49 }
 0x158   :  { %6886 = vmatpush1.bf16.msra.mxu1 %v9720_v10  ;;  %6846 = vmatprep.subr.bf16.mxu0 %v9725_v11  ;;  %v9771_v10 = vld [vmem:[%s14340_s1 + $0x1520] ss:$16 sps:$4 sm:$0xff]  }
 0x159   :  { %6887 = vmatprep.subr.bf16.mxu1 %v9728_v14  ;;  %v9774_v11 = vld [vmem:[%s14340_s1 + $0x1720] ss:$16 sps:$4 sm:$0xff]   ;;  %v9779_v14 = vld [vmem:[%s14340_s1 + $0x1504] ss:$16 sps:$4 sm:$0xff]  }
 0x15b   :  { %6847 = vmatpush1.bf16.msra.mxu0 %v9723_v16  ;;  %v9782_v16 = vld [vmem:[%s14340_s1 + $0x1704] ss:$16 sps:$4 sm:$0xff]  }
 0x15c   :  { %6888 = vmatpush1.bf16.msra.mxu1 %v9726_v19  ;;  %6848 = vmatprep.subr.bf16.mxu0 %v9731_v4  ;;  %v1238_v19 = vcombine.high %v12141_v9, %v12141_v9  ;;  %v12159_v4 = vrot.slane %v11913_v5, %v10967_v49  ;;  %v9789_v5 = vld [vmem:[%s14340_s1 + $0x1ae4] ss:$16 sps:$4 sm:$0xff]  }
 0x15d   :  { %6889 = vmatprep.subr.bf16.mxu1 %v9734_v20  ;;  %v9777_v20 = vld [vmem:[%s14340_s1 + $0x1500] ss:$16 sps:$4 sm:$0xff]  }
 0x15f   :  { %6849 = vmatpush1.bf16.msra.mxu0 %v9729_v21  ;;  %v9780_v21 = vld [vmem:[%s14340_s1 + $0x1700] ss:$16 sps:$4 sm:$0xff]  }
 0x160   :  { %6890 = vmatpush1.bf16.msra.mxu1 %v9732_v27  ;;  %6850 = vmatprep.subr.bf16.mxu0 %v9737_v28  ;;  %v9786_v27 = vld [vmem:[%s14340_s1 + $0x18e4] ss:$16 sps:$4 sm:$0xff]   ;;  %v9784_v28 = vld [vmem:[%s14340_s1 + $0x18e0] ss:$16 sps:$4 sm:$0xff]  }
 0x161   :  { %6891 = vmatprep.subr.bf16.mxu1 %v9740_v29  ;;  %v9787_v29 = vld [vmem:[%s14340_s1 + $0x1ae0] ss:$16 sps:$4 sm:$0xff]  }
 0x163   :  { %6851 = vmatpush2.bf16.msra.mxu0 %v9735_v30  ;;  %v12180_v30 = vrot.slane %v1238_v19, %v10967_v49  ;;  %v9811_v19 = vld [vmem:[%s14340_s1 + $0x1a60] ss:$16 sps:$4 sm:$0xff]  }
 0x164   :  { %6892 = vmatpush2.bf16.msra.mxu1 %v9738_v34  ;;  %6852 = vmatprep.subr.bf16.mxu0 %v9743_v36  ;;  %v12184_v34 = vcombine.high %v12159_v4, %v12159_v4  ;;  %v9792_v36 = vld [vmem:[%s14340_s1 + $0x18c4] ss:$16 sps:$4 sm:$0xff]  }
 0x165   :  { %6893 = vmatprep.subr.bf16.mxu1 %v9746_v37  ;;  %v9795_v37 = vld [vmem:[%s14340_s1 + $0x1ac4] ss:$16 sps:$4 sm:$0xff]  }
 0x167   :  { %6853 = vmatpush2.bf16.msra.mxu0 %v9741_v38  ;;  %v9790_v38 = vld [vmem:[%s14340_s1 + $0x18c0] ss:$16 sps:$4 sm:$0xff]  }
 0x168   :  { %6894 = vmatpush2.bf16.msra.mxu1 %v9744_v32  ;;  %6854 = vmatprep.subr.bf16.mxu0 %v9749_v40  ;;  %v9793_v32 = vld [vmem:[%s14340_s1 + $0x1ac0] ss:$16 sps:$4 sm:$0xff]   ;;  %v12200_v40 = vcombine.high %v12180_v30, %v12180_v30 }
 0x169   :  { %6895 = vmatprep.subr.bf16.mxu1 %v9752_v44 }
 0x16b   :  { %6855 = vmatpush2.bf16.msra.mxu0 %v9747_v47 }
 0x16c   :  { %6896 = vmatpush2.bf16.msra.mxu1 %v9750_v46  ;;  %6856 = vmatprep.subr.bf16.mxu0 %v9755_v48 }
 0x16d   :  { %6897 = vmatprep.subr.bf16.mxu1 %v9758_v51 }
 0x16f   :  { %6857 = vmatpush2.bf16.msra.mxu0 %v9753_v52  ;;  %v9798_v52 = vld [vmem:[%s14340_s1 + $0x18a4] ss:$16 sps:$4 sm:$0xff]  }
 0x170   :  { %6898 = vmatpush2.bf16.msra.mxu1 %v9756_v56  ;;  %6858 = vmatprep.subr.bf16.mxu0 %v9761_v55  ;;  %v9801_v56 = vld [vmem:[%s14340_s1 + $0x1aa4] ss:$16 sps:$4 sm:$0xff]  }
 0x171   :  { %6899 = vmatprep.subr.bf16.mxu1 %v9764_v57 }
 0x173   :  { %6859 = vmatpush2.bf16.msra.mxu0 %v9759_v58  ;;  %v9799_v58 = vld [vmem:[%s14340_s1 + $0x1aa0] ss:$16 sps:$4 sm:$0xff]  }
 0x174   :  { %6900 = vmatpush2.bf16.msra.mxu1 %v9762_v61  ;;  %6860 = vmatprep.subr.bf16.mxu0 %v9767_v62 }
 0x175   :  { %6901 = vmatprep.subr.bf16.mxu1 %v9770_v63 }
 0x177   :  { %6861 = vmatpush2.bf16.msra.mxu0 %v9765_v3 }
 0x178   :  { %6902 = vmatpush2.bf16.msra.mxu1 %v9768_v1  ;;  %6862 = vmatprep.subr.bf16.mxu0 %v9773_v7  ;;  %v9804_v1 = vld [vmem:[%s14340_s1 + $0x1884] ss:$16 sps:$4 sm:$0xff]  }
 0x179   :  { %6903 = vmatprep.subr.bf16.mxu1 %v9776_v8  ;;  %v9807_v7 = vld [vmem:[%s14340_s1 + $0x1a84] ss:$16 sps:$4 sm:$0xff]   ;;  %v9802_v8 = vld [vmem:[%s14340_s1 + $0x1880] ss:$16 sps:$4 sm:$0xff]  }
 0x17b   :  { %6863 = vmatpush2.bf16.msra.mxu0 %v9771_v10  ;;  %v9805_v10 = vld [vmem:[%s14340_s1 + $0x1a80] ss:$16 sps:$4 sm:$0xff]  }
 0x17c   :  { %6904 = vmatpush2.bf16.msra.mxu1 %v9774_v11  ;;  %6864 = vmatprep.subr.bf16.mxu0 %v9779_v14  ;;  %v9810_v11 = vld [vmem:[%s14340_s1 + $0x1864] ss:$16 sps:$4 sm:$0xff]  }
 0x17d   :  { %6905 = vmatprep.subr.bf16.mxu1 %v9782_v16  ;;  %v9813_v14 = vld [vmem:[%s14340_s1 + $0x1a64] ss:$16 sps:$4 sm:$0xff]   ;;  %v9808_v16 = vld [vmem:[%s14340_s1 + $0x1860] ss:$16 sps:$4 sm:$0xff]  }
 0x17f   :  { %6865 = vmatpush2.bf16.msra.mxu0 %v9777_v20  ;;  %v9816_v20 = vld [vmem:[%s14340_s1 + $0x1844] ss:$16 sps:$4 sm:$0xff]  }
 0x180   :  { %6906 = vmatpush2.bf16.msra.mxu1 %v9780_v21  ;;  %6916 = vmatprep.subr.bf16.mxu0 %v9786_v27  ;;  %v9819_v21 = vld [vmem:[%s14340_s1 + $0x1a44] ss:$16 sps:$4 sm:$0xff]   ;;  %v9814_v27 = vld [vmem:[%s14340_s1 + $0x1840] ss:$16 sps:$4 sm:$0xff]  }
 0x181   :  { %6957 = vmatprep.subr.bf16.mxu1 %v9789_v5  ;;  %v9817_v5 = vld [vmem:[%s14340_s1 + $0x1a40] ss:$16 sps:$4 sm:$0xff]  }
 0x182   :  { %v6622_v44 = vpop.f32.mrf.mxu0  ;;  %6867 = vmatmul.mubr.bf16.vlgmr.msra.gmra.mxu0 %v12159_v4 }
 0x183   :  { %v6663_v47 = vpop.f32.mrf.mxu1  ;;  %6908 = vmatmul.mubr.bf16.vlgmr.msra.gmra.mxu1 %v12184_v34  ;;  %v6623_v46 = vadd.f32 %v6622_v44, %v11983_v45  ;;  %6917 = vmatpush1.bf16.msra.mxu0 %v9784_v28  ;;  %v9796_v45 = vld [vmem:[%s14340_s1 + $0x18a0] ss:$16 sps:$4 sm:$0xff]   ;;  %v9822_v28 = vld [vmem:[%s14340_s1 + $0x1824] ss:$16 sps:$4 sm:$0xff]  }
 0x184   :  { %6958 = vmatpush1.bf16.msra.mxu1 %v9787_v29  ;;  %v6624_v48 = vpop.f32.mrf.mxu0  ;;  %6918 = vmatprep.subr.bf16.mxu0 %v9792_v36  ;;  %v9825_v29 = vld [vmem:[%s14340_s1 + $0x1a24] ss:$16 sps:$4 sm:$0xff]   ;;  %v9820_v36 = vld [vmem:[%s14340_s1 + $0x1820] ss:$16 sps:$4 sm:$0xff]  }
 0x185   :  { %v6665_v51 = vpop.f32.mrf.mxu1  ;;  %6959 = vmatprep.subr.bf16.mxu1 %v9795_v37  ;;  %v12211_v55 = vadd.f32 %v6663_v47, %v6623_v46  ;;  %v6625_v57 = vadd.f32 %v6624_v48, %v11994_v53  ;;  %6948 = vmatprep.mubr.bf16.mxu0 %v12180_v30  ;;  %v9823_v37 = vld [vmem:[%s14340_s1 + $0x1a20] ss:$16 sps:$4 sm:$0xff]   ;;  %v9834_v46 = vld [vmem:[%s14340_s1 + $0x19e4] ss:$16 sps:$4 sm:$0xff]  }
 0x186   :  { %6989 = vmatprep.mubr.bf16.mxu1 %v12200_v40  ;;  %v6626_v61 = vpop.f32.mrf.mxu0  ;;  %v9826_v44 = vld [vmem:[%s14340_s1 + $0x1800] ss:$16 sps:$4 sm:$0xff]   ;;  %v9837_v48 = vld [vmem:[%s14340_s1 + $0x1be4] ss:$16 sps:$4 sm:$0xff]  }
 0x187   :  { %v6667_v62 = vpop.f32.mrf.mxu1  ;;  %v12222_v63 = vadd.f32 %v6665_v51, %v6625_v57  ;;  %6919 = vmatpush1.bf16.msra.mxu0 %v9790_v38  ;;  %v9828_v38 = vld [vmem:[%s14340_s1 + $0x1804] ss:$16 sps:$4 sm:$0xff]   ;;  %v9829_v47 = vld [vmem:[%s14340_s1 + $0x1a00] ss:$16 sps:$4 sm:$0xff]  }
 0x188   :  { %6960 = vmatpush1.bf16.msra.mxu1 %v9793_v32  ;;  %v6627_v3 = vpop.f32.mrf.mxu0  ;;  %6920 = vmatprep.subr.bf16.mxu0 %v9798_v52  ;;  %v9831_v32 = vld [vmem:[%s14340_s1 + $0x1a04] ss:$16 sps:$4 sm:$0xff]   ;;  %v9832_v51 = vld [vmem:[%s14340_s1 + $0x19e0] ss:$16 sps:$4 sm:$0xff]  }
 0x189   :  { %v6668_v53 = vpop.f32.mrf.mxu1  ;;  %6961 = vmatprep.subr.bf16.mxu1 %v9801_v56  ;;  %v9835_v52 = vld [vmem:[%s14340_s1 + $0x1be0] ss:$16 sps:$4 sm:$0xff]   ;;  %v9840_v56 = vld [vmem:[%s14340_s1 + $0x19c4] ss:$16 sps:$4 sm:$0xff]  }
 0x18a   :  { %v9843_v57 = vld [vmem:[%s14340_s1 + $0x1bc4] ss:$16 sps:$4 sm:$0xff]   ;;  %v9844_v3 = vld [vmem:[%s14340_s1 + $0x19a0] ss:$16 sps:$4 sm:$0xff]  }
 0x18b   :  { %6921 = vmatpush1.bf16.msra.mxu0 %v9796_v45  ;;  %v9838_v45 = vld [vmem:[%s14340_s1 + $0x19c0] ss:$16 sps:$4 sm:$0xff]   ;;  %v9846_v61 = vld [vmem:[%s14340_s1 + $0x19a4] ss:$16 sps:$4 sm:$0xff]  }
 0x18c   :  { %6962 = vmatpush1.bf16.msra.mxu1 %v9799_v58  ;;  %6922 = vmatprep.subr.bf16.mxu0 %v9804_v1  ;;  %v9841_v58 = vld [vmem:[%s14340_s1 + $0x1bc0] ss:$16 sps:$4 sm:$0xff]   ;;  %v9849_v62 = vld [vmem:[%s14340_s1 + $0x1ba4] ss:$16 sps:$4 sm:$0xff]  }
 0x18d   :  { %6963 = vmatprep.subr.bf16.mxu1 %v9807_v7  ;;  %v9847_v53 = vld [vmem:[%s14340_s1 + $0x1ba0] ss:$16 sps:$4 sm:$0xff]   ;;  %v9852_v1 = vld [vmem:[%s14340_s1 + $0x1984] ss:$16 sps:$4 sm:$0xff]  }
 0x18e   :  { %v9855_v7 = vld [vmem:[%s14340_s1 + $0x1b84] ss:$16 sps:$4 sm:$0xff]  }
 0x18f   :  { %6923 = vmatpush1.bf16.msra.mxu0 %v9802_v8  ;;  %v9850_v8 = vld [vmem:[%s14340_s1 + $0x1980] ss:$16 sps:$4 sm:$0xff]  }
 0x190   :  { %6964 = vmatpush1.bf16.msra.mxu1 %v9805_v10  ;;  %6924 = vmatprep.subr.bf16.mxu0 %v9810_v11  ;;  %v9853_v10 = vld [vmem:[%s14340_s1 + $0x1b80] ss:$16 sps:$4 sm:$0xff]   ;;  %v9858_v11 = vld [vmem:[%s14340_s1 + $0x1964] ss:$16 sps:$4 sm:$0xff]  }
 0x191   :  { %6965 = vmatprep.subr.bf16.mxu1 %v9813_v14  ;;  %v9861_v14 = vld [vmem:[%s14340_s1 + $0x1b64] ss:$16 sps:$4 sm:$0xff]  }
 0x193   :  { %6925 = vmatpush1.bf16.msra.mxu0 %v9808_v16  ;;  %v9856_v16 = vld [vmem:[%s14340_s1 + $0x1960] ss:$16 sps:$4 sm:$0xff]  }
 0x194   :  { %6966 = vmatpush1.bf16.msra.mxu1 %v9811_v19  ;;  %6926 = vmatprep.subr.bf16.mxu0 %v9816_v20  ;;  %v9859_v19 = vld [vmem:[%s14340_s1 + $0x1b60] ss:$16 sps:$4 sm:$0xff]   ;;  %v9864_v20 = vld [vmem:[%s14340_s1 + $0x1944] ss:$16 sps:$4 sm:$0xff]  }
 0x195   :  { %6967 = vmatprep.subr.bf16.mxu1 %v9819_v21  ;;  %v9867_v21 = vld [vmem:[%s14340_s1 + $0x1b44] ss:$16 sps:$4 sm:$0xff]  }
 0x197   :  { %6927 = vmatpush1.bf16.msra.mxu0 %v9814_v27  ;;  %v1223_v27 = vcombine.high %v12125_v2, %v12125_v2  ;;  %v9873_v2 = vld [vmem:[%s14340_s1 + $0x1b24] ss:$16 sps:$4 sm:$0xff]  }
 0x198   :  { %6968 = vmatpush1.bf16.msra.mxu1 %v9817_v5  ;;  %6928 = vmatprep.subr.bf16.mxu0 %v9822_v28  ;;  %v9862_v5 = vld [vmem:[%s14340_s1 + $0x1940] ss:$16 sps:$4 sm:$0xff]  }
 0x199   :  { %6969 = vmatprep.subr.bf16.mxu1 %v9825_v29  ;;  %v9865_v28 = vld [vmem:[%s14340_s1 + $0x1b40] ss:$16 sps:$4 sm:$0xff]   ;;  %v9870_v29 = vld [vmem:[%s14340_s1 + $0x1924] ss:$16 sps:$4 sm:$0xff]  }
 0x19b   :  { %6929 = vmatpush1.bf16.msra.mxu0 %v9820_v36  ;;  %v12365_v36 = vrot.slane %v1223_v27, %v10967_v49  ;;  %v9895_v27 = vld [vmem:[%s14340_s1 + $0x1ea0] ss:$16 sps:$4 sm:$0xff]  }
 0x19c   :  { %6970 = vmatpush1.bf16.msra.mxu1 %v9823_v37  ;;  %6930 = vmatprep.subr.bf16.mxu0 %v9828_v38  ;;  %v9868_v37 = vld [vmem:[%s14340_s1 + $0x1920] ss:$16 sps:$4 sm:$0xff]  }
 0x19d   :  { %6971 = vmatprep.subr.bf16.mxu1 %v9831_v32  ;;  %v9871_v38 = vld [vmem:[%s14340_s1 + $0x1b20] ss:$16 sps:$4 sm:$0xff]   ;;  %v9876_v32 = vld [vmem:[%s14340_s1 + $0x1904] ss:$16 sps:$4 sm:$0xff]  }
 0x19f   :  { %6931 = vmatpush1.bf16.msra.mxu0 %v9826_v44  ;;  %v9879_v44 = vld [vmem:[%s14340_s1 + $0x1b04] ss:$16 sps:$4 sm:$0xff]  }
 0x1a0   :  { %6972 = vmatpush1.bf16.msra.mxu1 %v9829_v47  ;;  %6932 = vmatprep.subr.bf16.mxu0 %v9834_v46  ;;  %v1239_v47 = vcombine.high %v12365_v36, %v12365_v36  ;;  %v12383_v46 = vrot.slane %v12141_v9, %v10967_v49  ;;  %v9885_v9 = vld [vmem:[%s14340_s1 + $0x1ee4] ss:$16 sps:$4 sm:$0xff]  }
 0x1a1   :  { %6973 = vmatprep.subr.bf16.mxu1 %v9837_v48  ;;  %v9874_v48 = vld [vmem:[%s14340_s1 + $0x1900] ss:$16 sps:$4 sm:$0xff]  }
 0x1a3   :  { %6933 = vmatpush2.bf16.msra.mxu0 %v9832_v51  ;;  %v9877_v51 = vld [vmem:[%s14340_s1 + $0x1b00] ss:$16 sps:$4 sm:$0xff]  }
 0x1a4   :  { %6974 = vmatpush2.bf16.msra.mxu1 %v9835_v52  ;;  %6934 = vmatprep.subr.bf16.mxu0 %v9840_v56  ;;  %v9882_v52 = vld [vmem:[%s14340_s1 + $0x1ce4] ss:$16 sps:$4 sm:$0xff]   ;;  %v9880_v56 = vld [vmem:[%s14340_s1 + $0x1ce0] ss:$16 sps:$4 sm:$0xff]  }
 0x1a5   :  { %6975 = vmatprep.subr.bf16.mxu1 %v9843_v57  ;;  %v9883_v57 = vld [vmem:[%s14340_s1 + $0x1ee0] ss:$16 sps:$4 sm:$0xff]  }
 0x1a7   :  { %6935 = vmatpush2.bf16.msra.mxu0 %v9838_v45  ;;  %v12404_v45 = vrot.slane %v1239_v47, %v10967_v49  ;;  %v9906_v47 = vld [vmem:[%s14340_s1 + $0x1c64] ss:$16 sps:$4 sm:$0xff]  }
 0x1a8   :  { %6976 = vmatpush2.bf16.msra.mxu1 %v9841_v58  ;;  %6936 = vmatprep.subr.bf16.mxu0 %v9846_v61  ;;  %v12408_v58 = vcombine.high %v12383_v46, %v12383_v46  ;;  %v9888_v61 = vld [vmem:[%s14340_s1 + $0x1cc4] ss:$16 sps:$4 sm:$0xff]  }
 0x1a9   :  { %6977 = vmatprep.subr.bf16.mxu1 %v9849_v62  ;;  %v9891_v62 = vld [vmem:[%s14340_s1 + $0x1ec4] ss:$16 sps:$4 sm:$0xff]  }
 0x1ab   :  { %6937 = vmatpush2.bf16.msra.mxu0 %v9844_v3  ;;  %v9886_v3 = vld [vmem:[%s14340_s1 + $0x1cc0] ss:$16 sps:$4 sm:$0xff]  }
 0x1ac   :  { %6978 = vmatpush2.bf16.msra.mxu1 %v9847_v53  ;;  %6938 = vmatprep.subr.bf16.mxu0 %v9852_v1  ;;  %v9889_v53 = vld [vmem:[%s14340_s1 + $0x1ec0] ss:$16 sps:$4 sm:$0xff]   ;;  %v12424_v1 = vcombine.high %v12404_v45, %v12404_v45 }
 0x1ad   :  { %6979 = vmatprep.subr.bf16.mxu1 %v9855_v7 }
 0x1af   :  { %6939 = vmatpush2.bf16.msra.mxu0 %v9850_v8 }
 0x1b0   :  { %6980 = vmatpush2.bf16.msra.mxu1 %v9853_v10  ;;  %6940 = vmatprep.subr.bf16.mxu0 %v9858_v11 }
 0x1b1   :  { %6981 = vmatprep.subr.bf16.mxu1 %v9861_v14 }
 0x1b3   :  { %6941 = vmatpush2.bf16.msra.mxu0 %v9856_v16  ;;  %v9894_v16 = vld [vmem:[%s14340_s1 + $0x1ca4] ss:$16 sps:$4 sm:$0xff]  }
 0x1b4   :  { %6982 = vmatpush2.bf16.msra.mxu1 %v9859_v19  ;;  %6942 = vmatprep.subr.bf16.mxu0 %v9864_v20  ;;  %v9897_v19 = vld [vmem:[%s14340_s1 + $0x1ea4] ss:$16 sps:$4 sm:$0xff]  }
 0x1b5   :  { %6983 = vmatprep.subr.bf16.mxu1 %v9867_v21 }
 0x1b7   :  { %6943 = vmatpush2.bf16.msra.mxu0 %v9862_v5 }
 0x1b8   :  { %6984 = vmatpush2.bf16.msra.mxu1 %v9865_v28  ;;  %6944 = vmatprep.subr.bf16.mxu0 %v9870_v29 }
 0x1b9   :  { %6985 = vmatprep.subr.bf16.mxu1 %v9873_v2 }
 0x1bb   :  { %6945 = vmatpush2.bf16.msra.mxu0 %v9868_v37  ;;  %v9900_v37 = vld [vmem:[%s14340_s1 + $0x1c84] ss:$16 sps:$4 sm:$0xff]  }
 0x1bc   :  { %6986 = vmatpush2.bf16.msra.mxu1 %v9871_v38  ;;  %6946 = vmatprep.subr.bf16.mxu0 %v9876_v32  ;;  %v9903_v38 = vld [vmem:[%s14340_s1 + $0x1e84] ss:$16 sps:$4 sm:$0xff]   ;;  %v9898_v32 = vld [vmem:[%s14340_s1 + $0x1c80] ss:$16 sps:$4 sm:$0xff]  }
 0x1bd   :  { %6987 = vmatprep.subr.bf16.mxu1 %v9879_v44  ;;  %v9901_v44 = vld [vmem:[%s14340_s1 + $0x1e80] ss:$16 sps:$4 sm:$0xff]  }
 0x1bf   :  { %6947 = vmatpush2.bf16.msra.mxu0 %v9874_v48  ;;  %v9909_v48 = vld [vmem:[%s14340_s1 + $0x1e64] ss:$16 sps:$4 sm:$0xff]  }
 0x1c0   :  { %6988 = vmatpush2.bf16.msra.mxu1 %v9877_v51  ;;  %6998 = vmatprep.subr.bf16.mxu0 %v9882_v52  ;;  %v9904_v51 = vld [vmem:[%s14340_s1 + $0x1c60] ss:$16 sps:$4 sm:$0xff]  }
 0x1c1   :  { %7039 = vmatprep.subr.bf16.mxu1 %v9885_v9  ;;  %v9907_v52 = vld [vmem:[%s14340_s1 + $0x1e60] ss:$16 sps:$4 sm:$0xff]   ;;  %v9912_v9 = vld [vmem:[%s14340_s1 + $0x1c44] ss:$16 sps:$4 sm:$0xff]  }
 0x1c2   :  { %v6704_v7 = vpop.f32.mrf.mxu0  ;;  %6949 = vmatmul.mubr.bf16.vlgmr.msra.gmra.mxu0 %v12383_v46 }
 0x1c3   :  { %v6745_v8 = vpop.f32.mrf.mxu1  ;;  %6990 = vmatmul.mubr.bf16.vlgmr.msra.gmra.mxu1 %v12408_v58  ;;  %v6705_v10 = vadd.f32 %v6704_v7, %v12211_v55  ;;  %6999 = vmatpush1.bf16.msra.mxu0 %v9880_v56  ;;  %v9892_v55 = vld [vmem:[%s14340_s1 + $0x1ca0] ss:$16 sps:$4 sm:$0xff]   ;;  %v9915_v56 = vld [vmem:[%s14340_s1 + $0x1e44] ss:$16 sps:$4 sm:$0xff]  }
 0x1c4   :  { %7040 = vmatpush1.bf16.msra.mxu1 %v9883_v57  ;;  %v6706_v11 = vpop.f32.mrf.mxu0  ;;  %7000 = vmatprep.subr.bf16.mxu0 %v9888_v61  ;;  %v9910_v57 = vld [vmem:[%s14340_s1 + $0x1c40] ss:$16 sps:$4 sm:$0xff]  }
 0x1c5   :  { %v6747_v14 = vpop.f32.mrf.mxu1  ;;  %7041 = vmatprep.subr.bf16.mxu1 %v9891_v62  ;;  %v12435_v20 = vadd.f32 %v6745_v8, %v6705_v10  ;;  %v6707_v21 = vadd.f32 %v6706_v11, %v12222_v63  ;;  %7030 = vmatprep.mubr.bf16.mxu0 %v12404_v45  ;;  %v9913_v61 = vld [vmem:[%s14340_s1 + $0x1e40] ss:$16 sps:$4 sm:$0xff]   ;;  %v9918_v62 = vld [vmem:[%s14340_s1 + $0x1c24] ss:$16 sps:$4 sm:$0xff]  }
 0x1c6   :  { %7071 = vmatprep.mubr.bf16.mxu1 %v12424_v1  ;;  %v6708_v5 = vpop.f32.mrf.mxu0  ;;  %v9919_v7 = vld [vmem:[%s14340_s1 + $0x1e20] ss:$16 sps:$4 sm:$0xff]   ;;  %v9924_v8 = vld [vmem:[%s14340_s1 + $0x1c04] ss:$16 sps:$4 sm:$0xff]  }
 0x1c7   :  { %v6749_v28 = vpop.f32.mrf.mxu1  ;;  %v12446_v29 = vadd.f32 %v6747_v14, %v6707_v21  ;;  %7001 = vmatpush1.bf16.msra.mxu0 %v9886_v3  ;;  %v9921_v3 = vld [vmem:[%s14340_s1 + $0x1e24] ss:$16 sps:$4 sm:$0xff]   ;;  %v9922_v11 = vld [vmem:[%s14340_s1 + $0x1c00] ss:$16 sps:$4 sm:$0xff]  }
 0x1c8   :  { %7042 = vmatpush1.bf16.msra.mxu1 %v9889_v53  ;;  %v6709_v2 = vpop.f32.mrf.mxu0  ;;  %7002 = vmatprep.subr.bf16.mxu0 %v9894_v16  ;;  %v9916_v53 = vld [vmem:[%s14340_s1 + $0x1c20] ss:$16 sps:$4 sm:$0xff]   ;;  %v9927_v10 = vld [vmem:[%s14340_s1 + $0x1e04] ss:$16 sps:$4 sm:$0xff]  }
 0x1c9   :  { %v6750_v63 = vpop.f32.mrf.mxu1  ;;  %7043 = vmatprep.subr.bf16.mxu1 %v9897_v19  ;;  %v9925_v14 = vld [vmem:[%s14340_s1 + $0x1e00] ss:$16 sps:$4 sm:$0xff]   ;;  %v9930_v16 = vld [vmem:[%s14340_s1 + $0x1de4] ss:$16 sps:$4 sm:$0xff]  }
 0x1ca   :  { %v9933_v19 = vld [vmem:[%s14340_s1 + $0x1fe4] ss:$16 sps:$4 sm:$0xff]   ;;  %v9928_v21 = vld [vmem:[%s14340_s1 + $0x1de0] ss:$16 sps:$4 sm:$0xff]  }
 0x1cb   :  { %7003 = vmatpush1.bf16.msra.mxu0 %v9892_v55  ;;  %v9931_v55 = vld [vmem:[%s14340_s1 + $0x1fe0] ss:$16 sps:$4 sm:$0xff]   ;;  %v9939_v5 = vld [vmem:[%s14340_s1 + $0x1fc4] ss:$16 sps:$4 sm:$0xff]  }
 0x1cc   :  { %7044 = vmatpush1.bf16.msra.mxu1 %v9895_v27  ;;  %7004 = vmatprep.subr.bf16.mxu0 %v9900_v37  ;;  %v9936_v27 = vld [vmem:[%s14340_s1 + $0x1dc4] ss:$16 sps:$4 sm:$0xff]   ;;  %v9934_v28 = vld [vmem:[%s14340_s1 + $0x1dc0] ss:$16 sps:$4 sm:$0xff]  }
 0x1cd   :  { %7045 = vmatprep.subr.bf16.mxu1 %v9903_v38  ;;  %v9937_v2 = vld [vmem:[%s14340_s1 + $0x1fc0] ss:$16 sps:$4 sm:$0xff]   ;;  %v9942_v63 = vld [vmem:[%s14340_s1 + $0x1da4] ss:$16 sps:$4 sm:$0xff]  }
 0x1ce   :  { %v9945_v37 = vld [vmem:[%s14340_s1 + $0x1fa4] ss:$16 sps:$4 sm:$0xff]   ;;  %v9940_v38 = vld [vmem:[%s14340_s1 + $0x1da0] ss:$16 sps:$4 sm:$0xff]  }
 0x1cf   :  { %7005 = vmatpush1.bf16.msra.mxu0 %v9898_v32  ;;  %v9943_v32 = vld [vmem:[%s14340_s1 + $0x1fa0] ss:$16 sps:$4 sm:$0xff]  }
 0x1d0   :  { %7046 = vmatpush1.bf16.msra.mxu1 %v9901_v44  ;;  %7006 = vmatprep.subr.bf16.mxu0 %v9906_v47  ;;  %v9948_v44 = vld [vmem:[%s14340_s1 + $0x1d84] ss:$16 sps:$4 sm:$0xff]  }
 0x1d1   :  { %7047 = vmatprep.subr.bf16.mxu1 %v9909_v48  ;;  %v9951_v47 = vld [vmem:[%s14340_s1 + $0x1f84] ss:$16 sps:$4 sm:$0xff]   ;;  %v9946_v48 = vld [vmem:[%s14340_s1 + $0x1d80] ss:$16 sps:$4 sm:$0xff]  }
 0x1d3   :  { %7007 = vmatpush1.bf16.msra.mxu0 %v9904_v51  ;;  %v9949_v51 = vld [vmem:[%s14340_s1 + $0x1f80] ss:$16 sps:$4 sm:$0xff]  }
 0x1d4   :  { %7048 = vmatpush1.bf16.msra.mxu1 %v9907_v52  ;;  %7008 = vmatprep.subr.bf16.mxu0 %v9912_v9  ;;  %v9954_v52 = vld [vmem:[%s14340_s1 + $0x1d64] ss:$16 sps:$4 sm:$0xff]  }
 0x1d5   :  { %7049 = vmatprep.subr.bf16.mxu1 %v9915_v56  ;;  %v9957_v9 = vld [vmem:[%s14340_s1 + $0x1f64] ss:$16 sps:$4 sm:$0xff]   ;;  %v9952_v56 = vld [vmem:[%s14340_s1 + $0x1d60] ss:$16 sps:$4 sm:$0xff]  }
 0x1d7   :  { %7009 = vmatpush1.bf16.msra.mxu0 %v9910_v57  ;;  %v9955_v57 = vld [vmem:[%s14340_s1 + $0x1f60] ss:$16 sps:$4 sm:$0xff]  }
 0x1d8   :  { %7050 = vmatpush1.bf16.msra.mxu1 %v9913_v61  ;;  %7010 = vmatprep.subr.bf16.mxu0 %v9918_v62  ;;  %v9960_v61 = vld [vmem:[%s14340_s1 + $0x1d44] ss:$16 sps:$4 sm:$0xff]  }
 0x1d9   :  { %7051 = vmatprep.subr.bf16.mxu1 %v9921_v3  ;;  %v9963_v62 = vld [vmem:[%s14340_s1 + $0x1f44] ss:$16 sps:$4 sm:$0xff]   ;;  %v9958_v3 = vld [vmem:[%s14340_s1 + $0x1d40] ss:$16 sps:$4 sm:$0xff]  }
 0x1db   :  { %7011 = vmatpush1.bf16.msra.mxu0 %v9916_v53  ;;  %v9961_v53 = vld [vmem:[%s14340_s1 + $0x1f40] ss:$16 sps:$4 sm:$0xff]  }
 0x1dc   :  { %7052 = vmatpush1.bf16.msra.mxu1 %v9919_v7  ;;  %7012 = vmatprep.subr.bf16.mxu0 %v9924_v8  ;;  %v9966_v7 = vld [vmem:[%s14340_s1 + $0x1d24] ss:$16 sps:$4 sm:$0xff]  }
 0x1dd   :  { %7053 = vmatprep.subr.bf16.mxu1 %v9927_v10  ;;  %v9969_v8 = vld [vmem:[%s14340_s1 + $0x1f24] ss:$16 sps:$4 sm:$0xff]   ;;  %v9964_v10 = vld [vmem:[%s14340_s1 + $0x1d20] ss:$16 sps:$4 sm:$0xff]  }
 0x1df   :  { %7013 = vmatpush1.bf16.msra.mxu0 %v9922_v11  ;;  %v9967_v11 = vld [vmem:[%s14340_s1 + $0x1f20] ss:$16 sps:$4 sm:$0xff]  }
 0x1e0   :  { %7054 = vmatpush1.bf16.msra.mxu1 %v9925_v14  ;;  %7014 = vmatprep.subr.bf16.mxu0 %v9930_v16  ;;  %v9972_v14 = vld [vmem:[%s14340_s1 + $0x1d04] ss:$16 sps:$4 sm:$0xff]  }
 0x1e1   :  { %7055 = vmatprep.subr.bf16.mxu1 %v9933_v19  ;;  %v9975_v16 = vld [vmem:[%s14340_s1 + $0x1f04] ss:$16 sps:$4 sm:$0xff]   ;;  %v12600_v19 = vrot.slane %v12365_v36, %v10967_v49  ;;  %v9982_v49 = vld [vmem:[%s14340_s1 + $0x2ec] ss:$16 sps:$4 sm:$0xff]   ;;  %v9977_v36 = vld [vmem:[%s14340_s1 + $0xe8] ss:$16 sps:$4 sm:$0xff]  }
 0x1e3   :  { %7015 = vmatpush2.bf16.msra.mxu0 %v9928_v21  ;;  %v9970_v21 = vld [vmem:[%s14340_s1 + $0x1d00] ss:$16 sps:$4 sm:$0xff]  }
 0x1e4   :  { %7056 = vmatpush2.bf16.msra.mxu1 %v9931_v55  ;;  %7016 = vmatprep.subr.bf16.mxu0 %v9936_v27  ;;  %v9973_v55 = vld [vmem:[%s14340_s1 + $0x1f00] ss:$16 sps:$4 sm:$0xff]   ;;  %v9979_v27 = vld [vmem:[%s14340_s1 + $0xec] ss:$16 sps:$4 sm:$0xff]  }
 0x1e5   :  { %7057 = vmatprep.subr.bf16.mxu1 %v9939_v5  ;;  %v9980_v5 = vld [vmem:[%s14340_s1 + $0x2e8] ss:$16 sps:$4 sm:$0xff]  }
 0x1e7   :  { %7017 = vmatpush2.bf16.msra.mxu0 %v9934_v28  ;;  %v12622_v28 = vcombine.high %v12600_v19, %v12600_v19 }
 0x1e8   :  { %7058 = vmatpush2.bf16.msra.mxu1 %v9937_v2  ;;  %7018 = vmatprep.subr.bf16.mxu0 %v9942_v63  ;;  %v9985_v2 = vld [vmem:[%s14340_s1 + $0xcc] ss:$16 sps:$4 sm:$0xff]  }
 0x1e9   :  { %7059 = vmatprep.subr.bf16.mxu1 %v9945_v37  ;;  %v9988_v63 = vld [vmem:[%s14340_s1 + $0x2cc] ss:$16 sps:$4 sm:$0xff]   ;;  %v9983_v37 = vld [vmem:[%s14340_s1 + $0xc8] ss:$16 sps:$4 sm:$0xff]  }
 0x1eb   :  { %7019 = vmatpush2.bf16.msra.mxu0 %v9940_v38  ;;  %v9986_v38 = vld [vmem:[%s14340_s1 + $0x2c8] ss:$16 sps:$4 sm:$0xff]  }
 0x1ec   :  { %7060 = vmatpush2.bf16.msra.mxu1 %v9943_v32  ;;  %7020 = vmatprep.subr.bf16.mxu0 %v9948_v44 }
 0x1ed   :  { %7061 = vmatprep.subr.bf16.mxu1 %v9951_v47 }
 0x1ef   :  { %7021 = vmatpush2.bf16.msra.mxu0 %v9946_v48 }
 0x1f0   :  { %7062 = vmatpush2.bf16.msra.mxu1 %v9949_v51  ;;  %7022 = vmatprep.subr.bf16.mxu0 %v9954_v52  ;;  %v9991_v52 = vld [vmem:[%s14340_s1 + $0xac] ss:$16 sps:$4 sm:$0xff]  }
 0x1f1   :  { %7063 = vmatprep.subr.bf16.mxu1 %v9957_v9  ;;  %v9994_v9 = vld [vmem:[%s14340_s1 + $0x2ac] ss:$16 sps:$4 sm:$0xff]  }
 0x1f3   :  { %7023 = vmatpush2.bf16.msra.mxu0 %v9952_v56 }
 0x1f4   :  { %7064 = vmatpush2.bf16.msra.mxu1 %v9955_v57  ;;  %7024 = vmatprep.subr.bf16.mxu0 %v9960_v61  ;;  %v9992_v61 = vld [vmem:[%s14340_s1 + $0x2a8] ss:$16 sps:$4 sm:$0xff]  }
 0x1f5   :  { %7065 = vmatprep.subr.bf16.mxu1 %v9963_v62 }
 0x1f7   :  { %7025 = vmatpush2.bf16.msra.mxu0 %v9958_v3 }
 0x1f8   :  { %7066 = vmatpush2.bf16.msra.mxu1 %v9961_v53  ;;  %7026 = vmatprep.subr.bf16.mxu0 %v9966_v7 }
 0x1f9   :  { %7067 = vmatprep.subr.bf16.mxu1 %v9969_v8  ;;  %v9997_v8 = vld [vmem:[%s14340_s1 + $0x8c] ss:$16 sps:$4 sm:$0xff]  }
 0x1fb   :  { %7027 = vmatpush2.bf16.msra.mxu0 %v9964_v10  ;;  %v9998_v10 = vld [vmem:[%s14340_s1 + $0x288] ss:$16 sps:$4 sm:$0xff]  }
 0x1fc   :  { %7068 = vmatpush2.bf16.msra.mxu1 %v9967_v11  ;;  %7028 = vmatprep.subr.bf16.mxu0 %v9972_v14  ;;  %v10003_v11 = vld [vmem:[%s14340_s1 + $0x6c] ss:$16 sps:$4 sm:$0xff]  }
 0x1fd   :  { %7069 = vmatprep.subr.bf16.mxu1 %v9975_v16  ;;  %v10006_v14 = vld [vmem:[%s14340_s1 + $0x26c] ss:$16 sps:$4 sm:$0xff]   ;;  %v10001_v16 = vld [vmem:[%s14340_s1 + $0x68] ss:$16 sps:$4 sm:$0xff]  }
 0x1ff   :  { %7029 = vmatpush2.bf16.msra.mxu0 %v9970_v21  ;;  %v10004_v21 = vld [vmem:[%s14340_s1 + $0x268] ss:$16 sps:$4 sm:$0xff]  }
 0x200   :  { %7070 = vmatpush2.bf16.msra.mxu1 %v9973_v55  ;;  %7080 = vmatprep.subr.bf16.mxu0 %v9979_v27  ;;  %v10009_v55 = vld [vmem:[%s14340_s1 + $0x4c] ss:$16 sps:$4 sm:$0xff]  }
 0x201   :  { %7121 = vmatprep.subr.bf16.mxu1 %v9982_v49  ;;  %v10012_v27 = vld [vmem:[%s14340_s1 + $0x24c] ss:$16 sps:$4 sm:$0xff]   ;;  %v10007_v49 = vld [vmem:[%s14340_s1 + $0x48] ss:$16 sps:$4 sm:$0xff]  }
 0x202   :  { %v6786_v32 = vpop.f32.mrf.mxu0  ;;  %7031 = vmatmul.mubr.bf16.vlgmr.msra.gmra.mxu0 %v12600_v19 }
 0x203   :  { %v6827_v44 = vpop.f32.mrf.mxu1  ;;  %7072 = vmatmul.mubr.bf16.vlgmr.msra.gmra.mxu1 %v12622_v28  ;;  %v6787_v47 = vadd.f32 %v6786_v32, %v12435_v20  ;;  %7081 = vmatpush1.bf16.msra.mxu0 %v9977_v36  ;;  %v9989_v20 = vld [vmem:[%s14340_s1 + $0xa8] ss:$16 sps:$4 sm:$0xff]   ;;  %v10024_v32 = vld [vmem:[%s14340_s1 + $0x20c] ss:$16 sps:$4 sm:$0xff]  }
 0x204   :  { %7122 = vmatpush1.bf16.msra.mxu1 %v9980_v5  ;;  %v6788_v48 = vpop.f32.mrf.mxu0  ;;  %7082 = vmatprep.subr.bf16.mxu0 %v9985_v2  ;;  %v10010_v36 = vld [vmem:[%s14340_s1 + $0x248] ss:$16 sps:$4 sm:$0xff]   ;;  %v10015_v5 = vld [vmem:[%s14340_s1 + $0x2c] ss:$16 sps:$4 sm:$0xff]  }
 0x205   :  { %v6829_v51 = vpop.f32.mrf.mxu1  ;;  %7123 = vmatprep.subr.bf16.mxu1 %v9988_v63  ;;  %v12645_v56 = vadd.f32 %v6827_v44, %v6787_v47  ;;  %v6789_v57 = vadd.f32 %v6788_v48, %v12446_v29  ;;  %7112 = vmatprep.mubr.bf16.mxu0 %v10995_v60  ;;  %v10000_v60 = vld [vmem:[%s14340_s1 + $0x28c] ss:$16 sps:$4 sm:$0xff]   ;;  %v10013_v63 = vld [vmem:[%s14340_s1 + $0x28] ss:$16 sps:$4 sm:$0xff]  }
 0x206   :  { %7153 = vmatprep.mubr.bf16.mxu1 %v11008_v0  ;;  %v6790_v62 = vpop.f32.mrf.mxu0  ;;  %v9995_v0 = vld [vmem:[%s14340_s1 + $0x88] ss:$16 sps:$4 sm:$0xff]   ;;  %v10018_v2 = vld [vmem:[%s14340_s1 + $0x22c] ss:$16 sps:$4 sm:$0xff]  }
 0x207   :  { %v6831_v3 = vpop.f32.mrf.mxu1  ;;  %v12656_v53 = vadd.f32 %v6829_v51, %v6789_v57  ;;  %7083 = vmatpush1.bf16.msra.mxu0 %v9983_v37  ;;  %v10016_v37 = vld [vmem:[%s14340_s1 + $0x228] ss:$16 sps:$4 sm:$0xff]   ;;  %v10027_v48 = vld [vmem:[%s14340_s1 + $0x1ec] ss:$16 sps:$4 sm:$0xff]  }
 0x208   :  { %7124 = vmatpush1.bf16.msra.mxu1 %v9986_v38  ;;  %v6791_v7 = vpop.f32.mrf.mxu0  ;;  %7084 = vmatprep.subr.bf16.mxu0 %v9991_v52  ;;  %v10021_v38 = vld [vmem:[%s14340_s1 + $0xc] ss:$16 sps:$4 sm:$0xff]   ;;  %v10019_v44 = vld [vmem:[%s14340_s1 + $0x8] ss:$16 sps:$4 sm:$0xff]  }
 0x209   :  { %v6832_v29 = vpop.f32.mrf.mxu1  ;;  %7125 = vmatprep.subr.bf16.mxu1 %v9994_v9  ;;  %v10022_v47 = vld [vmem:[%s14340_s1 + $0x208] ss:$16 sps:$4 sm:$0xff]   ;;  %v10030_v51 = vld [vmem:[%s14340_s1 + $0x3ec] ss:$16 sps:$4 sm:$0xff]  }
 0x20a   :  { %v10025_v52 = vld [vmem:[%s14340_s1 + $0x1e8] ss:$16 sps:$4 sm:$0xff]   ;;  %v10033_v57 = vld [vmem:[%s14340_s1 + $0x1cc] ss:$16 sps:$4 sm:$0xff]  }
 0x20b   :  { %7085 = vmatpush1.bf16.msra.mxu0 %v9989_v20  ;;  %v10028_v9 = vld [vmem:[%s14340_s1 + $0x3e8] ss:$16 sps:$4 sm:$0xff]   ;;  %v10036_v20 = vld [vmem:[%s14340_s1 + $0x3cc] ss:$16 sps:$4 sm:$0xff]  }
 0x20c   :  { %7126 = vmatpush1.bf16.msra.mxu1 %v9992_v61  ;;  %7086 = vmatprep.subr.bf16.mxu0 %v9997_v8  ;;  %v10031_v61 = vld [vmem:[%s14340_s1 + $0x1c8] ss:$16 sps:$4 sm:$0xff]   ;;  %v10039_v3 = vld [vmem:[%s14340_s1 + $0x1ac] ss:$16 sps:$4 sm:$0xff]  }
 0x20d   :  { %7127 = vmatprep.subr.bf16.mxu1 %v10000_v60  ;;  %v10034_v62 = vld [vmem:[%s14340_s1 + $0x3c8] ss:$16 sps:$4 sm:$0xff]   ;;  %v10042_v7 = vld [vmem:[%s14340_s1 + $0x3ac] ss:$16 sps:$4 sm:$0xff]  }
 0x20e   :  { %v10037_v29 = vld [vmem:[%s14340_s1 + $0x1a8] ss:$16 sps:$4 sm:$0xff]   ;;  %v10045_v60 = vld [vmem:[%s14340_s1 + $0x18c] ss:$16 sps:$4 sm:$0xff]  }
 0x20f   :  { %7087 = vmatpush1.bf16.msra.mxu0 %v9995_v0  ;;  %v10040_v8 = vld [vmem:[%s14340_s1 + $0x3a8] ss:$16 sps:$4 sm:$0xff]   ;;  %v10048_v0 = vld [vmem:[%s14340_s1 + $0x38c] ss:$16 sps:$4 sm:$0xff]  }
 0x210   :  { %7128 = vmatpush1.bf16.msra.mxu1 %v9998_v10  ;;  %7088 = vmatprep.subr.bf16.mxu0 %v10003_v11  ;;  %v10043_v10 = vld [vmem:[%s14340_s1 + $0x188] ss:$16 sps:$4 sm:$0xff]  }
 0x211   :  { %7129 = vmatprep.subr.bf16.mxu1 %v10006_v14  ;;  %v10046_v11 = vld [vmem:[%s14340_s1 + $0x388] ss:$16 sps:$4 sm:$0xff]   ;;  %v10051_v14 = vld [vmem:[%s14340_s1 + $0x16c] ss:$16 sps:$4 sm:$0xff]  }
 0x213   :  { %7089 = vmatpush1.bf16.msra.mxu0 %v10001_v16  ;;  %v10054_v16 = vld [vmem:[%s14340_s1 + $0x36c] ss:$16 sps:$4 sm:$0xff]  }
 0x214   :  { %7130 = vmatpush1.bf16.msra.mxu1 %v10004_v21  ;;  %7090 = vmatprep.subr.bf16.mxu0 %v10009_v55  ;;  %v10049_v21 = vld [vmem:[%s14340_s1 + $0x168] ss:$16 sps:$4 sm:$0xff]  }
 0x215   :  { %7131 = vmatprep.subr.bf16.mxu1 %v10012_v27  ;;  %v10052_v55 = vld [vmem:[%s14340_s1 + $0x368] ss:$16 sps:$4 sm:$0xff]   ;;  %v10057_v27 = vld [vmem:[%s14340_s1 + $0x14c] ss:$16 sps:$4 sm:$0xff]  }
 0x217   :  { %7091 = vmatpush1.bf16.msra.mxu0 %v10007_v49  ;;  %v10060_v49 = vld [vmem:[%s14340_s1 + $0x34c] ss:$16 sps:$4 sm:$0xff]  }
 0x218   :  { %7132 = vmatpush1.bf16.msra.mxu1 %v10010_v36  ;;  %7092 = vmatprep.subr.bf16.mxu0 %v10015_v5  ;;  %v10055_v36 = vld [vmem:[%s14340_s1 + $0x148] ss:$16 sps:$4 sm:$0xff]  }
 0x219   :  { %7133 = vmatprep.subr.bf16.mxu1 %v10018_v2  ;;  %v10058_v5 = vld [vmem:[%s14340_s1 + $0x348] ss:$16 sps:$4 sm:$0xff]   ;;  %v10063_v2 = vld [vmem:[%s14340_s1 + $0x12c] ss:$16 sps:$4 sm:$0xff]  }
 0x21b   :  { %7093 = vmatpush1.bf16.msra.mxu0 %v10013_v63  ;;  %v10066_v63 = vld [vmem:[%s14340_s1 + $0x32c] ss:$16 sps:$4 sm:$0xff]  }
 0x21c   :  { %7134 = vmatpush1.bf16.msra.mxu1 %v10016_v37  ;;  %7094 = vmatprep.subr.bf16.mxu0 %v10021_v38  ;;  %v10061_v37 = vld [vmem:[%s14340_s1 + $0x128] ss:$16 sps:$4 sm:$0xff]  }
 0x21d   :  { %7135 = vmatprep.subr.bf16.mxu1 %v10024_v32  ;;  %v10064_v38 = vld [vmem:[%s14340_s1 + $0x328] ss:$16 sps:$4 sm:$0xff]   ;;  %v10069_v32 = vld [vmem:[%s14340_s1 + $0x10c] ss:$16 sps:$4 sm:$0xff]  }
 0x21f   :  { %7095 = vmatpush1.bf16.msra.mxu0 %v10019_v44  ;;  %v10072_v44 = vld [vmem:[%s14340_s1 + $0x30c] ss:$16 sps:$4 sm:$0xff]  }
 0x220   :  { %7136 = vmatpush1.bf16.msra.mxu1 %v10022_v47  ;;  %7096 = vmatprep.subr.bf16.mxu0 %v10027_v48  ;;  %v10067_v47 = vld [vmem:[%s14340_s1 + $0x108] ss:$16 sps:$4 sm:$0xff]  }
 0x221   :  { %7137 = vmatprep.subr.bf16.mxu1 %v10030_v51  ;;  %v10070_v48 = vld [vmem:[%s14340_s1 + $0x308] ss:$16 sps:$4 sm:$0xff]   ;;  %v10075_v51 = vld [vmem:[%s14340_s1 + $0x4ec] ss:$16 sps:$4 sm:$0xff]  }
 0x223   :  { %7097 = vmatpush2.bf16.msra.mxu0 %v10025_v52  ;;  %v10078_v52 = vld [vmem:[%s14340_s1 + $0x6ec] ss:$16 sps:$4 sm:$0xff]  }
 0x224   :  { %7138 = vmatpush2.bf16.msra.mxu1 %v10028_v9  ;;  %7098 = vmatprep.subr.bf16.mxu0 %v10033_v57  ;;  %v10073_v9 = vld [vmem:[%s14340_s1 + $0x4e8] ss:$16 sps:$4 sm:$0xff]  }
 0x225   :  { %7139 = vmatprep.subr.bf16.mxu1 %v10036_v20  ;;  %v10076_v57 = vld [vmem:[%s14340_s1 + $0x6e8] ss:$16 sps:$4 sm:$0xff]   ;;  %v10081_v20 = vld [vmem:[%s14340_s1 + $0x4cc] ss:$16 sps:$4 sm:$0xff]  }
 0x227   :  { %7099 = vmatpush2.bf16.msra.mxu0 %v10031_v61  ;;  %v10084_v61 = vld [vmem:[%s14340_s1 + $0x6cc] ss:$16 sps:$4 sm:$0xff]  }
 0x228   :  { %7140 = vmatpush2.bf16.msra.mxu1 %v10034_v62  ;;  %7100 = vmatprep.subr.bf16.mxu0 %v10039_v3  ;;  %v10079_v62 = vld [vmem:[%s14340_s1 + $0x4c8] ss:$16 sps:$4 sm:$0xff]  }
 0x229   :  { %7141 = vmatprep.subr.bf16.mxu1 %v10042_v7  ;;  %v10082_v3 = vld [vmem:[%s14340_s1 + $0x6c8] ss:$16 sps:$4 sm:$0xff]  }
 0x22b   :  { %7101 = vmatpush2.bf16.msra.mxu0 %v10037_v29 }
 0x22c   :  { %7142 = vmatpush2.bf16.msra.mxu1 %v10040_v8  ;;  %7102 = vmatprep.subr.bf16.mxu0 %v10045_v60 }
 0x22d   :  { %7143 = vmatprep.subr.bf16.mxu1 %v10048_v0 }
 0x22f   :  { %7103 = vmatpush2.bf16.msra.mxu0 %v10043_v10  ;;  %v10087_v10 = vld [vmem:[%s14340_s1 + $0x4ac] ss:$16 sps:$4 sm:$0xff]  }
 0x230   :  { %7144 = vmatpush2.bf16.msra.mxu1 %v10046_v11  ;;  %7104 = vmatprep.subr.bf16.mxu0 %v10051_v14  ;;  %v10090_v11 = vld [vmem:[%s14340_s1 + $0x6ac] ss:$16 sps:$4 sm:$0xff]  }
 0x231   :  { %7145 = vmatprep.subr.bf16.mxu1 %v10054_v16 }
 0x233   :  { %7105 = vmatpush2.bf16.msra.mxu0 %v10049_v21 }
 0x234   :  { %7146 = vmatpush2.bf16.msra.mxu1 %v10052_v55  ;;  %7106 = vmatprep.subr.bf16.mxu0 %v10057_v27 }
 0x235   :  { %7147 = vmatprep.subr.bf16.mxu1 %v10060_v49  ;;  %v10093_v49 = vld [vmem:[%s14340_s1 + $0x48c] ss:$16 sps:$4 sm:$0xff]  }
 0x237   :  { %7107 = vmatpush2.bf16.msra.mxu0 %v10055_v36  ;;  %v10094_v36 = vld [vmem:[%s14340_s1 + $0x688] ss:$16 sps:$4 sm:$0xff]  }
 0x238   :  { %7148 = vmatpush2.bf16.msra.mxu1 %v10058_v5  ;;  %7108 = vmatprep.subr.bf16.mxu0 %v10063_v2  ;;  %v10099_v5 = vld [vmem:[%s14340_s1 + $0x46c] ss:$16 sps:$4 sm:$0xff]  }
 0x239   :  { %7149 = vmatprep.subr.bf16.mxu1 %v10066_v63  ;;  %v10102_v2 = vld [vmem:[%s14340_s1 + $0x66c] ss:$16 sps:$4 sm:$0xff]   ;;  %v10097_v63 = vld [vmem:[%s14340_s1 + $0x468] ss:$16 sps:$4 sm:$0xff]  }
 0x23b   :  { %7109 = vmatpush2.bf16.msra.mxu0 %v10061_v37  ;;  %v10100_v37 = vld [vmem:[%s14340_s1 + $0x668] ss:$16 sps:$4 sm:$0xff]  }
 0x23c   :  { %7150 = vmatpush2.bf16.msra.mxu1 %v10064_v38  ;;  %7110 = vmatprep.subr.bf16.mxu0 %v10069_v32  ;;  %v10105_v38 = vld [vmem:[%s14340_s1 + $0x44c] ss:$16 sps:$4 sm:$0xff]  }
 0x23d   :  { %7151 = vmatprep.subr.bf16.mxu1 %v10072_v44  ;;  %v10108_v32 = vld [vmem:[%s14340_s1 + $0x64c] ss:$16 sps:$4 sm:$0xff]   ;;  %v10103_v44 = vld [vmem:[%s14340_s1 + $0x448] ss:$16 sps:$4 sm:$0xff]  }
 0x23f   :  { %7111 = vmatpush2.bf16.msra.mxu0 %v10067_v47  ;;  %v10106_v47 = vld [vmem:[%s14340_s1 + $0x648] ss:$16 sps:$4 sm:$0xff]  }
 0x240   :  { %7152 = vmatpush2.bf16.msra.mxu1 %v10070_v48  ;;  %7162 = vmatprep.subr.bf16.mxu0 %v10075_v51  ;;  %v10111_v48 = vld [vmem:[%s14340_s1 + $0x42c] ss:$16 sps:$4 sm:$0xff]  }
 0x241   :  { %7203 = vmatprep.subr.bf16.mxu1 %v10078_v52  ;;  %v10114_v51 = vld [vmem:[%s14340_s1 + $0x62c] ss:$16 sps:$4 sm:$0xff]   ;;  %v10109_v52 = vld [vmem:[%s14340_s1 + $0x428] ss:$16 sps:$4 sm:$0xff]  }
 0x242   :  { %v6868_v7 = vpop.f32.mrf.mxu0  ;;  %7113 = vmatmul.mubr.bf16.vlgmr.msra.gmra.mxu0 %v11045_v13 }
 0x243   :  { %v6909_v29 = vpop.f32.mrf.mxu1  ;;  %7154 = vmatmul.mubr.bf16.vlgmr.msra.gmra.mxu1 %v11061_v18  ;;  %v6869_v8 = vadd.f32 %v6868_v7, %v12645_v56  ;;  %7163 = vmatpush1.bf16.msra.mxu0 %v10073_v9  ;;  %v10085_v18 = vld [vmem:[%s14340_s1 + $0x4a8] ss:$16 sps:$4 sm:$0xff]   ;;  %v10126_v7 = vld [vmem:[%s14340_s1 + $0x7ec] ss:$16 sps:$4 sm:$0xff]  }
 0x244   :  { %7204 = vmatpush1.bf16.msra.mxu1 %v10076_v57  ;;  %v6870_v60 = vpop.f32.mrf.mxu0  ;;  %7164 = vmatprep.subr.bf16.mxu0 %v10081_v20  ;;  %v10088_v56 = vld [vmem:[%s14340_s1 + $0x6a8] ss:$16 sps:$4 sm:$0xff]   ;;  %v10117_v57 = vld [vmem:[%s14340_s1 + $0x40c] ss:$16 sps:$4 sm:$0xff]  }
 0x245   :  { %v6911_v0 = vpop.f32.mrf.mxu1  ;;  %7205 = vmatprep.subr.bf16.mxu1 %v10084_v61  ;;  %v12847_v14 = vadd.f32 %v6909_v29, %v6869_v8  ;;  %v6871_v13 = vadd.f32 %v6870_v60, %v12656_v53  ;;  %7194 = vmatprep.mubr.bf16.mxu0 %v11057_v17  ;;  %v10096_v17 = vld [vmem:[%s14340_s1 + $0x68c] ss:$16 sps:$4 sm:$0xff]   ;;  %v10112_v9 = vld [vmem:[%s14340_s1 + $0x628] ss:$16 sps:$4 sm:$0xff]  }
 0x246   :  { %7235 = vmatprep.mubr.bf16.mxu1 %v11077_v23  ;;  %v6872_v16 = vpop.f32.mrf.mxu0  ;;  %v10091_v23 = vld [vmem:[%s14340_s1 + $0x488] ss:$16 sps:$4 sm:$0xff]   ;;  %v10120_v20 = vld [vmem:[%s14340_s1 + $0x60c] ss:$16 sps:$4 sm:$0xff]  }
 0x247   :  { %v6913_v21 = vpop.f32.mrf.mxu1  ;;  %v12858_v55 = vadd.f32 %v6911_v0, %v6871_v13  ;;  %7165 = vmatpush1.bf16.msra.mxu0 %v10079_v62  ;;  %v10115_v61 = vld [vmem:[%s14340_s1 + $0x408] ss:$16 sps:$4 sm:$0xff]   ;;  %v10129_v60 = vld [vmem:[%s14340_s1 + $0x5cc] ss:$16 sps:$4 sm:$0xff]  }
 0x248   :  { %7206 = vmatpush1.bf16.msra.mxu1 %v10082_v3  ;;  %v6873_v27 = vpop.f32.mrf.mxu0  ;;  %7166 = vmatprep.subr.bf16.mxu0 %v10087_v10  ;;  %v10118_v62 = vld [vmem:[%s14340_s1 + $0x608] ss:$16 sps:$4 sm:$0xff]   ;;  %v10123_v3 = vld [vmem:[%s14340_s1 + $0x5ec] ss:$16 sps:$4 sm:$0xff]  }
 0x249   :  { %v6914_v53 = vpop.f32.mrf.mxu1  ;;  %7207 = vmatprep.subr.bf16.mxu1 %v10090_v11  ;;  %v10121_v29 = vld [vmem:[%s14340_s1 + $0x5e8] ss:$16 sps:$4 sm:$0xff]   ;;  %v10132_v0 = vld [vmem:[%s14340_s1 + $0x7cc] ss:$16 sps:$4 sm:$0xff]  }
 0x24a   :  { %v10124_v8 = vld [vmem:[%s14340_s1 + $0x7e8] ss:$16 sps:$4 sm:$0xff]  }
 0x24b   :  { %7167 = vmatpush1.bf16.msra.mxu0 %v10085_v18 }
 0x24c   :  { %7208 = vmatpush1.bf16.msra.mxu1 %v10088_v56  ;;  %7168 = vmatprep.subr.bf16.mxu0 %v10093_v49 }
 0x24d   :  { %7209 = vmatprep.subr.bf16.mxu1 %v10096_v17 }
 0x24f   :  { %7169 = vmatpush1.bf16.msra.mxu0 %v10091_v23 }
 0x250   :  { %7210 = vmatpush1.bf16.msra.mxu1 %v10094_v36  ;;  %7170 = vmatprep.subr.bf16.mxu0 %v10099_v5 }
 0x251   :  { %7211 = vmatprep.subr.bf16.mxu1 %v10102_v2 }
 0x253   :  { %7171 = vmatpush1.bf16.msra.mxu0 %v10097_v63 }
 0x254   :  { %7212 = vmatpush1.bf16.msra.mxu1 %v10100_v37  ;;  %7172 = vmatprep.subr.bf16.mxu0 %v10105_v38 }
 0x255   :  { %7213 = vmatprep.subr.bf16.mxu1 %v10108_v32 }
 0x257   :  { %7173 = vmatpush1.bf16.msra.mxu0 %v10103_v44 }
 0x258   :  { %7214 = vmatpush1.bf16.msra.mxu1 %v10106_v47  ;;  %7174 = vmatprep.subr.bf16.mxu0 %v10111_v48 }
 0x259   :  { %7215 = vmatprep.subr.bf16.mxu1 %v10114_v51 }
 0x25b   :  { %7175 = vmatpush1.bf16.msra.mxu0 %v10109_v52 }
 0x25c   :  { %7216 = vmatpush1.bf16.msra.mxu1 %v10112_v9  ;;  %7176 = vmatprep.subr.bf16.mxu0 %v10117_v57 }
 0x25d   :  { %7217 = vmatprep.subr.bf16.mxu1 %v10120_v20 }
 0x25f   :  { %7177 = vmatpush1.bf16.msra.mxu0 %v10115_v61 }
 0x260   :  { %7218 = vmatpush1.bf16.msra.mxu1 %v10118_v62  ;;  %7178 = vmatprep.subr.bf16.mxu0 %v10123_v3 }
 0x261   :  { %7219 = vmatprep.subr.bf16.mxu1 %v10126_v7 }
 0x262   :  { %10 = vsyncpa [#allocation3], 0  ;;  %v10127_v10 = vld [vmem:[%s14340_s1 + $0x5c8] ss:$16 sps:$4 sm:$0xff]   ;;  %v10135_v13 = vld [vmem:[%s14340_s1 + $0x5ac] ss:$16 sps:$4 sm:$0xff]  }
 0x263   :  { %7179 = vmatpush2.bf16.msra.mxu0 %v10121_v29  ;;  %v10130_v11 = vld [vmem:[%s14340_s1 + $0x7c8] ss:$16 sps:$4 sm:$0xff]   ;;  %v10138_v18 = vld [vmem:[%s14340_s1 + $0x7ac] ss:$16 sps:$4 sm:$0xff]   ;;  %s10801_s17 = smov [#allocation2]  }
 0x264   :  { %7220 = vmatpush2.bf16.msra.mxu1 %v10124_v8  ;;  %7180 = vmatprep.subr.bf16.mxu0 %v10129_v60  ;;  %v10133_v56 = vld [vmem:[%s14340_s1 + $0x5a8] ss:$16 sps:$4 sm:$0xff]   ;;  %v10141_v21 = vld [vmem:[%s14340_s1 + $0x58c] ss:$16 sps:$4 sm:$0xff]   ;;  %s8094_s18 = sshll.u32 %s10801_s17, 4  ;;  %s8095_s18 = int_to_ptr.vmem [resolvable:$true] %s8094_s18 }
 0x265   :  { %7221 = vmatprep.subr.bf16.mxu1 %v10132_v0  ;;  %v10136_v16 = vld [vmem:[%s14340_s1 + $0x7a8] ss:$16 sps:$4 sm:$0xff]   ;;  %v10144_v27 = vld [vmem:[%s14340_s1 + $0x78c] ss:$16 sps:$4 sm:$0xff]   ;;  %s10778_s19 = scalar_lea.vmem %s8095_s18, 32  ;;  %p10783_p1 = scmp.lt.s32.totalorder %s8095_s18, %s8095_s18 }
 0x266   :  { %v10139_v53 = vld [vmem:[%s14340_s1 + $0x588] ss:$16 sps:$4 sm:$0xff]   ;;  %v10147_v17 = vld [vmem:[%s14340_s1 + $0x56c] ss:$16 sps:$4 sm:$0xff]   ;;  %p10779_p0 = scmp.ne.s32.totalorder %s8095_s18, %s10778_s19  ;;  %p10784_p2 = scmp.lt.s32.totalorder %s10778_s19, %s10778_s19 }
 0x267   :  { %7181 = vmatpush2.bf16.msra.mxu0 %v10127_v10  ;;  %v10142_v49 = vld [vmem:[%s14340_s1 + $0x788] ss:$16 sps:$4 sm:$0xff]   ;;  %v10150_v23 = vld [vmem:[%s14340_s1 + $0x76c] ss:$16 sps:$4 sm:$0xff]  }
 0x268   :  { %7222 = vmatpush2.bf16.msra.mxu1 %v10130_v11  ;;  %7182 = vmatprep.subr.bf16.mxu0 %v10135_v13  ;;  %v10145_v36 = vld [vmem:[%s14340_s1 + $0x568] ss:$16 sps:$4 sm:$0xff]   ;;  %v10153_v2 = vld [vmem:[%s14340_s1 + $0x54c] ss:$16 sps:$4 sm:$0xff]   ;;  %p10785_p3 = por %p10784_p2, %p10783_p1 }
 0x269   :  { %7223 = vmatprep.subr.bf16.mxu1 %v10138_v18  ;;  %v10148_v5 = vld [vmem:[%s14340_s1 + $0x768] ss:$16 sps:$4 sm:$0xff]   ;;  %v10156_v63 = vld [vmem:[%s14340_s1 + $0x74c] ss:$16 sps:$4 sm:$0xff]  }
 0x26a   :  { %v10151_v37 = vld [vmem:[%s14340_s1 + $0x548] ss:$16 sps:$4 sm:$0xff]   ;;  %v10159_v32 = vld [vmem:[%s14340_s1 + $0x52c] ss:$16 sps:$4 sm:$0xff]   ;;  %p10786_p4 = pnand %p10785_p3, %p10779_p0 }
 0x26b   :  { %7183 = vmatpush2.bf16.msra.mxu0 %v10133_v56  ;;  %v10154_v38 = vld [vmem:[%s14340_s1 + $0x748] ss:$16 sps:$4 sm:$0xff]   ;;  %v10162_v44 = vld [vmem:[%s14340_s1 + $0x72c] ss:$16 sps:$4 sm:$0xff]  }
 0x26c   :  { %7224 = vmatpush2.bf16.msra.mxu1 %v10136_v16  ;;  %7184 = vmatprep.subr.bf16.mxu0 %v10141_v21  ;;  %v10157_v47 = vld [vmem:[%s14340_s1 + $0x528] ss:$16 sps:$4 sm:$0xff]   ;;  %v10165_v51 = vld [vmem:[%s14340_s1 + $0x50c] ss:$16 sps:$4 sm:$0xff]  }
 0x26d   :  { %7225 = vmatprep.subr.bf16.mxu1 %v10144_v27  ;;  %v10160_v48 = vld [vmem:[%s14340_s1 + $0x728] ss:$16 sps:$4 sm:$0xff]   ;;  %v10168_v52 = vld [vmem:[%s14340_s1 + $0x70c] ss:$16 sps:$4 sm:$0xff]  }
 0x26e   :  { %v10163_v9 = vld [vmem:[%s14340_s1 + $0x508] ss:$16 sps:$4 sm:$0xff]   ;;  %v10171_v20 = vld [vmem:[%s14340_s1 + $0x8ec] ss:$16 sps:$4 sm:$0xff]  }
 0x26f   :  { %7185 = vmatpush2.bf16.msra.mxu0 %v10139_v53  ;;  %v10166_v57 = vld [vmem:[%s14340_s1 + $0x708] ss:$16 sps:$4 sm:$0xff]   ;;  %v10174_v61 = vld [vmem:[%s14340_s1 + $0xaec] ss:$16 sps:$4 sm:$0xff]  }
 0x270   :  { %7226 = vmatpush2.bf16.msra.mxu1 %v10142_v49  ;;  %7186 = vmatprep.subr.bf16.mxu0 %v10147_v17  ;;  %v10169_v62 = vld [vmem:[%s14340_s1 + $0x8e8] ss:$16 sps:$4 sm:$0xff]   ;;  %v10177_v7 = vld [vmem:[%s14340_s1 + $0x8cc] ss:$16 sps:$4 sm:$0xff]  }
 0x271   :  { %7227 = vmatprep.subr.bf16.mxu1 %v10150_v23  ;;  %v10172_v3 = vld [vmem:[%s14340_s1 + $0xae8] ss:$16 sps:$4 sm:$0xff]   ;;  %v10180_v29 = vld [vmem:[%s14340_s1 + $0xacc] ss:$16 sps:$4 sm:$0xff]  }
 0x272   :  { %v10175_v10 = vld [vmem:[%s14340_s1 + $0x8c8] ss:$16 sps:$4 sm:$0xff]  }
 0x273   :  { %7187 = vmatpush2.bf16.msra.mxu0 %v10145_v36  ;;  %v10178_v11 = vld [vmem:[%s14340_s1 + $0xac8] ss:$16 sps:$4 sm:$0xff]  }
 0x274   :  { %7228 = vmatpush2.bf16.msra.mxu1 %v10148_v5  ;;  %7188 = vmatprep.subr.bf16.mxu0 %v10153_v2  ;;  %v10181_v53 = vld [vmem:[%s14340_s1 + $0x8a8] ss:$16 sps:$4 sm:$0xff]   ;;  %v10195_v5 = vld [vmem:[%s14340_s1 + $0x86c] ss:$16 sps:$4 sm:$0xff]  }
 0x275   :  { %7229 = vmatprep.subr.bf16.mxu1 %v10156_v63  ;;  %v10184_v49 = vld [vmem:[%s14340_s1 + $0xaa8] ss:$16 sps:$4 sm:$0xff]   ;;  %v10198_v2 = vld [vmem:[%s14340_s1 + $0xa6c] ss:$16 sps:$4 sm:$0xff]  }
 0x276   :  { %v10187_v23 = vld [vmem:[%s14340_s1 + $0x888] ss:$16 sps:$4 sm:$0xff]  }
 0x277   :  { %7189 = vmatpush2.bf16.msra.mxu0 %v10151_v37  ;;  %v10190_v36 = vld [vmem:[%s14340_s1 + $0xa88] ss:$16 sps:$4 sm:$0xff]  }
 0x278   :  { %7230 = vmatpush2.bf16.msra.mxu1 %v10154_v38  ;;  %7190 = vmatprep.subr.bf16.mxu0 %v10159_v32  ;;  %v10193_v63 = vld [vmem:[%s14340_s1 + $0x868] ss:$16 sps:$4 sm:$0xff]   ;;  %v10201_v38 = vld [vmem:[%s14340_s1 + $0x84c] ss:$16 sps:$4 sm:$0xff]  }
 0x279   :  { %7231 = vmatprep.subr.bf16.mxu1 %v10162_v44  ;;  %v10196_v37 = vld [vmem:[%s14340_s1 + $0xa68] ss:$16 sps:$4 sm:$0xff]   ;;  %v10204_v32 = vld [vmem:[%s14340_s1 + $0xa4c] ss:$16 sps:$4 sm:$0xff]  }
 0x27a   :  { %v10199_v44 = vld [vmem:[%s14340_s1 + $0x848] ss:$16 sps:$4 sm:$0xff]  }
 0x27b   :  { %7191 = vmatpush2.bf16.msra.mxu0 %v10157_v47  ;;  %v10202_v47 = vld [vmem:[%s14340_s1 + $0xa48] ss:$16 sps:$4 sm:$0xff]  }
 0x27c   :  { %7232 = vmatpush2.bf16.msra.mxu1 %v10160_v48  ;;  %7192 = vmatprep.subr.bf16.mxu0 %v10165_v51  ;;  %v10207_v48 = vld [vmem:[%s14340_s1 + $0x82c] ss:$16 sps:$4 sm:$0xff]  }
 0x27d   :  { %7233 = vmatprep.subr.bf16.mxu1 %v10168_v52  ;;  %v10210_v51 = vld [vmem:[%s14340_s1 + $0xa2c] ss:$16 sps:$4 sm:$0xff]   ;;  %v10205_v52 = vld [vmem:[%s14340_s1 + $0x828] ss:$16 sps:$4 sm:$0xff]  }
 0x27f   :  { %7193 = vmatpush2.bf16.msra.mxu0 %v10163_v9  ;;  %v10208_v9 = vld [vmem:[%s14340_s1 + $0xa28] ss:$16 sps:$4 sm:$0xff]  }
 0x280   :  { %7234 = vmatpush2.bf16.msra.mxu1 %v10166_v57  ;;  %7244 = vmatprep.subr.bf16.mxu0 %v10171_v20  ;;  %v10213_v57 = vld [vmem:[%s14340_s1 + $0x80c] ss:$16 sps:$4 sm:$0xff]  }
 0x281   :  { %7285 = vmatprep.subr.bf16.mxu1 %v10174_v61  ;;  %v10216_v20 = vld [vmem:[%s14340_s1 + $0xa0c] ss:$16 sps:$4 sm:$0xff]   ;;  %v10211_v61 = vld [vmem:[%s14340_s1 + $0x808] ss:$16 sps:$4 sm:$0xff]  }
 0x282   :  { %v6950_v8 = vpop.f32.mrf.mxu0  ;;  %7195 = vmatmul.mubr.bf16.vlgmr.msra.gmra.mxu0 %v11256_v26  ;;  %v10183_v26 = vld [vmem:[%s14340_s1 + $0x8ac] ss:$16 sps:$4 sm:$0xff]  }
 0x283   :  { %v6991_v60 = vpop.f32.mrf.mxu1  ;;  %7236 = vmatmul.mubr.bf16.vlgmr.msra.gmra.mxu1 %v11269_v6  ;;  %v6951_v0 = vadd.f32 %v6950_v8, %v12847_v14  ;;  %7245 = vmatpush1.bf16.msra.mxu0 %v10169_v62  ;;  %v10186_v6 = vld [vmem:[%s14340_s1 + $0xaac] ss:$16 sps:$4 sm:$0xff]   ;;  %v10214_v62 = vld [vmem:[%s14340_s1 + $0xa08] ss:$16 sps:$4 sm:$0xff]  }
 0x284   :  { %7286 = vmatpush1.bf16.msra.mxu1 %v10172_v3  ;;  %v6952_v13 = vpop.f32.mrf.mxu0  ;;  %7246 = vmatprep.subr.bf16.mxu0 %v10177_v7  ;;  %v10219_v3 = vld [vmem:[%s14340_s1 + $0x9ec] ss:$16 sps:$4 sm:$0xff]   ;;  %v10220_v8 = vld [vmem:[%s14340_s1 + $0xbe8] ss:$16 sps:$4 sm:$0xff]  }
 0x285   :  { %v6993_v18 = vpop.f32.mrf.mxu1  ;;  %7287 = vmatprep.subr.bf16.mxu1 %v10180_v29  ;;  %v13049_v14 = vadd.f32 %v6991_v60, %v6951_v0  ;;  %v6953_v56 = vadd.f32 %v6952_v13, %v12858_v55  ;;  %7276 = vmatprep.mubr.bf16.mxu0 %v11309_v41  ;;  %v10189_v41 = vld [vmem:[%s14340_s1 + $0x88c] ss:$16 sps:$4 sm:$0xff]   ;;  %v10217_v29 = vld [vmem:[%s14340_s1 + $0x9e8] ss:$16 sps:$4 sm:$0xff]  }
 0x286   :  { %7317 = vmatprep.mubr.bf16.mxu1 %v11314_v43  ;;  %v6954_v16 = vpop.f32.mrf.mxu0  ;;  %v10192_v43 = vld [vmem:[%s14340_s1 + $0xa8c] ss:$16 sps:$4 sm:$0xff]  }
 0x287   :  { %v6995_v21 = vpop.f32.mrf.mxu1  ;;  %v13054_v27 = vadd.f32 %v6993_v18, %v6953_v56  ;;  %7247 = vmatpush1.bf16.msra.mxu0 %v10175_v10  ;;  %v10222_v7 = vld [vmem:[%s14340_s1 + $0xbec] ss:$16 sps:$4 sm:$0xff]   ;;  %v10223_v10 = vld [vmem:[%s14340_s1 + $0x9c8] ss:$16 sps:$4 sm:$0xff]  }
 0x288   :  { %7288 = vmatpush1.bf16.msra.mxu1 %v10178_v11  ;;  %v6955_v17 = vpop.f32.mrf.mxu0  ;;  %7248 = vmatprep.subr.bf16.mxu0 %v10183_v26  ;;  %v10225_v60 = vld [vmem:[%s14340_s1 + $0x9cc] ss:$16 sps:$4 sm:$0xff]   ;;  %v10226_v11 = vld [vmem:[%s14340_s1 + $0xbc8] ss:$16 sps:$4 sm:$0xff]  }
 0x289   :  { %v6996_v55 = vpop.f32.mrf.mxu1  ;;  %7289 = vmatprep.subr.bf16.mxu1 %v10186_v6  ;;  %v10228_v0 = vld [vmem:[%s14340_s1 + $0xbcc] ss:$16 sps:$4 sm:$0xff]   ;;  %v10229_v26 = vld [vmem:[%s14340_s1 + $0x9a8] ss:$16 sps:$4 sm:$0xff]  }
 0x28a   :  { %v10231_v13 = vld [vmem:[%s14340_s1 + $0x9ac] ss:$16 sps:$4 sm:$0xff]   ;;  %v10232_v6 = vld [vmem:[%s14340_s1 + $0xba8] ss:$16 sps:$4 sm:$0xff]  }
 0x28b   :  { %7249 = vmatpush1.bf16.msra.mxu0 %v10181_v53  ;;  %v10234_v18 = vld [vmem:[%s14340_s1 + $0xbac] ss:$16 sps:$4 sm:$0xff]   ;;  %v10235_v21 = vld [vmem:[%s14340_s1 + $0x988] ss:$16 sps:$4 sm:$0xff]  }
 0x28c   :  { %7290 = vmatpush1.bf16.msra.mxu1 %v10184_v49  ;;  %7250 = vmatprep.subr.bf16.mxu0 %v10189_v41  ;;  %v10237_v56 = vld [vmem:[%s14340_s1 + $0x98c] ss:$16 sps:$4 sm:$0xff]   ;;  %v10238_v53 = vld [vmem:[%s14340_s1 + $0xb88] ss:$16 sps:$4 sm:$0xff]  }
 0x28d   :  { %7291 = vmatprep.subr.bf16.mxu1 %v10192_v43  ;;  %v10240_v16 = vld [vmem:[%s14340_s1 + $0xb8c] ss:$16 sps:$4 sm:$0xff]   ;;  %v10241_v55 = vld [vmem:[%s14340_s1 + $0x968] ss:$16 sps:$4 sm:$0xff]  }
 0x28e   :  { %v10243_v49 = vld [vmem:[%s14340_s1 + $0x96c] ss:$16 sps:$4 sm:$0xff]   ;;  %v10244_v41 = vld [vmem:[%s14340_s1 + $0xb68] ss:$16 sps:$4 sm:$0xff]  }
 0x28f   :  { %7251 = vmatpush1.bf16.msra.mxu0 %v10187_v23  ;;  %v10246_v17 = vld [vmem:[%s14340_s1 + $0xb6c] ss:$16 sps:$4 sm:$0xff]  }
 0x290   :  { %7292 = vmatpush1.bf16.msra.mxu1 %v10190_v36  ;;  %7252 = vmatprep.subr.bf16.mxu0 %v10195_v5  ;;  %v10249_v43 = vld [vmem:[%s14340_s1 + $0x94c] ss:$16 sps:$4 sm:$0xff]   ;;  %v10247_v36 = vld [vmem:[%s14340_s1 + $0x948] ss:$16 sps:$4 sm:$0xff]  }
 0x291   :  { %7293 = vmatprep.subr.bf16.mxu1 %v10198_v2  ;;  %v10252_v23 = vld [vmem:[%s14340_s1 + $0xb4c] ss:$16 sps:$4 sm:$0xff]   ;;  %v10250_v5 = vld [vmem:[%s14340_s1 + $0xb48] ss:$16 sps:$4 sm:$0xff]  }
 0x292   :  { %v10255_v2 = vld [vmem:[%s14340_s1 + $0x92c] ss:$16 sps:$4 sm:$0xff]  }
 0x293   :  { %7253 = vmatpush1.bf16.msra.mxu0 %v10193_v63  ;;  %v10258_v63 = vld [vmem:[%s14340_s1 + $0xb2c] ss:$16 sps:$4 sm:$0xff]  }
 0x294   :  { %7294 = vmatpush1.bf16.msra.mxu1 %v10196_v37  ;;  %7254 = vmatprep.subr.bf16.mxu0 %v10201_v38  ;;  %v10253_v37 = vld [vmem:[%s14340_s1 + $0x928] ss:$16 sps:$4 sm:$0xff]  }
 0x295   :  { %7295 = vmatprep.subr.bf16.mxu1 %v10204_v32  ;;  %v10256_v38 = vld [vmem:[%s14340_s1 + $0xb28] ss:$16 sps:$4 sm:$0xff]   ;;  %v10261_v32 = vld [vmem:[%s14340_s1 + $0x90c] ss:$16 sps:$4 sm:$0xff]  }
 0x297   :  { %7255 = vmatpush1.bf16.msra.mxu0 %v10199_v44  ;;  %v10264_v44 = vld [vmem:[%s14340_s1 + $0xb0c] ss:$16 sps:$4 sm:$0xff]  }
 0x298   :  { %7296 = vmatpush1.bf16.msra.mxu1 %v10202_v47  ;;  %7256 = vmatprep.subr.bf16.mxu0 %v10207_v48  ;;  %v10259_v47 = vld [vmem:[%s14340_s1 + $0x908] ss:$16 sps:$4 sm:$0xff]  }
 0x299   :  { %7297 = vmatprep.subr.bf16.mxu1 %v10210_v51  ;;  %v10262_v48 = vld [vmem:[%s14340_s1 + $0xb08] ss:$16 sps:$4 sm:$0xff]   ;;  %v10267_v51 = vld [vmem:[%s14340_s1 + $0xcec] ss:$16 sps:$4 sm:$0xff]  }
 0x29b   :  { %7257 = vmatpush1.bf16.msra.mxu0 %v10205_v52  ;;  %v10270_v52 = vld [vmem:[%s14340_s1 + $0xeec] ss:$16 sps:$4 sm:$0xff]  }
 0x29c   :  { %7298 = vmatpush1.bf16.msra.mxu1 %v10208_v9  ;;  %7258 = vmatprep.subr.bf16.mxu0 %v10213_v57  ;;  %v10265_v9 = vld [vmem:[%s14340_s1 + $0xce8] ss:$16 sps:$4 sm:$0xff]  }
 0x29d   :  { %7299 = vmatprep.subr.bf16.mxu1 %v10216_v20  ;;  %v10268_v57 = vld [vmem:[%s14340_s1 + $0xee8] ss:$16 sps:$4 sm:$0xff]   ;;  %v10273_v20 = vld [vmem:[%s14340_s1 + $0xccc] ss:$16 sps:$4 sm:$0xff]  }
 0x29f   :  { %7259 = vmatpush1.bf16.msra.mxu0 %v10211_v61  ;;  %v10276_v61 = vld [vmem:[%s14340_s1 + $0xecc] ss:$16 sps:$4 sm:$0xff]  }
 0x2a0   :  { %7300 = vmatpush1.bf16.msra.mxu1 %v10214_v62  ;;  %7260 = vmatprep.subr.bf16.mxu0 %v10219_v3 }
 0x2a1   :  { %7301 = vmatprep.subr.bf16.mxu1 %v10222_v7 }
 0x2a3   :  { %7261 = vmatpush2.bf16.msra.mxu0 %v10217_v29  ;;  %v10271_v29 = vld [vmem:[%s14340_s1 + $0xcc8] ss:$16 sps:$4 sm:$0xff]  }
 0x2a4   :  { %7302 = vmatpush2.bf16.msra.mxu1 %v10220_v8  ;;  %7262 = vmatprep.subr.bf16.mxu0 %v10225_v60  ;;  %v10274_v8 = vld [vmem:[%s14340_s1 + $0xec8] ss:$16 sps:$4 sm:$0xff]  }
 0x2a5   :  { %7303 = vmatprep.subr.bf16.mxu1 %v10228_v0 }
 0x2a7   :  { %7263 = vmatpush2.bf16.msra.mxu0 %v10223_v10 }
 0x2a8   :  { %7304 = vmatpush2.bf16.msra.mxu1 %v10226_v11  ;;  %7264 = vmatprep.subr.bf16.mxu0 %v10231_v13 }
 0x2a9   :  { %7305 = vmatprep.subr.bf16.mxu1 %v10234_v18 }
 0x2ab   :  { %7265 = vmatpush2.bf16.msra.mxu0 %v10229_v26  ;;  %v10277_v26 = vld [vmem:[%s14340_s1 + $0xca8] ss:$16 sps:$4 sm:$0xff]  }
 0x2ac   :  { %7306 = vmatpush2.bf16.msra.mxu1 %v10232_v6  ;;  %7266 = vmatprep.subr.bf16.mxu0 %v10237_v56  ;;  %v10280_v6 = vld [vmem:[%s14340_s1 + $0xea8] ss:$16 sps:$4 sm:$0xff]  }
 0x2ad   :  { %7307 = vmatprep.subr.bf16.mxu1 %v10240_v16  ;;  %v10283_v16 = vld [vmem:[%s14340_s1 + $0xc88] ss:$16 sps:$4 sm:$0xff]  }
 0x2af   :  { %7267 = vmatpush2.bf16.msra.mxu0 %v10235_v21  ;;  %v10286_v21 = vld [vmem:[%s14340_s1 + $0xe88] ss:$16 sps:$4 sm:$0xff]  }
 0x2b0   :  { %7308 = vmatpush2.bf16.msra.mxu1 %v10238_v53  ;;  %7268 = vmatprep.subr.bf16.mxu0 %v10243_v49  ;;  %v10291_v53 = vld [vmem:[%s14340_s1 + $0xc6c] ss:$16 sps:$4 sm:$0xff]  }
 0x2b1   :  { %7309 = vmatprep.subr.bf16.mxu1 %v10246_v17  ;;  %v10294_v49 = vld [vmem:[%s14340_s1 + $0xe6c] ss:$16 sps:$4 sm:$0xff]   ;;  %v10289_v17 = vld [vmem:[%s14340_s1 + $0xc68] ss:$16 sps:$4 sm:$0xff]  }
 0x2b3   :  { %7269 = vmatpush2.bf16.msra.mxu0 %v10241_v55  ;;  %v10292_v55 = vld [vmem:[%s14340_s1 + $0xe68] ss:$16 sps:$4 sm:$0xff]  }
 0x2b4   :  { %7310 = vmatpush2.bf16.msra.mxu1 %v10244_v41  ;;  %7270 = vmatprep.subr.bf16.mxu0 %v10249_v43  ;;  %v10297_v41 = vld [vmem:[%s14340_s1 + $0xc4c] ss:$16 sps:$4 sm:$0xff]  }
 0x2b5   :  { %7311 = vmatprep.subr.bf16.mxu1 %v10252_v23  ;;  %v10300_v43 = vld [vmem:[%s14340_s1 + $0xe4c] ss:$16 sps:$4 sm:$0xff]   ;;  %v10295_v23 = vld [vmem:[%s14340_s1 + $0xc48] ss:$16 sps:$4 sm:$0xff]  }
 0x2b7   :  { %7271 = vmatpush2.bf16.msra.mxu0 %v10247_v36  ;;  %v10298_v36 = vld [vmem:[%s14340_s1 + $0xe48] ss:$16 sps:$4 sm:$0xff]  }
 0x2b8   :  { %7312 = vmatpush2.bf16.msra.mxu1 %v10250_v5  ;;  %7272 = vmatprep.subr.bf16.mxu0 %v10255_v2  ;;  %v10303_v5 = vld [vmem:[%s14340_s1 + $0xc2c] ss:$16 sps:$4 sm:$0xff]  }
 0x2b9   :  { %7313 = vmatprep.subr.bf16.mxu1 %v10258_v63  ;;  %v10306_v2 = vld [vmem:[%s14340_s1 + $0xe2c] ss:$16 sps:$4 sm:$0xff]   ;;  %v10301_v63 = vld [vmem:[%s14340_s1 + $0xc28] ss:$16 sps:$4 sm:$0xff]  }
 0x2bb   :  { %7273 = vmatpush2.bf16.msra.mxu0 %v10253_v37  ;;  %v10304_v37 = vld [vmem:[%s14340_s1 + $0xe28] ss:$16 sps:$4 sm:$0xff]  }
 0x2bc   :  { %7314 = vmatpush2.bf16.msra.mxu1 %v10256_v38  ;;  %7274 = vmatprep.subr.bf16.mxu0 %v10261_v32  ;;  %v10309_v38 = vld [vmem:[%s14340_s1 + $0xc0c] ss:$16 sps:$4 sm:$0xff]  }
 0x2bd   :  { %7315 = vmatprep.subr.bf16.mxu1 %v10264_v44  ;;  %v10312_v32 = vld [vmem:[%s14340_s1 + $0xe0c] ss:$16 sps:$4 sm:$0xff]   ;;  %v10307_v44 = vld [vmem:[%s14340_s1 + $0xc08] ss:$16 sps:$4 sm:$0xff]  }
 0x2bf   :  { %7275 = vmatpush2.bf16.msra.mxu0 %v10259_v47  ;;  %v10310_v47 = vld [vmem:[%s14340_s1 + $0xe08] ss:$16 sps:$4 sm:$0xff]  }
 0x2c0   :  { %7316 = vmatpush2.bf16.msra.mxu1 %v10262_v48  ;;  %7326 = vmatprep.subr.bf16.mxu0 %v10267_v51  ;;  %v10315_v48 = vld [vmem:[%s14340_s1 + $0xdec] ss:$16 sps:$4 sm:$0xff]  }
 0x2c1   :  { %7367 = vmatprep.subr.bf16.mxu1 %v10270_v52  ;;  %v10318_v51 = vld [vmem:[%s14340_s1 + $0xfec] ss:$16 sps:$4 sm:$0xff]   ;;  %v10313_v52 = vld [vmem:[%s14340_s1 + $0xde8] ss:$16 sps:$4 sm:$0xff]  }
 0x2c2   :  { %v7032_v62 = vpop.f32.mrf.mxu0  ;;  %7277 = vmatmul.mubr.bf16.vlgmr.msra.gmra.mxu0 %v11485_v50  ;;  %v10279_v50 = vld [vmem:[%s14340_s1 + $0xcac] ss:$16 sps:$4 sm:$0xff]  }
 0x2c3   :  { %v7073_v3 = vpop.f32.mrf.mxu1  ;;  %7318 = vmatmul.mubr.bf16.vlgmr.msra.gmra.mxu1 %v11501_v35  ;;  %v7033_v7 = vadd.f32 %v7032_v62, %v13049_v14  ;;  %7327 = vmatpush1.bf16.msra.mxu0 %v10265_v9  ;;  %v10282_v35 = vld [vmem:[%s14340_s1 + $0xeac] ss:$16 sps:$4 sm:$0xff]   ;;  %v10316_v9 = vld [vmem:[%s14340_s1 + $0xfe8] ss:$16 sps:$4 sm:$0xff]  }
 0x2c4   :  { %7368 = vmatpush1.bf16.msra.mxu1 %v10268_v57  ;;  %v7034_v60 = vpop.f32.mrf.mxu0  ;;  %7328 = vmatprep.subr.bf16.mxu0 %v10273_v20  ;;  %v10321_v57 = vld [vmem:[%s14340_s1 + $0xdcc] ss:$16 sps:$4 sm:$0xff]   ;;  %v10322_v62 = vld [vmem:[%s14340_s1 + $0xfc8] ss:$16 sps:$4 sm:$0xff]  }
 0x2c5   :  { %v7075_v0 = vpop.f32.mrf.mxu1  ;;  %7369 = vmatprep.subr.bf16.mxu1 %v10276_v61  ;;  %v13251_v14 = vadd.f32 %v7073_v3, %v7033_v7  ;;  %v7035_v10 = vadd.f32 %v7034_v60, %v13054_v27  ;;  %7358 = vmatprep.mubr.bf16.mxu0 %v11497_v54  ;;  %v10285_v54 = vld [vmem:[%s14340_s1 + $0xc8c] ss:$16 sps:$4 sm:$0xff]   ;;  %v10319_v61 = vld [vmem:[%s14340_s1 + $0xdc8] ss:$16 sps:$4 sm:$0xff]  }
 0x2c6   :  { %7399 = vmatprep.mubr.bf16.mxu1 %v11517_v59  ;;  %v7036_v11 = vpop.f32.mrf.mxu0  ;;  %v10288_v59 = vld [vmem:[%s14340_s1 + $0xe8c] ss:$16 sps:$4 sm:$0xff]  }
 0x2c7   :  { %v7077_v13 = vpop.f32.mrf.mxu1  ;;  %v13256_v18 = vadd.f32 %v7075_v0, %v7035_v10  ;;  %7329 = vmatpush1.bf16.msra.mxu0 %v10271_v29  ;;  %v10324_v20 = vld [vmem:[%s14340_s1 + $0xfcc] ss:$16 sps:$4 sm:$0xff]   ;;  %v10325_v29 = vld [vmem:[%s14340_s1 + $0xda8] ss:$16 sps:$4 sm:$0xff]  }
 0x2c8   :  { %7370 = vmatpush1.bf16.msra.mxu1 %v10274_v8  ;;  %v7037_v56 = vpop.f32.mrf.mxu0  ;;  %7330 = vmatprep.subr.bf16.mxu0 %v10279_v50  ;;  %v10327_v3 = vld [vmem:[%s14340_s1 + $0xdac] ss:$16 sps:$4 sm:$0xff]   ;;  %v10328_v8 = vld [vmem:[%s14340_s1 + $0xfa8] ss:$16 sps:$4 sm:$0xff]  }
 0x2c9   :  { %v7078_v27 = vpop.f32.mrf.mxu1  ;;  %7371 = vmatprep.subr.bf16.mxu1 %v10282_v35  ;;  %v10330_v7 = vld [vmem:[%s14340_s1 + $0xfac] ss:$16 sps:$4 sm:$0xff]   ;;  %v10331_v50 = vld [vmem:[%s14340_s1 + $0xd88] ss:$16 sps:$4 sm:$0xff]  }
 0x2ca   :  { %v10333_v60 = vld [vmem:[%s14340_s1 + $0xd8c] ss:$16 sps:$4 sm:$0xff]   ;;  %v10334_v35 = vld [vmem:[%s14340_s1 + $0xf88] ss:$16 sps:$4 sm:$0xff]  }
 0x2cb   :  { %7331 = vmatpush1.bf16.msra.mxu0 %v10277_v26  ;;  %v10336_v0 = vld [vmem:[%s14340_s1 + $0xf8c] ss:$16 sps:$4 sm:$0xff]   ;;  %v10337_v13 = vld [vmem:[%s14340_s1 + $0xd68] ss:$16 sps:$4 sm:$0xff]  }
 0x2cc   :  { %7372 = vmatpush1.bf16.msra.mxu1 %v10280_v6  ;;  %7332 = vmatprep.subr.bf16.mxu0 %v10285_v54  ;;  %v10339_v10 = vld [vmem:[%s14340_s1 + $0xd6c] ss:$16 sps:$4 sm:$0xff]   ;;  %v10340_v26 = vld [vmem:[%s14340_s1 + $0xf68] ss:$16 sps:$4 sm:$0xff]  }
 0x2cd   :  { %7373 = vmatprep.subr.bf16.mxu1 %v10288_v59  ;;  %v10342_v11 = vld [vmem:[%s14340_s1 + $0xf6c] ss:$16 sps:$4 sm:$0xff]   ;;  %v10343_v27 = vld [vmem:[%s14340_s1 + $0xd48] ss:$16 sps:$4 sm:$0xff]  }
 0x2ce   :  { %v10345_v6 = vld [vmem:[%s14340_s1 + $0xd4c] ss:$16 sps:$4 sm:$0xff]   ;;  %v10346_v54 = vld [vmem:[%s14340_s1 + $0xf48] ss:$16 sps:$4 sm:$0xff]  }
 0x2cf   :  { %7333 = vmatpush1.bf16.msra.mxu0 %v10283_v16  ;;  %v10348_v56 = vld [vmem:[%s14340_s1 + $0xf4c] ss:$16 sps:$4 sm:$0xff]  }
 0x2d0   :  { %7374 = vmatpush1.bf16.msra.mxu1 %v10286_v21  ;;  %7334 = vmatprep.subr.bf16.mxu0 %v10291_v53  ;;  %v10351_v59 = vld [vmem:[%s14340_s1 + $0xd2c] ss:$16 sps:$4 sm:$0xff]   ;;  %v10349_v21 = vld [vmem:[%s14340_s1 + $0xd28] ss:$16 sps:$4 sm:$0xff]  }
 0x2d1   :  { %7375 = vmatprep.subr.bf16.mxu1 %v10294_v49  ;;  %v10354_v16 = vld [vmem:[%s14340_s1 + $0xf2c] ss:$16 sps:$4 sm:$0xff]   ;;  %v10352_v53 = vld [vmem:[%s14340_s1 + $0xf28] ss:$16 sps:$4 sm:$0xff]  }
 0x2d2   :  { %v10357_v49 = vld [vmem:[%s14340_s1 + $0xd0c] ss:$16 sps:$4 sm:$0xff]  }
 0x2d3   :  { %7335 = vmatpush1.bf16.msra.mxu0 %v10289_v17  ;;  %v10360_v17 = vld [vmem:[%s14340_s1 + $0xf0c] ss:$16 sps:$4 sm:$0xff]  }
 0x2d4   :  { %7376 = vmatpush1.bf16.msra.mxu1 %v10292_v55  ;;  %7336 = vmatprep.subr.bf16.mxu0 %v10297_v41  ;;  %v10355_v55 = vld [vmem:[%s14340_s1 + $0xd08] ss:$16 sps:$4 sm:$0xff]  }
 0x2d5   :  { %7377 = vmatprep.subr.bf16.mxu1 %v10300_v43  ;;  %v10358_v41 = vld [vmem:[%s14340_s1 + $0xf08] ss:$16 sps:$4 sm:$0xff]   ;;  %v1062_v43 = vsub.s32 2, %v10949_v42 }
 0x2d7   :  { %7337 = vmatpush1.bf16.msra.mxu0 %v10295_v23  ;;  %v10363_v23 = vld [vmem:[%s14340_s1 + $0x10ec] ss:$16 sps:$4 sm:$0xff]  }
 0x2d8   :  { %7378 = vmatpush1.bf16.msra.mxu1 %v10298_v36  ;;  %7338 = vmatprep.subr.bf16.mxu0 %v10303_v5  ;;  %v10366_v36 = vld [vmem:[%s14340_s1 + $0x12ec] ss:$16 sps:$4 sm:$0xff]   ;;  %v1066_v5 = vsub.s32 3, %v10949_v42 }
 0x2d9   :  { %7379 = vmatprep.subr.bf16.mxu1 %v10306_v2  ;;  %v10777_v2 = vld [vmem:[%s14341_s2] sm:$0xf]  ;;  %v10369_v42 = vld [vmem:[%s14340_s1 + $0x10cc] ss:$16 sps:$4 sm:$0xff]  }
 0x2db   :  { %7339 = vmatpush1.bf16.msra.mxu0 %v10301_v63  ;;  %v1063_v63 = vrot.slane %v10777_v2, %v1062_v43  ;;  %v10406_v43 = vld [vmem:[%s14340_s1 + $0x1208] ss:$16 sps:$4 sm:$0xff]  }
 0x2dc   :  { %7380 = vmatpush1.bf16.msra.mxu1 %v10304_v37  ;;  %7340 = vmatprep.subr.bf16.mxu0 %v10309_v38  ;;  %v10361_v37 = vld [vmem:[%s14340_s1 + $0x10e8] ss:$16 sps:$4 sm:$0xff]  }
 0x2dd   :  { %7381 = vmatprep.subr.bf16.mxu1 %v10312_v32  ;;  %v10364_v38 = vld [vmem:[%s14340_s1 + $0x12e8] ss:$16 sps:$4 sm:$0xff]   ;;  %v10372_v32 = vld [vmem:[%s14340_s1 + $0x12cc] ss:$16 sps:$4 sm:$0xff]  }
 0x2df   :  { %7341 = vmatpush1.bf16.msra.mxu0 %v10307_v44  ;;  %v1067_v44 = vrot.slane %v10777_v2, %v1066_v5  ;;  %v10409_v5 = vld [vmem:[%s14340_s1 + $0x11e8] ss:$16 sps:$4 sm:$0xff]  }
 0x2e0   :  { %7382 = vmatpush1.bf16.msra.mxu1 %v10310_v47  ;;  %7342 = vmatprep.subr.bf16.mxu0 %v10315_v48  ;;  %v10412_v2 = vld [vmem:[%s14340_s1 + $0x13e8] ss:$16 sps:$4 sm:$0xff]  }
 0x2e1   :  { %7383 = vmatprep.subr.bf16.mxu1 %v10318_v51 }
 0x2e3   :  { %7343 = vmatpush2.bf16.msra.mxu0 %v10313_v52  ;;  %v10367_v52 = vld [vmem:[%s14340_s1 + $0x10c8] ss:$16 sps:$4 sm:$0xff]  }
 0x2e4   :  { %7384 = vmatpush2.bf16.msra.mxu1 %v10316_v9  ;;  %7344 = vmatprep.subr.bf16.mxu0 %v10321_v57  ;;  %v10370_v9 = vld [vmem:[%s14340_s1 + $0x12c8] ss:$16 sps:$4 sm:$0xff]  }
 0x2e5   :  { %7385 = vmatprep.subr.bf16.mxu1 %v10324_v20 }
 0x2e7   :  { %7345 = vmatpush2.bf16.msra.mxu0 %v10319_v61 }
 0x2e8   :  { %7386 = vmatpush2.bf16.msra.mxu1 %v10322_v62  ;;  %7346 = vmatprep.subr.bf16.mxu0 %v10327_v3 }
 0x2e9   :  { %7387 = vmatprep.subr.bf16.mxu1 %v10330_v7 }
 0x2eb   :  { %7347 = vmatpush2.bf16.msra.mxu0 %v10325_v29 }
 0x2ec   :  { %7388 = vmatpush2.bf16.msra.mxu1 %v10328_v8  ;;  %7348 = vmatprep.subr.bf16.mxu0 %v10333_v60  ;;  %v10373_v8 = vld [vmem:[%s14340_s1 + $0x10a8] ss:$16 sps:$4 sm:$0xff]  }
 0x2ed   :  { %7389 = vmatprep.subr.bf16.mxu1 %v10336_v0  ;;  %v10376_v60 = vld [vmem:[%s14340_s1 + $0x12a8] ss:$16 sps:$4 sm:$0xff]  }
 0x2ef   :  { %7349 = vmatpush2.bf16.msra.mxu0 %v10331_v50 }
 0x2f0   :  { %7390 = vmatpush2.bf16.msra.mxu1 %v10334_v35  ;;  %7350 = vmatprep.subr.bf16.mxu0 %v10339_v10  ;;  %v10379_v35 = vld [vmem:[%s14340_s1 + $0x1088] ss:$16 sps:$4 sm:$0xff]  }
 0x2f1   :  { %7391 = vmatprep.subr.bf16.mxu1 %v10342_v11  ;;  %v10382_v10 = vld [vmem:[%s14340_s1 + $0x1288] ss:$16 sps:$4 sm:$0xff]   ;;  %v10387_v11 = vld [vmem:[%s14340_s1 + $0x106c] ss:$16 sps:$4 sm:$0xff]  }
 0x2f3   :  { %7351 = vmatpush2.bf16.msra.mxu0 %v10337_v13  ;;  %v10390_v13 = vld [vmem:[%s14340_s1 + $0x126c] ss:$16 sps:$4 sm:$0xff]  }
 0x2f4   :  { %7392 = vmatpush2.bf16.msra.mxu1 %v10340_v26  ;;  %7352 = vmatprep.subr.bf16.mxu0 %v10345_v6  ;;  %v10385_v26 = vld [vmem:[%s14340_s1 + $0x1068] ss:$16 sps:$4 sm:$0xff]  }
 0x2f5   :  { %7393 = vmatprep.subr.bf16.mxu1 %v10348_v56  ;;  %v10388_v6 = vld [vmem:[%s14340_s1 + $0x1268] ss:$16 sps:$4 sm:$0xff]   ;;  %v10393_v56 = vld [vmem:[%s14340_s1 + $0x104c] ss:$16 sps:$4 sm:$0xff]  }
 0x2f7   :  { %7353 = vmatpush2.bf16.msra.mxu0 %v10343_v27  ;;  %v10396_v27 = vld [vmem:[%s14340_s1 + $0x124c] ss:$16 sps:$4 sm:$0xff]  }
 0x2f8   :  { %7394 = vmatpush2.bf16.msra.mxu1 %v10346_v54  ;;  %7354 = vmatprep.subr.bf16.mxu0 %v10351_v59  ;;  %v10391_v54 = vld [vmem:[%s14340_s1 + $0x1048] ss:$16 sps:$4 sm:$0xff]  }
 0x2f9   :  { %7395 = vmatprep.subr.bf16.mxu1 %v10354_v16  ;;  %v10394_v59 = vld [vmem:[%s14340_s1 + $0x1248] ss:$16 sps:$4 sm:$0xff]   ;;  %v10399_v16 = vld [vmem:[%s14340_s1 + $0x102c] ss:$16 sps:$4 sm:$0xff]  }
 0x2fb   :  { %7355 = vmatpush2.bf16.msra.mxu0 %v10349_v21  ;;  %v10402_v21 = vld [vmem:[%s14340_s1 + $0x122c] ss:$16 sps:$4 sm:$0xff]  }
 0x2fc   :  { %7396 = vmatpush2.bf16.msra.mxu1 %v10352_v53  ;;  %7356 = vmatprep.subr.bf16.mxu0 %v10357_v49  ;;  %v10397_v53 = vld [vmem:[%s14340_s1 + $0x1028] ss:$16 sps:$4 sm:$0xff]  }
 0x2fd   :  { %7397 = vmatprep.subr.bf16.mxu1 %v10360_v17  ;;  %v10400_v49 = vld [vmem:[%s14340_s1 + $0x1228] ss:$16 sps:$4 sm:$0xff]   ;;  %v10405_v17 = vld [vmem:[%s14340_s1 + $0x100c] ss:$16 sps:$4 sm:$0xff]  }
 0x2ff   :  { %7357 = vmatpush2.bf16.msra.mxu0 %v10355_v55  ;;  %v10408_v55 = vld [vmem:[%s14340_s1 + $0x120c] ss:$16 sps:$4 sm:$0xff]  }
 0x300   :  { %7398 = vmatpush2.bf16.msra.mxu1 %v10358_v41  ;;  %7408 = vmatprep.subr.bf16.mxu0 %v10363_v23  ;;  %v10403_v41 = vld [vmem:[%s14340_s1 + $0x1008] ss:$16 sps:$4 sm:$0xff]   ;;  %v10411_v23 = vld [vmem:[%s14340_s1 + $0x11ec] ss:$16 sps:$4 sm:$0xff]  }
 0x301   :  { %7449 = vmatprep.subr.bf16.mxu1 %v10366_v36  ;;  %v10414_v36 = vld [vmem:[%s14340_s1 + $0x13ec] ss:$16 sps:$4 sm:$0xff]  }
 0x302   :  { %v7114_v47 = vpop.f32.mrf.mxu0  ;;  %7359 = vmatmul.mubr.bf16.vlgmr.msra.gmra.mxu0 %v11713_v15  ;;  %v10375_v15 = vld [vmem:[%s14340_s1 + $0x10ac] ss:$16 sps:$4 sm:$0xff]  }
 0x303   :  { %v7155_v48 = vpop.f32.mrf.mxu1  ;;  %7400 = vmatmul.mubr.bf16.vlgmr.msra.gmra.mxu1 %v11728_v39  ;;  %v7115_v51 = vadd.f32 %v7114_v47, %v1063_v63  ;;  %7409 = vmatpush1.bf16.msra.mxu0 %v10361_v37  ;;  %v10378_v39 = vld [vmem:[%s14340_s1 + $0x12ac] ss:$16 sps:$4 sm:$0xff]   ;;  %v10421_v47 = vld [vmem:[%s14340_s1 + $0x11a8] ss:$16 sps:$4 sm:$0xff]  }
 0x304   :  { %7450 = vmatpush1.bf16.msra.mxu1 %v10364_v38  ;;  %v7116_v57 = vpop.f32.mrf.mxu0  ;;  %7410 = vmatprep.subr.bf16.mxu0 %v10369_v42  ;;  %v10417_v63 = vld [vmem:[%s14340_s1 + $0x11cc] ss:$16 sps:$4 sm:$0xff]   ;;  %v10415_v38 = vld [vmem:[%s14340_s1 + $0x11c8] ss:$16 sps:$4 sm:$0xff]  }
 0x305   :  { %v7157_v20 = vpop.f32.mrf.mxu1  ;;  %7451 = vmatprep.subr.bf16.mxu1 %v10372_v32  ;;  %v13457_v61 = vadd.f32 %v7155_v48, %v7115_v51  ;;  %v7117_v62 = vadd.f32 %v7116_v57, %v1067_v44  ;;  %7440 = vmatprep.mubr.bf16.mxu0 %v11724_v22  ;;  %v10381_v22 = vld [vmem:[%s14340_s1 + $0x108c] ss:$16 sps:$4 sm:$0xff]   ;;  %v10418_v42 = vld [vmem:[%s14340_s1 + $0x13c8] ss:$16 sps:$4 sm:$0xff]  }
 0x306   :  { %7481 = vmatprep.mubr.bf16.mxu1 %v11744_v31  ;;  %v7118_v3 = vpop.f32.mrf.mxu0  ;;  %v10384_v31 = vld [vmem:[%s14340_s1 + $0x128c] ss:$16 sps:$4 sm:$0xff]   ;;  %v10424_v48 = vld [vmem:[%s14340_s1 + $0x13a8] ss:$16 sps:$4 sm:$0xff]  }
 0x307   :  { %v7159_v7 = vpop.f32.mrf.mxu1  ;;  %v13461_v29 = vadd.f32 %v7157_v20, %v7117_v62  ;;  %7411 = vmatpush1.bf16.msra.mxu0 %v10367_v52  ;;  %v10420_v37 = vld [vmem:[%s14340_s1 + $0x13cc] ss:$16 sps:$4 sm:$0xff]   ;;  %v10430_v57 = vld [vmem:[%s14340_s1 + $0x1388] ss:$16 sps:$4 sm:$0xff]  }
 0x308   :  { %7452 = vmatpush1.bf16.msra.mxu1 %v10370_v9  ;;  %v7119_v0 = vpop.f32.mrf.mxu0  ;;  %7412 = vmatprep.subr.bf16.mxu0 %v10375_v15  ;;  %v10423_v32 = vld [vmem:[%s14340_s1 + $0x11ac] ss:$16 sps:$4 sm:$0xff]   ;;  %v10427_v9 = vld [vmem:[%s14340_s1 + $0x1188] ss:$16 sps:$4 sm:$0xff]  }
 0x309   :  { %v7160_v50 = vpop.f32.mrf.mxu1  ;;  %7453 = vmatprep.subr.bf16.mxu1 %v10378_v39  ;;  %v10426_v44 = vld [vmem:[%s14340_s1 + $0x13ac] ss:$16 sps:$4 sm:$0xff]   ;;  %v10433_v39 = vld [vmem:[%s14340_s1 + $0x1168] ss:$16 sps:$4 sm:$0xff]  }
 0x30a   :  { %v10429_v51 = vld [vmem:[%s14340_s1 + $0x118c] ss:$16 sps:$4 sm:$0xff]   ;;  %v10436_v62 = vld [vmem:[%s14340_s1 + $0x1368] ss:$16 sps:$4 sm:$0xff]  }
 0x30b   :  { %7413 = vmatpush1.bf16.msra.mxu0 %v10373_v8  ;;  %v10432_v52 = vld [vmem:[%s14340_s1 + $0x138c] ss:$16 sps:$4 sm:$0xff]   ;;  %v10439_v8 = vld [vmem:[%s14340_s1 + $0x1148] ss:$16 sps:$4 sm:$0xff]  }
 0x30c   :  { %7454 = vmatpush1.bf16.msra.mxu1 %v10376_v60  ;;  %7414 = vmatprep.subr.bf16.mxu0 %v10381_v22  ;;  %v10435_v20 = vld [vmem:[%s14340_s1 + $0x116c] ss:$16 sps:$4 sm:$0xff]   ;;  %v10442_v60 = vld [vmem:[%s14340_s1 + $0x1348] ss:$16 sps:$4 sm:$0xff]  }
 0x30d   :  { %7455 = vmatprep.subr.bf16.mxu1 %v10384_v31  ;;  %v10438_v15 = vld [vmem:[%s14340_s1 + $0x136c] ss:$16 sps:$4 sm:$0xff]   ;;  %v10445_v22 = vld [vmem:[%s14340_s1 + $0x1128] ss:$16 sps:$4 sm:$0xff]  }
 0x30e   :  { %v10441_v3 = vld [vmem:[%s14340_s1 + $0x114c] ss:$16 sps:$4 sm:$0xff]   ;;  %v10448_v31 = vld [vmem:[%s14340_s1 + $0x1328] ss:$16 sps:$4 sm:$0xff]  }
 0x30f   :  { %7415 = vmatpush1.bf16.msra.mxu0 %v10379_v35  ;;  %v10444_v7 = vld [vmem:[%s14340_s1 + $0x134c] ss:$16 sps:$4 sm:$0xff]  }
 0x310   :  { %7456 = vmatpush1.bf16.msra.mxu1 %v10382_v10  ;;  %7416 = vmatprep.subr.bf16.mxu0 %v10387_v11  ;;  %v10447_v0 = vld [vmem:[%s14340_s1 + $0x112c] ss:$16 sps:$4 sm:$0xff]   ;;  %v10451_v11 = vld [vmem:[%s14340_s1 + $0x1108] ss:$16 sps:$4 sm:$0xff]  }
 0x311   :  { %7457 = vmatprep.subr.bf16.mxu1 %v10390_v13  ;;  %v10450_v50 = vld [vmem:[%s14340_s1 + $0x132c] ss:$16 sps:$4 sm:$0xff]   ;;  %v10454_v13 = vld [vmem:[%s14340_s1 + $0x1308] ss:$16 sps:$4 sm:$0xff]  }
 0x312   :  { %v10453_v35 = vld [vmem:[%s14340_s1 + $0x110c] ss:$16 sps:$4 sm:$0xff]  }
 0x313   :  { %7417 = vmatpush1.bf16.msra.mxu0 %v10385_v26  ;;  %v10456_v10 = vld [vmem:[%s14340_s1 + $0x130c] ss:$16 sps:$4 sm:$0xff]  }
 0x314   :  { %7458 = vmatpush1.bf16.msra.mxu1 %v10388_v6  ;;  %7418 = vmatprep.subr.bf16.mxu0 %v10393_v56  ;;  %v10459_v26 = vld [vmem:[%s14340_s1 + $0x14ec] ss:$16 sps:$4 sm:$0xff]   ;;  %v10457_v56 = vld [vmem:[%s14340_s1 + $0x14e8] ss:$16 sps:$4 sm:$0xff]  }
 0x315   :  { %7459 = vmatprep.subr.bf16.mxu1 %v10396_v27  ;;  %v10462_v6 = vld [vmem:[%s14340_s1 + $0x16ec] ss:$16 sps:$4 sm:$0xff]   ;;  %v10460_v27 = vld [vmem:[%s14340_s1 + $0x16e8] ss:$16 sps:$4 sm:$0xff]  }
 0x317   :  { %7419 = vmatpush1.bf16.msra.mxu0 %v10391_v54  ;;  %v10465_v54 = vld [vmem:[%s14340_s1 + $0x14cc] ss:$16 sps:$4 sm:$0xff]  }
 0x318   :  { %7460 = vmatpush1.bf16.msra.mxu1 %v10394_v59  ;;  %7420 = vmatprep.subr.bf16.mxu0 %v10399_v16  ;;  %v10468_v59 = vld [vmem:[%s14340_s1 + $0x16cc] ss:$16 sps:$4 sm:$0xff]  }
 0x319   :  { %7461 = vmatprep.subr.bf16.mxu1 %v10402_v21 }
 0x31b   :  { %7421 = vmatpush1.bf16.msra.mxu0 %v10397_v53 }
 0x31c   :  { %7462 = vmatpush1.bf16.msra.mxu1 %v10400_v49  ;;  %7422 = vmatprep.subr.bf16.mxu0 %v10405_v17  ;;  %v10463_v49 = vld [vmem:[%s14340_s1 + $0x14c8] ss:$16 sps:$4 sm:$0xff]  }
 0x31d   :  { %7463 = vmatprep.subr.bf16.mxu1 %v10408_v55  ;;  %v10466_v17 = vld [vmem:[%s14340_s1 + $0x16c8] ss:$16 sps:$4 sm:$0xff]  }
 0x31f   :  { %7423 = vmatpush1.bf16.msra.mxu0 %v10403_v41 }
 0x320   :  { %7464 = vmatpush1.bf16.msra.mxu1 %v10406_v43  ;;  %7424 = vmatprep.subr.bf16.mxu0 %v10411_v23 }
 0x321   :  { %7465 = vmatprep.subr.bf16.mxu1 %v10414_v36 }
 0x323   :  { %7425 = vmatpush2.bf16.msra.mxu0 %v10409_v5 }
 0x324   :  { %7466 = vmatpush2.bf16.msra.mxu1 %v10412_v2  ;;  %7426 = vmatprep.subr.bf16.mxu0 %v10417_v63  ;;  %v10469_v2 = vld [vmem:[%s14340_s1 + $0x14a8] ss:$16 sps:$4 sm:$0xff]  }
 0x325   :  { %7467 = vmatprep.subr.bf16.mxu1 %v10420_v37  ;;  %v10472_v63 = vld [vmem:[%s14340_s1 + $0x16a8] ss:$16 sps:$4 sm:$0xff]  }
 0x327   :  { %7427 = vmatpush2.bf16.msra.mxu0 %v10415_v38  ;;  %v10475_v38 = vld [vmem:[%s14340_s1 + $0x1488] ss:$16 sps:$4 sm:$0xff]  }
 0x328   :  { %7468 = vmatpush2.bf16.msra.mxu1 %v10418_v42  ;;  %7428 = vmatprep.subr.bf16.mxu0 %v10423_v32  ;;  %v10478_v42 = vld [vmem:[%s14340_s1 + $0x1688] ss:$16 sps:$4 sm:$0xff]   ;;  %v10483_v32 = vld [vmem:[%s14340_s1 + $0x146c] ss:$16 sps:$4 sm:$0xff]  }
 0x329   :  { %7469 = vmatprep.subr.bf16.mxu1 %v10426_v44  ;;  %v10486_v44 = vld [vmem:[%s14340_s1 + $0x166c] ss:$16 sps:$4 sm:$0xff]  }
 0x32b   :  { %7429 = vmatpush2.bf16.msra.mxu0 %v10421_v47  ;;  %v10481_v47 = vld [vmem:[%s14340_s1 + $0x1468] ss:$16 sps:$4 sm:$0xff]  }
 0x32c   :  { %7470 = vmatpush2.bf16.msra.mxu1 %v10424_v48  ;;  %7430 = vmatprep.subr.bf16.mxu0 %v10429_v51  ;;  %v10484_v48 = vld [vmem:[%s14340_s1 + $0x1668] ss:$16 sps:$4 sm:$0xff]   ;;  %v10489_v51 = vld [vmem:[%s14340_s1 + $0x144c] ss:$16 sps:$4 sm:$0xff]  }
 0x32d   :  { %7471 = vmatprep.subr.bf16.mxu1 %v10432_v52  ;;  %v10492_v52 = vld [vmem:[%s14340_s1 + $0x164c] ss:$16 sps:$4 sm:$0xff]  }
 0x32f   :  { %7431 = vmatpush2.bf16.msra.mxu0 %v10427_v9  ;;  %v10487_v9 = vld [vmem:[%s14340_s1 + $0x1448] ss:$16 sps:$4 sm:$0xff]  }
 0x330   :  { %7472 = vmatpush2.bf16.msra.mxu1 %v10430_v57  ;;  %7432 = vmatprep.subr.bf16.mxu0 %v10435_v20  ;;  %v10490_v57 = vld [vmem:[%s14340_s1 + $0x1648] ss:$16 sps:$4 sm:$0xff]   ;;  %v10495_v20 = vld [vmem:[%s14340_s1 + $0x142c] ss:$16 sps:$4 sm:$0xff]  }
 0x331   :  { %7473 = vmatprep.subr.bf16.mxu1 %v10438_v15  ;;  %v10498_v15 = vld [vmem:[%s14340_s1 + $0x162c] ss:$16 sps:$4 sm:$0xff]  }
 0x333   :  { %7433 = vmatpush2.bf16.msra.mxu0 %v10433_v39  ;;  %v10493_v39 = vld [vmem:[%s14340_s1 + $0x1428] ss:$16 sps:$4 sm:$0xff]  }
 0x334   :  { %7474 = vmatpush2.bf16.msra.mxu1 %v10436_v62  ;;  %7434 = vmatprep.subr.bf16.mxu0 %v10441_v3  ;;  %v10496_v62 = vld [vmem:[%s14340_s1 + $0x1628] ss:$16 sps:$4 sm:$0xff]   ;;  %v10501_v3 = vld [vmem:[%s14340_s1 + $0x140c] ss:$16 sps:$4 sm:$0xff]  }
 0x335   :  { %7475 = vmatprep.subr.bf16.mxu1 %v10444_v7  ;;  %v10504_v7 = vld [vmem:[%s14340_s1 + $0x160c] ss:$16 sps:$4 sm:$0xff]  }
 0x337   :  { %7435 = vmatpush2.bf16.msra.mxu0 %v10439_v8  ;;  %v10499_v8 = vld [vmem:[%s14340_s1 + $0x1408] ss:$16 sps:$4 sm:$0xff]  }
 0x338   :  { %7476 = vmatpush2.bf16.msra.mxu1 %v10442_v60  ;;  %7436 = vmatprep.subr.bf16.mxu0 %v10447_v0  ;;  %v10502_v60 = vld [vmem:[%s14340_s1 + $0x1608] ss:$16 sps:$4 sm:$0xff]   ;;  %v10507_v0 = vld [vmem:[%s14340_s1 + $0x15ec] ss:$16 sps:$4 sm:$0xff]  }
 0x339   :  { %7477 = vmatprep.subr.bf16.mxu1 %v10450_v50  ;;  %v10510_v50 = vld [vmem:[%s14340_s1 + $0x17ec] ss:$16 sps:$4 sm:$0xff]  }
 0x33b   :  { %7437 = vmatpush2.bf16.msra.mxu0 %v10445_v22  ;;  %v10505_v22 = vld [vmem:[%s14340_s1 + $0x15e8] ss:$16 sps:$4 sm:$0xff]  }
 0x33c   :  { %7478 = vmatpush2.bf16.msra.mxu1 %v10448_v31  ;;  %7438 = vmatprep.subr.bf16.mxu0 %v10453_v35  ;;  %v10508_v31 = vld [vmem:[%s14340_s1 + $0x17e8] ss:$16 sps:$4 sm:$0xff]   ;;  %v10513_v35 = vld [vmem:[%s14340_s1 + $0x15cc] ss:$16 sps:$4 sm:$0xff]  }
 0x33d   :  { %7479 = vmatprep.subr.bf16.mxu1 %v10456_v10  ;;  %v10516_v10 = vld [vmem:[%s14340_s1 + $0x17cc] ss:$16 sps:$4 sm:$0xff]  }
 0x33f   :  { %7439 = vmatpush2.bf16.msra.mxu0 %v10451_v11  ;;  %v10511_v11 = vld [vmem:[%s14340_s1 + $0x15c8] ss:$16 sps:$4 sm:$0xff]  }
 0x340   :  { %7480 = vmatpush2.bf16.msra.mxu1 %v10454_v13  ;;  %7490 = vmatprep.subr.bf16.mxu0 %v10459_v26  ;;  %v10514_v13 = vld [vmem:[%s14340_s1 + $0x17c8] ss:$16 sps:$4 sm:$0xff]   ;;  %v10519_v26 = vld [vmem:[%s14340_s1 + $0x15ac] ss:$16 sps:$4 sm:$0xff]  }
 0x341   :  { %7531 = vmatprep.subr.bf16.mxu1 %v10462_v6  ;;  %v10522_v6 = vld [vmem:[%s14340_s1 + $0x17ac] ss:$16 sps:$4 sm:$0xff]  }
 0x342   :  { %v7196_v16 = vpop.f32.mrf.mxu0  ;;  %7441 = vmatmul.mubr.bf16.vlgmr.msra.gmra.mxu0 %v11931_v12  ;;  %v10471_v12 = vld [vmem:[%s14340_s1 + $0x14ac] ss:$16 sps:$4 sm:$0xff]  }
 0x343   :  { %v7237_v21 = vpop.f32.mrf.mxu1  ;;  %7482 = vmatmul.mubr.bf16.vlgmr.msra.gmra.mxu1 %v11956_v25  ;;  %v7197_v53 = vadd.f32 %v7196_v16, %v13457_v61  ;;  %7491 = vmatpush1.bf16.msra.mxu0 %v10457_v56  ;;  %v10474_v25 = vld [vmem:[%s14340_s1 + $0x16ac] ss:$16 sps:$4 sm:$0xff]   ;;  %v10517_v56 = vld [vmem:[%s14340_s1 + $0x15a8] ss:$16 sps:$4 sm:$0xff]  }
 0x344   :  { %7532 = vmatpush1.bf16.msra.mxu1 %v10460_v27  ;;  %v7198_v55 = vpop.f32.mrf.mxu0  ;;  %7492 = vmatprep.subr.bf16.mxu0 %v10465_v54  ;;  %v10520_v27 = vld [vmem:[%s14340_s1 + $0x17a8] ss:$16 sps:$4 sm:$0xff]   ;;  %v10525_v54 = vld [vmem:[%s14340_s1 + $0x158c] ss:$16 sps:$4 sm:$0xff]  }
 0x345   :  { %v7239_v41 = vpop.f32.mrf.mxu1  ;;  %7533 = vmatprep.subr.bf16.mxu1 %v10468_v59  ;;  %v13658_v61 = vadd.f32 %v7237_v21, %v7197_v53  ;;  %v7199_v43 = vadd.f32 %v7198_v55, %v13461_v29  ;;  %7522 = vmatprep.mubr.bf16.mxu0 %v11952_v24  ;;  %v10477_v24 = vld [vmem:[%s14340_s1 + $0x148c] ss:$16 sps:$4 sm:$0xff]   ;;  %v10523_v16 = vld [vmem:[%s14340_s1 + $0x1588] ss:$16 sps:$4 sm:$0xff]  }
 0x346   :  { %7563 = vmatprep.mubr.bf16.mxu1 %v11972_v33  ;;  %v7200_v23 = vpop.f32.mrf.mxu0  ;;  %v10480_v33 = vld [vmem:[%s14340_s1 + $0x168c] ss:$16 sps:$4 sm:$0xff]   ;;  %v10526_v21 = vld [vmem:[%s14340_s1 + $0x1788] ss:$16 sps:$4 sm:$0xff]  }
 0x347   :  { %v7241_v36 = vpop.f32.mrf.mxu1  ;;  %v13663_v5 = vadd.f32 %v7239_v41, %v7199_v43  ;;  %7493 = vmatpush1.bf16.msra.mxu0 %v10463_v49  ;;  %v10528_v59 = vld [vmem:[%s14340_s1 + $0x178c] ss:$16 sps:$4 sm:$0xff]   ;;  %v10532_v55 = vld [vmem:[%s14340_s1 + $0x1768] ss:$16 sps:$4 sm:$0xff]  }
 0x348   :  { %7534 = vmatpush1.bf16.msra.mxu1 %v10466_v17  ;;  %v7201_v37 = vpop.f32.mrf.mxu0  ;;  %7494 = vmatprep.subr.bf16.mxu0 %v10471_v12  ;;  %v10531_v53 = vld [vmem:[%s14340_s1 + $0x156c] ss:$16 sps:$4 sm:$0xff]   ;;  %v10529_v17 = vld [vmem:[%s14340_s1 + $0x1568] ss:$16 sps:$4 sm:$0xff]  }
 0x349   :  { %v7242_v29 = vpop.f32.mrf.mxu1  ;;  %7535 = vmatprep.subr.bf16.mxu1 %v10474_v25  ;;  %v10534_v49 = vld [vmem:[%s14340_s1 + $0x176c] ss:$16 sps:$4 sm:$0xff]   ;;  %v10535_v25 = vld [vmem:[%s14340_s1 + $0x1548] ss:$16 sps:$4 sm:$0xff]  }
 0x34a   :  { %v10537_v41 = vld [vmem:[%s14340_s1 + $0x154c] ss:$16 sps:$4 sm:$0xff]   ;;  %v10538_v43 = vld [vmem:[%s14340_s1 + $0x1748] ss:$16 sps:$4 sm:$0xff]  }
 0x34b   :  { %7495 = vmatpush1.bf16.msra.mxu0 %v10469_v2  ;;  %v10540_v12 = vld [vmem:[%s14340_s1 + $0x174c] ss:$16 sps:$4 sm:$0xff]   ;;  %v10541_v2 = vld [vmem:[%s14340_s1 + $0x1528] ss:$16 sps:$4 sm:$0xff]  }
 0x34c   :  { %7536 = vmatpush1.bf16.msra.mxu1 %v10472_v63  ;;  %7496 = vmatprep.subr.bf16.mxu0 %v10477_v24  ;;  %v10543_v23 = vld [vmem:[%s14340_s1 + $0x152c] ss:$16 sps:$4 sm:$0xff]   ;;  %v10544_v63 = vld [vmem:[%s14340_s1 + $0x1728] ss:$16 sps:$4 sm:$0xff]  }
 0x34d   :  { %7537 = vmatprep.subr.bf16.mxu1 %v10480_v33  ;;  %v10546_v36 = vld [vmem:[%s14340_s1 + $0x172c] ss:$16 sps:$4 sm:$0xff]   ;;  %v10547_v24 = vld [vmem:[%s14340_s1 + $0x1508] ss:$16 sps:$4 sm:$0xff]  }
 0x34e   :  { %v10549_v37 = vld [vmem:[%s14340_s1 + $0x150c] ss:$16 sps:$4 sm:$0xff]   ;;  %v10550_v33 = vld [vmem:[%s14340_s1 + $0x1708] ss:$16 sps:$4 sm:$0xff]  }
 0x34f   :  { %7497 = vmatpush1.bf16.msra.mxu0 %v10475_v38  ;;  %v10552_v29 = vld [vmem:[%s14340_s1 + $0x170c] ss:$16 sps:$4 sm:$0xff]  }
 0x350   :  { %7538 = vmatpush1.bf16.msra.mxu1 %v10478_v42  ;;  %7498 = vmatprep.subr.bf16.mxu0 %v10483_v32  ;;  %v10555_v38 = vld [vmem:[%s14340_s1 + $0x18ec] ss:$16 sps:$4 sm:$0xff]   ;;  %v10553_v32 = vld [vmem:[%s14340_s1 + $0x18e8] ss:$16 sps:$4 sm:$0xff]  }
 0x351   :  { %7539 = vmatprep.subr.bf16.mxu1 %v10486_v44  ;;  %v10558_v42 = vld [vmem:[%s14340_s1 + $0x1aec] ss:$16 sps:$4 sm:$0xff]   ;;  %v10556_v44 = vld [vmem:[%s14340_s1 + $0x1ae8] ss:$16 sps:$4 sm:$0xff]  }
 0x353   :  { %7499 = vmatpush1.bf16.msra.mxu0 %v10481_v47  ;;  %v10561_v47 = vld [vmem:[%s14340_s1 + $0x18cc] ss:$16 sps:$4 sm:$0xff]  }
 0x354   :  { %7540 = vmatpush1.bf16.msra.mxu1 %v10484_v48  ;;  %7500 = vmatprep.subr.bf16.mxu0 %v10489_v51  ;;  %v10564_v48 = vld [vmem:[%s14340_s1 + $0x1acc] ss:$16 sps:$4 sm:$0xff]  }
 0x355   :  { %7541 = vmatprep.subr.bf16.mxu1 %v10492_v52 }
 0x357   :  { %7501 = vmatpush1.bf16.msra.mxu0 %v10487_v9 }
 0x358   :  { %7542 = vmatpush1.bf16.msra.mxu1 %v10490_v57  ;;  %7502 = vmatprep.subr.bf16.mxu0 %v10495_v20  ;;  %v10559_v57 = vld [vmem:[%s14340_s1 + $0x18c8] ss:$16 sps:$4 sm:$0xff]  }
 0x359   :  { %7543 = vmatprep.subr.bf16.mxu1 %v10498_v15  ;;  %v10562_v20 = vld [vmem:[%s14340_s1 + $0x1ac8] ss:$16 sps:$4 sm:$0xff]  }
 0x35b   :  { %7503 = vmatpush1.bf16.msra.mxu0 %v10493_v39 }
 0x35c   :  { %7544 = vmatpush1.bf16.msra.mxu1 %v10496_v62  ;;  %7504 = vmatprep.subr.bf16.mxu0 %v10501_v3 }
 0x35d   :  { %7545 = vmatprep.subr.bf16.mxu1 %v10504_v7 }
 0x35f   :  { %7505 = vmatpush1.bf16.msra.mxu0 %v10499_v8 }
 0x360   :  { %7546 = vmatpush1.bf16.msra.mxu1 %v10502_v60  ;;  %7506 = vmatprep.subr.bf16.mxu0 %v10507_v0  ;;  %v10565_v60 = vld [vmem:[%s14340_s1 + $0x18a8] ss:$16 sps:$4 sm:$0xff]  }
 0x361   :  { %7547 = vmatprep.subr.bf16.mxu1 %v10510_v50  ;;  %v10568_v0 = vld [vmem:[%s14340_s1 + $0x1aa8] ss:$16 sps:$4 sm:$0xff]  }
 0x363   :  { %7507 = vmatpush2.bf16.msra.mxu0 %v10505_v22  ;;  %v10571_v22 = vld [vmem:[%s14340_s1 + $0x1888] ss:$16 sps:$4 sm:$0xff]  }
 0x364   :  { %7548 = vmatpush2.bf16.msra.mxu1 %v10508_v31  ;;  %7508 = vmatprep.subr.bf16.mxu0 %v10513_v35  ;;  %v10574_v31 = vld [vmem:[%s14340_s1 + $0x1a88] ss:$16 sps:$4 sm:$0xff]   ;;  %v10579_v35 = vld [vmem:[%s14340_s1 + $0x186c] ss:$16 sps:$4 sm:$0xff]  }
 0x365   :  { %7549 = vmatprep.subr.bf16.mxu1 %v10516_v10  ;;  %v10582_v10 = vld [vmem:[%s14340_s1 + $0x1a6c] ss:$16 sps:$4 sm:$0xff]  }
 0x367   :  { %7509 = vmatpush2.bf16.msra.mxu0 %v10511_v11  ;;  %v10577_v11 = vld [vmem:[%s14340_s1 + $0x1868] ss:$16 sps:$4 sm:$0xff]  }
 0x368   :  { %7550 = vmatpush2.bf16.msra.mxu1 %v10514_v13  ;;  %7510 = vmatprep.subr.bf16.mxu0 %v10519_v26  ;;  %v10580_v13 = vld [vmem:[%s14340_s1 + $0x1a68] ss:$16 sps:$4 sm:$0xff]   ;;  %v10585_v26 = vld [vmem:[%s14340_s1 + $0x184c] ss:$16 sps:$4 sm:$0xff]  }
 0x369   :  { %7551 = vmatprep.subr.bf16.mxu1 %v10522_v6  ;;  %v10588_v6 = vld [vmem:[%s14340_s1 + $0x1a4c] ss:$16 sps:$4 sm:$0xff]  }
 0x36b   :  { %7511 = vmatpush2.bf16.msra.mxu0 %v10517_v56  ;;  %v10583_v56 = vld [vmem:[%s14340_s1 + $0x1848] ss:$16 sps:$4 sm:$0xff]  }
 0x36c   :  { %7552 = vmatpush2.bf16.msra.mxu1 %v10520_v27  ;;  %7512 = vmatprep.subr.bf16.mxu0 %v10525_v54  ;;  %v10586_v27 = vld [vmem:[%s14340_s1 + $0x1a48] ss:$16 sps:$4 sm:$0xff]   ;;  %v10591_v54 = vld [vmem:[%s14340_s1 + $0x182c] ss:$16 sps:$4 sm:$0xff]  }
 0x36d   :  { %7553 = vmatprep.subr.bf16.mxu1 %v10528_v59  ;;  %v10594_v59 = vld [vmem:[%s14340_s1 + $0x1a2c] ss:$16 sps:$4 sm:$0xff]  }
 0x36f   :  { %7513 = vmatpush2.bf16.msra.mxu0 %v10523_v16  ;;  %v10589_v16 = vld [vmem:[%s14340_s1 + $0x1828] ss:$16 sps:$4 sm:$0xff]  }
 0x370   :  { %7554 = vmatpush2.bf16.msra.mxu1 %v10526_v21  ;;  %7514 = vmatprep.subr.bf16.mxu0 %v10531_v53  ;;  %v10592_v21 = vld [vmem:[%s14340_s1 + $0x1a28] ss:$16 sps:$4 sm:$0xff]   ;;  %v10597_v53 = vld [vmem:[%s14340_s1 + $0x180c] ss:$16 sps:$4 sm:$0xff]  }
 0x371   :  { %7555 = vmatprep.subr.bf16.mxu1 %v10534_v49  ;;  %v10600_v49 = vld [vmem:[%s14340_s1 + $0x1a0c] ss:$16 sps:$4 sm:$0xff]  }
 0x373   :  { %7515 = vmatpush2.bf16.msra.mxu0 %v10529_v17  ;;  %v10595_v17 = vld [vmem:[%s14340_s1 + $0x1808] ss:$16 sps:$4 sm:$0xff]  }
 0x374   :  { %7556 = vmatpush2.bf16.msra.mxu1 %v10532_v55  ;;  %7516 = vmatprep.subr.bf16.mxu0 %v10537_v41  ;;  %v10598_v55 = vld [vmem:[%s14340_s1 + $0x1a08] ss:$16 sps:$4 sm:$0xff]   ;;  %v10603_v41 = vld [vmem:[%s14340_s1 + $0x19ec] ss:$16 sps:$4 sm:$0xff]  }
 0x375   :  { %7557 = vmatprep.subr.bf16.mxu1 %v10540_v12  ;;  %v10606_v12 = vld [vmem:[%s14340_s1 + $0x1bec] ss:$16 sps:$4 sm:$0xff]  }
 0x377   :  { %7517 = vmatpush2.bf16.msra.mxu0 %v10535_v25  ;;  %v10601_v25 = vld [vmem:[%s14340_s1 + $0x19e8] ss:$16 sps:$4 sm:$0xff]  }
 0x378   :  { %7558 = vmatpush2.bf16.msra.mxu1 %v10538_v43  ;;  %7518 = vmatprep.subr.bf16.mxu0 %v10543_v23  ;;  %v10604_v43 = vld [vmem:[%s14340_s1 + $0x1be8] ss:$16 sps:$4 sm:$0xff]   ;;  %v10609_v23 = vld [vmem:[%s14340_s1 + $0x19cc] ss:$16 sps:$4 sm:$0xff]  }
 0x379   :  { %7559 = vmatprep.subr.bf16.mxu1 %v10546_v36  ;;  %v10612_v36 = vld [vmem:[%s14340_s1 + $0x1bcc] ss:$16 sps:$4 sm:$0xff]  }
 0x37b   :  { %7519 = vmatpush2.bf16.msra.mxu0 %v10541_v2  ;;  %v10607_v2 = vld [vmem:[%s14340_s1 + $0x19c8] ss:$16 sps:$4 sm:$0xff]  }
 0x37c   :  { %7560 = vmatpush2.bf16.msra.mxu1 %v10544_v63  ;;  %7520 = vmatprep.subr.bf16.mxu0 %v10549_v37  ;;  %v10610_v63 = vld [vmem:[%s14340_s1 + $0x1bc8] ss:$16 sps:$4 sm:$0xff]   ;;  %v10615_v37 = vld [vmem:[%s14340_s1 + $0x19ac] ss:$16 sps:$4 sm:$0xff]  }
 0x37d   :  { %7561 = vmatprep.subr.bf16.mxu1 %v10552_v29  ;;  %v10618_v29 = vld [vmem:[%s14340_s1 + $0x1bac] ss:$16 sps:$4 sm:$0xff]  }
 0x37f   :  { %7521 = vmatpush2.bf16.msra.mxu0 %v10547_v24  ;;  %v10613_v24 = vld [vmem:[%s14340_s1 + $0x19a8] ss:$16 sps:$4 sm:$0xff]  }
 0x380   :  { %7562 = vmatpush2.bf16.msra.mxu1 %v10550_v33  ;;  %7572 = vmatprep.subr.bf16.mxu0 %v10555_v38  ;;  %v10616_v33 = vld [vmem:[%s14340_s1 + $0x1ba8] ss:$16 sps:$4 sm:$0xff]   ;;  %v10621_v38 = vld [vmem:[%s14340_s1 + $0x198c] ss:$16 sps:$4 sm:$0xff]  }
 0x381   :  { %7613 = vmatprep.subr.bf16.mxu1 %v10558_v42  ;;  %v10624_v42 = vld [vmem:[%s14340_s1 + $0x1b8c] ss:$16 sps:$4 sm:$0xff]  }
 0x382   :  { %v7278_v51 = vpop.f32.mrf.mxu0  ;;  %7523 = vmatmul.mubr.bf16.vlgmr.msra.gmra.mxu0 %v12159_v4  ;;  %v10567_v4 = vld [vmem:[%s14340_s1 + $0x18ac] ss:$16 sps:$4 sm:$0xff]  }
 0x383   :  { %v7319_v52 = vpop.f32.mrf.mxu1  ;;  %7564 = vmatmul.mubr.bf16.vlgmr.msra.gmra.mxu1 %v12184_v34  ;;  %v7279_v9 = vadd.f32 %v7278_v51, %v13658_v61  ;;  %7573 = vmatpush1.bf16.msra.mxu0 %v10553_v32  ;;  %v10570_v34 = vld [vmem:[%s14340_s1 + $0x1aac] ss:$16 sps:$4 sm:$0xff]   ;;  %v10619_v32 = vld [vmem:[%s14340_s1 + $0x1988] ss:$16 sps:$4 sm:$0xff]  }
 0x384   :  { %7614 = vmatpush1.bf16.msra.mxu1 %v10556_v44  ;;  %v7280_v15 = vpop.f32.mrf.mxu0  ;;  %7574 = vmatprep.subr.bf16.mxu0 %v10561_v47  ;;  %v10622_v44 = vld [vmem:[%s14340_s1 + $0x1b88] ss:$16 sps:$4 sm:$0xff]   ;;  %v10627_v47 = vld [vmem:[%s14340_s1 + $0x196c] ss:$16 sps:$4 sm:$0xff]  }
 0x385   :  { %v7321_v39 = vpop.f32.mrf.mxu1  ;;  %7615 = vmatprep.subr.bf16.mxu1 %v10564_v48  ;;  %v13860_v61 = vadd.f32 %v7319_v52, %v7279_v9  ;;  %v7281_v62 = vadd.f32 %v7280_v15, %v13663_v5  ;;  %7604 = vmatprep.mubr.bf16.mxu0 %v12180_v30  ;;  %v10573_v30 = vld [vmem:[%s14340_s1 + $0x188c] ss:$16 sps:$4 sm:$0xff]   ;;  %v10625_v51 = vld [vmem:[%s14340_s1 + $0x1968] ss:$16 sps:$4 sm:$0xff]  }
 0x386   :  { %7645 = vmatprep.mubr.bf16.mxu1 %v12200_v40  ;;  %v7282_v3 = vpop.f32.mrf.mxu0  ;;  %v10576_v40 = vld [vmem:[%s14340_s1 + $0x1a8c] ss:$16 sps:$4 sm:$0xff]   ;;  %v10628_v52 = vld [vmem:[%s14340_s1 + $0x1b68] ss:$16 sps:$4 sm:$0xff]  }
 0x387   :  { %v7323_v7 = vpop.f32.mrf.mxu1  ;;  %v13865_v8 = vadd.f32 %v7321_v39, %v7281_v62  ;;  %7575 = vmatpush1.bf16.msra.mxu0 %v10559_v57  ;;  %v10630_v48 = vld [vmem:[%s14340_s1 + $0x1b6c] ss:$16 sps:$4 sm:$0xff]   ;;  %v10634_v15 = vld [vmem:[%s14340_s1 + $0x1b48] ss:$16 sps:$4 sm:$0xff]  }
 0x388   :  { %7616 = vmatpush1.bf16.msra.mxu1 %v10562_v20  ;;  %v7283_v50 = vpop.f32.mrf.mxu0  ;;  %7576 = vmatprep.subr.bf16.mxu0 %v10567_v4  ;;  %v10633_v9 = vld [vmem:[%s14340_s1 + $0x194c] ss:$16 sps:$4 sm:$0xff]   ;;  %v10631_v20 = vld [vmem:[%s14340_s1 + $0x1948] ss:$16 sps:$4 sm:$0xff]  }
 0x389   :  { %v7324_v5 = vpop.f32.mrf.mxu1  ;;  %7617 = vmatprep.subr.bf16.mxu1 %v10570_v34  ;;  %v10636_v57 = vld [vmem:[%s14340_s1 + $0x1b4c] ss:$16 sps:$4 sm:$0xff]   ;;  %v10637_v34 = vld [vmem:[%s14340_s1 + $0x1928] ss:$16 sps:$4 sm:$0xff]  }
 0x38a   :  { %v10639_v39 = vld [vmem:[%s14340_s1 + $0x192c] ss:$16 sps:$4 sm:$0xff]   ;;  %v10640_v62 = vld [vmem:[%s14340_s1 + $0x1b28] ss:$16 sps:$4 sm:$0xff]  }
 0x38b   :  { %7577 = vmatpush1.bf16.msra.mxu0 %v10565_v60  ;;  %v10642_v4 = vld [vmem:[%s14340_s1 + $0x1b2c] ss:$16 sps:$4 sm:$0xff]   ;;  %v10643_v60 = vld [vmem:[%s14340_s1 + $0x1908] ss:$16 sps:$4 sm:$0xff]  }
 0x38c   :  { %7618 = vmatpush1.bf16.msra.mxu1 %v10568_v0  ;;  %7578 = vmatprep.subr.bf16.mxu0 %v10573_v30  ;;  %v10645_v3 = vld [vmem:[%s14340_s1 + $0x190c] ss:$16 sps:$4 sm:$0xff]   ;;  %v10646_v0 = vld [vmem:[%s14340_s1 + $0x1b08] ss:$16 sps:$4 sm:$0xff]  }
 0x38d   :  { %7619 = vmatprep.subr.bf16.mxu1 %v10576_v40  ;;  %v10648_v7 = vld [vmem:[%s14340_s1 + $0x1b0c] ss:$16 sps:$4 sm:$0xff]   ;;  %v10649_v30 = vld [vmem:[%s14340_s1 + $0x1ce8] ss:$16 sps:$4 sm:$0xff]  }
 0x38e   :  { %v10651_v50 = vld [vmem:[%s14340_s1 + $0x1cec] ss:$16 sps:$4 sm:$0xff]   ;;  %v10652_v40 = vld [vmem:[%s14340_s1 + $0x1ee8] ss:$16 sps:$4 sm:$0xff]  }
 0x38f   :  { %7579 = vmatpush1.bf16.msra.mxu0 %v10571_v22  ;;  %v10654_v5 = vld [vmem:[%s14340_s1 + $0x1eec] ss:$16 sps:$4 sm:$0xff]  }
 0x390   :  { %7620 = vmatpush1.bf16.msra.mxu1 %v10574_v31  ;;  %7580 = vmatprep.subr.bf16.mxu0 %v10579_v35  ;;  %v10657_v22 = vld [vmem:[%s14340_s1 + $0x1ccc] ss:$16 sps:$4 sm:$0xff]  }
 0x391   :  { %7621 = vmatprep.subr.bf16.mxu1 %v10582_v10  ;;  %v10660_v31 = vld [vmem:[%s14340_s1 + $0x1ecc] ss:$16 sps:$4 sm:$0xff]  }
 0x393   :  { %7581 = vmatpush1.bf16.msra.mxu0 %v10577_v11 }
 0x394   :  { %7622 = vmatpush1.bf16.msra.mxu1 %v10580_v13  ;;  %7582 = vmatprep.subr.bf16.mxu0 %v10585_v26  ;;  %v10655_v13 = vld [vmem:[%s14340_s1 + $0x1cc8] ss:$16 sps:$4 sm:$0xff]  }
 0x395   :  { %7623 = vmatprep.subr.bf16.mxu1 %v10588_v6  ;;  %v10658_v26 = vld [vmem:[%s14340_s1 + $0x1ec8] ss:$16 sps:$4 sm:$0xff]  }
 0x397   :  { %7583 = vmatpush1.bf16.msra.mxu0 %v10583_v56 }
 0x398   :  { %7624 = vmatpush1.bf16.msra.mxu1 %v10586_v27  ;;  %7584 = vmatprep.subr.bf16.mxu0 %v10591_v54 }
 0x399   :  { %7625 = vmatprep.subr.bf16.mxu1 %v10594_v59 }
 0x39b   :  { %7585 = vmatpush1.bf16.msra.mxu0 %v10589_v16 }
 0x39c   :  { %7626 = vmatpush1.bf16.msra.mxu1 %v10592_v21  ;;  %7586 = vmatprep.subr.bf16.mxu0 %v10597_v53  ;;  %v10661_v21 = vld [vmem:[%s14340_s1 + $0x1ca8] ss:$16 sps:$4 sm:$0xff]  }
 0x39d   :  { %7627 = vmatprep.subr.bf16.mxu1 %v10600_v49  ;;  %v10664_v53 = vld [vmem:[%s14340_s1 + $0x1ea8] ss:$16 sps:$4 sm:$0xff]  }
 0x39f   :  { %7587 = vmatpush1.bf16.msra.mxu0 %v10595_v17  ;;  %v10667_v17 = vld [vmem:[%s14340_s1 + $0x1c88] ss:$16 sps:$4 sm:$0xff]  }
 0x3a0   :  { %7628 = vmatpush1.bf16.msra.mxu1 %v10598_v55  ;;  %7588 = vmatprep.subr.bf16.mxu0 %v10603_v41  ;;  %v10670_v55 = vld [vmem:[%s14340_s1 + $0x1e88] ss:$16 sps:$4 sm:$0xff]   ;;  %v10675_v41 = vld [vmem:[%s14340_s1 + $0x1c6c] ss:$16 sps:$4 sm:$0xff]  }
 0x3a1   :  { %7629 = vmatprep.subr.bf16.mxu1 %v10606_v12  ;;  %v10678_v12 = vld [vmem:[%s14340_s1 + $0x1e6c] ss:$16 sps:$4 sm:$0xff]  }
 0x3a3   :  { %7589 = vmatpush2.bf16.msra.mxu0 %v10601_v25  ;;  %v10673_v25 = vld [vmem:[%s14340_s1 + $0x1c68] ss:$16 sps:$4 sm:$0xff]  }
 0x3a4   :  { %7630 = vmatpush2.bf16.msra.mxu1 %v10604_v43  ;;  %7590 = vmatprep.subr.bf16.mxu0 %v10609_v23  ;;  %v10676_v43 = vld [vmem:[%s14340_s1 + $0x1e68] ss:$16 sps:$4 sm:$0xff]   ;;  %v10681_v23 = vld [vmem:[%s14340_s1 + $0x1c4c] ss:$16 sps:$4 sm:$0xff]  }
 0x3a5   :  { %7631 = vmatprep.subr.bf16.mxu1 %v10612_v36  ;;  %v10684_v36 = vld [vmem:[%s14340_s1 + $0x1e4c] ss:$16 sps:$4 sm:$0xff]  }
 0x3a7   :  { %7591 = vmatpush2.bf16.msra.mxu0 %v10607_v2  ;;  %v10679_v2 = vld [vmem:[%s14340_s1 + $0x1c48] ss:$16 sps:$4 sm:$0xff]  }
 0x3a8   :  { %7632 = vmatpush2.bf16.msra.mxu1 %v10610_v63  ;;  %7592 = vmatprep.subr.bf16.mxu0 %v10615_v37  ;;  %v10682_v63 = vld [vmem:[%s14340_s1 + $0x1e48] ss:$16 sps:$4 sm:$0xff]   ;;  %v10687_v37 = vld [vmem:[%s14340_s1 + $0x1c2c] ss:$16 sps:$4 sm:$0xff]  }
 0x3a9   :  { %7633 = vmatprep.subr.bf16.mxu1 %v10618_v29  ;;  %v10690_v29 = vld [vmem:[%s14340_s1 + $0x1e2c] ss:$16 sps:$4 sm:$0xff]  }
 0x3ab   :  { %7593 = vmatpush2.bf16.msra.mxu0 %v10613_v24  ;;  %v10685_v24 = vld [vmem:[%s14340_s1 + $0x1c28] ss:$16 sps:$4 sm:$0xff]  }
 0x3ac   :  { %7634 = vmatpush2.bf16.msra.mxu1 %v10616_v33  ;;  %7594 = vmatprep.subr.bf16.mxu0 %v10621_v38  ;;  %v10688_v33 = vld [vmem:[%s14340_s1 + $0x1e28] ss:$16 sps:$4 sm:$0xff]   ;;  %v10693_v38 = vld [vmem:[%s14340_s1 + $0x1c0c] ss:$16 sps:$4 sm:$0xff]  }
 0x3ad   :  { %7635 = vmatprep.subr.bf16.mxu1 %v10624_v42  ;;  %v10696_v42 = vld [vmem:[%s14340_s1 + $0x1e0c] ss:$16 sps:$4 sm:$0xff]  }
 0x3af   :  { %7595 = vmatpush2.bf16.msra.mxu0 %v10619_v32  ;;  %v10691_v32 = vld [vmem:[%s14340_s1 + $0x1c08] ss:$16 sps:$4 sm:$0xff]  }
 0x3b0   :  { %7636 = vmatpush2.bf16.msra.mxu1 %v10622_v44  ;;  %7596 = vmatprep.subr.bf16.mxu0 %v10627_v47  ;;  %v10694_v44 = vld [vmem:[%s14340_s1 + $0x1e08] ss:$16 sps:$4 sm:$0xff]   ;;  %v10699_v47 = vld [vmem:[%s14340_s1 + $0x1dec] ss:$16 sps:$4 sm:$0xff]  }
 0x3b1   :  { %7637 = vmatprep.subr.bf16.mxu1 %v10630_v48  ;;  %v10702_v48 = vld [vmem:[%s14340_s1 + $0x1fec] ss:$16 sps:$4 sm:$0xff]  }
 0x3b3   :  { %7597 = vmatpush2.bf16.msra.mxu0 %v10625_v51  ;;  %v10697_v51 = vld [vmem:[%s14340_s1 + $0x1de8] ss:$16 sps:$4 sm:$0xff]  }
 0x3b4   :  { %7638 = vmatpush2.bf16.msra.mxu1 %v10628_v52  ;;  %7598 = vmatprep.subr.bf16.mxu0 %v10633_v9  ;;  %v10700_v52 = vld [vmem:[%s14340_s1 + $0x1fe8] ss:$16 sps:$4 sm:$0xff]   ;;  %v10705_v9 = vld [vmem:[%s14340_s1 + $0x1dcc] ss:$16 sps:$4 sm:$0xff]  }
 0x3b5   :  { %7639 = vmatprep.subr.bf16.mxu1 %v10636_v57  ;;  %v10708_v57 = vld [vmem:[%s14340_s1 + $0x1fcc] ss:$16 sps:$4 sm:$0xff]  }
 0x3b7   :  { %7599 = vmatpush2.bf16.msra.mxu0 %v10631_v20  ;;  %v10703_v20 = vld [vmem:[%s14340_s1 + $0x1dc8] ss:$16 sps:$4 sm:$0xff]  }
 0x3b8   :  { %7640 = vmatpush2.bf16.msra.mxu1 %v10634_v15  ;;  %7600 = vmatprep.subr.bf16.mxu0 %v10639_v39  ;;  %v10706_v15 = vld [vmem:[%s14340_s1 + $0x1fc8] ss:$16 sps:$4 sm:$0xff]   ;;  %v10711_v39 = vld [vmem:[%s14340_s1 + $0x1dac] ss:$16 sps:$4 sm:$0xff]  }
 0x3b9   :  { %7641 = vmatprep.subr.bf16.mxu1 %v10642_v4  ;;  %v10714_v4 = vld [vmem:[%s14340_s1 + $0x1fac] ss:$16 sps:$4 sm:$0xff]  }
 0x3bb   :  { %7601 = vmatpush2.bf16.msra.mxu0 %v10637_v34  ;;  %v10709_v34 = vld [vmem:[%s14340_s1 + $0x1da8] ss:$16 sps:$4 sm:$0xff]  }
 0x3bc   :  { %7642 = vmatpush2.bf16.msra.mxu1 %v10640_v62  ;;  %7602 = vmatprep.subr.bf16.mxu0 %v10645_v3  ;;  %v10712_v62 = vld [vmem:[%s14340_s1 + $0x1fa8] ss:$16 sps:$4 sm:$0xff]   ;;  %v10717_v3 = vld [vmem:[%s14340_s1 + $0x1d8c] ss:$16 sps:$4 sm:$0xff]  }
 0x3bd   :  { %7643 = vmatprep.subr.bf16.mxu1 %v10648_v7  ;;  %v10720_v7 = vld [vmem:[%s14340_s1 + $0x1f8c] ss:$16 sps:$4 sm:$0xff]  }
 0x3bf   :  { %7603 = vmatpush2.bf16.msra.mxu0 %v10643_v60  ;;  %v10715_v60 = vld [vmem:[%s14340_s1 + $0x1d88] ss:$16 sps:$4 sm:$0xff]  }
 0x3c0   :  { %7644 = vmatpush2.bf16.msra.mxu1 %v10646_v0  ;;  %7654 = vmatprep.subr.bf16.mxu0 %v10651_v50  ;;  %v10718_v0 = vld [vmem:[%s14340_s1 + $0x1f88] ss:$16 sps:$4 sm:$0xff]   ;;  %v10723_v50 = vld [vmem:[%s14340_s1 + $0x1d6c] ss:$16 sps:$4 sm:$0xff]  }
 0x3c1   :  { %7695 = vmatprep.subr.bf16.mxu1 %v10654_v5  ;;  %v10726_v5 = vld [vmem:[%s14340_s1 + $0x1f6c] ss:$16 sps:$4 sm:$0xff]  }
 0x3c2   :  { %v7360_v35 = vpop.f32.mrf.mxu0  ;;  %7605 = vmatmul.mubr.bf16.vlgmr.msra.gmra.mxu0 %v12383_v46  ;;  %v10663_v46 = vld [vmem:[%s14340_s1 + $0x1cac] ss:$16 sps:$4 sm:$0xff]  }
 0x3c3   :  { %v7401_v10 = vpop.f32.mrf.mxu1  ;;  %7646 = vmatmul.mubr.bf16.vlgmr.msra.gmra.mxu1 %v12408_v58  ;;  %v7361_v11 = vadd.f32 %v7360_v35, %v13860_v61  ;;  %7655 = vmatpush1.bf16.msra.mxu0 %v10649_v30  ;;  %v10666_v58 = vld [vmem:[%s14340_s1 + $0x1eac] ss:$16 sps:$4 sm:$0xff]   ;;  %v10721_v30 = vld [vmem:[%s14340_s1 + $0x1d68] ss:$16 sps:$4 sm:$0xff]  }
 0x3c4   :  { %7696 = vmatpush1.bf16.msra.mxu1 %v10652_v40  ;;  %v7362_v6 = vpop.f32.mrf.mxu0  ;;  %7656 = vmatprep.subr.bf16.mxu0 %v10657_v22  ;;  %v10724_v40 = vld [vmem:[%s14340_s1 + $0x1f68] ss:$16 sps:$4 sm:$0xff]   ;;  %v10729_v22 = vld [vmem:[%s14340_s1 + $0x1d4c] ss:$16 sps:$4 sm:$0xff]  }
 0x3c5   :  { %v7403_v56 = vpop.f32.mrf.mxu1  ;;  %7697 = vmatprep.subr.bf16.mxu1 %v10660_v31  ;;  %v14062_v61 = vadd.f32 %v7401_v10, %v7361_v11  ;;  %v7363_v27 = vadd.f32 %v7362_v6, %v13865_v8  ;;  %7686 = vmatprep.mubr.bf16.mxu0 %v12404_v45  ;;  %v10669_v45 = vld [vmem:[%s14340_s1 + $0x1c8c] ss:$16 sps:$4 sm:$0xff]   ;;  %v10727_v35 = vld [vmem:[%s14340_s1 + $0x1d48] ss:$16 sps:$4 sm:$0xff]  }
 0x3c6   :  { %7727 = vmatprep.mubr.bf16.mxu1 %v12424_v1  ;;  %v7364_v54 = vpop.f32.mrf.mxu0  ;;  %v10672_v1 = vld [vmem:[%s14340_s1 + $0x1e8c] ss:$16 sps:$4 sm:$0xff]   ;;  %v10730_v10 = vld [vmem:[%s14340_s1 + $0x1f48] ss:$16 sps:$4 sm:$0xff]  }
 0x3c7   :  { %v7405_v59 = vpop.f32.mrf.mxu1  ;;  %v14067_v16 = vadd.f32 %v7403_v56, %v7363_v27  ;;  %7657 = vmatpush1.bf16.msra.mxu0 %v10655_v13  ;;  %v10732_v31 = vld [vmem:[%s14340_s1 + $0x1f4c] ss:$16 sps:$4 sm:$0xff]   ;;  %v10736_v6 = vld [vmem:[%s14340_s1 + $0x1f28] ss:$16 sps:$4 sm:$0xff]  }
 0x3c8   :  { %7698 = vmatpush1.bf16.msra.mxu1 %v10658_v26  ;;  %v7365_v49 = vpop.f32.mrf.mxu0  ;;  %7658 = vmatprep.subr.bf16.mxu0 %v10663_v46  ;;  %v10735_v11 = vld [vmem:[%s14340_s1 + $0x1d2c] ss:$16 sps:$4 sm:$0xff]   ;;  %v10733_v26 = vld [vmem:[%s14340_s1 + $0x1d28] ss:$16 sps:$4 sm:$0xff]   ;;  %v7737_v59 = vmax.f32 %v13256_v18, 0.0 }
 0x3c9   :  { %v7406_v8 = vpop.f32.mrf.mxu1  ;;  %7699 = vmatprep.subr.bf16.mxu1 %v10666_v58  ;;  %v10738_v13 = vld [vmem:[%s14340_s1 + $0x1f2c] ss:$16 sps:$4 sm:$0xff]   ;;  %v10739_v58 = vld [vmem:[%s14340_s1 + $0x1d08] ss:$16 sps:$4 sm:$0xff]  }
 0x3ca   :  { %v10741_v56 = vld [vmem:[%s14340_s1 + $0x1d0c] ss:$16 sps:$4 sm:$0xff]   ;;  %v10742_v27 = vld [vmem:[%s14340_s1 + $0x1f08] ss:$16 sps:$4 sm:$0xff]   ;;  %v7741_v49 = vpack.c.bf16 %v7737_v59, %v7737_v59 }
 0x3cb   :  { %7659 = vmatpush1.bf16.msra.mxu0 %v10661_v21  ;;  %v10744_v46 = vld [vmem:[%s14340_s1 + $0x1f0c] ss:$16 sps:$4 sm:$0xff]  }
 0x3cc   :  { %7700 = vmatpush1.bf16.msra.mxu1 %v10664_v53  ;;  %7660 = vmatprep.subr.bf16.mxu0 %v10669_v45  ;;  %v10745_v54 = vld [vmem:[%s14342_s3 + $0x78] sm:$0xff]   ;;  %v10747_v53 = vld [vmem:[%s14342_s3 + $0x70] sm:$0xff]  }
 0x3cd   :  { %7701 = vmatprep.subr.bf16.mxu1 %v10672_v1  ;;  %v10746_v21 = vld [vmem:[%s14342_s3 + $0x38] sm:$0xff]   ;;  %v10748_v1 = vld [vmem:[%s14342_s3 + $0x30] sm:$0xff]  }
 0x3cf   :  { %7661 = vmatpush1.bf16.msra.mxu0 %v10667_v17 }
 0x3d0   :  { %7702 = vmatpush1.bf16.msra.mxu1 %v10670_v55  ;;  %7662 = vmatprep.subr.bf16.mxu0 %v10675_v41  ;;  %v10749_v41 = vld [vmem:[%s14342_s3 + $0x68] sm:$0xff]  }
 0x3d1   :  { %7703 = vmatprep.subr.bf16.mxu1 %v10678_v12 }
 0x3d3   :  { %7663 = vmatpush1.bf16.msra.mxu0 %v10673_v25 }
 0x3d4   :  { %7704 = vmatpush1.bf16.msra.mxu1 %v10676_v43  ;;  %7664 = vmatprep.subr.bf16.mxu0 %v10681_v23  ;;  %v10751_v23 = vld [vmem:[%s14342_s3 + $0x60] sm:$0xff]  }
 0x3d5   :  { %7705 = vmatprep.subr.bf16.mxu1 %v10684_v36 }
 0x3d7   :  { %7665 = vmatpush1.bf16.msra.mxu0 %v10679_v2 }
 0x3d8   :  { %7706 = vmatpush1.bf16.msra.mxu1 %v10682_v63  ;;  %7666 = vmatprep.subr.bf16.mxu0 %v10687_v37  ;;  %v10761_v63 = vld [vmem:[%s14342_s3 + $0xf8] sm:$0xff]   ;;  %v10763_v37 = vld [vmem:[%s14342_s3 + $0xf0] sm:$0xff]  }
 0x3d9   :  { %7707 = vmatprep.subr.bf16.mxu1 %v10690_v29  ;;  %v10752_v29 = vld [vmem:[%s14342_s3 + $0x20] sm:$0xff]  }
 0x3db   :  { %7667 = vmatpush1.bf16.msra.mxu0 %v10685_v24  ;;  %v10764_v24 = vld [vmem:[%s14342_s3 + $0xb0] sm:$0xff]  }
 0x3dc   :  { %7708 = vmatpush1.bf16.msra.mxu1 %v10688_v33  ;;  %7668 = vmatprep.subr.bf16.mxu0 %v10693_v38  ;;  %v10753_v33 = vld [vmem:[%s14342_s3 + $0x58] sm:$0xff]   ;;  %v10765_v38 = vld [vmem:[%s14342_s3 + $0xe8] sm:$0xff]  }
 0x3dd   :  { %7709 = vmatprep.subr.bf16.mxu1 %v10696_v42  ;;  %v10754_v42 = vld [vmem:[%s14342_s3 + $0x18] sm:$0xff]  }
 0x3df   :  { %7669 = vmatpush1.bf16.msra.mxu0 %v10691_v32  ;;  %v10766_v32 = vld [vmem:[%s14342_s3 + $0xa8] sm:$0xff]  }
 0x3e0   :  { %7710 = vmatpush1.bf16.msra.mxu1 %v10694_v44  ;;  %7670 = vmatprep.subr.bf16.mxu0 %v10699_v47  ;;  %v10755_v44 = vld [vmem:[%s14342_s3 + $0x50] sm:$0xff]   ;;  %v10767_v47 = vld [vmem:[%s14342_s3 + $0xe0] sm:$0xff]  }
 0x3e1   :  { %7711 = vmatprep.subr.bf16.mxu1 %v10702_v48  ;;  %v10756_v48 = vld [vmem:[%s14342_s3 + $0x10] sm:$0xff]  }
 0x3e3   :  { %7671 = vmatpush2.bf16.msra.mxu0 %v10697_v51  ;;  %v10768_v51 = vld [vmem:[%s14342_s3 + $0xa0] sm:$0xff]  }
 0x3e4   :  { %7712 = vmatpush2.bf16.msra.mxu1 %v10700_v52  ;;  %7672 = vmatprep.subr.bf16.mxu0 %v10705_v9  ;;  %v10757_v52 = vld [vmem:[%s14342_s3 + $0x48] sm:$0xff]   ;;  %v10769_v9 = vld [vmem:[%s14342_s3 + $0xd8] sm:$0xff]  }
 0x3e5   :  { %7713 = vmatprep.subr.bf16.mxu1 %v10708_v57  ;;  %v10758_v57 = vld [vmem:[%s14342_s3 + $0x8] sm:$0xff]  }
 0x3e7   :  { %7673 = vmatpush2.bf16.msra.mxu0 %v10703_v20  ;;  %v10770_v20 = vld [vmem:[%s14342_s3 + $0x98] sm:$0xff]  }
 0x3e8   :  { %7714 = vmatpush2.bf16.msra.mxu1 %v10706_v15  ;;  %7674 = vmatprep.subr.bf16.mxu0 %v10711_v39  ;;  %v10759_v15 = vld [vmem:[%s14342_s3 + $0x40] sm:$0xff]  }
 0x3e9   :  { %7715 = vmatprep.subr.bf16.mxu1 %v10714_v4  ;;  %v10760_v39 = vld [vmem:[%s14342_s3] sm:$0xff]   ;;  %v7736_v4 = vmax.f32 %v13251_v14, 0.0  ;;  %v10773_v14 = vld [vmem:[%s14342_s3 + $0xc8] sm:$0xff]  }
 0x3eb   :  { %7675 = vmatpush2.bf16.msra.mxu0 %v10709_v34  ;;  %v7740_v34 = vpack.c.bf16 %v7736_v4, %v7736_v4 }
 0x3ec   :  { %7716 = vmatpush2.bf16.msra.mxu1 %v10712_v62  ;;  %7676 = vmatprep.subr.bf16.mxu0 %v10717_v3  ;;  %v10771_v62 = vld [vmem:[%s14342_s3 + $0xd0] sm:$0xff]  }
 0x3ed   :  { %7717 = vmatprep.subr.bf16.mxu1 %v10720_v7  ;;  %v10772_v3 = vld [vmem:[%s14342_s3 + $0x90] sm:$0xff]  }
 0x3ef   :  { %7677 = vmatpush2.bf16.msra.mxu0 %v10715_v60 }
 0x3f0   :  { %7718 = vmatpush2.bf16.msra.mxu1 %v10718_v0  ;;  %7678 = vmatprep.subr.bf16.mxu0 %v10723_v50 }
 0x3f1   :  { %7719 = vmatprep.subr.bf16.mxu1 %v10726_v5 }
 0x3f3   :  { %7679 = vmatpush2.bf16.msra.mxu0 %v10721_v30 }
 0x3f4   :  { %7720 = vmatpush2.bf16.msra.mxu1 %v10724_v40  ;;  %7680 = vmatprep.subr.bf16.mxu0 %v10729_v22  ;;  %v10774_v22 = vld [vmem:[%s14342_s3 + $0x88] sm:$0xff]  }
 0x3f5   :  { %7721 = vmatprep.subr.bf16.mxu1 %v10732_v31 }
 0x3f7   :  { %7681 = vmatpush2.bf16.msra.mxu0 %v10727_v35 }
 0x3f8   :  { %7722 = vmatpush2.bf16.msra.mxu1 %v10730_v10  ;;  %7682 = vmatprep.subr.bf16.mxu0 %v10735_v11 }
 0x3f9   :  { %7723 = vmatprep.subr.bf16.mxu1 %v10738_v13 }
 0x3fb   :  { %7683 = vmatpush2.bf16.msra.mxu0 %v10733_v26  ;;  %v10775_v26 = vld [vmem:[%s14342_s3 + $0xc0] sm:$0xff]  }
 0x3fc   :  { %7724 = vmatpush2.bf16.msra.mxu1 %v10736_v6  ;;  %7684 = vmatprep.subr.bf16.mxu0 %v10741_v56  ;;  %v10776_v6 = vld [vmem:[%s14342_s3 + $0x80] sm:$0xff]  }
 0x3fd   :  { %7725 = vmatprep.subr.bf16.mxu1 %v10744_v46 }
 0x3ff   :  { %7685 = vmatpush2.bf16.msra.mxu0 %v10739_v58 }
 0x400   :  { %7726 = vmatpush2.bf16.msra.mxu1 %v10742_v27  ;;  %9159 = vmatprep.subr.bf16.mxu0 %v10745_v54 }
 0x401   :  { %9181 = vmatprep.subr.bf16.mxu1 %v10761_v63 }
 0x402   :  { %v7442_v8 = vpop.f32.mrf.mxu0  ;;  %7687 = vmatmul.mubr.bf16.vlgmr.msra.gmra.mxu0 %v12600_v19 }
 0x403   :  { %v7483_v45 = vpop.f32.mrf.mxu1  ;;  %7728 = vmatmul.mubr.bf16.vlgmr.msra.gmra.mxu1 %v12622_v28  ;;  %v7443_v18 = vadd.f32 %v7442_v8, %v14062_v61  ;;  %9160 = vmatpush3.bf16.msra.mxu0 %v10746_v21  ;;  %v10750_v61 = vld [vmem:[%s14342_s3 + $0x28] sm:$0xff]  }
 0x404   :  { %8039 = vmatprep.mubr.bf16.mxu0 %v7741_v49  ;;  %v7444_v17 = vpop.f32.mrf.mxu0  ;;  %9161 = vmatprep.subr.bf16.mxu0 %v10747_v53 }
 0x405   :  { %v7485_v55 = vpop.f32.mrf.mxu1  ;;  %v7484_v12 = vadd.f32 %v7483_v45, %v7443_v18  ;;  %v7445_v19 = vadd.f32 %v7444_v17, %v14067_v16  ;;  %v10762_v16 = vld [vmem:[%s14342_s3 + $0xb8] sm:$0xff]  }
 0x406   :  { %v7446_v25 = vpop.f32.mrf.mxu0  ;;  %9182 = vmatpush3.bf16.msra.mxu1 %v10762_v16 }
 0x407   :  { %v7487_v28 = vpop.f32.mrf.mxu1  ;;  %v7486_v43 = vadd.f32 %v7485_v55, %v7445_v19  ;;  %9162 = vmatpush3.bf16.msra.mxu0 %v10748_v1  ;;  %9183 = vmatprep.subr.bf16.mxu1 %v10763_v37 }
 0x408   :  { %v7447_v36 = vpop.f32.mrf.mxu0  ;;  %9163 = vmatprep.subr.bf16.mxu0 %v10749_v41 }
 0x409   :  { %v7488_v2 = vpop.f32.mrf.mxu1 }
 0x40a   :  { %9184 = vmatpush3.bf16.msra.mxu1 %v10764_v24 }
 0x40b   :  { %9164 = vmatpush3.bf16.msra.mxu0 %v10750_v61  ;;  %9185 = vmatprep.subr.bf16.mxu1 %v10765_v38 }
 0x40c   :  { %9165 = vmatprep.subr.bf16.mxu0 %v10751_v23 }
 0x40e   :  { %9186 = vmatpush3.bf16.msra.mxu1 %v10766_v32  ;;  %v9126_v32 = vld [vmem:[%s14343_s4] ss:$0 sm:$0xff] }
 0x40f   :  { %9166 = vmatpush3.bf16.msra.mxu0 %v10752_v29  ;;  %9187 = vmatprep.subr.bf16.mxu1 %v10767_v47 }
 0x410   :  { %9167 = vmatprep.subr.bf16.mxu0 %v10753_v33 }
 0x412   :  { %9188 = vmatpush3.bf16.msra.mxu1 %v10768_v51 }
 0x413   :  { %9168 = vmatpush3.bf16.msra.mxu0 %v10754_v42  ;;  %9189 = vmatprep.subr.bf16.mxu1 %v10769_v9 }
 0x414   :  { %9169 = vmatprep.subr.bf16.mxu0 %v10755_v44 }
 0x416   :  { %9190 = vmatpush3.bf16.msra.mxu1 %v10770_v20 }
 0x417   :  { %9170 = vmatpush3.bf16.msra.mxu0 %v10756_v48  ;;  %9191 = vmatprep.subr.bf16.mxu1 %v10771_v62 }
 0x418   :  { %9171 = vmatprep.subr.bf16.mxu0 %v10757_v52 }
 0x41a   :  { %9192 = vmatpush3.bf16.msra.mxu1 %v10772_v3 }
 0x41b   :  { %9172 = vmatpush3.bf16.msra.mxu0 %v10758_v57  ;;  %9193 = vmatprep.subr.bf16.mxu1 %v10773_v14 }
 0x41c   :  { %9173 = vmatprep.subr.bf16.mxu0 %v10759_v15 }
 0x41e   :  { %9194 = vmatpush3.bf16.msra.mxu1 %v10774_v22 }
 0x41f   :  { %9174 = vmatpush3.bf16.msra.mxu0 %v10760_v39  ;;  %9195 = vmatprep.subr.bf16.mxu1 %v10775_v26 }
 0x422   :  { %8040 = vmatmul.mubr.bf16.vlgmr.msra.gmra.mxu0 %v7740_v34  ;;  %9196 = vmatpush3.bf16.msra.mxu1 %v10776_v6 }
 0x442   :  { %v7524_v7 = vpop.f32.mrf.mxu0 }
 0x443   :  { %v7565_v60 = vpop.f32.mrf.mxu1  ;;  %v7525_v0 = vadd.f32 %v7524_v7, %v7484_v12 }
 0x444   :  { %v7526_v50 = vpop.f32.mrf.mxu0 }
 0x445   :  { %v7567_v5 = vpop.f32.mrf.mxu1  ;;  %v7566_v30 = vadd.f32 %v7565_v60, %v7525_v0  ;;  %v7527_v40 = vadd.f32 %v7526_v50, %v7486_v43 }
 0x446   :  { %v7528_v31 = vpop.f32.mrf.mxu0 }
 0x447   :  { %v7569_v35 = vpop.f32.mrf.mxu1  ;;  %v7568_v10 = vadd.f32 %v7567_v5, %v7527_v40 }
 0x448   :  { %v7529_v11 = vpop.f32.mrf.mxu0 }
 0x449   :  { %v7570_v13 = vpop.f32.mrf.mxu1 }
 0x482   :  { %v7606_v56 = vpop.f32.mrf.mxu0 }
 0x483   :  { %v7647_v46 = vpop.f32.mrf.mxu1  ;;  %v7607_v58 = vadd.f32 %v7606_v56, %v7566_v30 }
 0x484   :  { %v7608_v27 = vpop.f32.mrf.mxu0 }
 0x485   :  { %v7649_v54 = vpop.f32.mrf.mxu1  ;;  %v7648_v59 = vadd.f32 %v7647_v46, %v7607_v58  ;;  %v7609_v45 = vadd.f32 %v7608_v27, %v7568_v10 }
 0x486   :  { %v7610_v21 = vpop.f32.mrf.mxu0 }
 0x487   :  { %v7651_v53 = vpop.f32.mrf.mxu1  ;;  %v7650_v17 = vadd.f32 %v7649_v54, %v7609_v45 }
 0x488   :  { %v7611_v49 = vpop.f32.mrf.mxu0 }
 0x489   :  { %v7652_v8 = vpop.f32.mrf.mxu1 }
 0x4c2   :  { %v7688_v18 = vpop.f32.mrf.mxu0 }
 0x4c3   :  { %v7729_v1 = vpop.f32.mrf.mxu1  ;;  %v7689_v55 = vadd.f32 %v7688_v18, %v7648_v59 }
 0x4c4   :  { %v7690_v41 = vpop.f32.mrf.mxu0 }
 0x4c5   :  { %v7731_v12 = vpop.f32.mrf.mxu1  ;;  %v7730_v19 = vadd.f32 %v7729_v1, %v7689_v55  ;;  %v7691_v25 = vadd.f32 %v7690_v41, %v7650_v17 }
 0x4c6   :  { %v7692_v28 = vpop.f32.mrf.mxu0 }
 0x4c7   :  { %v7733_v43 = vpop.f32.mrf.mxu1  ;;  %v7732_v61 = vadd.f32 %v7731_v12, %v7691_v25  ;;  %v7738_v23 = vmax.f32 %v7730_v19, 0.0 }
 0x4c8   :  { %v7693_v36 = vpop.f32.mrf.mxu0 }
 0x4c9   :  { %v7734_v2 = vpop.f32.mrf.mxu1  ;;  %v7739_v63 = vmax.f32 %v7732_v61, 0.0  ;;  %v7742_v37 = vpack.c.bf16 %v7738_v23, %v7738_v23 }
 0x4cb   :  { %v7743_v16 = vpack.c.bf16 %v7739_v63, %v7739_v63 }
 0x4cd   :  { %8079 = vmatprep.mubr.bf16.mxu1 %v7743_v16 }
 0x4ce   :  { %8080 = vmatmul.mubr.bf16.vlgmr.msra.gmra.mxu1 %v7742_v37 }
 0x4e2   :  { %v9175_v29 = vpop.f32.mrf.mxu0 }
 0x4e4   :  { %v9176_v24 = vpop.f32.mrf.mxu0 }
 0x4e5   :  { %v9177_v33 = vadd.f32 %v9176_v24, %v9175_v29 }
 0x4e6   :  { %v9178_v38 = vpop.f32.mrf.mxu0 }
 0x4e7   :  { %v8042_v48 = vadd.f32 %v9177_v33, %v9126_v32 }
 0x4e8   :  { %v9179_v42 = vpop.f32.mrf.mxu0 }
 0x58e   :  { %v9197_v44 = vpop.f32.mrf.mxu1 }
 0x590   :  { %v9198_v47 = vpop.f32.mrf.mxu1 }
 0x591   :  { %v9199_v51 = vadd.f32 %v9198_v47, %v9197_v44 }
 0x592   :  { %v9200_v52 = vpop.f32.mrf.mxu1 }
 0x593   :  { %v8082_v9 = vadd.f32 %v9199_v51, %v8042_v48 }
 0x594   :  { %v9201_v57 = vpop.f32.mrf.mxu1 }
 0x595   :  { %8087 = vst [vmem:[#allocation2] sm:$0x3] %v8082_v9 }
 0x596   :  { %10789 = shalt.err (!%p10786_p4)
}
 0x597   :  { %8097 = dma.vmem_to_hbm [thread:$0]  %s8095_s18, 32, %s14344_s5, [#allocation3]  }
 0x598   :  { %10798 = dma.done.wait [#allocation3], 32  }
 0x599   :  { %10799 = vsyncadd [#allocation3], 4294967264 }
 0x59a   :  { %8101 = vsyncpa [#allocation3], 1 }

</bundles_post_ra>
